<compile_context>
chip_gen: v6e
topology: v6e:2x2x1
jax: 0.10.0
libtpu: 0.0.40
codegen_flags: <defaults>
</compile_context>

<pallas_src>
import functools
import math

import jax
import jax.numpy as jnp
import numpy as np
from jax.experimental import pallas as pl
from jax.experimental.pallas import tpu as pltpu

LN_EPS = 1e-5       # nn.LayerNorm default eps
BN_EPS = 1e-5       # nn.BatchNorm1d default eps
LEAKY_SLOPE = 0.2   # nn.LeakyReLU(0.2)


def _round_up(x, m):
    return ((x + m - 1) // m) * m


def _layer_norm_last(x, gamma, beta):
    """Reference helper: LayerNorm over the last axis (activation-major layout)."""
    mu = jnp.mean(x, axis=-1, keepdims=True)
    var = jnp.mean(jnp.square(x - mu), axis=-1, keepdims=True)
    return (x - mu) * jax.lax.rsqrt(var + LN_EPS) * gamma + beta


def _layer_norm_feat(x, gamma, beta):
    """Kernel helper: x is [S, D, bt]; normalize over the feature axis D.

    gamma / beta are [D, 1] and broadcast along lanes (batch) and S.
    """
    mu = jnp.mean(x, axis=1, keepdims=True)
    var = jnp.mean(jnp.square(x - mu), axis=1, keepdims=True)
    return (x - mu) * jax.lax.rsqrt(var + LN_EPS) * gamma + beta


def _ctx_kernel(x_ref, wide_ref,
                wqkv_ref, bqkv_ref, wo_ref, bo_ref,
                ln1_g_ref, ln1_b_ref,
                w1_ref, b1_ref, w2_ref, b2_ref,
                ln2_g_ref, ln2_b_ref,
                wd_ref, bd_ref, ww_ref, bw_ref,
                out_ref,
                *, num_layers, num_heads, mxu_dtype):
    S, D, _ = x_ref.shape
    H = num_heads
    dh = D // H

    def mm(w, a):
        # transposed-weight matmul: [out, in] @ [in, batch_lanes] -> [out, batch_lanes]
        return jnp.dot(w, a, preferred_element_type=jnp.float32)

    x = x_ref[...]                                              # [S, D, bt] f32

    # ----- TransformerEncoder: num_layers x post-norm TransformerEncoderLayer -----
    for l in range(num_layers):
        w_qkv = wqkv_ref[l]                                     # [3D, D] bf16
        b_qkv = bqkv_ref[l]                                     # [3D, 1] f32
        w_o = wo_ref[l]                                         # [D, D]  bf16
        xb = x.astype(mxu_dtype)                                # hoisted cast

        # Fused QKV in-projection: a single [3D, D] weight, applied to each of the
        # S (static, tiny) feature positions.  1/sqrt(dh) is folded into the q rows.
        qkv = [mm(w_qkv, xb[s]) + b_qkv for s in range(S)]      # S x [3D, bt] f32

        # Attention core: batch on lanes -> VPU multiplies + small sublane reduces,
        # zero MXU pushes, lane-dense softmax.
        ctx_heads = []
        for h in range(H):
            q_h = jnp.stack([qkv[s][h * dh:(h + 1) * dh] for s in range(S)], axis=0)
            k_h = jnp.stack([qkv[s][D + h * dh:D + (h + 1) * dh]
                             for s in range(S)], axis=0)
            v_h = jnp.stack([qkv[s][2 * D + h * dh:2 * D + (h + 1) * dh]
                             for s in range(S)], axis=0)        # [S, dh, bt]
            scr = jnp.sum(q_h[:, None, :, :] * k_h[None, :, :, :], axis=2)  # [Sq,Sk,bt]
            m = jnp.max(scr, axis=1, keepdims=True)
            e = jnp.exp(scr - m)
            probs = e * pl.reciprocal(jnp.sum(e, axis=1, keepdims=True), approx=True)
            ctx_heads.append(
                jnp.sum(probs[:, :, None, :] * v_h[None, :, :, :], axis=1))  # [S,dh,bt]
        ctx = jnp.concatenate(ctx_heads, axis=1).astype(mxu_dtype)           # [S, D, bt]

        # Fused output projection (single [D, D] weight, K = D) + residual + LN1
        attn = jnp.stack([mm(w_o, ctx[s]) for s in range(S)], axis=0) + bo_ref[l]
        x = _layer_norm_feat(x + attn, ln1_g_ref[l], ln1_b_ref[l])

        # Feed-forward (ReLU) + residual + LN2
        xb = x.astype(mxu_dtype)
        w1 = w1_ref[l]
        b1 = b1_ref[l]
        w2 = w2_ref[l]
        ff = []
        for s in range(S):
            h1 = jnp.maximum(mm(w1, xb[s]) + b1, 0.0)           # [FF, bt]
            ff.append(mm(w2, h1.astype(mxu_dtype)))             # [D, bt]
        x = _layer_norm_feat(x + jnp.stack(ff, axis=0) + b2_ref[l],
                             ln2_g_ref[l], ln2_b_ref[l])

    # ----- MeanMaxPooling over the feature-sequence axis, then deep dense -----
    mean_p = jnp.mean(x, axis=0).astype(mxu_dtype)              # [D, bt]
    max_p = jnp.max(x, axis=0).astype(mxu_dtype)                # [D, bt]
    deep_out = mm(wd_ref[0], mean_p) + mm(wd_ref[1], max_p) + bd_ref[...]   # [half, bt]

    # ----- wide branch: BN folded into the Linear (wrapper); K=num_wide stays on VPU
    wide = wide_ref[...]                                        # [W, bt] f32
    wide_out = jnp.sum(ww_ref[...] * wide[None, :, :], axis=1) + bw_ref[...]  # [half,bt]
    wide_out = jnp.where(wide_out >= 0.0, wide_out, LEAKY_SLOPE * wide_out)

    # single lane-dense store of the concatenated halves
    out_ref[...] = jnp.concatenate([deep_out, wide_out], axis=0)  # [wad, bt]


def init_params(key, deep_dims, D, FF, L, H, W, wad):
    half = wad // 2
    dh = D // H
    keys = jax.random.split(key, 16)
    init = lambda k, shape: (0.05 * jax.random.normal(k, shape)).astype(jnp.float32)
    p = {}
    p['emb'] = [init(jax.random.fold_in(keys[0], i), (dd, D))
                for i, dd in enumerate(deep_dims)]
    p['wqkv'] = init(keys[1], (L, 3, H, D, dh))    # q/k/v, per layer, per head (x @ W)
    p['bqkv'] = init(keys[2], (L, 3, H, dh))
    p['wo'] = init(keys[3], (L, H, dh, D))
    p['bo'] = init(keys[4], (L, D))
    p['ln1_g'] = jnp.ones((L, D), jnp.float32)
    p['ln1_b'] = jnp.zeros((L, D), jnp.float32)
    p['w1'] = init(keys[5], (L, D, FF))
    p['b1'] = init(keys[6], (L, FF))
    p['w2'] = init(keys[7], (L, FF, D))
    p['b2'] = init(keys[8], (L, D))
    p['ln2_g'] = jnp.ones((L, D), jnp.float32)
    p['ln2_b'] = jnp.zeros((L, D), jnp.float32)
    p['wd'] = init(keys[9], (2, D, half))          # [mean | max] halves of deep dense
    p['bd'] = init(keys[10], (1, half))
    p['bn_g'] = (1.0 + 0.1 * jax.random.normal(keys[13], (1, W))).astype(jnp.float32)
    p['bn_b'] = init(keys[14], (1, W))
    p['bn_rm'] = init(keys[15], (1, W))
    p['bn_rv'] = (0.5 + jax.random.uniform(jax.random.fold_in(keys[15], 1),
                                           (1, W))).astype(jnp.float32)
    p['ww'] = init(keys[11], (W, half))
    p['bw'] = init(keys[12], (1, half))
    return p


def context_transformer_and_wide(deep_in, wide_in, p, *, num_layers, num_heads, wad,
                                 mxu_dtype=jnp.bfloat16, batch_tile=128):
    # Glue: embedding gathers + stacking (matches torch.cat of unsqueezed embeddings
    # and torch.stack/transpose of the wide feature list).
    # TODO(synk): fuse the embedding gather into the kernel (scalar-prefetched ids +
    # manual DMA) to remove the extra HBM roundtrip at production batch sizes.
    S = len(deep_in)
    x = jnp.stack([p['emb'][i][deep_in[i]] for i in range(S)],
                  axis=1).astype(jnp.float32)                  # [B, S, D]
    wide = jnp.stack(wide_in, axis=1).astype(jnp.float32)      # [B, W]
    B, _, D = x.shape
    W = wide.shape[1]
    H = num_heads
    dh = D // H
    L = num_layers
    half = wad // 2
    FF = p['w1'].shape[-1]

    # ---- wrapper-side weight folds, transposed to "y = W @ x" form ----
    scale = 1.0 / math.sqrt(dh)
    wqkv = p['wqkv'].at[:, 0].multiply(scale)      # fold attention scale into Q proj
    bqkv = p['bqkv'].at[:, 0].multiply(scale)
    # fused in-projection [L, 3D, D]: rows = q(all heads) | k(all heads) | v(all heads)
    wqkv_t = jnp.transpose(wqkv, (0, 1, 2, 4, 3)).reshape(L, 3 * D, D).astype(mxu_dtype)
    bqkv_t = bqkv.reshape(L, 3 * D)[:, :, None]                       # [L, 3D, 1]
    wo_t = jnp.transpose(p['wo'].reshape(L, D, D), (0, 2, 1)).astype(mxu_dtype)
    bo_t = p['bo'][:, :, None]
    ln1_g = p['ln1_g'][:, :, None]
    ln1_b = p['ln1_b'][:, :, None]
    w1_t = jnp.transpose(p['w1'], (0, 2, 1)).astype(mxu_dtype)        # [L, FF, D]
    b1_t = p['b1'][:, :, None]
    w2_t = jnp.transpose(p['w2'], (0, 2, 1)).astype(mxu_dtype)        # [L, D, FF]
    b2_t = p['b2'][:, :, None]
    ln2_g = p['ln2_g'][:, :, None]
    ln2_b = p['ln2_b'][:, :, None]
    wd_t = jnp.transpose(p['wd'], (0, 2, 1)).astype(mxu_dtype)        # [2, half, D]
    bd_t = p['bd'].T                                                  # [half, 1]
    # inference BatchNorm1d folded into the wide Linear (running stats)
    inv = p['bn_g'] * jax.lax.rsqrt(p['bn_rv'] + BN_EPS)              # [1, W]
    ww_eff_t = (p['ww'] * inv.reshape(W, 1)).T[:, :, None]            # [half, W, 1] f32
    bw_eff_t = (p['bw'] + (p['bn_b'] - p['bn_rm'] * inv) @ p['ww']).T  # [half, 1]

    # ---- batch tiling: batch lives on the lane axis, so a tile is either a
    # multiple of 128 lanes (multi-step, >=4 grid steps so v7x megacore engages)
    # or the whole (padded) batch for small B.
    if B >= 4 * 128:
        bt = 128 * max(1, min(max(batch_tile, 128) // 128, (B // 4) // 128))
    else:
        bt = _round_up(B, 8)
    B_pad = _round_up(B, bt)
    x_t = jnp.transpose(x, (1, 2, 0))              # [S, D, B]
    wide_t = wide.T                                # [W, B]
    if B_pad != B:
        x_t = jnp.pad(x_t, ((0, 0), (0, 0), (0, B_pad - B)))
        wide_t = jnp.pad(wide_t, ((0, 0), (0, B_pad - B)))
    grid = (B_pad // bt,)

    weight_args = [wqkv_t, bqkv_t, wo_t, bo_t, ln1_g, ln1_b,
                   w1_t, b1_t, w2_t, b2_t, ln2_g, ln2_b,
                   wd_t, bd_t, ww_eff_t, bw_eff_t]

    def _resident(a):
        # full-array block, constant index map -> stays VMEM resident across steps.
        # TODO(synk): add pipeline_mode=pl.Buffered(1) to single-buffer these once
        # weight footprints matter at production D/FF/L.
        nd = a.ndim
        return pl.BlockSpec(a.shape, lambda i, _nd=nd: (0,) * _nd)

    in_specs = ([pl.BlockSpec((S, D, bt), lambda i: (0, 0, i)),
                 pl.BlockSpec((W, bt), lambda i: (0, i))]
                + [_resident(a) for a in weight_args])

    flops = 2 * B_pad * (L * (S * D * (3 * D) + S * D * D + 2 * S * D * FF
                              + 2 * H * S * S * dh)
                         + 2 * D * half + W * half)
    bytes_accessed = (4 * (x_t.size + wide_t.size + B_pad * wad)
                      + sum(int(a.size) * a.dtype.itemsize for a in weight_args))
    cost = pl.CostEstimate(flops=int(flops),
                           transcendentals=int(B_pad * L * H * S * S),
                           bytes_accessed=int(bytes_accessed))

    kernel = functools.partial(_ctx_kernel, num_layers=L, num_heads=H,
                               mxu_dtype=mxu_dtype)
    out = pl.pallas_call(
        kernel,
        grid=grid,
        out_shape=jax.ShapeDtypeStruct((wad, B_pad), jnp.float32),
        in_specs=in_specs,
        out_specs=pl.BlockSpec((wad, bt), lambda i: (0, i)),
        compiler_params=pltpu.CompilerParams(
            dimension_semantics=("parallel",),
            vmem_limit_bytes=32 * 1024 * 1024),
        cost_estimate=cost,
    )(x_t, wide_t, *weight_args)
    return out[:, :B].T                            # [B, wad]


def reference_forward(deep_in, wide_in, p, *, num_layers, num_heads):
    """Pure-JAX mirror of the PyTorch forward (unfused params, for verification)."""
    x = jnp.stack([p['emb'][i][deep_in[i]] for i in range(len(deep_in))],
                  axis=1).astype(jnp.float32)
    wide = jnp.stack(wide_in, axis=1).astype(jnp.float32)
    B, S, D = x.shape
    H = num_heads
    dh = D // H
    for l in range(num_layers):
        heads = []
        for h in range(H):
            q = x @ p['wqkv'][l, 0, h] + p['bqkv'][l, 0, h]
            k = x @ p['wqkv'][l, 1, h] + p['bqkv'][l, 1, h]
            v = x @ p['wqkv'][l, 2, h] + p['bqkv'][l, 2, h]
            s = jnp.einsum('bqd,bkd->bqk', q, k) / math.sqrt(dh)
            heads.append(jnp.einsum('bqk,bkd->bqd', jax.nn.softmax(s, axis=-1), v))
        attn = sum(heads[h] @ p['wo'][l, h] for h in range(H)) + p['bo'][l]
        x = _layer_norm_last(x + attn, p['ln1_g'][l], p['ln1_b'][l])
        ff = jnp.maximum(x @ p['w1'][l] + p['b1'][l], 0.0) @ p['w2'][l] + p['b2'][l]
        x = _layer_norm_last(x + ff, p['ln2_g'][l], p['ln2_b'][l])
    deep_out = x.mean(axis=1) @ p['wd'][0] + x.max(axis=1) @ p['wd'][1] + p['bd']
    wn = (wide - p['bn_rm']) * jax.lax.rsqrt(p['bn_rv'] + BN_EPS) * p['bn_g'] + p['bn_b']
    w_out = wn @ p['ww'] + p['bw']
    w_out = jnp.where(w_out >= 0, w_out, LEAKY_SLOPE * w_out)
    return jnp.concatenate([deep_out, w_out], axis=-1)


if __name__ == "__main__":
    # Small configuration consistent with the module's constructor.
    deep_dims = (50, 60, 70, 80)      # S = 4 deep categorical features
    B = 8
    D = 32                            # deep_embed_dims
    H = 2                             # deep_num_heads
    FF = 64                           # deep_hidden_size
    L = 2                             # deep_num_layers
    W = 5                             # num_wide
    WAD = 16                          # wad_embed_dim -> output [B, 16]
    # deep_pe=False, all dropouts=0.0 (identity at inference), so omitted.

    key = jax.random.PRNGKey(0)
    pkey, dkey, wkey = jax.random.split(key, 3)
    params = init_params(pkey, deep_dims, D, FF, L, H, W, WAD)

    deep_in = [jax.random.randint(jax.random.fold_in(dkey, i), (B,), 0, dd)
               for i, dd in enumerate(deep_dims)]
    wide_in = [jax.random.normal(jax.random.fold_in(wkey, i), (B,), jnp.float32)
               for i in range(W)]

    out = context_transformer_and_wide(deep_in, wide_in, params,
                                       num_layers=L, num_heads=H, wad=WAD)
    out = jax.block_until_ready(out)

    ref = jax.block_until_ready(
        reference_forward(deep_in, wide_in, params, num_layers=L, num_heads=H))
    # bf16 MXU operands + approx reciprocal -> slightly wider tolerance than pure f32.
    np.testing.assert_allclose(np.asarray(out), np.asarray(ref), rtol=2e-2, atol=2e-2)
    assert out.shape == (B, WAD)
    print("KERNEL_OK")
</pallas_src>

<mosaic_0001>
module attributes {stable_mosaic.version = 11 : i64} {
  func.func @_ctx_kernel(%arg0: i32, %arg1: memref<4x32x8xf32, #tpu.memory_space<vmem>>, %arg2: memref<5x8xf32, #tpu.memory_space<vmem>>, %arg3: memref<2x96x32xbf16, #tpu.memory_space<vmem>>, %arg4: memref<2x96x1xf32, #tpu.memory_space<vmem>>, %arg5: memref<2x32x32xbf16, #tpu.memory_space<vmem>>, %arg6: memref<2x32x1xf32, #tpu.memory_space<vmem>>, %arg7: memref<2x32x1xf32, #tpu.memory_space<vmem>>, %arg8: memref<2x32x1xf32, #tpu.memory_space<vmem>>, %arg9: memref<2x64x32xbf16, #tpu.memory_space<vmem>>, %arg10: memref<2x64x1xf32, #tpu.memory_space<vmem>>, %arg11: memref<2x32x64xbf16, #tpu.memory_space<vmem>>, %arg12: memref<2x32x1xf32, #tpu.memory_space<vmem>>, %arg13: memref<2x32x1xf32, #tpu.memory_space<vmem>>, %arg14: memref<2x32x1xf32, #tpu.memory_space<vmem>>, %arg15: memref<2x8x32xbf16, #tpu.memory_space<vmem>>, %arg16: memref<8x1xf32, #tpu.memory_space<vmem>>, %arg17: memref<8x5x1xf32, #tpu.memory_space<vmem>>, %arg18: memref<8x1xf32, #tpu.memory_space<vmem>>, %arg19: memref<16x8xf32, #tpu.memory_space<vmem>>) attributes {dimension_semantics = [#tpu.dimension_semantics<parallel>], iteration_bounds = array<i64: 1>, scalar_prefetch = 0 : i64, scratch_operands = 0 : i64, tpu.core_type = #tpu.core_type<tc>, window_params = [{transform_indices = @transform_0, window_bounds = array<i64: 4, 32, 8>}, {transform_indices = @transform_1, window_bounds = array<i64: 5, 8>}, {pipeline_mode = #tpu.pipeline_mode<synchronous>, transform_indices = @transform_2, window_bounds = array<i64: 2, 96, 32>}, {pipeline_mode = #tpu.pipeline_mode<synchronous>, transform_indices = @transform_3, window_bounds = array<i64: 2, 96, 1>}, {pipeline_mode = #tpu.pipeline_mode<synchronous>, transform_indices = @transform_4, window_bounds = array<i64: 2, 32, 32>}, {pipeline_mode = #tpu.pipeline_mode<synchronous>, transform_indices = @transform_5, window_bounds = array<i64: 2, 32, 1>}, {pipeline_mode = #tpu.pipeline_mode<synchronous>, transform_indices = @transform_6, window_bounds = array<i64: 2, 32, 1>}, {pipeline_mode = #tpu.pipeline_mode<synchronous>, transform_indices = @transform_7, window_bounds = array<i64: 2, 32, 1>}, {pipeline_mode = #tpu.pipeline_mode<synchronous>, transform_indices = @transform_8, window_bounds = array<i64: 2, 64, 32>}, {pipeline_mode = #tpu.pipeline_mode<synchronous>, transform_indices = @transform_9, window_bounds = array<i64: 2, 64, 1>}, {pipeline_mode = #tpu.pipeline_mode<synchronous>, transform_indices = @transform_10, window_bounds = array<i64: 2, 32, 64>}, {pipeline_mode = #tpu.pipeline_mode<synchronous>, transform_indices = @transform_11, window_bounds = array<i64: 2, 32, 1>}, {pipeline_mode = #tpu.pipeline_mode<synchronous>, transform_indices = @transform_12, window_bounds = array<i64: 2, 32, 1>}, {pipeline_mode = #tpu.pipeline_mode<synchronous>, transform_indices = @transform_13, window_bounds = array<i64: 2, 32, 1>}, {pipeline_mode = #tpu.pipeline_mode<synchronous>, transform_indices = @transform_14, window_bounds = array<i64: 2, 8, 32>}, {pipeline_mode = #tpu.pipeline_mode<synchronous>, transform_indices = @transform_15, window_bounds = array<i64: 8, 1>}, {pipeline_mode = #tpu.pipeline_mode<synchronous>, transform_indices = @transform_16, window_bounds = array<i64: 8, 5, 1>}, {pipeline_mode = #tpu.pipeline_mode<synchronous>, transform_indices = @transform_17, window_bounds = array<i64: 8, 1>}, {transform_indices = @transform_18, window_bounds = array<i64: 16, 8>}]} {
    %c0 = arith.constant 0 : index
    %c0_0 = arith.constant 0 : index
    %c0_1 = arith.constant 0 : index
    %0 = vector.load %arg1[%c0, %c0_0, %c0_1] : memref<4x32x8xf32, #tpu.memory_space<vmem>>, vector<4x32x8xf32>
    %c0_2 = arith.constant 0 : index
    %c0_3 = arith.constant 0 : index
    %c0_4 = arith.constant 0 : index
    %1 = vector.load %arg3[%c0_2, %c0_3, %c0_4] : memref<2x96x32xbf16, #tpu.memory_space<vmem>>, vector<1x96x32xbf16>
    %2 = vector.shape_cast %1 : vector<1x96x32xbf16> to vector<96x32xbf16>
    %c0_5 = arith.constant 0 : index
    %c0_6 = arith.constant 0 : index
    %c0_7 = arith.constant 0 : index
    %3 = vector.load %arg4[%c0_5, %c0_6, %c0_7] : memref<2x96x1xf32, #tpu.memory_space<vmem>>, vector<1x96x1xf32>
    %4 = vector.shape_cast %3 : vector<1x96x1xf32> to vector<96x1xf32>
    %c0_8 = arith.constant 0 : index
    %c0_9 = arith.constant 0 : index
    %c0_10 = arith.constant 0 : index
    %5 = vector.load %arg5[%c0_8, %c0_9, %c0_10] : memref<2x32x32xbf16, #tpu.memory_space<vmem>>, vector<1x32x32xbf16>
    %6 = vector.shape_cast %5 : vector<1x32x32xbf16> to vector<32x32xbf16>
    %7 = arith.truncf %0 : vector<4x32x8xf32> to vector<4x32x8xbf16>
    %8 = vector.extract_strided_slice %7 {offsets = [0, 0, 0], sizes = [1, 32, 8], strides = [1, 1, 1]} : vector<4x32x8xbf16> to vector<1x32x8xbf16>
    %9 = vector.shape_cast %8 : vector<1x32x8xbf16> to vector<32x8xbf16>
    %cst = arith.constant dense<0.000000e+00> : vector<96x8xf32>
    %10 = tpu.matmul %2, %9, %cst {dimension_numbers = #tpu.dot_dimension_numbers<[1], [0], [0], [1], [0, 0, 1, 1], [], []>} : vector<96x32xbf16>, vector<32x8xbf16>, vector<96x8xf32> -> vector<96x8xf32>
    %11 = vector.broadcast %4 : vector<96x1xf32> to vector<96x8xf32>
    %12 = arith.addf %10, %11 : vector<96x8xf32>
    %13 = vector.extract_strided_slice %7 {offsets = [1, 0, 0], sizes = [1, 32, 8], strides = [1, 1, 1]} : vector<4x32x8xbf16> to vector<1x32x8xbf16>
    %14 = vector.shape_cast %13 : vector<1x32x8xbf16> to vector<32x8xbf16>
    %cst_11 = arith.constant dense<0.000000e+00> : vector<96x8xf32>
    %15 = tpu.matmul %2, %14, %cst_11 {dimension_numbers = #tpu.dot_dimension_numbers<[1], [0], [0], [1], [0, 0, 1, 1], [], []>} : vector<96x32xbf16>, vector<32x8xbf16>, vector<96x8xf32> -> vector<96x8xf32>
    %16 = vector.broadcast %4 : vector<96x1xf32> to vector<96x8xf32>
    %17 = arith.addf %15, %16 : vector<96x8xf32>
    %18 = vector.extract_strided_slice %7 {offsets = [2, 0, 0], sizes = [1, 32, 8], strides = [1, 1, 1]} : vector<4x32x8xbf16> to vector<1x32x8xbf16>
    %19 = vector.shape_cast %18 : vector<1x32x8xbf16> to vector<32x8xbf16>
    %cst_12 = arith.constant dense<0.000000e+00> : vector<96x8xf32>
    %20 = tpu.matmul %2, %19, %cst_12 {dimension_numbers = #tpu.dot_dimension_numbers<[1], [0], [0], [1], [0, 0, 1, 1], [], []>} : vector<96x32xbf16>, vector<32x8xbf16>, vector<96x8xf32> -> vector<96x8xf32>
    %21 = vector.broadcast %4 : vector<96x1xf32> to vector<96x8xf32>
    %22 = arith.addf %20, %21 : vector<96x8xf32>
    %23 = vector.extract_strided_slice %7 {offsets = [3, 0, 0], sizes = [1, 32, 8], strides = [1, 1, 1]} : vector<4x32x8xbf16> to vector<1x32x8xbf16>
    %24 = vector.shape_cast %23 : vector<1x32x8xbf16> to vector<32x8xbf16>
    %cst_13 = arith.constant dense<0.000000e+00> : vector<96x8xf32>
    %25 = tpu.matmul %2, %24, %cst_13 {dimension_numbers = #tpu.dot_dimension_numbers<[1], [0], [0], [1], [0, 0, 1, 1], [], []>} : vector<96x32xbf16>, vector<32x8xbf16>, vector<96x8xf32> -> vector<96x8xf32>
    %26 = vector.broadcast %4 : vector<96x1xf32> to vector<96x8xf32>
    %27 = arith.addf %25, %26 : vector<96x8xf32>
    %28 = vector.extract_strided_slice %12 {offsets = [0, 0], sizes = [16, 8], strides = [1, 1]} : vector<96x8xf32> to vector<16x8xf32>
    %29 = vector.extract_strided_slice %17 {offsets = [0, 0], sizes = [16, 8], strides = [1, 1]} : vector<96x8xf32> to vector<16x8xf32>
    %30 = vector.extract_strided_slice %22 {offsets = [0, 0], sizes = [16, 8], strides = [1, 1]} : vector<96x8xf32> to vector<16x8xf32>
    %31 = vector.extract_strided_slice %27 {offsets = [0, 0], sizes = [16, 8], strides = [1, 1]} : vector<96x8xf32> to vector<16x8xf32>
    %32 = vector.shape_cast %28 : vector<16x8xf32> to vector<1x16x8xf32>
    %33 = vector.shape_cast %29 : vector<16x8xf32> to vector<1x16x8xf32>
    %34 = vector.shape_cast %30 : vector<16x8xf32> to vector<1x16x8xf32>
    %35 = vector.shape_cast %31 : vector<16x8xf32> to vector<1x16x8xf32>
    %36 = tpu.concatenate %32, %33, %34, %35 in 0 : vector<1x16x8xf32>, vector<1x16x8xf32>, vector<1x16x8xf32>, vector<1x16x8xf32> -> vector<4x16x8xf32>
    %37 = vector.extract_strided_slice %12 {offsets = [32, 0], sizes = [16, 8], strides = [1, 1]} : vector<96x8xf32> to vector<16x8xf32>
    %38 = vector.extract_strided_slice %17 {offsets = [32, 0], sizes = [16, 8], strides = [1, 1]} : vector<96x8xf32> to vector<16x8xf32>
    %39 = vector.extract_strided_slice %22 {offsets = [32, 0], sizes = [16, 8], strides = [1, 1]} : vector<96x8xf32> to vector<16x8xf32>
    %40 = vector.extract_strided_slice %27 {offsets = [32, 0], sizes = [16, 8], strides = [1, 1]} : vector<96x8xf32> to vector<16x8xf32>
    %41 = vector.shape_cast %37 : vector<16x8xf32> to vector<1x16x8xf32>
    %42 = vector.shape_cast %38 : vector<16x8xf32> to vector<1x16x8xf32>
    %43 = vector.shape_cast %39 : vector<16x8xf32> to vector<1x16x8xf32>
    %44 = vector.shape_cast %40 : vector<16x8xf32> to vector<1x16x8xf32>
    %45 = tpu.concatenate %41, %42, %43, %44 in 0 : vector<1x16x8xf32>, vector<1x16x8xf32>, vector<1x16x8xf32>, vector<1x16x8xf32> -> vector<4x16x8xf32>
    %46 = vector.extract_strided_slice %12 {offsets = [64, 0], sizes = [16, 8], strides = [1, 1]} : vector<96x8xf32> to vector<16x8xf32>
    %47 = vector.extract_strided_slice %17 {offsets = [64, 0], sizes = [16, 8], strides = [1, 1]} : vector<96x8xf32> to vector<16x8xf32>
    %48 = vector.extract_strided_slice %22 {offsets = [64, 0], sizes = [16, 8], strides = [1, 1]} : vector<96x8xf32> to vector<16x8xf32>
    %49 = vector.extract_strided_slice %27 {offsets = [64, 0], sizes = [16, 8], strides = [1, 1]} : vector<96x8xf32> to vector<16x8xf32>
    %50 = vector.shape_cast %46 : vector<16x8xf32> to vector<1x16x8xf32>
    %51 = vector.shape_cast %47 : vector<16x8xf32> to vector<1x16x8xf32>
    %52 = vector.shape_cast %48 : vector<16x8xf32> to vector<1x16x8xf32>
    %53 = vector.shape_cast %49 : vector<16x8xf32> to vector<1x16x8xf32>
    %54 = tpu.concatenate %50, %51, %52, %53 in 0 : vector<1x16x8xf32>, vector<1x16x8xf32>, vector<1x16x8xf32>, vector<1x16x8xf32> -> vector<4x16x8xf32>
    %55 = vector.shape_cast %36 : vector<4x16x8xf32> to vector<4x1x16x8xf32>
    %56 = vector.shape_cast %45 : vector<4x16x8xf32> to vector<1x4x16x8xf32>
    %57 = vector.broadcast %55 : vector<4x1x16x8xf32> to vector<4x4x16x8xf32>
    %58 = vector.broadcast %56 : vector<1x4x16x8xf32> to vector<4x4x16x8xf32>
    %59 = arith.mulf %57, %58 : vector<4x4x16x8xf32>
    %cst_14 = arith.constant dense<0.000000e+00> : vector<4x4x8xf32>
    %60 = vector.multi_reduction <add>, %59, %cst_14 [2] : vector<4x4x16x8xf32> to vector<4x4x8xf32>
    %cst_15 = arith.constant dense<0xFF800000> : vector<4x8xf32>
    %61 = vector.multi_reduction <maximumf>, %60, %cst_15 [1] : vector<4x4x8xf32> to vector<4x8xf32>
    %62 = vector.shape_cast %61 : vector<4x8xf32> to vector<4x1x8xf32>
    %63 = vector.broadcast %62 : vector<4x1x8xf32> to vector<4x4x8xf32>
    %64 = arith.subf %60, %63 : vector<4x4x8xf32>
    %65 = math.exp %64 : vector<4x4x8xf32>
    %cst_16 = arith.constant dense<0.000000e+00> : vector<4x8xf32>
    %66 = vector.multi_reduction <add>, %65, %cst_16 [1] : vector<4x4x8xf32> to vector<4x8xf32>
    %67 = vector.shape_cast %66 : vector<4x8xf32> to vector<4x1x8xf32>
    %68 = tpu.reciprocal %67 {approx = true} : vector<4x1x8xf32> -> vector<4x1x8xf32>
    %69 = vector.broadcast %68 : vector<4x1x8xf32> to vector<4x4x8xf32>
    %70 = arith.mulf %65, %69 : vector<4x4x8xf32>
    %71 = vector.shape_cast %70 : vector<4x4x8xf32> to vector<4x4x1x8xf32>
    %72 = vector.shape_cast %54 : vector<4x16x8xf32> to vector<1x4x16x8xf32>
    %73 = vector.broadcast %71 : vector<4x4x1x8xf32> to vector<4x4x16x8xf32>
    %74 = vector.broadcast %72 : vector<1x4x16x8xf32> to vector<4x4x16x8xf32>
    %75 = arith.mulf %73, %74 : vector<4x4x16x8xf32>
    %cst_17 = arith.constant dense<0.000000e+00> : vector<4x16x8xf32>
    %76 = vector.multi_reduction <add>, %75, %cst_17 [1] : vector<4x4x16x8xf32> to vector<4x16x8xf32>
    %77 = vector.extract_strided_slice %12 {offsets = [16, 0], sizes = [16, 8], strides = [1, 1]} : vector<96x8xf32> to vector<16x8xf32>
    %78 = vector.extract_strided_slice %17 {offsets = [16, 0], sizes = [16, 8], strides = [1, 1]} : vector<96x8xf32> to vector<16x8xf32>
    %79 = vector.extract_strided_slice %22 {offsets = [16, 0], sizes = [16, 8], strides = [1, 1]} : vector<96x8xf32> to vector<16x8xf32>
    %80 = vector.extract_strided_slice %27 {offsets = [16, 0], sizes = [16, 8], strides = [1, 1]} : vector<96x8xf32> to vector<16x8xf32>
    %81 = vector.shape_cast %77 : vector<16x8xf32> to vector<1x16x8xf32>
    %82 = vector.shape_cast %78 : vector<16x8xf32> to vector<1x16x8xf32>
    %83 = vector.shape_cast %79 : vector<16x8xf32> to vector<1x16x8xf32>
    %84 = vector.shape_cast %80 : vector<16x8xf32> to vector<1x16x8xf32>
    %85 = tpu.concatenate %81, %82, %83, %84 in 0 : vector<1x16x8xf32>, vector<1x16x8xf32>, vector<1x16x8xf32>, vector<1x16x8xf32> -> vector<4x16x8xf32>
    %86 = vector.extract_strided_slice %12 {offsets = [48, 0], sizes = [16, 8], strides = [1, 1]} : vector<96x8xf32> to vector<16x8xf32>
    %87 = vector.extract_strided_slice %17 {offsets = [48, 0], sizes = [16, 8], strides = [1, 1]} : vector<96x8xf32> to vector<16x8xf32>
    %88 = vector.extract_strided_slice %22 {offsets = [48, 0], sizes = [16, 8], strides = [1, 1]} : vector<96x8xf32> to vector<16x8xf32>
    %89 = vector.extract_strided_slice %27 {offsets = [48, 0], sizes = [16, 8], strides = [1, 1]} : vector<96x8xf32> to vector<16x8xf32>
    %90 = vector.shape_cast %86 : vector<16x8xf32> to vector<1x16x8xf32>
    %91 = vector.shape_cast %87 : vector<16x8xf32> to vector<1x16x8xf32>
    %92 = vector.shape_cast %88 : vector<16x8xf32> to vector<1x16x8xf32>
    %93 = vector.shape_cast %89 : vector<16x8xf32> to vector<1x16x8xf32>
    %94 = tpu.concatenate %90, %91, %92, %93 in 0 : vector<1x16x8xf32>, vector<1x16x8xf32>, vector<1x16x8xf32>, vector<1x16x8xf32> -> vector<4x16x8xf32>
    %95 = vector.extract_strided_slice %12 {offsets = [80, 0], sizes = [16, 8], strides = [1, 1]} : vector<96x8xf32> to vector<16x8xf32>
    %96 = vector.extract_strided_slice %17 {offsets = [80, 0], sizes = [16, 8], strides = [1, 1]} : vector<96x8xf32> to vector<16x8xf32>
    %97 = vector.extract_strided_slice %22 {offsets = [80, 0], sizes = [16, 8], strides = [1, 1]} : vector<96x8xf32> to vector<16x8xf32>
    %98 = vector.extract_strided_slice %27 {offsets = [80, 0], sizes = [16, 8], strides = [1, 1]} : vector<96x8xf32> to vector<16x8xf32>
    %99 = vector.shape_cast %95 : vector<16x8xf32> to vector<1x16x8xf32>
    %100 = vector.shape_cast %96 : vector<16x8xf32> to vector<1x16x8xf32>
    %101 = vector.shape_cast %97 : vector<16x8xf32> to vector<1x16x8xf32>
    %102 = vector.shape_cast %98 : vector<16x8xf32> to vector<1x16x8xf32>
    %103 = tpu.concatenate %99, %100, %101, %102 in 0 : vector<1x16x8xf32>, vector<1x16x8xf32>, vector<1x16x8xf32>, vector<1x16x8xf32> -> vector<4x16x8xf32>
    %104 = vector.shape_cast %85 : vector<4x16x8xf32> to vector<4x1x16x8xf32>
    %105 = vector.shape_cast %94 : vector<4x16x8xf32> to vector<1x4x16x8xf32>
    %106 = vector.broadcast %104 : vector<4x1x16x8xf32> to vector<4x4x16x8xf32>
    %107 = vector.broadcast %105 : vector<1x4x16x8xf32> to vector<4x4x16x8xf32>
    %108 = arith.mulf %106, %107 : vector<4x4x16x8xf32>
    %cst_18 = arith.constant dense<0.000000e+00> : vector<4x4x8xf32>
    %109 = vector.multi_reduction <add>, %108, %cst_18 [2] : vector<4x4x16x8xf32> to vector<4x4x8xf32>
    %cst_19 = arith.constant dense<0xFF800000> : vector<4x8xf32>
    %110 = vector.multi_reduction <maximumf>, %109, %cst_19 [1] : vector<4x4x8xf32> to vector<4x8xf32>
    %111 = vector.shape_cast %110 : vector<4x8xf32> to vector<4x1x8xf32>
    %112 = vector.broadcast %111 : vector<4x1x8xf32> to vector<4x4x8xf32>
    %113 = arith.subf %109, %112 : vector<4x4x8xf32>
    %114 = math.exp %113 : vector<4x4x8xf32>
    %cst_20 = arith.constant dense<0.000000e+00> : vector<4x8xf32>
    %115 = vector.multi_reduction <add>, %114, %cst_20 [1] : vector<4x4x8xf32> to vector<4x8xf32>
    %116 = vector.shape_cast %115 : vector<4x8xf32> to vector<4x1x8xf32>
    %117 = tpu.reciprocal %116 {approx = true} : vector<4x1x8xf32> -> vector<4x1x8xf32>
    %118 = vector.broadcast %117 : vector<4x1x8xf32> to vector<4x4x8xf32>
    %119 = arith.mulf %114, %118 : vector<4x4x8xf32>
    %120 = vector.shape_cast %119 : vector<4x4x8xf32> to vector<4x4x1x8xf32>
    %121 = vector.shape_cast %103 : vector<4x16x8xf32> to vector<1x4x16x8xf32>
    %122 = vector.broadcast %120 : vector<4x4x1x8xf32> to vector<4x4x16x8xf32>
    %123 = vector.broadcast %121 : vector<1x4x16x8xf32> to vector<4x4x16x8xf32>
    %124 = arith.mulf %122, %123 : vector<4x4x16x8xf32>
    %cst_21 = arith.constant dense<0.000000e+00> : vector<4x16x8xf32>
    %125 = vector.multi_reduction <add>, %124, %cst_21 [1] : vector<4x4x16x8xf32> to vector<4x16x8xf32>
    %126 = tpu.concatenate %76, %125 in 1 : vector<4x16x8xf32>, vector<4x16x8xf32> -> vector<4x32x8xf32>
    %127 = arith.truncf %126 : vector<4x32x8xf32> to vector<4x32x8xbf16>
    %128 = vector.extract_strided_slice %127 {offsets = [0, 0, 0], sizes = [1, 32, 8], strides = [1, 1, 1]} : vector<4x32x8xbf16> to vector<1x32x8xbf16>
    %129 = vector.shape_cast %128 : vector<1x32x8xbf16> to vector<32x8xbf16>
    %cst_22 = arith.constant dense<0.000000e+00> : vector<32x8xf32>
    %130 = tpu.matmul %6, %129, %cst_22 {dimension_numbers = #tpu.dot_dimension_numbers<[1], [0], [0], [1], [0, 0, 1, 1], [], []>} : vector<32x32xbf16>, vector<32x8xbf16>, vector<32x8xf32> -> vector<32x8xf32>
    %131 = vector.extract_strided_slice %127 {offsets = [1, 0, 0], sizes = [1, 32, 8], strides = [1, 1, 1]} : vector<4x32x8xbf16> to vector<1x32x8xbf16>
    %132 = vector.shape_cast %131 : vector<1x32x8xbf16> to vector<32x8xbf16>
    %cst_23 = arith.constant dense<0.000000e+00> : vector<32x8xf32>
    %133 = tpu.matmul %6, %132, %cst_23 {dimension_numbers = #tpu.dot_dimension_numbers<[1], [0], [0], [1], [0, 0, 1, 1], [], []>} : vector<32x32xbf16>, vector<32x8xbf16>, vector<32x8xf32> -> vector<32x8xf32>
    %134 = vector.extract_strided_slice %127 {offsets = [2, 0, 0], sizes = [1, 32, 8], strides = [1, 1, 1]} : vector<4x32x8xbf16> to vector<1x32x8xbf16>
    %135 = vector.shape_cast %134 : vector<1x32x8xbf16> to vector<32x8xbf16>
    %cst_24 = arith.constant dense<0.000000e+00> : vector<32x8xf32>
    %136 = tpu.matmul %6, %135, %cst_24 {dimension_numbers = #tpu.dot_dimension_numbers<[1], [0], [0], [1], [0, 0, 1, 1], [], []>} : vector<32x32xbf16>, vector<32x8xbf16>, vector<32x8xf32> -> vector<32x8xf32>
    %137 = vector.extract_strided_slice %127 {offsets = [3, 0, 0], sizes = [1, 32, 8], strides = [1, 1, 1]} : vector<4x32x8xbf16> to vector<1x32x8xbf16>
    %138 = vector.shape_cast %137 : vector<1x32x8xbf16> to vector<32x8xbf16>
    %cst_25 = arith.constant dense<0.000000e+00> : vector<32x8xf32>
    %139 = tpu.matmul %6, %138, %cst_25 {dimension_numbers = #tpu.dot_dimension_numbers<[1], [0], [0], [1], [0, 0, 1, 1], [], []>} : vector<32x32xbf16>, vector<32x8xbf16>, vector<32x8xf32> -> vector<32x8xf32>
    %140 = vector.shape_cast %130 : vector<32x8xf32> to vector<1x32x8xf32>
    %141 = vector.shape_cast %133 : vector<32x8xf32> to vector<1x32x8xf32>
    %142 = vector.shape_cast %136 : vector<32x8xf32> to vector<1x32x8xf32>
    %143 = vector.shape_cast %139 : vector<32x8xf32> to vector<1x32x8xf32>
    %144 = tpu.concatenate %140, %141, %142, %143 in 0 : vector<1x32x8xf32>, vector<1x32x8xf32>, vector<1x32x8xf32>, vector<1x32x8xf32> -> vector<4x32x8xf32>
    %c0_26 = arith.constant 0 : index
    %c0_27 = arith.constant 0 : index
    %c0_28 = arith.constant 0 : index
    %145 = vector.load %arg6[%c0_26, %c0_27, %c0_28] : memref<2x32x1xf32, #tpu.memory_space<vmem>>, vector<1x32x1xf32>
    %146 = vector.shape_cast %145 : vector<1x32x1xf32> to vector<32x1xf32>
    %147 = vector.shape_cast %146 : vector<32x1xf32> to vector<1x32x1xf32>
    %148 = vector.broadcast %147 : vector<1x32x1xf32> to vector<4x32x8xf32>
    %149 = arith.addf %144, %148 : vector<4x32x8xf32>
    %150 = arith.addf %0, %149 : vector<4x32x8xf32>
    %c0_29 = arith.constant 0 : index
    %c0_30 = arith.constant 0 : index
    %c0_31 = arith.constant 0 : index
    %151 = vector.load %arg7[%c0_29, %c0_30, %c0_31] : memref<2x32x1xf32, #tpu.memory_space<vmem>>, vector<1x32x1xf32>
    %152 = vector.shape_cast %151 : vector<1x32x1xf32> to vector<32x1xf32>
    %c0_32 = arith.constant 0 : index
    %c0_33 = arith.constant 0 : index
    %c0_34 = arith.constant 0 : index
    %153 = vector.load %arg8[%c0_32, %c0_33, %c0_34] : memref<2x32x1xf32, #tpu.memory_space<vmem>>, vector<1x32x1xf32>
    %154 = vector.shape_cast %153 : vector<1x32x1xf32> to vector<32x1xf32>
    %cst_35 = arith.constant dense<0.000000e+00> : vector<4x8xf32>
    %155 = vector.multi_reduction <add>, %150, %cst_35 [1] : vector<4x32x8xf32> to vector<4x8xf32>
    %156 = vector.shape_cast %155 : vector<4x8xf32> to vector<4x1x8xf32>
    %cst_36 = arith.constant 3.200000e+01 : f32
    %157 = vector.broadcast %cst_36 : f32 to vector<4x1x8xf32>
    %158 = arith.divf %156, %157 : vector<4x1x8xf32>
    %159 = vector.broadcast %158 : vector<4x1x8xf32> to vector<4x32x8xf32>
    %160 = arith.subf %150, %159 : vector<4x32x8xf32>
    %161 = arith.mulf %160, %160 : vector<4x32x8xf32>
    %cst_37 = arith.constant dense<0.000000e+00> : vector<4x8xf32>
    %162 = vector.multi_reduction <add>, %161, %cst_37 [1] : vector<4x32x8xf32> to vector<4x8xf32>
    %163 = vector.shape_cast %162 : vector<4x8xf32> to vector<4x1x8xf32>
    %cst_38 = arith.constant 3.200000e+01 : f32
    %164 = vector.broadcast %cst_38 : f32 to vector<4x1x8xf32>
    %165 = arith.divf %163, %164 : vector<4x1x8xf32>
    %166 = vector.broadcast %158 : vector<4x1x8xf32> to vector<4x32x8xf32>
    %167 = arith.subf %150, %166 : vector<4x32x8xf32>
    %cst_39 = arith.constant 9.99999974E-6 : f32
    %168 = vector.broadcast %cst_39 : f32 to vector<4x1x8xf32>
    %169 = arith.addf %165, %168 : vector<4x1x8xf32>
    %170 = math.rsqrt %169 : vector<4x1x8xf32>
    %171 = vector.broadcast %170 : vector<4x1x8xf32> to vector<4x32x8xf32>
    %172 = arith.mulf %167, %171 : vector<4x32x8xf32>
    %173 = vector.shape_cast %152 : vector<32x1xf32> to vector<1x32x1xf32>
    %174 = vector.broadcast %173 : vector<1x32x1xf32> to vector<4x32x8xf32>
    %175 = arith.mulf %172, %174 : vector<4x32x8xf32>
    %176 = vector.shape_cast %154 : vector<32x1xf32> to vector<1x32x1xf32>
    %177 = vector.broadcast %176 : vector<1x32x1xf32> to vector<4x32x8xf32>
    %178 = arith.addf %175, %177 : vector<4x32x8xf32>
    %179 = arith.truncf %178 : vector<4x32x8xf32> to vector<4x32x8xbf16>
    %c0_40 = arith.constant 0 : index
    %c0_41 = arith.constant 0 : index
    %c0_42 = arith.constant 0 : index
    %180 = vector.load %arg9[%c0_40, %c0_41, %c0_42] : memref<2x64x32xbf16, #tpu.memory_space<vmem>>, vector<1x64x32xbf16>
    %181 = vector.shape_cast %180 : vector<1x64x32xbf16> to vector<64x32xbf16>
    %c0_43 = arith.constant 0 : index
    %c0_44 = arith.constant 0 : index
    %c0_45 = arith.constant 0 : index
    %182 = vector.load %arg10[%c0_43, %c0_44, %c0_45] : memref<2x64x1xf32, #tpu.memory_space<vmem>>, vector<1x64x1xf32>
    %183 = vector.shape_cast %182 : vector<1x64x1xf32> to vector<64x1xf32>
    %c0_46 = arith.constant 0 : index
    %c0_47 = arith.constant 0 : index
    %c0_48 = arith.constant 0 : index
    %184 = vector.load %arg11[%c0_46, %c0_47, %c0_48] : memref<2x32x64xbf16, #tpu.memory_space<vmem>>, vector<1x32x64xbf16>
    %185 = vector.shape_cast %184 : vector<1x32x64xbf16> to vector<32x64xbf16>
    %186 = vector.extract_strided_slice %179 {offsets = [0, 0, 0], sizes = [1, 32, 8], strides = [1, 1, 1]} : vector<4x32x8xbf16> to vector<1x32x8xbf16>
    %187 = vector.shape_cast %186 : vector<1x32x8xbf16> to vector<32x8xbf16>
    %cst_49 = arith.constant dense<0.000000e+00> : vector<64x8xf32>
    %188 = tpu.matmul %181, %187, %cst_49 {dimension_numbers = #tpu.dot_dimension_numbers<[1], [0], [0], [1], [0, 0, 1, 1], [], []>} : vector<64x32xbf16>, vector<32x8xbf16>, vector<64x8xf32> -> vector<64x8xf32>
    %189 = vector.broadcast %183 : vector<64x1xf32> to vector<64x8xf32>
    %190 = arith.addf %188, %189 : vector<64x8xf32>
    %cst_50 = arith.constant 0.000000e+00 : f32
    %191 = vector.broadcast %cst_50 : f32 to vector<64x8xf32>
    %192 = arith.maximumf %190, %191 : vector<64x8xf32>
    %193 = arith.truncf %192 : vector<64x8xf32> to vector<64x8xbf16>
    %cst_51 = arith.constant dense<0.000000e+00> : vector<32x8xf32>
    %194 = tpu.matmul %185, %193, %cst_51 {dimension_numbers = #tpu.dot_dimension_numbers<[1], [0], [0], [1], [0, 0, 1, 1], [], []>} : vector<32x64xbf16>, vector<64x8xbf16>, vector<32x8xf32> -> vector<32x8xf32>
    %195 = vector.extract_strided_slice %179 {offsets = [1, 0, 0], sizes = [1, 32, 8], strides = [1, 1, 1]} : vector<4x32x8xbf16> to vector<1x32x8xbf16>
    %196 = vector.shape_cast %195 : vector<1x32x8xbf16> to vector<32x8xbf16>
    %cst_52 = arith.constant dense<0.000000e+00> : vector<64x8xf32>
    %197 = tpu.matmul %181, %196, %cst_52 {dimension_numbers = #tpu.dot_dimension_numbers<[1], [0], [0], [1], [0, 0, 1, 1], [], []>} : vector<64x32xbf16>, vector<32x8xbf16>, vector<64x8xf32> -> vector<64x8xf32>
    %198 = vector.broadcast %183 : vector<64x1xf32> to vector<64x8xf32>
    %199 = arith.addf %197, %198 : vector<64x8xf32>
    %cst_53 = arith.constant 0.000000e+00 : f32
    %200 = vector.broadcast %cst_53 : f32 to vector<64x8xf32>
    %201 = arith.maximumf %199, %200 : vector<64x8xf32>
    %202 = arith.truncf %201 : vector<64x8xf32> to vector<64x8xbf16>
    %cst_54 = arith.constant dense<0.000000e+00> : vector<32x8xf32>
    %203 = tpu.matmul %185, %202, %cst_54 {dimension_numbers = #tpu.dot_dimension_numbers<[1], [0], [0], [1], [0, 0, 1, 1], [], []>} : vector<32x64xbf16>, vector<64x8xbf16>, vector<32x8xf32> -> vector<32x8xf32>
    %204 = vector.extract_strided_slice %179 {offsets = [2, 0, 0], sizes = [1, 32, 8], strides = [1, 1, 1]} : vector<4x32x8xbf16> to vector<1x32x8xbf16>
    %205 = vector.shape_cast %204 : vector<1x32x8xbf16> to vector<32x8xbf16>
    %cst_55 = arith.constant dense<0.000000e+00> : vector<64x8xf32>
    %206 = tpu.matmul %181, %205, %cst_55 {dimension_numbers = #tpu.dot_dimension_numbers<[1], [0], [0], [1], [0, 0, 1, 1], [], []>} : vector<64x32xbf16>, vector<32x8xbf16>, vector<64x8xf32> -> vector<64x8xf32>
    %207 = vector.broadcast %183 : vector<64x1xf32> to vector<64x8xf32>
    %208 = arith.addf %206, %207 : vector<64x8xf32>
    %cst_56 = arith.constant 0.000000e+00 : f32
    %209 = vector.broadcast %cst_56 : f32 to vector<64x8xf32>
    %210 = arith.maximumf %208, %209 : vector<64x8xf32>
    %211 = arith.truncf %210 : vector<64x8xf32> to vector<64x8xbf16>
    %cst_57 = arith.constant dense<0.000000e+00> : vector<32x8xf32>
    %212 = tpu.matmul %185, %211, %cst_57 {dimension_numbers = #tpu.dot_dimension_numbers<[1], [0], [0], [1], [0, 0, 1, 1], [], []>} : vector<32x64xbf16>, vector<64x8xbf16>, vector<32x8xf32> -> vector<32x8xf32>
    %213 = vector.extract_strided_slice %179 {offsets = [3, 0, 0], sizes = [1, 32, 8], strides = [1, 1, 1]} : vector<4x32x8xbf16> to vector<1x32x8xbf16>
    %214 = vector.shape_cast %213 : vector<1x32x8xbf16> to vector<32x8xbf16>
    %cst_58 = arith.constant dense<0.000000e+00> : vector<64x8xf32>
    %215 = tpu.matmul %181, %214, %cst_58 {dimension_numbers = #tpu.dot_dimension_numbers<[1], [0], [0], [1], [0, 0, 1, 1], [], []>} : vector<64x32xbf16>, vector<32x8xbf16>, vector<64x8xf32> -> vector<64x8xf32>
    %216 = vector.broadcast %183 : vector<64x1xf32> to vector<64x8xf32>
    %217 = arith.addf %215, %216 : vector<64x8xf32>
    %cst_59 = arith.constant 0.000000e+00 : f32
    %218 = vector.broadcast %cst_59 : f32 to vector<64x8xf32>
    %219 = arith.maximumf %217, %218 : vector<64x8xf32>
    %220 = arith.truncf %219 : vector<64x8xf32> to vector<64x8xbf16>
    %cst_60 = arith.constant dense<0.000000e+00> : vector<32x8xf32>
    %221 = tpu.matmul %185, %220, %cst_60 {dimension_numbers = #tpu.dot_dimension_numbers<[1], [0], [0], [1], [0, 0, 1, 1], [], []>} : vector<32x64xbf16>, vector<64x8xbf16>, vector<32x8xf32> -> vector<32x8xf32>
    %222 = vector.shape_cast %194 : vector<32x8xf32> to vector<1x32x8xf32>
    %223 = vector.shape_cast %203 : vector<32x8xf32> to vector<1x32x8xf32>
    %224 = vector.shape_cast %212 : vector<32x8xf32> to vector<1x32x8xf32>
    %225 = vector.shape_cast %221 : vector<32x8xf32> to vector<1x32x8xf32>
    %226 = tpu.concatenate %222, %223, %224, %225 in 0 : vector<1x32x8xf32>, vector<1x32x8xf32>, vector<1x32x8xf32>, vector<1x32x8xf32> -> vector<4x32x8xf32>
    %227 = arith.addf %178, %226 : vector<4x32x8xf32>
    %c0_61 = arith.constant 0 : index
    %c0_62 = arith.constant 0 : index
    %c0_63 = arith.constant 0 : index
    %228 = vector.load %arg12[%c0_61, %c0_62, %c0_63] : memref<2x32x1xf32, #tpu.memory_space<vmem>>, vector<1x32x1xf32>
    %229 = vector.shape_cast %228 : vector<1x32x1xf32> to vector<32x1xf32>
    %230 = vector.shape_cast %229 : vector<32x1xf32> to vector<1x32x1xf32>
    %231 = vector.broadcast %230 : vector<1x32x1xf32> to vector<4x32x8xf32>
    %232 = arith.addf %227, %231 : vector<4x32x8xf32>
    %c0_64 = arith.constant 0 : index
    %c0_65 = arith.constant 0 : index
    %c0_66 = arith.constant 0 : index
    %233 = vector.load %arg13[%c0_64, %c0_65, %c0_66] : memref<2x32x1xf32, #tpu.memory_space<vmem>>, vector<1x32x1xf32>
    %234 = vector.shape_cast %233 : vector<1x32x1xf32> to vector<32x1xf32>
    %c0_67 = arith.constant 0 : index
    %c0_68 = arith.constant 0 : index
    %c0_69 = arith.constant 0 : index
    %235 = vector.load %arg14[%c0_67, %c0_68, %c0_69] : memref<2x32x1xf32, #tpu.memory_space<vmem>>, vector<1x32x1xf32>
    %236 = vector.shape_cast %235 : vector<1x32x1xf32> to vector<32x1xf32>
    %cst_70 = arith.constant dense<0.000000e+00> : vector<4x8xf32>
    %237 = vector.multi_reduction <add>, %232, %cst_70 [1] : vector<4x32x8xf32> to vector<4x8xf32>
    %238 = vector.shape_cast %237 : vector<4x8xf32> to vector<4x1x8xf32>
    %cst_71 = arith.constant 3.200000e+01 : f32
    %239 = vector.broadcast %cst_71 : f32 to vector<4x1x8xf32>
    %240 = arith.divf %238, %239 : vector<4x1x8xf32>
    %241 = vector.broadcast %240 : vector<4x1x8xf32> to vector<4x32x8xf32>
    %242 = arith.subf %232, %241 : vector<4x32x8xf32>
    %243 = arith.mulf %242, %242 : vector<4x32x8xf32>
    %cst_72 = arith.constant dense<0.000000e+00> : vector<4x8xf32>
    %244 = vector.multi_reduction <add>, %243, %cst_72 [1] : vector<4x32x8xf32> to vector<4x8xf32>
    %245 = vector.shape_cast %244 : vector<4x8xf32> to vector<4x1x8xf32>
    %cst_73 = arith.constant 3.200000e+01 : f32
    %246 = vector.broadcast %cst_73 : f32 to vector<4x1x8xf32>
    %247 = arith.divf %245, %246 : vector<4x1x8xf32>
    %248 = vector.broadcast %240 : vector<4x1x8xf32> to vector<4x32x8xf32>
    %249 = arith.subf %232, %248 : vector<4x32x8xf32>
    %cst_74 = arith.constant 9.99999974E-6 : f32
    %250 = vector.broadcast %cst_74 : f32 to vector<4x1x8xf32>
    %251 = arith.addf %247, %250 : vector<4x1x8xf32>
    %252 = math.rsqrt %251 : vector<4x1x8xf32>
    %253 = vector.broadcast %252 : vector<4x1x8xf32> to vector<4x32x8xf32>
    %254 = arith.mulf %249, %253 : vector<4x32x8xf32>
    %255 = vector.shape_cast %234 : vector<32x1xf32> to vector<1x32x1xf32>
    %256 = vector.broadcast %255 : vector<1x32x1xf32> to vector<4x32x8xf32>
    %257 = arith.mulf %254, %256 : vector<4x32x8xf32>
    %258 = vector.shape_cast %236 : vector<32x1xf32> to vector<1x32x1xf32>
    %259 = vector.broadcast %258 : vector<1x32x1xf32> to vector<4x32x8xf32>
    %260 = arith.addf %257, %259 : vector<4x32x8xf32>
    %c1 = arith.constant 1 : index
    %c0_75 = arith.constant 0 : index
    %c0_76 = arith.constant 0 : index
    %261 = vector.load %arg3[%c1, %c0_75, %c0_76] : memref<2x96x32xbf16, #tpu.memory_space<vmem>>, vector<1x96x32xbf16>
    %262 = vector.shape_cast %261 : vector<1x96x32xbf16> to vector<96x32xbf16>
    %c1_77 = arith.constant 1 : index
    %c0_78 = arith.constant 0 : index
    %c0_79 = arith.constant 0 : index
    %263 = vector.load %arg4[%c1_77, %c0_78, %c0_79] : memref<2x96x1xf32, #tpu.memory_space<vmem>>, vector<1x96x1xf32>
    %264 = vector.shape_cast %263 : vector<1x96x1xf32> to vector<96x1xf32>
    %c1_80 = arith.constant 1 : index
    %c0_81 = arith.constant 0 : index
    %c0_82 = arith.constant 0 : index
    %265 = vector.load %arg5[%c1_80, %c0_81, %c0_82] : memref<2x32x32xbf16, #tpu.memory_space<vmem>>, vector<1x32x32xbf16>
    %266 = vector.shape_cast %265 : vector<1x32x32xbf16> to vector<32x32xbf16>
    %267 = arith.truncf %260 : vector<4x32x8xf32> to vector<4x32x8xbf16>
    %268 = vector.extract_strided_slice %267 {offsets = [0, 0, 0], sizes = [1, 32, 8], strides = [1, 1, 1]} : vector<4x32x8xbf16> to vector<1x32x8xbf16>
    %269 = vector.shape_cast %268 : vector<1x32x8xbf16> to vector<32x8xbf16>
    %cst_83 = arith.constant dense<0.000000e+00> : vector<96x8xf32>
    %270 = tpu.matmul %262, %269, %cst_83 {dimension_numbers = #tpu.dot_dimension_numbers<[1], [0], [0], [1], [0, 0, 1, 1], [], []>} : vector<96x32xbf16>, vector<32x8xbf16>, vector<96x8xf32> -> vector<96x8xf32>
    %271 = vector.broadcast %264 : vector<96x1xf32> to vector<96x8xf32>
    %272 = arith.addf %270, %271 : vector<96x8xf32>
    %273 = vector.extract_strided_slice %267 {offsets = [1, 0, 0], sizes = [1, 32, 8], strides = [1, 1, 1]} : vector<4x32x8xbf16> to vector<1x32x8xbf16>
    %274 = vector.shape_cast %273 : vector<1x32x8xbf16> to vector<32x8xbf16>
    %cst_84 = arith.constant dense<0.000000e+00> : vector<96x8xf32>
    %275 = tpu.matmul %262, %274, %cst_84 {dimension_numbers = #tpu.dot_dimension_numbers<[1], [0], [0], [1], [0, 0, 1, 1], [], []>} : vector<96x32xbf16>, vector<32x8xbf16>, vector<96x8xf32> -> vector<96x8xf32>
    %276 = vector.broadcast %264 : vector<96x1xf32> to vector<96x8xf32>
    %277 = arith.addf %275, %276 : vector<96x8xf32>
    %278 = vector.extract_strided_slice %267 {offsets = [2, 0, 0], sizes = [1, 32, 8], strides = [1, 1, 1]} : vector<4x32x8xbf16> to vector<1x32x8xbf16>
    %279 = vector.shape_cast %278 : vector<1x32x8xbf16> to vector<32x8xbf16>
    %cst_85 = arith.constant dense<0.000000e+00> : vector<96x8xf32>
    %280 = tpu.matmul %262, %279, %cst_85 {dimension_numbers = #tpu.dot_dimension_numbers<[1], [0], [0], [1], [0, 0, 1, 1], [], []>} : vector<96x32xbf16>, vector<32x8xbf16>, vector<96x8xf32> -> vector<96x8xf32>
    %281 = vector.broadcast %264 : vector<96x1xf32> to vector<96x8xf32>
    %282 = arith.addf %280, %281 : vector<96x8xf32>
    %283 = vector.extract_strided_slice %267 {offsets = [3, 0, 0], sizes = [1, 32, 8], strides = [1, 1, 1]} : vector<4x32x8xbf16> to vector<1x32x8xbf16>
    %284 = vector.shape_cast %283 : vector<1x32x8xbf16> to vector<32x8xbf16>
    %cst_86 = arith.constant dense<0.000000e+00> : vector<96x8xf32>
    %285 = tpu.matmul %262, %284, %cst_86 {dimension_numbers = #tpu.dot_dimension_numbers<[1], [0], [0], [1], [0, 0, 1, 1], [], []>} : vector<96x32xbf16>, vector<32x8xbf16>, vector<96x8xf32> -> vector<96x8xf32>
    %286 = vector.broadcast %264 : vector<96x1xf32> to vector<96x8xf32>
    %287 = arith.addf %285, %286 : vector<96x8xf32>
    %288 = vector.extract_strided_slice %272 {offsets = [0, 0], sizes = [16, 8], strides = [1, 1]} : vector<96x8xf32> to vector<16x8xf32>
    %289 = vector.extract_strided_slice %277 {offsets = [0, 0], sizes = [16, 8], strides = [1, 1]} : vector<96x8xf32> to vector<16x8xf32>
    %290 = vector.extract_strided_slice %282 {offsets = [0, 0], sizes = [16, 8], strides = [1, 1]} : vector<96x8xf32> to vector<16x8xf32>
    %291 = vector.extract_strided_slice %287 {offsets = [0, 0], sizes = [16, 8], strides = [1, 1]} : vector<96x8xf32> to vector<16x8xf32>
    %292 = vector.shape_cast %288 : vector<16x8xf32> to vector<1x16x8xf32>
    %293 = vector.shape_cast %289 : vector<16x8xf32> to vector<1x16x8xf32>
    %294 = vector.shape_cast %290 : vector<16x8xf32> to vector<1x16x8xf32>
    %295 = vector.shape_cast %291 : vector<16x8xf32> to vector<1x16x8xf32>
    %296 = tpu.concatenate %292, %293, %294, %295 in 0 : vector<1x16x8xf32>, vector<1x16x8xf32>, vector<1x16x8xf32>, vector<1x16x8xf32> -> vector<4x16x8xf32>
    %297 = vector.extract_strided_slice %272 {offsets = [32, 0], sizes = [16, 8], strides = [1, 1]} : vector<96x8xf32> to vector<16x8xf32>
    %298 = vector.extract_strided_slice %277 {offsets = [32, 0], sizes = [16, 8], strides = [1, 1]} : vector<96x8xf32> to vector<16x8xf32>
    %299 = vector.extract_strided_slice %282 {offsets = [32, 0], sizes = [16, 8], strides = [1, 1]} : vector<96x8xf32> to vector<16x8xf32>
    %300 = vector.extract_strided_slice %287 {offsets = [32, 0], sizes = [16, 8], strides = [1, 1]} : vector<96x8xf32> to vector<16x8xf32>
    %301 = vector.shape_cast %297 : vector<16x8xf32> to vector<1x16x8xf32>
    %302 = vector.shape_cast %298 : vector<16x8xf32> to vector<1x16x8xf32>
    %303 = vector.shape_cast %299 : vector<16x8xf32> to vector<1x16x8xf32>
    %304 = vector.shape_cast %300 : vector<16x8xf32> to vector<1x16x8xf32>
    %305 = tpu.concatenate %301, %302, %303, %304 in 0 : vector<1x16x8xf32>, vector<1x16x8xf32>, vector<1x16x8xf32>, vector<1x16x8xf32> -> vector<4x16x8xf32>
    %306 = vector.extract_strided_slice %272 {offsets = [64, 0], sizes = [16, 8], strides = [1, 1]} : vector<96x8xf32> to vector<16x8xf32>
    %307 = vector.extract_strided_slice %277 {offsets = [64, 0], sizes = [16, 8], strides = [1, 1]} : vector<96x8xf32> to vector<16x8xf32>
    %308 = vector.extract_strided_slice %282 {offsets = [64, 0], sizes = [16, 8], strides = [1, 1]} : vector<96x8xf32> to vector<16x8xf32>
    %309 = vector.extract_strided_slice %287 {offsets = [64, 0], sizes = [16, 8], strides = [1, 1]} : vector<96x8xf32> to vector<16x8xf32>
    %310 = vector.shape_cast %306 : vector<16x8xf32> to vector<1x16x8xf32>
    %311 = vector.shape_cast %307 : vector<16x8xf32> to vector<1x16x8xf32>
    %312 = vector.shape_cast %308 : vector<16x8xf32> to vector<1x16x8xf32>
    %313 = vector.shape_cast %309 : vector<16x8xf32> to vector<1x16x8xf32>
    %314 = tpu.concatenate %310, %311, %312, %313 in 0 : vector<1x16x8xf32>, vector<1x16x8xf32>, vector<1x16x8xf32>, vector<1x16x8xf32> -> vector<4x16x8xf32>
    %315 = vector.shape_cast %296 : vector<4x16x8xf32> to vector<4x1x16x8xf32>
    %316 = vector.shape_cast %305 : vector<4x16x8xf32> to vector<1x4x16x8xf32>
    %317 = vector.broadcast %315 : vector<4x1x16x8xf32> to vector<4x4x16x8xf32>
    %318 = vector.broadcast %316 : vector<1x4x16x8xf32> to vector<4x4x16x8xf32>
    %319 = arith.mulf %317, %318 : vector<4x4x16x8xf32>
    %cst_87 = arith.constant dense<0.000000e+00> : vector<4x4x8xf32>
    %320 = vector.multi_reduction <add>, %319, %cst_87 [2] : vector<4x4x16x8xf32> to vector<4x4x8xf32>
    %cst_88 = arith.constant dense<0xFF800000> : vector<4x8xf32>
    %321 = vector.multi_reduction <maximumf>, %320, %cst_88 [1] : vector<4x4x8xf32> to vector<4x8xf32>
    %322 = vector.shape_cast %321 : vector<4x8xf32> to vector<4x1x8xf32>
    %323 = vector.broadcast %322 : vector<4x1x8xf32> to vector<4x4x8xf32>
    %324 = arith.subf %320, %323 : vector<4x4x8xf32>
    %325 = math.exp %324 : vector<4x4x8xf32>
    %cst_89 = arith.constant dense<0.000000e+00> : vector<4x8xf32>
    %326 = vector.multi_reduction <add>, %325, %cst_89 [1] : vector<4x4x8xf32> to vector<4x8xf32>
    %327 = vector.shape_cast %326 : vector<4x8xf32> to vector<4x1x8xf32>
    %328 = tpu.reciprocal %327 {approx = true} : vector<4x1x8xf32> -> vector<4x1x8xf32>
    %329 = vector.broadcast %328 : vector<4x1x8xf32> to vector<4x4x8xf32>
    %330 = arith.mulf %325, %329 : vector<4x4x8xf32>
    %331 = vector.shape_cast %330 : vector<4x4x8xf32> to vector<4x4x1x8xf32>
    %332 = vector.shape_cast %314 : vector<4x16x8xf32> to vector<1x4x16x8xf32>
    %333 = vector.broadcast %331 : vector<4x4x1x8xf32> to vector<4x4x16x8xf32>
    %334 = vector.broadcast %332 : vector<1x4x16x8xf32> to vector<4x4x16x8xf32>
    %335 = arith.mulf %333, %334 : vector<4x4x16x8xf32>
    %cst_90 = arith.constant dense<0.000000e+00> : vector<4x16x8xf32>
    %336 = vector.multi_reduction <add>, %335, %cst_90 [1] : vector<4x4x16x8xf32> to vector<4x16x8xf32>
    %337 = vector.extract_strided_slice %272 {offsets = [16, 0], sizes = [16, 8], strides = [1, 1]} : vector<96x8xf32> to vector<16x8xf32>
    %338 = vector.extract_strided_slice %277 {offsets = [16, 0], sizes = [16, 8], strides = [1, 1]} : vector<96x8xf32> to vector<16x8xf32>
    %339 = vector.extract_strided_slice %282 {offsets = [16, 0], sizes = [16, 8], strides = [1, 1]} : vector<96x8xf32> to vector<16x8xf32>
    %340 = vector.extract_strided_slice %287 {offsets = [16, 0], sizes = [16, 8], strides = [1, 1]} : vector<96x8xf32> to vector<16x8xf32>
    %341 = vector.shape_cast %337 : vector<16x8xf32> to vector<1x16x8xf32>
    %342 = vector.shape_cast %338 : vector<16x8xf32> to vector<1x16x8xf32>
    %343 = vector.shape_cast %339 : vector<16x8xf32> to vector<1x16x8xf32>
    %344 = vector.shape_cast %340 : vector<16x8xf32> to vector<1x16x8xf32>
    %345 = tpu.concatenate %341, %342, %343, %344 in 0 : vector<1x16x8xf32>, vector<1x16x8xf32>, vector<1x16x8xf32>, vector<1x16x8xf32> -> vector<4x16x8xf32>
    %346 = vector.extract_strided_slice %272 {offsets = [48, 0], sizes = [16, 8], strides = [1, 1]} : vector<96x8xf32> to vector<16x8xf32>
    %347 = vector.extract_strided_slice %277 {offsets = [48, 0], sizes = [16, 8], strides = [1, 1]} : vector<96x8xf32> to vector<16x8xf32>
    %348 = vector.extract_strided_slice %282 {offsets = [48, 0], sizes = [16, 8], strides = [1, 1]} : vector<96x8xf32> to vector<16x8xf32>
    %349 = vector.extract_strided_slice %287 {offsets = [48, 0], sizes = [16, 8], strides = [1, 1]} : vector<96x8xf32> to vector<16x8xf32>
    %350 = vector.shape_cast %346 : vector<16x8xf32> to vector<1x16x8xf32>
    %351 = vector.shape_cast %347 : vector<16x8xf32> to vector<1x16x8xf32>
    %352 = vector.shape_cast %348 : vector<16x8xf32> to vector<1x16x8xf32>
    %353 = vector.shape_cast %349 : vector<16x8xf32> to vector<1x16x8xf32>
    %354 = tpu.concatenate %350, %351, %352, %353 in 0 : vector<1x16x8xf32>, vector<1x16x8xf32>, vector<1x16x8xf32>, vector<1x16x8xf32> -> vector<4x16x8xf32>
    %355 = vector.extract_strided_slice %272 {offsets = [80, 0], sizes = [16, 8], strides = [1, 1]} : vector<96x8xf32> to vector<16x8xf32>
    %356 = vector.extract_strided_slice %277 {offsets = [80, 0], sizes = [16, 8], strides = [1, 1]} : vector<96x8xf32> to vector<16x8xf32>
    %357 = vector.extract_strided_slice %282 {offsets = [80, 0], sizes = [16, 8], strides = [1, 1]} : vector<96x8xf32> to vector<16x8xf32>
    %358 = vector.extract_strided_slice %287 {offsets = [80, 0], sizes = [16, 8], strides = [1, 1]} : vector<96x8xf32> to vector<16x8xf32>
    %359 = vector.shape_cast %355 : vector<16x8xf32> to vector<1x16x8xf32>
    %360 = vector.shape_cast %356 : vector<16x8xf32> to vector<1x16x8xf32>
    %361 = vector.shape_cast %357 : vector<16x8xf32> to vector<1x16x8xf32>
    %362 = vector.shape_cast %358 : vector<16x8xf32> to vector<1x16x8xf32>
    %363 = tpu.concatenate %359, %360, %361, %362 in 0 : vector<1x16x8xf32>, vector<1x16x8xf32>, vector<1x16x8xf32>, vector<1x16x8xf32> -> vector<4x16x8xf32>
    %364 = vector.shape_cast %345 : vector<4x16x8xf32> to vector<4x1x16x8xf32>
    %365 = vector.shape_cast %354 : vector<4x16x8xf32> to vector<1x4x16x8xf32>
    %366 = vector.broadcast %364 : vector<4x1x16x8xf32> to vector<4x4x16x8xf32>
    %367 = vector.broadcast %365 : vector<1x4x16x8xf32> to vector<4x4x16x8xf32>
    %368 = arith.mulf %366, %367 : vector<4x4x16x8xf32>
    %cst_91 = arith.constant dense<0.000000e+00> : vector<4x4x8xf32>
    %369 = vector.multi_reduction <add>, %368, %cst_91 [2] : vector<4x4x16x8xf32> to vector<4x4x8xf32>
    %cst_92 = arith.constant dense<0xFF800000> : vector<4x8xf32>
    %370 = vector.multi_reduction <maximumf>, %369, %cst_92 [1] : vector<4x4x8xf32> to vector<4x8xf32>
    %371 = vector.shape_cast %370 : vector<4x8xf32> to vector<4x1x8xf32>
    %372 = vector.broadcast %371 : vector<4x1x8xf32> to vector<4x4x8xf32>
    %373 = arith.subf %369, %372 : vector<4x4x8xf32>
    %374 = math.exp %373 : vector<4x4x8xf32>
    %cst_93 = arith.constant dense<0.000000e+00> : vector<4x8xf32>
    %375 = vector.multi_reduction <add>, %374, %cst_93 [1] : vector<4x4x8xf32> to vector<4x8xf32>
    %376 = vector.shape_cast %375 : vector<4x8xf32> to vector<4x1x8xf32>
    %377 = tpu.reciprocal %376 {approx = true} : vector<4x1x8xf32> -> vector<4x1x8xf32>
    %378 = vector.broadcast %377 : vector<4x1x8xf32> to vector<4x4x8xf32>
    %379 = arith.mulf %374, %378 : vector<4x4x8xf32>
    %380 = vector.shape_cast %379 : vector<4x4x8xf32> to vector<4x4x1x8xf32>
    %381 = vector.shape_cast %363 : vector<4x16x8xf32> to vector<1x4x16x8xf32>
    %382 = vector.broadcast %380 : vector<4x4x1x8xf32> to vector<4x4x16x8xf32>
    %383 = vector.broadcast %381 : vector<1x4x16x8xf32> to vector<4x4x16x8xf32>
    %384 = arith.mulf %382, %383 : vector<4x4x16x8xf32>
    %cst_94 = arith.constant dense<0.000000e+00> : vector<4x16x8xf32>
    %385 = vector.multi_reduction <add>, %384, %cst_94 [1] : vector<4x4x16x8xf32> to vector<4x16x8xf32>
    %386 = tpu.concatenate %336, %385 in 1 : vector<4x16x8xf32>, vector<4x16x8xf32> -> vector<4x32x8xf32>
    %387 = arith.truncf %386 : vector<4x32x8xf32> to vector<4x32x8xbf16>
    %388 = vector.extract_strided_slice %387 {offsets = [0, 0, 0], sizes = [1, 32, 8], strides = [1, 1, 1]} : vector<4x32x8xbf16> to vector<1x32x8xbf16>
    %389 = vector.shape_cast %388 : vector<1x32x8xbf16> to vector<32x8xbf16>
    %cst_95 = arith.constant dense<0.000000e+00> : vector<32x8xf32>
    %390 = tpu.matmul %266, %389, %cst_95 {dimension_numbers = #tpu.dot_dimension_numbers<[1], [0], [0], [1], [0, 0, 1, 1], [], []>} : vector<32x32xbf16>, vector<32x8xbf16>, vector<32x8xf32> -> vector<32x8xf32>
    %391 = vector.extract_strided_slice %387 {offsets = [1, 0, 0], sizes = [1, 32, 8], strides = [1, 1, 1]} : vector<4x32x8xbf16> to vector<1x32x8xbf16>
    %392 = vector.shape_cast %391 : vector<1x32x8xbf16> to vector<32x8xbf16>
    %cst_96 = arith.constant dense<0.000000e+00> : vector<32x8xf32>
    %393 = tpu.matmul %266, %392, %cst_96 {dimension_numbers = #tpu.dot_dimension_numbers<[1], [0], [0], [1], [0, 0, 1, 1], [], []>} : vector<32x32xbf16>, vector<32x8xbf16>, vector<32x8xf32> -> vector<32x8xf32>
    %394 = vector.extract_strided_slice %387 {offsets = [2, 0, 0], sizes = [1, 32, 8], strides = [1, 1, 1]} : vector<4x32x8xbf16> to vector<1x32x8xbf16>
    %395 = vector.shape_cast %394 : vector<1x32x8xbf16> to vector<32x8xbf16>
    %cst_97 = arith.constant dense<0.000000e+00> : vector<32x8xf32>
    %396 = tpu.matmul %266, %395, %cst_97 {dimension_numbers = #tpu.dot_dimension_numbers<[1], [0], [0], [1], [0, 0, 1, 1], [], []>} : vector<32x32xbf16>, vector<32x8xbf16>, vector<32x8xf32> -> vector<32x8xf32>
    %397 = vector.extract_strided_slice %387 {offsets = [3, 0, 0], sizes = [1, 32, 8], strides = [1, 1, 1]} : vector<4x32x8xbf16> to vector<1x32x8xbf16>
    %398 = vector.shape_cast %397 : vector<1x32x8xbf16> to vector<32x8xbf16>
    %cst_98 = arith.constant dense<0.000000e+00> : vector<32x8xf32>
    %399 = tpu.matmul %266, %398, %cst_98 {dimension_numbers = #tpu.dot_dimension_numbers<[1], [0], [0], [1], [0, 0, 1, 1], [], []>} : vector<32x32xbf16>, vector<32x8xbf16>, vector<32x8xf32> -> vector<32x8xf32>
    %400 = vector.shape_cast %390 : vector<32x8xf32> to vector<1x32x8xf32>
    %401 = vector.shape_cast %393 : vector<32x8xf32> to vector<1x32x8xf32>
    %402 = vector.shape_cast %396 : vector<32x8xf32> to vector<1x32x8xf32>
    %403 = vector.shape_cast %399 : vector<32x8xf32> to vector<1x32x8xf32>
    %404 = tpu.concatenate %400, %401, %402, %403 in 0 : vector<1x32x8xf32>, vector<1x32x8xf32>, vector<1x32x8xf32>, vector<1x32x8xf32> -> vector<4x32x8xf32>
    %c1_99 = arith.constant 1 : index
    %c0_100 = arith.constant 0 : index
    %c0_101 = arith.constant 0 : index
    %405 = vector.load %arg6[%c1_99, %c0_100, %c0_101] : memref<2x32x1xf32, #tpu.memory_space<vmem>>, vector<1x32x1xf32>
    %406 = vector.shape_cast %405 : vector<1x32x1xf32> to vector<32x1xf32>
    %407 = vector.shape_cast %406 : vector<32x1xf32> to vector<1x32x1xf32>
    %408 = vector.broadcast %407 : vector<1x32x1xf32> to vector<4x32x8xf32>
    %409 = arith.addf %404, %408 : vector<4x32x8xf32>
    %410 = arith.addf %260, %409 : vector<4x32x8xf32>
    %c1_102 = arith.constant 1 : index
    %c0_103 = arith.constant 0 : index
    %c0_104 = arith.constant 0 : index
    %411 = vector.load %arg7[%c1_102, %c0_103, %c0_104] : memref<2x32x1xf32, #tpu.memory_space<vmem>>, vector<1x32x1xf32>
    %412 = vector.shape_cast %411 : vector<1x32x1xf32> to vector<32x1xf32>
    %c1_105 = arith.constant 1 : index
    %c0_106 = arith.constant 0 : index
    %c0_107 = arith.constant 0 : index
    %413 = vector.load %arg8[%c1_105, %c0_106, %c0_107] : memref<2x32x1xf32, #tpu.memory_space<vmem>>, vector<1x32x1xf32>
    %414 = vector.shape_cast %413 : vector<1x32x1xf32> to vector<32x1xf32>
    %cst_108 = arith.constant dense<0.000000e+00> : vector<4x8xf32>
    %415 = vector.multi_reduction <add>, %410, %cst_108 [1] : vector<4x32x8xf32> to vector<4x8xf32>
    %416 = vector.shape_cast %415 : vector<4x8xf32> to vector<4x1x8xf32>
    %cst_109 = arith.constant 3.200000e+01 : f32
    %417 = vector.broadcast %cst_109 : f32 to vector<4x1x8xf32>
    %418 = arith.divf %416, %417 : vector<4x1x8xf32>
    %419 = vector.broadcast %418 : vector<4x1x8xf32> to vector<4x32x8xf32>
    %420 = arith.subf %410, %419 : vector<4x32x8xf32>
    %421 = arith.mulf %420, %420 : vector<4x32x8xf32>
    %cst_110 = arith.constant dense<0.000000e+00> : vector<4x8xf32>
    %422 = vector.multi_reduction <add>, %421, %cst_110 [1] : vector<4x32x8xf32> to vector<4x8xf32>
    %423 = vector.shape_cast %422 : vector<4x8xf32> to vector<4x1x8xf32>
    %cst_111 = arith.constant 3.200000e+01 : f32
    %424 = vector.broadcast %cst_111 : f32 to vector<4x1x8xf32>
    %425 = arith.divf %423, %424 : vector<4x1x8xf32>
    %426 = vector.broadcast %418 : vector<4x1x8xf32> to vector<4x32x8xf32>
    %427 = arith.subf %410, %426 : vector<4x32x8xf32>
    %cst_112 = arith.constant 9.99999974E-6 : f32
    %428 = vector.broadcast %cst_112 : f32 to vector<4x1x8xf32>
    %429 = arith.addf %425, %428 : vector<4x1x8xf32>
    %430 = math.rsqrt %429 : vector<4x1x8xf32>
    %431 = vector.broadcast %430 : vector<4x1x8xf32> to vector<4x32x8xf32>
    %432 = arith.mulf %427, %431 : vector<4x32x8xf32>
    %433 = vector.shape_cast %412 : vector<32x1xf32> to vector<1x32x1xf32>
    %434 = vector.broadcast %433 : vector<1x32x1xf32> to vector<4x32x8xf32>
    %435 = arith.mulf %432, %434 : vector<4x32x8xf32>
    %436 = vector.shape_cast %414 : vector<32x1xf32> to vector<1x32x1xf32>
    %437 = vector.broadcast %436 : vector<1x32x1xf32> to vector<4x32x8xf32>
    %438 = arith.addf %435, %437 : vector<4x32x8xf32>
    %439 = arith.truncf %438 : vector<4x32x8xf32> to vector<4x32x8xbf16>
    %c1_113 = arith.constant 1 : index
    %c0_114 = arith.constant 0 : index
    %c0_115 = arith.constant 0 : index
    %440 = vector.load %arg9[%c1_113, %c0_114, %c0_115] : memref<2x64x32xbf16, #tpu.memory_space<vmem>>, vector<1x64x32xbf16>
    %441 = vector.shape_cast %440 : vector<1x64x32xbf16> to vector<64x32xbf16>
    %c1_116 = arith.constant 1 : index
    %c0_117 = arith.constant 0 : index
    %c0_118 = arith.constant 0 : index
    %442 = vector.load %arg10[%c1_116, %c0_117, %c0_118] : memref<2x64x1xf32, #tpu.memory_space<vmem>>, vector<1x64x1xf32>
    %443 = vector.shape_cast %442 : vector<1x64x1xf32> to vector<64x1xf32>
    %c1_119 = arith.constant 1 : index
    %c0_120 = arith.constant 0 : index
    %c0_121 = arith.constant 0 : index
    %444 = vector.load %arg11[%c1_119, %c0_120, %c0_121] : memref<2x32x64xbf16, #tpu.memory_space<vmem>>, vector<1x32x64xbf16>
    %445 = vector.shape_cast %444 : vector<1x32x64xbf16> to vector<32x64xbf16>
    %446 = vector.extract_strided_slice %439 {offsets = [0, 0, 0], sizes = [1, 32, 8], strides = [1, 1, 1]} : vector<4x32x8xbf16> to vector<1x32x8xbf16>
    %447 = vector.shape_cast %446 : vector<1x32x8xbf16> to vector<32x8xbf16>
    %cst_122 = arith.constant dense<0.000000e+00> : vector<64x8xf32>
    %448 = tpu.matmul %441, %447, %cst_122 {dimension_numbers = #tpu.dot_dimension_numbers<[1], [0], [0], [1], [0, 0, 1, 1], [], []>} : vector<64x32xbf16>, vector<32x8xbf16>, vector<64x8xf32> -> vector<64x8xf32>
    %449 = vector.broadcast %443 : vector<64x1xf32> to vector<64x8xf32>
    %450 = arith.addf %448, %449 : vector<64x8xf32>
    %cst_123 = arith.constant 0.000000e+00 : f32
    %451 = vector.broadcast %cst_123 : f32 to vector<64x8xf32>
    %452 = arith.maximumf %450, %451 : vector<64x8xf32>
    %453 = arith.truncf %452 : vector<64x8xf32> to vector<64x8xbf16>
    %cst_124 = arith.constant dense<0.000000e+00> : vector<32x8xf32>
    %454 = tpu.matmul %445, %453, %cst_124 {dimension_numbers = #tpu.dot_dimension_numbers<[1], [0], [0], [1], [0, 0, 1, 1], [], []>} : vector<32x64xbf16>, vector<64x8xbf16>, vector<32x8xf32> -> vector<32x8xf32>
    %455 = vector.extract_strided_slice %439 {offsets = [1, 0, 0], sizes = [1, 32, 8], strides = [1, 1, 1]} : vector<4x32x8xbf16> to vector<1x32x8xbf16>
    %456 = vector.shape_cast %455 : vector<1x32x8xbf16> to vector<32x8xbf16>
    %cst_125 = arith.constant dense<0.000000e+00> : vector<64x8xf32>
    %457 = tpu.matmul %441, %456, %cst_125 {dimension_numbers = #tpu.dot_dimension_numbers<[1], [0], [0], [1], [0, 0, 1, 1], [], []>} : vector<64x32xbf16>, vector<32x8xbf16>, vector<64x8xf32> -> vector<64x8xf32>
    %458 = vector.broadcast %443 : vector<64x1xf32> to vector<64x8xf32>
    %459 = arith.addf %457, %458 : vector<64x8xf32>
    %cst_126 = arith.constant 0.000000e+00 : f32
    %460 = vector.broadcast %cst_126 : f32 to vector<64x8xf32>
    %461 = arith.maximumf %459, %460 : vector<64x8xf32>
    %462 = arith.truncf %461 : vector<64x8xf32> to vector<64x8xbf16>
    %cst_127 = arith.constant dense<0.000000e+00> : vector<32x8xf32>
    %463 = tpu.matmul %445, %462, %cst_127 {dimension_numbers = #tpu.dot_dimension_numbers<[1], [0], [0], [1], [0, 0, 1, 1], [], []>} : vector<32x64xbf16>, vector<64x8xbf16>, vector<32x8xf32> -> vector<32x8xf32>
    %464 = vector.extract_strided_slice %439 {offsets = [2, 0, 0], sizes = [1, 32, 8], strides = [1, 1, 1]} : vector<4x32x8xbf16> to vector<1x32x8xbf16>
    %465 = vector.shape_cast %464 : vector<1x32x8xbf16> to vector<32x8xbf16>
    %cst_128 = arith.constant dense<0.000000e+00> : vector<64x8xf32>
    %466 = tpu.matmul %441, %465, %cst_128 {dimension_numbers = #tpu.dot_dimension_numbers<[1], [0], [0], [1], [0, 0, 1, 1], [], []>} : vector<64x32xbf16>, vector<32x8xbf16>, vector<64x8xf32> -> vector<64x8xf32>
    %467 = vector.broadcast %443 : vector<64x1xf32> to vector<64x8xf32>
    %468 = arith.addf %466, %467 : vector<64x8xf32>
    %cst_129 = arith.constant 0.000000e+00 : f32
    %469 = vector.broadcast %cst_129 : f32 to vector<64x8xf32>
    %470 = arith.maximumf %468, %469 : vector<64x8xf32>
    %471 = arith.truncf %470 : vector<64x8xf32> to vector<64x8xbf16>
    %cst_130 = arith.constant dense<0.000000e+00> : vector<32x8xf32>
    %472 = tpu.matmul %445, %471, %cst_130 {dimension_numbers = #tpu.dot_dimension_numbers<[1], [0], [0], [1], [0, 0, 1, 1], [], []>} : vector<32x64xbf16>, vector<64x8xbf16>, vector<32x8xf32> -> vector<32x8xf32>
    %473 = vector.extract_strided_slice %439 {offsets = [3, 0, 0], sizes = [1, 32, 8], strides = [1, 1, 1]} : vector<4x32x8xbf16> to vector<1x32x8xbf16>
    %474 = vector.shape_cast %473 : vector<1x32x8xbf16> to vector<32x8xbf16>
    %cst_131 = arith.constant dense<0.000000e+00> : vector<64x8xf32>
    %475 = tpu.matmul %441, %474, %cst_131 {dimension_numbers = #tpu.dot_dimension_numbers<[1], [0], [0], [1], [0, 0, 1, 1], [], []>} : vector<64x32xbf16>, vector<32x8xbf16>, vector<64x8xf32> -> vector<64x8xf32>
    %476 = vector.broadcast %443 : vector<64x1xf32> to vector<64x8xf32>
    %477 = arith.addf %475, %476 : vector<64x8xf32>
    %cst_132 = arith.constant 0.000000e+00 : f32
    %478 = vector.broadcast %cst_132 : f32 to vector<64x8xf32>
    %479 = arith.maximumf %477, %478 : vector<64x8xf32>
    %480 = arith.truncf %479 : vector<64x8xf32> to vector<64x8xbf16>
    %cst_133 = arith.constant dense<0.000000e+00> : vector<32x8xf32>
    %481 = tpu.matmul %445, %480, %cst_133 {dimension_numbers = #tpu.dot_dimension_numbers<[1], [0], [0], [1], [0, 0, 1, 1], [], []>} : vector<32x64xbf16>, vector<64x8xbf16>, vector<32x8xf32> -> vector<32x8xf32>
    %482 = vector.shape_cast %454 : vector<32x8xf32> to vector<1x32x8xf32>
    %483 = vector.shape_cast %463 : vector<32x8xf32> to vector<1x32x8xf32>
    %484 = vector.shape_cast %472 : vector<32x8xf32> to vector<1x32x8xf32>
    %485 = vector.shape_cast %481 : vector<32x8xf32> to vector<1x32x8xf32>
    %486 = tpu.concatenate %482, %483, %484, %485 in 0 : vector<1x32x8xf32>, vector<1x32x8xf32>, vector<1x32x8xf32>, vector<1x32x8xf32> -> vector<4x32x8xf32>
    %487 = arith.addf %438, %486 : vector<4x32x8xf32>
    %c1_134 = arith.constant 1 : index
    %c0_135 = arith.constant 0 : index
    %c0_136 = arith.constant 0 : index
    %488 = vector.load %arg12[%c1_134, %c0_135, %c0_136] : memref<2x32x1xf32, #tpu.memory_space<vmem>>, vector<1x32x1xf32>
    %489 = vector.shape_cast %488 : vector<1x32x1xf32> to vector<32x1xf32>
    %490 = vector.shape_cast %489 : vector<32x1xf32> to vector<1x32x1xf32>
    %491 = vector.broadcast %490 : vector<1x32x1xf32> to vector<4x32x8xf32>
    %492 = arith.addf %487, %491 : vector<4x32x8xf32>
    %c1_137 = arith.constant 1 : index
    %c0_138 = arith.constant 0 : index
    %c0_139 = arith.constant 0 : index
    %493 = vector.load %arg13[%c1_137, %c0_138, %c0_139] : memref<2x32x1xf32, #tpu.memory_space<vmem>>, vector<1x32x1xf32>
    %494 = vector.shape_cast %493 : vector<1x32x1xf32> to vector<32x1xf32>
    %c1_140 = arith.constant 1 : index
    %c0_141 = arith.constant 0 : index
    %c0_142 = arith.constant 0 : index
    %495 = vector.load %arg14[%c1_140, %c0_141, %c0_142] : memref<2x32x1xf32, #tpu.memory_space<vmem>>, vector<1x32x1xf32>
    %496 = vector.shape_cast %495 : vector<1x32x1xf32> to vector<32x1xf32>
    %cst_143 = arith.constant dense<0.000000e+00> : vector<4x8xf32>
    %497 = vector.multi_reduction <add>, %492, %cst_143 [1] : vector<4x32x8xf32> to vector<4x8xf32>
    %498 = vector.shape_cast %497 : vector<4x8xf32> to vector<4x1x8xf32>
    %cst_144 = arith.constant 3.200000e+01 : f32
    %499 = vector.broadcast %cst_144 : f32 to vector<4x1x8xf32>
    %500 = arith.divf %498, %499 : vector<4x1x8xf32>
    %501 = vector.broadcast %500 : vector<4x1x8xf32> to vector<4x32x8xf32>
    %502 = arith.subf %492, %501 : vector<4x32x8xf32>
    %503 = arith.mulf %502, %502 : vector<4x32x8xf32>
    %cst_145 = arith.constant dense<0.000000e+00> : vector<4x8xf32>
    %504 = vector.multi_reduction <add>, %503, %cst_145 [1] : vector<4x32x8xf32> to vector<4x8xf32>
    %505 = vector.shape_cast %504 : vector<4x8xf32> to vector<4x1x8xf32>
    %cst_146 = arith.constant 3.200000e+01 : f32
    %506 = vector.broadcast %cst_146 : f32 to vector<4x1x8xf32>
    %507 = arith.divf %505, %506 : vector<4x1x8xf32>
    %508 = vector.broadcast %500 : vector<4x1x8xf32> to vector<4x32x8xf32>
    %509 = arith.subf %492, %508 : vector<4x32x8xf32>
    %cst_147 = arith.constant 9.99999974E-6 : f32
    %510 = vector.broadcast %cst_147 : f32 to vector<4x1x8xf32>
    %511 = arith.addf %507, %510 : vector<4x1x8xf32>
    %512 = math.rsqrt %511 : vector<4x1x8xf32>
    %513 = vector.broadcast %512 : vector<4x1x8xf32> to vector<4x32x8xf32>
    %514 = arith.mulf %509, %513 : vector<4x32x8xf32>
    %515 = vector.shape_cast %494 : vector<32x1xf32> to vector<1x32x1xf32>
    %516 = vector.broadcast %515 : vector<1x32x1xf32> to vector<4x32x8xf32>
    %517 = arith.mulf %514, %516 : vector<4x32x8xf32>
    %518 = vector.shape_cast %496 : vector<32x1xf32> to vector<1x32x1xf32>
    %519 = vector.broadcast %518 : vector<1x32x1xf32> to vector<4x32x8xf32>
    %520 = arith.addf %517, %519 : vector<4x32x8xf32>
    %cst_148 = arith.constant dense<0.000000e+00> : vector<32x8xf32>
    %521 = vector.multi_reduction <add>, %520, %cst_148 [0] : vector<4x32x8xf32> to vector<32x8xf32>
    %cst_149 = arith.constant 4.000000e+00 : f32
    %522 = vector.broadcast %cst_149 : f32 to vector<32x8xf32>
    %523 = arith.divf %521, %522 : vector<32x8xf32>
    %524 = arith.truncf %523 : vector<32x8xf32> to vector<32x8xbf16>
    %cst_150 = arith.constant dense<0xFF800000> : vector<32x8xf32>
    %525 = vector.multi_reduction <maximumf>, %520, %cst_150 [0] : vector<4x32x8xf32> to vector<32x8xf32>
    %526 = arith.truncf %525 : vector<32x8xf32> to vector<32x8xbf16>
    %c0_151 = arith.constant 0 : index
    %c0_152 = arith.constant 0 : index
    %c0_153 = arith.constant 0 : index
    %527 = vector.load %arg15[%c0_151, %c0_152, %c0_153] : memref<2x8x32xbf16, #tpu.memory_space<vmem>>, vector<1x8x32xbf16>
    %528 = vector.shape_cast %527 : vector<1x8x32xbf16> to vector<8x32xbf16>
    %cst_154 = arith.constant dense<0.000000e+00> : vector<8x8xf32>
    %529 = tpu.matmul %528, %524, %cst_154 {dimension_numbers = #tpu.dot_dimension_numbers<[1], [0], [0], [1], [0, 0, 1, 1], [], []>} : vector<8x32xbf16>, vector<32x8xbf16>, vector<8x8xf32> -> vector<8x8xf32>
    %c1_155 = arith.constant 1 : index
    %c0_156 = arith.constant 0 : index
    %c0_157 = arith.constant 0 : index
    %530 = vector.load %arg15[%c1_155, %c0_156, %c0_157] : memref<2x8x32xbf16, #tpu.memory_space<vmem>>, vector<1x8x32xbf16>
    %531 = vector.shape_cast %530 : vector<1x8x32xbf16> to vector<8x32xbf16>
    %cst_158 = arith.constant dense<0.000000e+00> : vector<8x8xf32>
    %532 = tpu.matmul %531, %526, %cst_158 {dimension_numbers = #tpu.dot_dimension_numbers<[1], [0], [0], [1], [0, 0, 1, 1], [], []>} : vector<8x32xbf16>, vector<32x8xbf16>, vector<8x8xf32> -> vector<8x8xf32>
    %533 = arith.addf %529, %532 : vector<8x8xf32>
    %c0_159 = arith.constant 0 : index
    %c0_160 = arith.constant 0 : index
    %534 = vector.load %arg16[%c0_159, %c0_160] : memref<8x1xf32, #tpu.memory_space<vmem>>, vector<8x1xf32>
    %535 = vector.broadcast %534 : vector<8x1xf32> to vector<8x8xf32>
    %536 = arith.addf %533, %535 : vector<8x8xf32>
    %c0_161 = arith.constant 0 : index
    %c0_162 = arith.constant 0 : index
    %537 = vector.load %arg2[%c0_161, %c0_162] : memref<5x8xf32, #tpu.memory_space<vmem>>, vector<5x8xf32>
    %c0_163 = arith.constant 0 : index
    %c0_164 = arith.constant 0 : index
    %c0_165 = arith.constant 0 : index
    %538 = vector.load %arg17[%c0_163, %c0_164, %c0_165] : memref<8x5x1xf32, #tpu.memory_space<vmem>>, vector<8x5x1xf32>
    %539 = vector.shape_cast %537 : vector<5x8xf32> to vector<1x5x8xf32>
    %540 = vector.broadcast %538 : vector<8x5x1xf32> to vector<8x5x8xf32>
    %541 = vector.broadcast %539 : vector<1x5x8xf32> to vector<8x5x8xf32>
    %542 = arith.mulf %540, %541 : vector<8x5x8xf32>
    %cst_166 = arith.constant dense<0.000000e+00> : vector<8x8xf32>
    %543 = vector.multi_reduction <add>, %542, %cst_166 [1] : vector<8x5x8xf32> to vector<8x8xf32>
    %c0_167 = arith.constant 0 : index
    %c0_168 = arith.constant 0 : index
    %544 = vector.load %arg18[%c0_167, %c0_168] : memref<8x1xf32, #tpu.memory_space<vmem>>, vector<8x1xf32>
    %545 = vector.broadcast %544 : vector<8x1xf32> to vector<8x8xf32>
    %546 = arith.addf %543, %545 : vector<8x8xf32>
    %cst_169 = arith.constant 0.000000e+00 : f32
    %547 = vector.broadcast %cst_169 : f32 to vector<8x8xf32>
    %548 = arith.cmpf oge, %546, %547 : vector<8x8xf32>
    %cst_170 = arith.constant 2.000000e-01 : f32
    %549 = vector.broadcast %cst_170 : f32 to vector<8x8xf32>
    %550 = arith.mulf %549, %546 : vector<8x8xf32>
    %551 = arith.select %548, %546, %550 : vector<8x8xi1>, vector<8x8xf32>
    %552 = tpu.concatenate %536, %551 in 0 : vector<8x8xf32>, vector<8x8xf32> -> vector<16x8xf32>
    %c0_171 = arith.constant 0 : index
    %c0_172 = arith.constant 0 : index
    %553 = vector.load %arg19[%c0_171, %c0_172] : memref<16x8xf32, #tpu.memory_space<vmem>>, vector<16x8xf32>
    tpu.vector_store %arg19[%c0_171, %c0_172], %552 {strides = array<i32>} : memref<16x8xf32, #tpu.memory_space<vmem>>, vector<16x8xf32>,
    return
  }
  func.func @transform_0(%arg0: i32) -> (i32, i32, i32) {
    %c0_i32 = arith.constant 0 : i32
    %c0_i32_0 = arith.constant 0 : i32
    %c0_i32_1 = arith.constant 0 : i32
    return %c0_i32, %c0_i32_0, %arg0 : i32, i32, i32
  }
  func.func @transform_1(%arg0: i32) -> (i32, i32) {
    %c0_i32 = arith.constant 0 : i32
    %c0_i32_0 = arith.constant 0 : i32
    return %c0_i32, %arg0 : i32, i32
  }
  func.func @transform_2(%arg0: i32) -> (i32, i32, i32) {
    %c0_i32 = arith.constant 0 : i32
    %c0_i32_0 = arith.constant 0 : i32
    %c0_i32_1 = arith.constant 0 : i32
    %c0_i32_2 = arith.constant 0 : i32
    return %c0_i32, %c0_i32_0, %c0_i32_1 : i32, i32, i32
  }
  func.func @transform_3(%arg0: i32) -> (i32, i32, i32) {
    %c0_i32 = arith.constant 0 : i32
    %c0_i32_0 = arith.constant 0 : i32
    %c0_i32_1 = arith.constant 0 : i32
    %c0_i32_2 = arith.constant 0 : i32
    return %c0_i32, %c0_i32_0, %c0_i32_1 : i32, i32, i32
  }
  func.func @transform_4(%arg0: i32) -> (i32, i32, i32) {
    %c0_i32 = arith.constant 0 : i32
    %c0_i32_0 = arith.constant 0 : i32
    %c0_i32_1 = arith.constant 0 : i32
    %c0_i32_2 = arith.constant 0 : i32
    return %c0_i32, %c0_i32_0, %c0_i32_1 : i32, i32, i32
  }
  func.func @transform_5(%arg0: i32) -> (i32, i32, i32) {
    %c0_i32 = arith.constant 0 : i32
    %c0_i32_0 = arith.constant 0 : i32
    %c0_i32_1 = arith.constant 0 : i32
    %c0_i32_2 = arith.constant 0 : i32
    return %c0_i32, %c0_i32_0, %c0_i32_1 : i32, i32, i32
  }
  func.func @transform_6(%arg0: i32) -> (i32, i32, i32) {
    %c0_i32 = arith.constant 0 : i32
    %c0_i32_0 = arith.constant 0 : i32
    %c0_i32_1 = arith.constant 0 : i32
    %c0_i32_2 = arith.constant 0 : i32
    return %c0_i32, %c0_i32_0, %c0_i32_1 : i32, i32, i32
  }
  func.func @transform_7(%arg0: i32) -> (i32, i32, i32) {
    %c0_i32 = arith.constant 0 : i32
    %c0_i32_0 = arith.constant 0 : i32
    %c0_i32_1 = arith.constant 0 : i32
    %c0_i32_2 = arith.constant 0 : i32
    return %c0_i32, %c0_i32_0, %c0_i32_1 : i32, i32, i32
  }
  func.func @transform_8(%arg0: i32) -> (i32, i32, i32) {
    %c0_i32 = arith.constant 0 : i32
    %c0_i32_0 = arith.constant 0 : i32
    %c0_i32_1 = arith.constant 0 : i32
    %c0_i32_2 = arith.constant 0 : i32
    return %c0_i32, %c0_i32_0, %c0_i32_1 : i32, i32, i32
  }
  func.func @transform_9(%arg0: i32) -> (i32, i32, i32) {
    %c0_i32 = arith.constant 0 : i32
    %c0_i32_0 = arith.constant 0 : i32
    %c0_i32_1 = arith.constant 0 : i32
    %c0_i32_2 = arith.constant 0 : i32
    return %c0_i32, %c0_i32_0, %c0_i32_1 : i32, i32, i32
  }
  func.func @transform_10(%arg0: i32) -> (i32, i32, i32) {
    %c0_i32 = arith.constant 0 : i32
    %c0_i32_0 = arith.constant 0 : i32
    %c0_i32_1 = arith.constant 0 : i32
    %c0_i32_2 = arith.constant 0 : i32
    return %c0_i32, %c0_i32_0, %c0_i32_1 : i32, i32, i32
  }
  func.func @transform_11(%arg0: i32) -> (i32, i32, i32) {
    %c0_i32 = arith.constant 0 : i32
    %c0_i32_0 = arith.constant 0 : i32
    %c0_i32_1 = arith.constant 0 : i32
    %c0_i32_2 = arith.constant 0 : i32
    return %c0_i32, %c0_i32_0, %c0_i32_1 : i32, i32, i32
  }
  func.func @transform_12(%arg0: i32) -> (i32, i32, i32) {
    %c0_i32 = arith.constant 0 : i32
    %c0_i32_0 = arith.constant 0 : i32
    %c0_i32_1 = arith.constant 0 : i32
    %c0_i32_2 = arith.constant 0 : i32
    return %c0_i32, %c0_i32_0, %c0_i32_1 : i32, i32, i32
  }
  func.func @transform_13(%arg0: i32) -> (i32, i32, i32) {
    %c0_i32 = arith.constant 0 : i32
    %c0_i32_0 = arith.constant 0 : i32
    %c0_i32_1 = arith.constant 0 : i32
    %c0_i32_2 = arith.constant 0 : i32
    return %c0_i32, %c0_i32_0, %c0_i32_1 : i32, i32, i32
  }
  func.func @transform_14(%arg0: i32) -> (i32, i32, i32) {
    %c0_i32 = arith.constant 0 : i32
    %c0_i32_0 = arith.constant 0 : i32
    %c0_i32_1 = arith.constant 0 : i32
    %c0_i32_2 = arith.constant 0 : i32
    return %c0_i32, %c0_i32_0, %c0_i32_1 : i32, i32, i32
  }
  func.func @transform_15(%arg0: i32) -> (i32, i32) {
    %c0_i32 = arith.constant 0 : i32
    %c0_i32_0 = arith.constant 0 : i32
    %c0_i32_1 = arith.constant 0 : i32
    return %c0_i32, %c0_i32_0 : i32, i32
  }
  func.func @transform_16(%arg0: i32) -> (i32, i32, i32) {
    %c0_i32 = arith.constant 0 : i32
    %c0_i32_0 = arith.constant 0 : i32
    %c0_i32_1 = arith.constant 0 : i32
    %c0_i32_2 = arith.constant 0 : i32
    return %c0_i32, %c0_i32_0, %c0_i32_1 : i32, i32, i32
  }
  func.func @transform_17(%arg0: i32) -> (i32, i32) {
    %c0_i32 = arith.constant 0 : i32
    %c0_i32_0 = arith.constant 0 : i32
    %c0_i32_1 = arith.constant 0 : i32
    return %c0_i32, %c0_i32_0 : i32, i32
  }
  func.func @transform_18(%arg0: i32) -> (i32, i32) {
    %c0_i32 = arith.constant 0 : i32
    %c0_i32_0 = arith.constant 0 : i32
    return %c0_i32, %arg0 : i32, i32
  }
}

</mosaic_0001>

<bundles_post_ra>
// kernel: tpu_custom_call.1
= control target key start
LH: loop header
LB: loop body
LE: loop exit
PB: predicated region body
PF: predicated region fallthrough
CT: control target
= control target key end

     0   :  { %v7392_v0 = vmov 0   ;;  %vm202_vm0 = vcmask 261120   ;;  %vm577_vm1 = vcmask 64512   ;;  %vm815_vm2 = vcmask 1041409   ;;  %s11626_s3 = inlined_call_operand.vmem [shape: f32[2,96,1], index: 3, kind: input, shape index: {}]   ;;  %s11627_s0 = inlined_call_operand.vmem [shape: f32[4,32,8], index: 0, kind: input, shape index: {}]   ;;  %s11628_s2 = inlined_call_operand.vmem [shape: bf16[2,96,32], index: 2, kind: input, shape index: {}]   ;;  %s11629_s5 = inlined_call_operand.vmem [shape: f32[2,32,1], index: 5, kind: input, shape index: {}]   ;;  %s11630_s6 = inlined_call_operand.vmem [shape: f32[2,32,1], index: 6, kind: input, shape index: {}]   ;;  %s11631_s7 = inlined_call_operand.vmem [shape: f32[2,32,1], index: 7, kind: input, shape index: {}]   ;;  %s11632_s9 = inlined_call_operand.vmem [shape: f32[2,64,1], index: 9, kind: input, shape index: {}]   ;;  %s11633_s11 = inlined_call_operand.vmem [shape: f32[2,32,1], index: 11, kind: input, shape index: {}]   ;;  %s11634_s12 = inlined_call_operand.vmem [shape: f32[2,32,1], index: 12, kind: input, shape index: {}]   ;;  %s11635_s13 = inlined_call_operand.vmem [shape: f32[2,32,1], index: 13, kind: input, shape index: {}]   ;;  %s11636_s16 = inlined_call_operand.vmem [shape: f32[8,5,1], index: 16, kind: input, shape index: {}]   ;;  %s11637_s15 = inlined_call_operand.vmem [shape: f32[8,1], index: 15, kind: input, shape index: {}]   ;;  %s11638_s17 = inlined_call_operand.vmem [shape: f32[8,1], index: 17, kind: input, shape index: {}]   ;;  %s11639_s4 = inlined_call_operand.vmem [shape: bf16[2,32,32], index: 4, kind: input, shape index: {}]   ;;  %s11640_s1 = inlined_call_operand.vmem [shape: f32[5,8], index: 1, kind: input, shape index: {}]   ;;  %s11641_s18 = inlined_call_operand.vmem [shape: f32[16,8], index: 18, kind: output, shape index: {}]   ;;  %s11642_s8 = inlined_call_operand.vmem [shape: bf16[2,64,32], index: 8, kind: input, shape index: {}]   ;;  %s11643_s10 = inlined_call_operand.vmem [shape: bf16[2,32,64], index: 10, kind: input, shape index: {}]   ;;  %s11644_s14 = inlined_call_operand.vmem [shape: bf16[2,8,32], index: 14, kind: input, shape index: {}]  }
   0x1   :  { %11834 = sst [smem:[#allocation108_spill]] %s11626_s3  ;;  %7153 = vset.pattern.permute.xlu1 %v7392_v0  ;;  %7152 = vset.pattern.permute.xlu0 %v7392_v0  ;;  %v1795_v42 = vld [vmem:[%s11629_s5 + $0x8] sm:$0xff]  ;;  %v1794_v43 = vld [vmem:[%s11629_s5] sm:$0xff]  ;;  %v1797_v45 = vld [vmem:[%s11629_s5 + $0x18] sm:$0xff]  ;;  %vm6194_vm3 = vcmask 61440   ;;  %vm818_vm4 = vcmask 1042434  }
   0x2   :  { %11835 = sst [smem:[#allocation109_spill]] %s11627_s0  ;;  %v1796_v46 = vld [vmem:[%s11629_s5 + $0x10] sm:$0xff]  ;;  %v1853_v47 = vld [vmem:[%s11630_s6 + $0x18] sm:$0xff]  ;;  %v1851_v51 = vld [vmem:[%s11630_s6 + $0x8] sm:$0xff]  ;;  %vm821_vm5 = vcmask 1043459   ;;  %vm845_vm6 = vcmask 60416  }
   0x3   :  { %11836 = sst [smem:[#allocation110_spill]] %s11628_s2  ;;  %v1852_v48 = vld [vmem:[%s11630_s6 + $0x10] sm:$0xff]  ;;  %v1857_v49 = vld [vmem:[%s11631_s7 + $0x18] sm:$0xff]  ;;  %v1850_v52 = vld [vmem:[%s11630_s6] sm:$0xff]  ;;  %vm6318_vm15 = vcmask 1044484  }
   0x4   :  { %s11837_s29 = sld [smem:[#allocation108_spill]]  ;;  %v1856_v50 = vld [vmem:[%s11631_s7 + $0x10] sm:$0xff]  ;;  %v1855_v53 = vld [vmem:[%s11631_s7 + $0x8] sm:$0xff]  ;;  %v1854_v54 = vld [vmem:[%s11631_s7] sm:$0xff] }
   0x5   :  { %s11838_s20 = sld [smem:[#allocation109_spill]]  ;;  %v2122_v55 = vld [vmem:[%s11632_s9 + $0x38] sm:$0xff]  ;;  %v2121_v56 = vld [vmem:[%s11632_s9 + $0x30] sm:$0xff]  ;;  %v2120_v57 = vld [vmem:[%s11632_s9 + $0x28] sm:$0xff] }
   0x6   :  { %s11839_s27 = sld [smem:[#allocation110_spill]]  ;;  %v2119_v58 = vld [vmem:[%s11632_s9 + $0x20] sm:$0xff]  ;;  %v2118_v59 = vld [vmem:[%s11632_s9 + $0x18] sm:$0xff]  ;;  %v2117_v60 = vld [vmem:[%s11632_s9 + $0x10] sm:$0xff] }
   0x7   :  { %v2116_v61 = vld [vmem:[%s11632_s9 + $0x8] sm:$0xff]  ;;  %v2115_v62 = vld [vmem:[%s11632_s9] sm:$0xff] }
   0x8   :  { %v2737_v63 = vld [vmem:[%s11633_s11 + $0x8] sm:$0xff]  ;;  %v2736_v0 = vld [vmem:[%s11633_s11] sm:$0xff] }
   0xa   :  { %v94_v1 = vld [vmem:[%s11837_s29 + $0x30] sm:$0xff]  ;;  %v95_v9 = vld [vmem:[%s11837_s29 + $0x38] sm:$0xff]  ;;  %v89_v18 = vld [vmem:[%s11837_s29 + $0x8] sm:$0xff] }
   0xb   :  { %v90_v2 = vld [vmem:[%s11837_s29 + $0x10] sm:$0xff]  ;;  %144 = vperm.xlu1 %7153, %v94_v1   ;;  %v63_v4 = vld [vmem:[%s11838_s20 + $0x18] sm:$0xff]  ;;  %v60_v11 = vld [vmem:[%s11838_s20] sm:$0xff] }
   0xc   :  { %v62_v3 = vld [vmem:[%s11838_s20 + $0x10] sm:$0xff]  ;;  %124 = vperm.xlu0 %7152, %v90_v2   ;;  %v67_v6 = vld [vmem:[%s11838_s20 + $0x38] sm:$0xff]  ;;  %v61_v12 = vld [vmem:[%s11838_s20 + $0x8] sm:$0xff] }
   0xd   :  { %v66_v5 = vld [vmem:[%s11838_s20 + $0x30] sm:$0xff]  ;;  %v105_v7 = vpack.c.bf16 %v63_v4, %v62_v3  ;;  %v91_v10 = vld [vmem:[%s11837_s29 + $0x18] sm:$0xff]  ;;  %v64_v13 = vld [vmem:[%s11838_s20 + $0x20] sm:$0xff]  ;;  %v104_v15 = vpack.c.bf16 %v61_v12, %v60_v11 }
   0xe   :  { %v107_v8 = vpack.c.bf16 %v67_v6, %v66_v5  ;;  %v65_v14 = vld [vmem:[%s11838_s20 + $0x28] sm:$0xff]  ;;  %v7529_v17 = vld [vmem:[%s11839_s27] sm:$0xff]   ;;  %v7549_v21 = vld [vmem:[%s11839_s27 + $0x10] sm:$0xff]  }
   0xf   :  { %6749 = vmatprep.subr.bf16.mxu0 %v105_v7  ;;  %v106_v16 = vpack.c.bf16 %v65_v14, %v64_v13  ;;  %149 = vperm.xlu1 %7153, %v95_v9   ;;  %v88_v19 = vld [vmem:[%s11837_s29] sm:$0xff]  ;;  %v7544_v20 = vld [vmem:[%s11839_s27 + $0x8] sm:$0xff]   ;;  %v70_v24 = vld [vmem:[%s11838_s20 + $0x50] sm:$0xff] }
  0x10   :  { %6765 = vmatprep.subr.bf16.mxu1 %v107_v8  ;;  %6750 = vmatpush3.bf16.msra.mxu0 %v105_v7  ;;  %v93_v22 = vld [vmem:[%s11837_s29 + $0x28] sm:$0xff]  ;;  %v92_v23 = vld [vmem:[%s11837_s29 + $0x20] sm:$0xff]  ;;  %v71_v25 = vld [vmem:[%s11838_s20 + $0x58] sm:$0xff] }
  0x11   :  { %6766 = vmatpush3.bf16.msra.mxu1 %v107_v8  ;;  %129 = vperm.xlu0 %7152, %v91_v10   ;;  %v99_v26 = vld [vmem:[%s11837_s29 + $0x58] sm:$0xff]  ;;  %v109_v27 = vpack.c.bf16 %v71_v25, %v70_v24  ;;  %v74_v28 = vld [vmem:[%s11838_s20 + $0x70] sm:$0xff]  ;;  %v68_v32 = vld [vmem:[%s11838_s20 + $0x40] sm:$0xff] }
  0x12   :  { %6751 = vmatprep.subr.bf16.mxu0 %v104_v15  ;;  %6767 = vmatprep.subr.bf16.mxu1 %v106_v16  ;;  %v75_v29 = vld [vmem:[%s11838_s20 + $0x78] sm:$0xff]  ;;  %v98_v30 = vld [vmem:[%s11837_s29 + $0x50] sm:$0xff]  ;;  %v69_v33 = vld [vmem:[%s11838_s20 + $0x48] sm:$0xff] }
  0x13   :  { %6753 = vmatprep.mubr.msk.bf16.mxu0 %vm202_vm0, %v7529_v17  ;;  %6769 = vmatprep.mubr.msk.bf16.mxu1 %vm202_vm0, %v7529_v17  ;;  %v111_v31 = vpack.c.bf16 %v75_v29, %v74_v28  ;;  %v7157_v34 = vld [vmem:[%s11839_s27 + $0x18] sm:$0xff]   ;;  %v108_v35 = vpack.c.bf16 %v69_v33, %v68_v32  ;;  %v72_v36 = vld [vmem:[%s11838_s20 + $0x60] sm:$0xff]  ;;  %v73_v37 = vld [vmem:[%s11838_s20 + $0x68] sm:$0xff] }
  0x14   :  { %6752 = vmatpush3.bf16.msra.mxu0 %v104_v15  ;;  %119 = vperm.xlu1 %7153, %v89_v18   ;;  %v7158_v38 = vld [vmem:[%s11839_s27 + $0x20] sm:$0xff]   ;;  %v97_v39 = vld [vmem:[%s11837_s29 + $0x48] sm:$0xff]  ;;  %v110_v41 = vpack.c.bf16 %v73_v37, %v72_v36  ;;  %v2739_v1 = vld [vmem:[%s11633_s11 + $0x18] sm:$0xff] }
  0x15   :  { %6768 = vmatpush3.bf16.msra.mxu1 %v106_v16  ;;  %114 = vperm.xlu0 %7152, %v88_v19   ;;  %v96_v40 = vld [vmem:[%s11837_s29 + $0x40] sm:$0xff]  ;;  %v7159_v44 = vld [vmem:[%s11839_s27 + $0x28] sm:$0xff]   ;;  %v2738_v2 = vld [vmem:[%s11633_s11 + $0x10] sm:$0xff] }
  0x16   :  { %6781 = vmatprep.subr.bf16.mxu0 %v109_v27  ;;  %6797 = vmatprep.subr.bf16.mxu1 %v111_v31  ;;  %v2779_v3 = vld [vmem:[%s11634_s12 + $0x18] sm:$0xff]  ;;  %v2778_v4 = vld [vmem:[%s11634_s12 + $0x10] sm:$0xff]  ;;  %v2777_v7 = vld [vmem:[%s11634_s12 + $0x8] sm:$0xff] }
  0x17   :  { %6754 = vmatmul.mubr.msk.bf16.vlgmr.msra.gmra.mxu0 %vm202_vm0, %v7544_v20  ;;  %v2783_v5 = vld [vmem:[%s11635_s13 + $0x18] sm:$0xff]  ;;  %v2782_v6 = vld [vmem:[%s11635_s13 + $0x10] sm:$0xff]  ;;  %v2776_v8 = vld [vmem:[%s11634_s12] sm:$0xff] }
  0x18   :  { %6770 = vmatmul.mubr.msk.bf16.vlgmr.msra.gmra.mxu1 %vm202_vm0, %v7544_v20  ;;  %6757 = vmatprep.mubr.msk.bf16.mxu0 %vm202_vm0, %v7549_v21  ;;  %v2781_v9 = vld [vmem:[%s11635_s13 + $0x8] sm:$0xff]  ;;  %v2780_v10 = vld [vmem:[%s11635_s13] sm:$0xff]  ;;  %v6421_v11 = vld [vmem:[%s11837_s29 + $0x78] sm:$0xff] }
  0x19   :  { %6773 = vmatprep.mubr.msk.bf16.mxu1 %vm202_vm0, %v7549_v21  ;;  %139 = vperm.xlu1 %7153, %v93_v22   ;;  %v6420_v12 = vld [vmem:[%s11837_s29 + $0x70] sm:$0xff]  ;;  %v6425_v13 = vld [vmem:[%s11837_s29 + $0x98] sm:$0xff]  ;;  %v6419_v15 = vld [vmem:[%s11837_s29 + $0x68] sm:$0xff] }
  0x1a   :  { %134 = vperm.xlu0 %7152, %v92_v23   ;;  %6782 = vmatpush3.bf16.msra.mxu0 %v109_v27  ;;  %v6424_v14 = vld [vmem:[%s11837_s29 + $0x90] sm:$0xff]  ;;  %v6418_v16 = vld [vmem:[%s11837_s29 + $0x60] sm:$0xff]  ;;  %v6429_v19 = vld [vmem:[%s11837_s29 + $0xb8] sm:$0xff] }
  0x1b   :  { %6798 = vmatpush3.bf16.msra.mxu1 %v111_v31  ;;  %6783 = vmatprep.subr.bf16.mxu0 %v108_v35  ;;  %v6422_v18 = vld [vmem:[%s11837_s29 + $0x80] sm:$0xff]  ;;  %v6475_v23 = vld [vmem:[%s11629_s5 + $0x28] sm:$0xff]  ;;  %v6477_v25 = vld [vmem:[%s11629_s5 + $0x38] sm:$0xff] }
  0x1c   :  { %6799 = vmatprep.subr.bf16.mxu1 %v110_v41  ;;  %v6426_v22 = vld [vmem:[%s11837_s29 + $0xa0] sm:$0xff]  ;;  %v6481_v27 = vld [vmem:[%s11630_s6 + $0x38] sm:$0xff]  ;;  %v6480_v28 = vld [vmem:[%s11630_s6 + $0x30] sm:$0xff] }
  0x1d   :  { %169 = vperm.xlu1 %7153, %v99_v26   ;;  %v6474_v24 = vld [vmem:[%s11629_s5 + $0x20] sm:$0xff]  ;;  %v6476_v26 = vld [vmem:[%s11629_s5 + $0x30] sm:$0xff]  ;;  %v6485_v29 = vld [vmem:[%s11631_s7 + $0x38] sm:$0xff] }
  0x1e   :  { %164 = vperm.xlu0 %7152, %v98_v30   ;;  %6784 = vmatpush3.bf16.msra.mxu0 %v108_v35  ;;  %v6484_v30 = vld [vmem:[%s11631_s7 + $0x30] sm:$0xff]  ;;  %v6479_v33 = vld [vmem:[%s11630_s6 + $0x28] sm:$0xff] }
  0x1f   :  { %6758 = vmatmul.mubr.msk.bf16.gmra.mxu0 %vm202_vm0, %v7157_v34  ;;  %6800 = vmatpush3.bf16.msra.mxu1 %v110_v41  ;;  %v6483_v37 = vld [vmem:[%s11631_s7 + $0x28] sm:$0xff]  ;;  %v6501_v41 = vld [vmem:[%s11632_s9 + $0x78] sm:$0xff] }
  0x20   :  { %6774 = vmatmul.mubr.msk.bf16.gmra.mxu1 %vm202_vm0, %v7157_v34  ;;  %6761 = vmatprep.mubr.msk.bf16.mxu0 %vm202_vm0, %v7158_v38 }
  0x21   :  { %6777 = vmatprep.mubr.msk.bf16.mxu1 %vm202_vm0, %v7158_v38  ;;  %159 = vperm.xlu1 %7153, %v97_v39  }
  0x22   :  { %154 = vperm.xlu0 %7152, %v96_v40  }
  0x25   :  { %1805 = vperm.xlu1 %7153, %v1795_v42   ;;  %v6500_v42 = vld [vmem:[%s11632_s9 + $0x70] sm:$0xff] }
  0x26   :  { %1800 = vperm.xlu0 %7152, %v1794_v43  }
  0x27   :  { %6762 = vmatmul.mubr.msk.bf16.gmra.mxu0 %vm202_vm0, %v7159_v44 }
  0x28   :  { %6778 = vmatmul.mubr.msk.bf16.gmra.mxu1 %vm202_vm0, %v7159_v44  ;;  %6785 = vmatprep.mubr.msk.bf16.mxu0 %vm202_vm0, %v7529_v17 }
  0x29   :  { %6801 = vmatprep.mubr.msk.bf16.mxu1 %vm202_vm0, %v7529_v17  ;;  %1815 = vperm.xlu1 %7153, %v1797_v45   ;;  %v6423_v17 = vld [vmem:[%s11837_s29 + $0x88] sm:$0xff] }
  0x2a   :  { %1810 = vperm.xlu0 %7152, %v1796_v46   ;;  %v6499_v45 = vld [vmem:[%s11632_s9 + $0x68] sm:$0xff]  ;;  %v6498_v46 = vld [vmem:[%s11632_s9 + $0x60] sm:$0xff] }
  0x2d   :  { %2044 = vperm.xlu1 %7153, %v1853_v47  }
  0x2e   :  { %2039 = vperm.xlu0 %7152, %v1852_v48  }
  0x2f   :  { %6786 = vmatmul.mubr.msk.bf16.vlgmr.msra.gmra.mxu0 %vm202_vm0, %v7544_v20 }
  0x30   :  { %6802 = vmatmul.mubr.msk.bf16.vlgmr.msra.gmra.mxu1 %vm202_vm0, %v7544_v20  ;;  %6789 = vmatprep.mubr.msk.bf16.mxu0 %vm202_vm0, %v7549_v21  ;;  %v6428_v20 = vld [vmem:[%s11837_s29 + $0xb0] sm:$0xff] }
  0x31   :  { %6805 = vmatprep.mubr.msk.bf16.mxu1 %vm202_vm0, %v7549_v21  ;;  %2080 = vperm.xlu1 %7153, %v1857_v49   ;;  %v6427_v21 = vld [vmem:[%s11837_s29 + $0xa8] sm:$0xff]  ;;  %v6497_v49 = vld [vmem:[%s11632_s9 + $0x58] sm:$0xff] }
  0x32   :  { %2075 = vperm.xlu0 %7152, %v1856_v50   ;;  %v6496_v50 = vld [vmem:[%s11632_s9 + $0x50] sm:$0xff] }
  0x35   :  { %2034 = vperm.xlu1 %7153, %v1851_v51  }
  0x36   :  { %2029 = vperm.xlu0 %7152, %v1850_v52  }
  0x37   :  { %6790 = vmatmul.mubr.msk.bf16.gmra.mxu0 %vm202_vm0, %v7157_v34 }
  0x38   :  { %6806 = vmatmul.mubr.msk.bf16.gmra.mxu1 %vm202_vm0, %v7157_v34  ;;  %6793 = vmatprep.mubr.msk.bf16.mxu0 %vm202_vm0, %v7158_v38  ;;  %v6478_v34 = vld [vmem:[%s11630_s6 + $0x20] sm:$0xff] }
  0x39   :  { %6809 = vmatprep.mubr.msk.bf16.mxu1 %vm202_vm0, %v7158_v38  ;;  %2070 = vperm.xlu1 %7153, %v1855_v53   ;;  %v6482_v38 = vld [vmem:[%s11631_s7 + $0x20] sm:$0xff]  ;;  %v6495_v53 = vld [vmem:[%s11632_s9 + $0x48] sm:$0xff] }
  0x3a   :  { %2065 = vperm.xlu0 %7152, %v1854_v54   ;;  %v6494_v54 = vld [vmem:[%s11632_s9 + $0x40] sm:$0xff] }
  0x3d   :  { %2164 = vperm.xlu1 %7153, %v2122_v55  }
  0x3e   :  { %2159 = vperm.xlu0 %7152, %v2121_v56  }
  0x3f   :  { %6794 = vmatmul.mubr.msk.bf16.gmra.mxu0 %vm202_vm0, %v7159_v44 }
  0x40   :  { %6810 = vmatmul.mubr.msk.bf16.gmra.mxu1 %vm202_vm0, %v7159_v44 }
  0x41   :  { %2154 = vperm.xlu1 %7153, %v2120_v57   ;;  %v6537_v57 = vld [vmem:[%s11633_s11 + $0x28] sm:$0xff] }
  0x42   :  { %2149 = vperm.xlu0 %7152, %v2119_v58   ;;  %v6536_v58 = vld [vmem:[%s11633_s11 + $0x20] sm:$0xff] }
  0x45   :  { %2144 = vperm.xlu1 %7153, %v2118_v59  }
  0x46   :  { %2139 = vperm.xlu0 %7152, %v2117_v60  }
  0x49   :  { %2134 = vperm.xlu1 %7153, %v2116_v61   ;;  %v6539_v61 = vld [vmem:[%s11633_s11 + $0x38] sm:$0xff] }
  0x4a   :  { %2129 = vperm.xlu0 %7152, %v2115_v62   ;;  %v6538_v62 = vld [vmem:[%s11633_s11 + $0x30] sm:$0xff] }
  0x4d   :  { %2747 = vperm.xlu1 %7153, %v2737_v63  }
  0x4e   :  { %2742 = vperm.xlu0 %7152, %v2736_v0  }
  0x51   :  { %2757 = vperm.xlu1 %7153, %v2739_v1   ;;  %v6543_v1 = vld [vmem:[%s11634_s12 + $0x38] sm:$0xff] }
  0x52   :  { %2752 = vperm.xlu0 %7152, %v2738_v2   ;;  %v6542_v2 = vld [vmem:[%s11634_s12 + $0x30] sm:$0xff] }
  0x55   :  { %2969 = vperm.xlu1 %7153, %v2779_v3  }
  0x56   :  { %2964 = vperm.xlu0 %7152, %v2778_v4  }
  0x59   :  { %3005 = vperm.xlu1 %7153, %v2783_v5   ;;  %v6547_v5 = vld [vmem:[%s11635_s13 + $0x38] sm:$0xff] }
  0x5a   :  { %3000 = vperm.xlu0 %7152, %v2782_v6   ;;  %v6546_v6 = vld [vmem:[%s11635_s13 + $0x30] sm:$0xff] }
  0x5d   :  { %2959 = vperm.xlu1 %7153, %v2777_v7  }
  0x5e   :  { %2954 = vperm.xlu0 %7152, %v2776_v8  }
  0x61   :  { %2995 = vperm.xlu1 %7153, %v2781_v9   ;;  %v6541_v9 = vld [vmem:[%s11634_s12 + $0x28] sm:$0xff] }
  0x62   :  { %2990 = vperm.xlu0 %7152, %v2780_v10   ;;  %v6540_v10 = vld [vmem:[%s11634_s12 + $0x20] sm:$0xff] }
  0x65   :  { %3080 = vperm.xlu1 %7153, %v6421_v11  }
  0x66   :  { %3075 = vperm.xlu0 %7152, %v6420_v12  }
  0x69   :  { %3100 = vperm.xlu1 %7153, %v6425_v13   ;;  %v6545_v13 = vld [vmem:[%s11635_s13 + $0x28] sm:$0xff] }
  0x6a   :  { %3095 = vperm.xlu0 %7152, %v6424_v14   ;;  %v6544_v14 = vld [vmem:[%s11635_s13 + $0x20] sm:$0xff] }
  0x6d   :  { %3070 = vperm.xlu1 %7153, %v6419_v15  }
  0x6e   :  { %3065 = vperm.xlu0 %7152, %v6418_v16  }
  0x71   :  { %3090 = vperm.xlu1 %7153, %v6423_v17   ;;  %v6140_v17 = vld [vmem:[%s11636_s16 + $0x10] sm:$0x1f] }
  0x72   :  { %3085 = vperm.xlu0 %7152, %v6422_v18   ;;  %v6139_v18 = vld [vmem:[%s11636_s16 + $0x8] sm:$0x1f] }
  0x75   :  { %3120 = vperm.xlu1 %7153, %v6429_v19  }
  0x76   :  { %3115 = vperm.xlu0 %7152, %v6428_v20  }
  0x79   :  { %3110 = vperm.xlu1 %7153, %v6427_v21   ;;  %v6141_v21 = vld [vmem:[%s11636_s16 + $0x18] sm:$0x1f] }
  0x7a   :  { %3105 = vperm.xlu0 %7152, %v6426_v22   ;;  %v6138_v22 = vld [vmem:[%s11636_s16] sm:$0x1f] }
  0x7d   :  { %4751 = vperm.xlu1 %7153, %v6475_v23  }
  0x7e   :  { %4746 = vperm.xlu0 %7152, %v6474_v24  }
  0x81   :  { %4761 = vperm.xlu1 %7153, %v6477_v25   ;;  %v6143_v25 = vld [vmem:[%s11636_s16 + $0x28] sm:$0x1f] }
  0x82   :  { %4756 = vperm.xlu0 %7152, %v6476_v26   ;;  %v6142_v26 = vld [vmem:[%s11636_s16 + $0x20] sm:$0x1f] }
  0x85   :  { %4991 = vperm.xlu1 %7153, %v6481_v27  }
  0x86   :  { %4986 = vperm.xlu0 %7152, %v6480_v28   ;;  %v7790_v31 = vpop.permute.xlu1 %144 }
  0x87   :  { %v7792_v32 = vpop.permute.xlu0 %124 }
  0x89   :  { %5027 = vperm.xlu1 %7153, %v6485_v29   ;;  %v6145_v29 = vld [vmem:[%s11636_s16 + $0x38] sm:$0x1f] }
  0x8a   :  { %5022 = vperm.xlu0 %7152, %v6484_v30   ;;  %v7800_v35 = vpop.permute.xlu1 %149  ;;  %v6144_v30 = vld [vmem:[%s11636_s16 + $0x30] sm:$0x1f] }
  0x8b   :  { %11840 = vst [vmem:[#allocation2_spill] sm:$0xff] %v7800_v35 }
  0x8c   :  { %v7802_v36 = vpop.permute.xlu0 %129 }
  0x8d   :  { %4981 = vperm.xlu1 %7153, %v6479_v33  }
  0x8e   :  { %4976 = vperm.xlu0 %7152, %v6478_v34  }
  0x8f   :  { %v7810_v39 = vpop.permute.xlu1 %119 }
  0x90   :  { %v7812_v40 = vpop.permute.xlu0 %114 }
  0x91   :  { %5017 = vperm.xlu1 %7153, %v6483_v37   ;;  %v6130_v37 = vld [vmem:[%s11637_s15] sm:$0xff] }
  0x92   :  { %5012 = vperm.xlu0 %7152, %v6482_v38   ;;  %v6251_v38 = vld [vmem:[%s11638_s17] sm:$0xff] }
  0x94   :  { %v7820_v43 = vpop.permute.xlu1 %139 }
  0x95   :  { %11841 = vst [vmem:[#allocation3_spill] sm:$0xff] %v7820_v43  ;;  %v7822_v44 = vpop.permute.xlu0 %134  ;;  %5114 = vperm.xlu1 %7153, %v6501_v41  }
  0x96   :  { %5109 = vperm.xlu0 %7152, %v6500_v42  }
  0x98   :  { %v7830_v47 = vpop.permute.xlu1 %169 }
  0x99   :  { %11842 = vst [vmem:[#allocation4_spill] sm:$0xff] %v7830_v47  ;;  %v7832_v48 = vpop.permute.xlu0 %164  ;;  %5104 = vperm.xlu1 %7153, %v6499_v45  }
  0x9a   :  { %11843 = vst [vmem:[#allocation5_spill] sm:$0xff] %v7832_v48  ;;  %5099 = vperm.xlu0 %7152, %v6498_v46  }
  0x9c   :  { %v7840_v51 = vpop.permute.xlu1 %159 }
  0x9d   :  { %11844 = vst [vmem:[#allocation6_spill] sm:$0xff] %v7840_v51  ;;  %v7842_v52 = vpop.permute.xlu0 %154  ;;  %5094 = vperm.xlu1 %7153, %v6497_v49  }
  0x9e   :  { %11845 = vst [vmem:[#allocation7_spill] sm:$0xff] %v7842_v52  ;;  %5089 = vperm.xlu0 %7152, %v6496_v50  }
  0xa0   :  { %v7850_v55 = vpop.permute.xlu1 %1805 }
  0xa1   :  { %11846 = vst [vmem:[#allocation8_spill] sm:$0xff] %v7850_v55  ;;  %v7852_v56 = vpop.permute.xlu0 %1800  ;;  %5084 = vperm.xlu1 %7153, %v6495_v53  }
  0xa2   :  { %11847 = vst [vmem:[#allocation9_spill] sm:$0xff] %v7852_v56  ;;  %5079 = vperm.xlu0 %7152, %v6494_v54  }
  0xa4   :  { %v7860_v59 = vpop.permute.xlu1 %1815 }
  0xa5   :  { %11848 = vst [vmem:[#allocation10_spill] sm:$0xff] %v7860_v59  ;;  %v7862_v60 = vpop.permute.xlu0 %1810  ;;  %5697 = vperm.xlu1 %7153, %v6537_v57  }
  0xa6   :  { %11849 = vst [vmem:[#allocation11_spill] sm:$0xff] %v7862_v60  ;;  %5692 = vperm.xlu0 %7152, %v6536_v58  }
  0xa8   :  { %v7870_v63 = vpop.permute.xlu1 %2044 }
  0xa9   :  { %11850 = vst [vmem:[#allocation12_spill] sm:$0xff] %v7870_v63  ;;  %v7872_v0 = vpop.permute.xlu0 %2039  ;;  %5707 = vperm.xlu1 %7153, %v6539_v61  }
  0xaa   :  { %11851 = vst [vmem:[#allocation13_spill] sm:$0xff] %v7872_v0  ;;  %5702 = vperm.xlu0 %7152, %v6538_v62  }
  0xac   :  { %v7880_v3 = vpop.permute.xlu1 %2080 }
  0xad   :  { %11852 = vst [vmem:[#allocation14_spill] sm:$0xff] %v7880_v3  ;;  %v7882_v4 = vpop.permute.xlu0 %2075  ;;  %5921 = vperm.xlu1 %7153, %v6543_v1  }
  0xae   :  { %11853 = vst [vmem:[#allocation15_spill] sm:$0xff] %v7882_v4  ;;  %5916 = vperm.xlu0 %7152, %v6542_v2  }
  0xb0   :  { %v7890_v7 = vpop.permute.xlu1 %2034 }
  0xb1   :  { %11854 = vst [vmem:[#allocation16_spill] sm:$0xff] %v7890_v7  ;;  %v7892_v8 = vpop.permute.xlu0 %2029  ;;  %5957 = vperm.xlu1 %7153, %v6547_v5  }
  0xb2   :  { %11855 = vst [vmem:[#allocation17_spill] sm:$0xff] %v7892_v8  ;;  %5952 = vperm.xlu0 %7152, %v6546_v6  }
  0xb4   :  { %v7900_v11 = vpop.permute.xlu1 %2070 }
  0xb5   :  { %11856 = vst [vmem:[#allocation18_spill] sm:$0xff] %v7900_v11  ;;  %v7902_v12 = vpop.permute.xlu0 %2065  ;;  %5911 = vperm.xlu1 %7153, %v6541_v9  }
  0xb6   :  { %11857 = vst [vmem:[#allocation19_spill] sm:$0xff] %v7902_v12  ;;  %5906 = vperm.xlu0 %7152, %v6540_v10  }
  0xb8   :  { %v7910_v15 = vpop.permute.xlu1 %2164 }
  0xb9   :  { %11858 = vst [vmem:[#allocation20_spill] sm:$0xff] %v7910_v15  ;;  %v7912_v16 = vpop.permute.xlu0 %2159  ;;  %5947 = vperm.xlu1 %7153, %v6545_v13  }
  0xba   :  { %11859 = vst [vmem:[#allocation21_spill] sm:$0xff] %v7912_v16  ;;  %5942 = vperm.xlu0 %7152, %v6544_v14  }
  0xbc   :  { %v7920_v19 = vpop.permute.xlu1 %2154 }
  0xbd   :  { %11860 = vst [vmem:[#allocation22_spill] sm:$0xff] %v7920_v19  ;;  %v7922_v20 = vpop.permute.xlu0 %2149  ;;  %6158 = vperm.xlu1 %7153, %v6140_v17  }
  0xbe   :  { %11861 = vst [vmem:[#allocation23_spill] sm:$0xff] %v7922_v20  ;;  %6153 = vperm.xlu0 %7152, %v6139_v18  }
  0xc0   :  { %v7930_v23 = vpop.permute.xlu1 %2144 }
  0xc1   :  { %11862 = vst [vmem:[#allocation24_spill] sm:$0xff] %v7930_v23  ;;  %v7932_v24 = vpop.permute.xlu0 %2139  ;;  %6163 = vperm.xlu1 %7153, %v6141_v21  }
  0xc2   :  { %11863 = vst [vmem:[#allocation25_spill] sm:$0xff] %v7932_v24  ;;  %6148 = vperm.xlu0 %7152, %v6138_v22  }
  0xc4   :  { %v7940_v27 = vpop.permute.xlu1 %2134 }
  0xc5   :  { %11864 = vst [vmem:[#allocation26_spill] sm:$0xff] %v7940_v27  ;;  %v7942_v28 = vpop.permute.xlu0 %2129  ;;  %6173 = vperm.xlu1 %7153, %v6143_v25  }
  0xc6   :  { %11865 = vst [vmem:[#allocation27_spill] sm:$0xff] %v7942_v28  ;;  %6168 = vperm.xlu0 %7152, %v6142_v26  }
  0xc8   :  { %v7950_v33 = vpop.permute.xlu1 %2747 }
  0xc9   :  { %11866 = vst [vmem:[#allocation28_spill] sm:$0xff] %v7950_v33  ;;  %v7952_v34 = vpop.permute.xlu0 %2742  ;;  %6183 = vperm.xlu1 %7153, %v6145_v29  }
  0xca   :  { %11867 = vst [vmem:[#allocation29_spill] sm:$0xff] %v7952_v34  ;;  %6178 = vperm.xlu0 %7152, %v6144_v30  }
  0xcc   :  { %v7960_v41 = vpop.permute.xlu1 %2757 }
  0xcd   :  { %11868 = vst [vmem:[#allocation30_spill] sm:$0xff] %v7960_v41  ;;  %v7962_v42 = vpop.permute.xlu0 %2752  ;;  %6133 = vperm.xlu1 %7153, %v6130_v37  }
  0xce   :  { %11869 = vst [vmem:[#allocation31_spill] sm:$0xff] %v7962_v42  ;;  %6254 = vperm.xlu0 %7152, %v6251_v38  }
  0xd0   :  { %v7964_v45 = vpop.permute.xlu1 %2969 }
  0xd1   :  { %11870 = vst [vmem:[#allocation32_spill] sm:$0xff] %v7964_v45  ;;  %v7966_v46 = vpop.permute.xlu0 %2964 }
  0xd2   :  { %11871 = vst [vmem:[#allocation33_spill] sm:$0xff] %v7966_v46 }
  0xd4   :  { %v7968_v49 = vpop.permute.xlu1 %3005 }
  0xd5   :  { %11872 = vst [vmem:[#allocation34_spill] sm:$0xff] %v7968_v49  ;;  %v7970_v50 = vpop.permute.xlu0 %3000 }
  0xd6   :  { %11873 = vst [vmem:[#allocation35_spill] sm:$0xff] %v7970_v50 }
  0xd7   :  { %v6755_v53 = vpop.f32.mrf.mxu0 }
  0xd8   :  { %v6771_v54 = vpop.f32.mrf.mxu1  ;;  %v7972_v57 = vpop.permute.xlu1 %2959  ;;  %v7981_v17 = vadd.f32 %v6755_v53, %v7792_v32 }
  0xd9   :  { %11874 = vst [vmem:[#allocation36_spill] sm:$0xff] %v7972_v57  ;;  %v7974_v58 = vpop.permute.xlu0 %2954  ;;  %v255_v61 = vpop.f32.mrf.mxu0  ;;  %v7984_v18 = vadd.f32 %v6771_v54, %v7792_v32 }
  0xda   :  { %11875 = vst [vmem:[#allocation37_spill] sm:$0xff] %v7974_v58  ;;  %v336_v62 = vpop.f32.mrf.mxu1  ;;  %v7997_v29 = vadd.f32 %v255_v61, %v7812_v40 }
  0xdb   :  { %v6756_v1 = vpop.f32.mrf.mxu0  ;;  %11878 = vst [vmem:[#allocation40_spill] sm:$0xff] %v7984_v18  ;;  %v8000_v30 = vadd.f32 %v336_v62, %v7812_v40 }
  0xdc   :  { %v6772_v2 = vpop.f32.mrf.mxu1  ;;  %v7976_v5 = vpop.permute.xlu1 %2995  ;;  %11881 = vst [vmem:[#allocation43_spill] sm:$0xff] %v7997_v29  ;;  %v8003_v37 = vadd.f32 %v6756_v1, %v7802_v36 }
  0xdd   :  { %11876 = vst [vmem:[#allocation38_spill] sm:$0xff] %v7976_v5  ;;  %v7978_v6 = vpop.permute.xlu0 %2990  ;;  %v258_v9 = vpop.f32.mrf.mxu0  ;;  %11882 = vst [vmem:[#allocation44_spill] sm:$0xff] %v8000_v30  ;;  %v8006_v38 = vadd.f32 %v6772_v2, %v7802_v36 }
  0xde   :  { %11877 = vst [vmem:[#allocation39_spill] sm:$0xff] %v7978_v6  ;;  %v339_v10 = vpop.f32.mrf.mxu1  ;;  %11883 = vst [vmem:[#allocation45_spill] sm:$0xff] %v8003_v37  ;;  %v8017_v1 = vadd.f32 %v258_v9, %v7810_v39 }
  0xdf   :  { %v6759_v13 = vpop.f32.mrf.mxu0  ;;  %11884 = vst [vmem:[#allocation46_spill] sm:$0xff] %v8006_v38  ;;  %v8020_v2 = vadd.f32 %v339_v10, %v7810_v39 }
  0xe0   :  { %v6775_v14 = vpop.f32.mrf.mxu1  ;;  %v7987_v21 = vadd.f32 %v6759_v13, %v7790_v31  ;;  %v7992_v25 = vpop.permute.xlu1 %3080  ;;  %11885 = vst [vmem:[#allocation47_spill] sm:$0xff] %v8017_v1 }
  0xe1   :  { %v7990_v22 = vadd.f32 %v6775_v14, %v7790_v31  ;;  %11879 = vst [vmem:[#allocation41_spill] sm:$0xff] %v7992_v25  ;;  %v7994_v26 = vpop.permute.xlu0 %3075  ;;  %v271_v53 = vpop.f32.mrf.mxu0  ;;  %11886 = vst [vmem:[#allocation48_spill] sm:$0xff] %v8020_v2 }
  0xe2   :  { %11880 = vst [vmem:[#allocation42_spill] sm:$0xff] %v7994_v26  ;;  %v352_v54 = vpop.f32.mrf.mxu1  ;;  %v1062_v13 = vmul.f32 %v7987_v21, %v7981_v17  ;;  %v1070_v14 = vmul.f32 %v7984_v18, %v7987_v21  ;;  %v8023_v25 = vadd.f32 %v271_v53, %v7822_v44 }
  0xe3   :  { %v1064_v61 = vmul.f32 %v7990_v22, %v7981_v17  ;;  %v1072_v62 = vmul.f32 %v7990_v22, %v7984_v18  ;;  %v8026_v26 = vadd.f32 %v352_v54, %v7822_v44  ;;  %v6760_v5 = vpop.f32.mrf.mxu0 }
  0xe4   :  { %v6776_v6 = vpop.f32.mrf.mxu1  ;;  %v1094_v49 = vsel %vm577_vm1, %v1062_v13, 0.0  ;;  %v1130_v50 = vsel %vm577_vm1, %v1070_v14, 0.0  ;;  %v8032_v45 = vpop.permute.xlu1 %3100  ;;  %v545_v53 = vmul.f32 %v8023_v25, %v7997_v29  ;;  %v553_v54 = vmul.f32 %v8000_v30, %v8023_v25 }
  0xe5   :  { %v1103_v58 = vsel %vm577_vm1, %v1064_v61, 0.0  ;;  %v1139_v9 = vsel %vm577_vm1, %v1072_v62, 0.0  ;;  %11887 = vst [vmem:[#allocation49_spill] sm:$0xff] %v8032_v45  ;;  %v8034_v10 = vpop.permute.xlu0 %3095  ;;  %v547_v57 = vmul.f32 %v8026_v26, %v7997_v29  ;;  %v555_v13 = vmul.f32 %v8026_v26, %v8000_v30  ;;  %v274_v14 = vpop.f32.mrf.mxu0 }
  0xe6   :  { %11888 = vst [vmem:[#allocation50_spill] sm:$0xff] %v8034_v10  ;;  %v355_v61 = vpop.f32.mrf.mxu1  ;;  %v8045_v62 = vadd.f32 %v6760_v5, %v7800_v35  ;;  %v8048_v45 = vadd.f32 %v6776_v6, %v7800_v35  ;;  %v8051_v10 = vadd.f32 %v274_v14, %v7820_v43  ;;  %v578_v41 = vsel %vm577_vm1, %v545_v53, 0.0 }
  0xe7   :  { %v8054_v46 = vadd.f32 %v355_v61, %v7820_v43  ;;  %v614_v33 = vsel %vm577_vm1, %v553_v54, 0.0  ;;  %v587_v42 = vsel %vm577_vm1, %v547_v57, 0.0  ;;  %v623_v34 = vsel %vm577_vm1, %v555_v13, 0.0  ;;  %v8060_v28 = vpop.f32.mrf.mxu0 }
  0xe8   :  { %v8062_v5 = vpop.f32.mrf.mxu1  ;;  %v1063_v6 = vmul.f32 %v8045_v62, %v8003_v37  ;;  %v1071_v14 = vmul.f32 %v8006_v38, %v8045_v62  ;;  %v1065_v61 = vmul.f32 %v8048_v45, %v8003_v37  ;;  %v1073_v53 = vmul.f32 %v8048_v45, %v8006_v38  ;;  %v8088_v12 = vpop.permute.xlu1 %3070 }
  0xe9   :  { %v546_v57 = vmul.f32 %v8051_v10, %v8017_v1  ;;  %v554_v54 = vmul.f32 %v8020_v2, %v8051_v10  ;;  %v548_v13 = vmul.f32 %v8054_v46, %v8017_v1  ;;  %v556_v27 = vmul.f32 %v8054_v46, %v8020_v2  ;;  %v8080_v24 = vpop.f32.mrf.mxu0  ;;  %11889 = vst [vmem:[#allocation51_spill] sm:$0xff] %v8088_v12  ;;  %v8090_v3 = vpop.permute.xlu0 %3065 }
  0xea   :  { %v8082_v19 = vpop.f32.mrf.mxu1  ;;  %v1095_v23 = vsel %vm577_vm1, %v1063_v6, 0.0  ;;  %v1131_v15 = vsel %vm577_vm1, %v1071_v14, 0.0  ;;  %v1104_v20 = vsel %vm577_vm1, %v1065_v61, 0.0  ;;  %v1140_v16 = vsel %vm577_vm1, %v1073_v53, 0.0  ;;  %11890 = vst [vmem:[#allocation52_spill] sm:$0xff] %v8090_v3 }
  0xeb   :  { %v1096_v11 = vadd.f32 %v1095_v23, %v1094_v49  ;;  %v1132_v4 = vadd.f32 %v1131_v15, %v1130_v50  ;;  %v1105_v8 = vadd.f32 %v1104_v20, %v1103_v58  ;;  %v1141_v63 = vadd.f32 %v1140_v16, %v1139_v9  ;;  %v8092_v7 = vpop.f32.mrf.mxu0 }
  0xec   :  { %v8094_v0 = vpop.f32.mrf.mxu1  ;;  %v579_v6 = vsel %vm577_vm1, %v546_v57, 0.0  ;;  %v615_v14 = vsel %vm577_vm1, %v554_v54, 0.0  ;;  %v588_v61 = vsel %vm577_vm1, %v548_v13, 0.0  ;;  %v624_v53 = vsel %vm577_vm1, %v556_v27, 0.0  ;;  %v8104_v2 = vpop.permute.xlu1 %3090 }
  0xed   :  { %v1097_v55 = vrot.slane %v1096_v11, 4  ;;  %v1133_v12 = vrot.slane %v1132_v4, 4  ;;  %v1106_v59 = vrot.slane %v1105_v8, 4  ;;  %v1142_v3 = vrot.slane %v1141_v63, 4  ;;  %v8100_v23 = vpop.f32.mrf.mxu0  ;;  %11892 = vst [vmem:[#allocation54_spill] sm:$0xff] %v8104_v2  ;;  %v8106_v1 = vpop.permute.xlu0 %3085 }
  0xee   :  { %v8102_v15 = vpop.f32.mrf.mxu1  ;;  %v580_v16 = vadd.f32 %v579_v6, %v578_v41  ;;  %v616_v20 = vadd.f32 %v615_v14, %v614_v33  ;;  %v589_v49 = vadd.f32 %v588_v61, %v587_v42  ;;  %v625_v50 = vadd.f32 %v624_v53, %v623_v34  ;;  %11893 = vst [vmem:[#allocation55_spill] sm:$0xff] %v8106_v1 }
  0xef   :  { %11891 = vst [vmem:[#allocation53_spill] sm:$0xff] %v8102_v15  ;;  %v1098_v58 = vadd.f32 %v1097_v55, %v1096_v11  ;;  %v1134_v9 = vadd.f32 %v1133_v12, %v1132_v4  ;;  %v1107_v57 = vadd.f32 %v1106_v59, %v1105_v8  ;;  %v1143_v54 = vadd.f32 %v1142_v3, %v1141_v63  ;;  %v6787_v41 = vpop.f32.mrf.mxu0 }
  0xf0   :  { %v581_v60 = vrot.slane %v580_v16, 4  ;;  %v617_v13 = vrot.slane %v616_v20, 4  ;;  %v590_v56 = vrot.slane %v589_v49, 4  ;;  %v626_v27 = vrot.slane %v625_v50, 4  ;;  %v6803_v33 = vpop.f32.mrf.mxu1 }
  0xf1   :  { %v1099_v38 = vrot.slane %v1098_v58, 2  ;;  %v1135_v37 = vrot.slane %v1134_v9, 2  ;;  %v1108_v43 = vrot.slane %v1107_v57, 2  ;;  %v1144_v15 = vrot.slane %v1143_v54, 2  ;;  %v417_v35 = vpop.f32.mrf.mxu0 }
  0xf2   :  { %v582_v42 = vadd.f32 %v581_v60, %v580_v16  ;;  %v618_v34 = vadd.f32 %v617_v13, %v616_v20  ;;  %v591_v55 = vadd.f32 %v590_v56, %v589_v49  ;;  %v627_v4 = vadd.f32 %v626_v27, %v625_v50  ;;  %v498_v30 = vpop.f32.mrf.mxu1  ;;  %v8108_v56 = vpop.permute.xlu1 %3120 }
  0xf3   :  { %v1100_v59 = vadd.f32 %v1099_v38, %v1098_v58  ;;  %v1136_v63 = vadd.f32 %v1135_v37, %v1134_v9  ;;  %v1109_v3 = vadd.f32 %v1108_v43, %v1107_v57  ;;  %v1145_v8 = vadd.f32 %v1144_v15, %v1143_v54  ;;  %11894 = vst [vmem:[#allocation56_spill] sm:$0xff] %v8108_v56  ;;  %v8110_v38 = vpop.permute.xlu0 %3115  ;;  %v6788_v13 = vpop.f32.mrf.mxu0 }
  0xf4   :  { %v583_v11 = vrot.slane %v582_v42, 2  ;;  %v619_v12 = vrot.slane %v618_v34, 2  ;;  %v592_v6 = vrot.slane %v591_v55, 2  ;;  %v628_v14 = vrot.slane %v627_v4, 2  ;;  %11895 = vst [vmem:[#allocation57_spill] sm:$0xff] %v8110_v38  ;;  %v6804_v27 = vpop.f32.mrf.mxu1 }
  0xf5   :  { %v1101_v61 = vrot.slane %v1100_v59, 1  ;;  %v1137_v53 = vrot.slane %v1136_v63, 1  ;;  %v1110_v2 = vrot.slane %v1109_v3, 1  ;;  %v1146_v1 = vrot.slane %v1145_v8, 1 }
  0xf6   :  { %v584_v29 = vadd.f32 %v583_v11, %v582_v42  ;;  %v620_v18 = vadd.f32 %v619_v12, %v618_v34  ;;  %v593_v60 = vadd.f32 %v592_v6, %v591_v55  ;;  %v629_v16 = vadd.f32 %v628_v14, %v627_v4  ;;  %v420_v12 = vpop.f32.mrf.mxu0  ;;  %v501_v6 = vpop.f32.mrf.mxu1 }
  0xf7   :  { %v8112_v43 = vadd.f32 %v1101_v61, %v1100_v59  ;;  %v8114_v37 = vadd.f32 %v1137_v53, %v1136_v63  ;;  %v8116_v15 = vadd.f32 %v1110_v2, %v1109_v3  ;;  %v8118_v20 = vadd.f32 %v1146_v1, %v1145_v8  ;;  %v8146_v63 = vpop.permute.xlu1 %3110  ;;  %v8148_v3 = vpop.permute.xlu0 %3105 }
  0xf8   :  { %v585_v49 = vrot.slane %v584_v29, 1  ;;  %v621_v50 = vrot.slane %v620_v18, 1  ;;  %v594_v58 = vrot.slane %v593_v60, 1  ;;  %v630_v9 = vrot.slane %v629_v16, 1  ;;  %11901 = vst [vmem:[#allocation63_spill] sm:$0xff] %v8146_v63  ;;  %11902 = vst [vmem:[#allocation64_spill] sm:$0xff] %v8148_v3 }
  0xf9   :  { %11896 = vst [vmem:[#allocation58_spill] sm:$0xff] %v8118_v20  ;;  %v8122_v57 = vsel %vm577_vm1, %v8112_v43, -inf  ;;  %v8126_v54 = vsel %vm577_vm1, %v8116_v15, -inf  ;;  %v8130_v2 = vsel %vm577_vm1, %v8114_v37, -inf  ;;  %v8134_v1 = vsel %vm577_vm1, %v8118_v20, -inf }
  0xfa   :  { %v8136_v42 = vadd.f32 %v585_v49, %v584_v29  ;;  %v8138_v34 = vadd.f32 %v621_v50, %v620_v18  ;;  %v8140_v55 = vadd.f32 %v594_v58, %v593_v60  ;;  %v8142_v4 = vadd.f32 %v630_v9, %v629_v16 }
  0xfb   :  { %v8158_v18 = vadd.f32 %v8060_v28, %v7832_v48  ;;  %v8162_v11 = vadd.f32 %v8062_v5, %v7832_v48  ;;  %v8178_v28 = vadd.f32 %v8080_v24, %v7842_v52  ;;  %v8181_v5 = vadd.f32 %v6787_v41, %v7792_v32 }
  0xfc   :  { %11897 = vst [vmem:[#allocation59_spill] sm:$0xff] %v8136_v42  ;;  %11898 = vst [vmem:[#allocation60_spill] sm:$0xff] %v8138_v34  ;;  %v8154_v29 = vsel %vm577_vm1, %v8136_v42, -inf  ;;  %v8166_v14 = vsel %vm577_vm1, %v8138_v34, -inf  ;;  %v8170_v61 = vsel %vm577_vm1, %v8140_v55, -inf  ;;  %v8174_v53 = vsel %vm577_vm1, %v8142_v4, -inf }
  0xfd   :  { %11899 = vst [vmem:[#allocation61_spill] sm:$0xff] %v8140_v55  ;;  %11900 = vst [vmem:[#allocation62_spill] sm:$0xff] %v8142_v4  ;;  %v8184_v60 = vadd.f32 %v6803_v33, %v7792_v32  ;;  %v8187_v16 = vadd.f32 %v417_v35, %v7812_v40  ;;  %v8190_v49 = vadd.f32 %v498_v30, %v7812_v40 }
  0xfe   :  { %11903 = vst [vmem:[#allocation65_spill] sm:$0xff] %v8154_v29  ;;  %11904 = vst [vmem:[#allocation66_spill] sm:$0xff] %v8158_v18  ;;  %v8193_v50 = vadd.f32 %v6788_v13, %v7802_v36  ;;  %v8196_v58 = vadd.f32 %v6804_v27, %v7802_v36  ;;  %v8199_v24 = vadd.f32 %v420_v12, %v7810_v39  ;;  %v8220_v13 = vpop.permute.xlu1 %4751 }
  0xff   :  { %11905 = vst [vmem:[#allocation67_spill] sm:$0xff] %v8162_v11  ;;  %11906 = vst [vmem:[#allocation68_spill] sm:$0xff] %v8166_v14  ;;  %v8202_v41 = vadd.f32 %v501_v6, %v7810_v39  ;;  %v1078_v32 = vmul.f32 %v8181_v5, %v7987_v21  ;;  %v1080_v35 = vmul.f32 %v8181_v5, %v7990_v22  ;;  %v8226_v6 = vpop.permute.xlu0 %4746 }
 0x100   :  { %11907 = vst [vmem:[#allocation69_spill] sm:$0xff] %v8170_v61  ;;  %11908 = vst [vmem:[#allocation70_spill] sm:$0xff] %v8174_v53  ;;  %v1086_v40 = vmul.f32 %v8184_v60, %v7987_v21  ;;  %v1088_v30 = vmul.f32 %v8184_v60, %v7990_v22  ;;  %v561_v36 = vmul.f32 %v8187_v16, %v8023_v25 }
 0x101   :  { %11909 = vst [vmem:[#allocation71_spill] sm:$0xff] %v8178_v28  ;;  %v563_v33 = vmul.f32 %v8187_v16, %v8026_v26  ;;  %v569_v39 = vmul.f32 %v8190_v49, %v8023_v25  ;;  %v571_v9 = vmul.f32 %v8190_v49, %v8026_v26  ;;  %11910 = vst [vmem:[#allocation72_spill] sm:$0xff] %v8220_v13  ;;  %v1166_v27 = vsel %vm577_vm1, %v1078_v32, 0.0 }
 0x102   :  { %v1175_v21 = vsel %vm577_vm1, %v1080_v35, 0.0  ;;  %v1202_v22 = vsel %vm577_vm1, %v1086_v40, 0.0  ;;  %v1211_v12 = vsel %vm577_vm1, %v1088_v30, 0.0  ;;  %11911 = vst [vmem:[#allocation73_spill] sm:$0xff] %v8226_v6  ;;  %v650_v8 = vsel %vm577_vm1, %v561_v36, 0.0  ;;  %v8252_v28 = vpop.permute.xlu1 %4761 }
 0x103   :  { %v659_v59 = vsel %vm577_vm1, %v563_v33, 0.0  ;;  %v686_v25 = vsel %vm577_vm1, %v569_v39, 0.0  ;;  %v695_v26 = vsel %vm577_vm1, %v571_v9, 0.0  ;;  %v1079_v13 = vmul.f32 %v8193_v50, %v8045_v62  ;;  %11912 = vst [vmem:[#allocation74_spill] sm:$0xff] %v8252_v28  ;;  %v8258_v18 = vpop.permute.xlu0 %4756 }
 0x104   :  { %v1081_v32 = vmul.f32 %v8193_v50, %v8048_v45  ;;  %v1087_v35 = vmul.f32 %v8196_v58, %v8045_v62  ;;  %v1089_v40 = vmul.f32 %v8196_v58, %v8048_v45  ;;  %v562_v30 = vmul.f32 %v8199_v24, %v8051_v10  ;;  %11913 = vst [vmem:[#allocation75_spill] sm:$0xff] %v8258_v18 }
 0x105   :  { %v564_v36 = vmul.f32 %v8199_v24, %v8054_v46  ;;  %v570_v33 = vmul.f32 %v8202_v41, %v8051_v10  ;;  %v572_v39 = vmul.f32 %v8202_v41, %v8054_v46  ;;  %v1167_v9 = vsel %vm577_vm1, %v1079_v13, 0.0 }
 0x106   :  { %v1176_v6 = vsel %vm577_vm1, %v1081_v32, 0.0  ;;  %v1203_v62 = vsel %vm577_vm1, %v1087_v35, 0.0  ;;  %v1212_v45 = vsel %vm577_vm1, %v1089_v40, 0.0  ;;  %v1168_v63 = vadd.f32 %v1167_v9, %v1166_v27  ;;  %v8260_v55 = vpop.permute.xlu1 %4991 }
 0x107   :  { %v1177_v56 = vadd.f32 %v1176_v6, %v1175_v21  ;;  %v1204_v3 = vadd.f32 %v1203_v62, %v1202_v22  ;;  %v1213_v38 = vadd.f32 %v1212_v45, %v1211_v12  ;;  %v651_v11 = vsel %vm577_vm1, %v562_v30, 0.0  ;;  %11914 = vst [vmem:[#allocation76_spill] sm:$0xff] %v8260_v55 }
 0x108   :  { %v660_v10 = vsel %vm577_vm1, %v564_v36, 0.0  ;;  %v687_v46 = vsel %vm577_vm1, %v570_v33, 0.0  ;;  %v696_v13 = vsel %vm577_vm1, %v572_v39, 0.0  ;;  %v1169_v32 = vrot.slane %v1168_v63, 4 }
 0x109   :  { %v1178_v35 = vrot.slane %v1177_v56, 4  ;;  %v1205_v48 = vrot.slane %v1204_v3, 4  ;;  %v1214_v40 = vrot.slane %v1213_v38, 4  ;;  %v652_v27 = vadd.f32 %v651_v11, %v650_v8  ;;  %v8262_v11 = vpop.permute.xlu0 %4986 }
 0x10a   :  { %v661_v21 = vadd.f32 %v660_v10, %v659_v59  ;;  %v688_v22 = vadd.f32 %v687_v46, %v686_v25  ;;  %v697_v12 = vadd.f32 %v696_v13, %v695_v26  ;;  %v1170_v6 = vadd.f32 %v1169_v32, %v1168_v63  ;;  %11915 = vst [vmem:[#allocation77_spill] sm:$0xff] %v8262_v11 }
 0x10b   :  { %v1179_v9 = vadd.f32 %v1178_v35, %v1177_v56  ;;  %v1206_v62 = vadd.f32 %v1205_v48, %v1204_v3  ;;  %v1215_v30 = vadd.f32 %v1214_v40, %v1213_v38  ;;  %v653_v45 = vrot.slane %v652_v27, 4 }
 0x10c   :  { %v662_v36 = vrot.slane %v661_v21, 4  ;;  %v689_v28 = vrot.slane %v688_v22, 4  ;;  %v698_v33 = vrot.slane %v697_v12, 4  ;;  %v1171_v4 = vrot.slane %v1170_v6, 2 }
 0x10d   :  { %v1180_v39 = vrot.slane %v1179_v9, 2  ;;  %v1207_v34 = vrot.slane %v1206_v62, 2  ;;  %v1216_v18 = vrot.slane %v1215_v30, 2  ;;  %v654_v42 = vadd.f32 %v653_v45, %v652_v27  ;;  %v6807_v45 = vpop.f32.mrf.mxu1 }
 0x10e   :  { %v663_v20 = vadd.f32 %v662_v36, %v661_v21  ;;  %v690_v8 = vadd.f32 %v689_v28, %v688_v22  ;;  %v699_v59 = vadd.f32 %v698_v33, %v697_v12  ;;  %v1172_v63 = vadd.f32 %v1171_v4, %v1170_v6  ;;  %v6791_v28 = vpop.f32.mrf.mxu0 }
 0x10f   :  { %v1181_v56 = vadd.f32 %v1180_v39, %v1179_v9  ;;  %v1208_v48 = vadd.f32 %v1207_v34, %v1206_v62  ;;  %v1217_v38 = vadd.f32 %v1216_v18, %v1215_v30  ;;  %v655_v3 = vrot.slane %v654_v42, 2  ;;  %v8272_v18 = vpop.permute.xlu1 %5027 }
 0x110   :  { %v664_v25 = vrot.slane %v663_v20, 2  ;;  %v691_v26 = vrot.slane %v690_v8, 2  ;;  %v700_v10 = vrot.slane %v699_v59, 2  ;;  %v1173_v46 = vrot.slane %v1172_v63, 1  ;;  %11916 = vst [vmem:[#allocation78_spill] sm:$0xff] %v8272_v18  ;;  %v11932_v18 = vld [vmem:[#allocation44_spill] sm:$0xff] }
 0x111   :  { %v1182_v13 = vrot.slane %v1181_v56, 1  ;;  %v1209_v32 = vrot.slane %v1208_v48, 1  ;;  %v1218_v35 = vrot.slane %v1217_v38, 1  ;;  %v656_v40 = vadd.f32 %v655_v3, %v654_v42  ;;  %v8274_v42 = vpop.permute.xlu0 %5022 }
 0x112   :  { %v665_v55 = vadd.f32 %v664_v25, %v663_v20  ;;  %v692_v27 = vadd.f32 %v691_v26, %v690_v8  ;;  %v701_v21 = vadd.f32 %v700_v10, %v699_v59  ;;  %v8264_v22 = vadd.f32 %v1173_v46, %v1172_v63  ;;  %11917 = vst [vmem:[#allocation79_spill] sm:$0xff] %v8274_v42  ;;  %v514_v46 = vpop.f32.mrf.mxu1 }
 0x113   :  { %v8266_v12 = vadd.f32 %v1182_v13, %v1181_v56  ;;  %v8268_v4 = vadd.f32 %v1209_v32, %v1208_v48  ;;  %v8270_v34 = vadd.f32 %v1218_v35, %v1217_v38  ;;  %v657_v6 = vrot.slane %v656_v40, 1 }
 0x114   :  { %v666_v9 = vrot.slane %v665_v55, 1  ;;  %v693_v62 = vrot.slane %v692_v27, 1  ;;  %v702_v30 = vrot.slane %v701_v21, 1  ;;  %v8278_v20 = vadd.f32 %v8082_v19, %v7842_v52  ;;  %v6808_v11 = vpop.f32.mrf.mxu1 }
 0x115   :  { %v8282_v36 = vadd.f32 %v8092_v7, %v7830_v47  ;;  %v8286_v33 = vadd.f32 %v8094_v0, %v7830_v47  ;;  %v8290_v39 = vsel %vm577_vm1, %v8264_v22, -inf  ;;  %v8294_v8 = vsel %vm577_vm1, %v8266_v12, -inf  ;;  %v433_v0 = vpop.f32.mrf.mxu0 }
 0x116   :  { %11918 = vst [vmem:[#allocation80_spill] sm:$0xff] %v8278_v20  ;;  %v8298_v19 = vsel %vm577_vm1, %v8268_v4, -inf  ;;  %v8302_v7 = vsel %vm577_vm1, %v8270_v34, -inf  ;;  %v8304_v59 = vadd.f32 %v657_v6, %v656_v40  ;;  %v442_v48 = vadd.f32 %v6791_v28, %v7790_v31  ;;  %v8328_v40 = vpop.permute.xlu1 %4981  ;;  %v8337_v6 = vpop.permute.xlu0 %4976 }
 0x117   :  { %11919 = vst [vmem:[#allocation81_spill] sm:$0xff] %v8282_v36  ;;  %11920 = vst [vmem:[#allocation82_spill] sm:$0xff] %v8286_v33  ;;  %v523_v38 = vadd.f32 %v6807_v45, %v7790_v31  ;;  %v8314_v3 = vadd.f32 %v8100_v23, %v7840_v51  ;;  %v8316_v25 = vadd.f32 %v666_v9, %v665_v55  ;;  %v11927_v55 = vld [vmem:[#allocation40_spill] sm:$0xff] }
 0x118   :  { %11921 = vst [vmem:[#allocation83_spill] sm:$0xff] %v8304_v59  ;;  %v8318_v26 = vadd.f32 %v693_v62, %v692_v27  ;;  %v8320_v10 = vadd.f32 %v702_v30, %v701_v21  ;;  %v1066_v35 = vmul.f32 %v442_v48, %v7981_v17  ;;  %v434_v31 = vadd.f32 %v433_v0, %v7822_v44  ;;  %v6792_v0 = vpop.f32.mrf.mxu0 }
 0x119   :  { %11922 = vst [vmem:[#allocation84_spill] sm:$0xff] %v8314_v3  ;;  %11923 = vst [vmem:[#allocation85_spill] sm:$0xff] %v8316_v25  ;;  %v8332_v23 = vsel %vm577_vm1, %v8304_v59, -inf  ;;  %v1074_v27 = vmul.f32 %v442_v48, %v11927_v55  ;;  %v1082_v21 = vmul.f32 %v442_v48, %v8181_v5  ;;  %v1090_v28 = vmul.f32 %v8184_v60, %v442_v48 }
 0x11a   :  { %11924 = vst [vmem:[#allocation86_spill] sm:$0xff] %v8318_v26  ;;  %11925 = vst [vmem:[#allocation87_spill] sm:$0xff] %v8320_v10  ;;  %v1068_v9 = vmul.f32 %v523_v38, %v7981_v17  ;;  %v1076_v62 = vmul.f32 %v523_v38, %v11927_v55  ;;  %v1084_v30 = vmul.f32 %v523_v38, %v8181_v5  ;;  %v8345_v56 = vsel %vm577_vm1, %v8316_v25, -inf }
 0x11b   :  { %11926 = vst [vmem:[#allocation88_spill] sm:$0xff] %v8328_v40  ;;  %11928 = vst [vmem:[#allocation40_spill] sm:$0xff] %v8337_v6  ;;  %v515_v45 = vadd.f32 %v514_v46, %v7822_v44  ;;  %v8349_v63 = vsel %vm577_vm1, %v8318_v26, -inf  ;;  %v8353_v48 = vsel %vm577_vm1, %v8320_v10, -inf  ;;  %v1092_v17 = vmul.f32 %v523_v38, %v8184_v60  ;;  %v11931_v46 = vld [vmem:[#allocation43_spill] sm:$0xff] }
 0x11c   :  { %11929 = vst [vmem:[#allocation89_spill] sm:$0xff] %v8349_v63  ;;  %11930 = vst [vmem:[#allocation90_spill] sm:$0xff] %v8353_v48  ;;  %v1112_v55 = vsel %vm577_vm1, %v1066_v35, 0.0  ;;  %v1148_v5 = vsel %vm577_vm1, %v1074_v27, 0.0  ;;  %v1184_v44 = vsel %vm577_vm1, %v1082_v21, 0.0  ;;  %v549_v32 = vmul.f32 %v434_v31, %v11931_v46  ;;  %v436_v27 = vpop.f32.mrf.mxu0  ;;  %v8368_v21 = vpop.permute.xlu1 %5017 }
 0x11d   :  { %v1220_v13 = vsel %vm577_vm1, %v1090_v28, 0.0  ;;  %v557_v42 = vmul.f32 %v434_v31, %v11932_v18  ;;  %v565_v40 = vmul.f32 %v434_v31, %v8187_v16  ;;  %v573_v6 = vmul.f32 %v8190_v49, %v434_v31  ;;  %11933 = vst [vmem:[#allocation43_spill] sm:$0xff] %v8368_v21 }
 0x11e   :  { %v1121_v20 = vsel %vm577_vm1, %v1068_v9, 0.0  ;;  %v1157_v60 = vsel %vm577_vm1, %v1076_v62, 0.0  ;;  %v1193_v38 = vsel %vm577_vm1, %v1084_v30, 0.0  ;;  %v551_v35 = vmul.f32 %v515_v45, %v11931_v46  ;;  %v8380_v9 = vpop.permute.xlu0 %5012 }
 0x11f   :  { %v1229_v28 = vsel %vm577_vm1, %v1092_v17, 0.0  ;;  %v8372_v3 = vsel %vm577_vm1, %v549_v32, 0.0  ;;  %v8375_v33 = vmul.f32 %v515_v45, %v11932_v18  ;;  %v8378_v31 = vmul.f32 %v515_v45, %v8187_v16  ;;  %11934 = vst [vmem:[#allocation44_spill] sm:$0xff] %v8380_v9  ;;  %v11935_v17 = vld [vmem:[#allocation2_spill] sm:$0xff]  ;;  %v11937_v9 = vld [vmem:[#allocation3_spill] sm:$0xff] }
 0x120   :  { %v8383_v62 = vsel %vm577_vm1, %v557_v42, 0.0  ;;  %v8386_v30 = vsel %vm577_vm1, %v565_v40, 0.0  ;;  %v8389_v46 = vsel %vm577_vm1, %v573_v6, 0.0  ;;  %v445_v32 = vadd.f32 %v6792_v0, %v11935_v17  ;;  %v11938_v42 = vld [vmem:[#allocation45_spill] sm:$0xff]  ;;  %v11939_v40 = vld [vmem:[#allocation46_spill] sm:$0xff]  ;;  %v8414_v26 = vpop.permute.xlu1 %5114 }
 0x121   :  { %v8393_v21 = vmul.f32 %v515_v45, %v8190_v49  ;;  %v8396_v18 = vsel %vm577_vm1, %v551_v35, 0.0  ;;  %v526_v16 = vadd.f32 %v6808_v11, %v11935_v17  ;;  %v8400_v36 = vadd.f32 %v436_v27, %v11937_v9  ;;  %11940 = vst [vmem:[#allocation3_spill] sm:$0xff] %v8414_v26 }
 0x122   :  { %v1067_v47 = vmul.f32 %v445_v32, %v11938_v42  ;;  %v1075_v52 = vmul.f32 %v445_v32, %v11939_v40  ;;  %v1083_v6 = vmul.f32 %v445_v32, %v8193_v50  ;;  %v1091_v51 = vmul.f32 %v8196_v58, %v445_v32  ;;  %v8416_v53 = vpop.permute.xlu0 %5109 }
 0x123   :  { %11936 = vst [vmem:[#allocation2_spill] sm:$0xff] %v8393_v21  ;;  %v1069_v0 = vmul.f32 %v526_v16, %v11938_v42  ;;  %v1077_v49 = vmul.f32 %v526_v16, %v11939_v40  ;;  %v1085_v45 = vmul.f32 %v526_v16, %v8193_v50  ;;  %v1093_v35 = vmul.f32 %v526_v16, %v8196_v58 }
 0x124   :  { %v1113_v11 = vsel %vm577_vm1, %v1067_v47, 0.0  ;;  %v1149_v27 = vsel %vm577_vm1, %v1075_v52, 0.0  ;;  %v1185_v17 = vsel %vm577_vm1, %v1083_v6, 0.0  ;;  %v1221_v10 = vsel %vm577_vm1, %v1091_v51, 0.0  ;;  %11941 = vst [vmem:[#allocation45_spill] sm:$0xff] %v8416_v53  ;;  %v8422_v53 = vpop.permute.xlu1 %5104 }
 0x125   :  { %v1114_v25 = vadd.f32 %v1113_v11, %v1112_v55  ;;  %v1150_v32 = vadd.f32 %v1149_v27, %v1148_v5  ;;  %v1186_v59 = vadd.f32 %v1185_v17, %v1184_v44  ;;  %v1222_v42 = vadd.f32 %v1221_v10, %v1220_v13  ;;  %11942 = vst [vmem:[#allocation46_spill] sm:$0xff] %v8422_v53 }
 0x126   :  { %v1122_v50 = vsel %vm577_vm1, %v1069_v0, 0.0  ;;  %v1158_v58 = vsel %vm577_vm1, %v1077_v49, 0.0  ;;  %v1194_v47 = vsel %vm577_vm1, %v1085_v45, 0.0  ;;  %v1230_v52 = vsel %vm577_vm1, %v1093_v35, 0.0  ;;  %v8424_v21 = vpop.permute.xlu0 %5099 }
 0x127   :  { %v1115_v16 = vrot.slane %v1114_v25, 4  ;;  %v1151_v40 = vrot.slane %v1150_v32, 4  ;;  %v1187_v6 = vrot.slane %v1186_v59, 4  ;;  %v1223_v51 = vrot.slane %v1222_v42, 4  ;;  %11943 = vst [vmem:[#allocation91_spill] sm:$0xff] %v8424_v21 }
 0x128   :  { %v1123_v14 = vadd.f32 %v1122_v50, %v1121_v20  ;;  %v1159_v26 = vadd.f32 %v1158_v58, %v1157_v60  ;;  %v1195_v55 = vadd.f32 %v1194_v47, %v1193_v38  ;;  %v1231_v5 = vadd.f32 %v1230_v52, %v1229_v28 }
 0x129   :  { %v1116_v44 = vadd.f32 %v1115_v16, %v1114_v25  ;;  %v1152_v10 = vadd.f32 %v1151_v40, %v1150_v32  ;;  %v1188_v13 = vadd.f32 %v1187_v6, %v1186_v59  ;;  %v1224_v11 = vadd.f32 %v1223_v51, %v1222_v42 }
 0x12a   :  { %v1124_v27 = vrot.slane %v1123_v14, 4  ;;  %v1160_v0 = vrot.slane %v1159_v26, 4  ;;  %v1196_v17 = vrot.slane %v1195_v55, 4  ;;  %v1232_v49 = vrot.slane %v1231_v5, 4 }
 0x12b   :  { %v1117_v45 = vrot.slane %v1116_v44, 2  ;;  %v1153_v35 = vrot.slane %v1152_v10, 2  ;;  %v1189_v61 = vrot.slane %v1188_v13, 2  ;;  %v1225_v29 = vrot.slane %v1224_v11, 2 }
 0x12c   :  { %v1125_v20 = vadd.f32 %v1124_v27, %v1123_v14  ;;  %v1161_v60 = vadd.f32 %v1160_v0, %v1159_v26  ;;  %v1197_v38 = vadd.f32 %v1196_v17, %v1195_v55  ;;  %v1233_v28 = vadd.f32 %v1232_v49, %v1231_v5  ;;  %v8426_v14 = vpop.permute.xlu1 %5094  ;;  %v8436_v5 = vpop.permute.xlu0 %5089 }
 0x12d   :  { %v1118_v25 = vadd.f32 %v1117_v45, %v1116_v44  ;;  %v1154_v32 = vadd.f32 %v1153_v35, %v1152_v10  ;;  %v1190_v59 = vadd.f32 %v1189_v61, %v1188_v13  ;;  %v1226_v42 = vadd.f32 %v1225_v29, %v1224_v11  ;;  %11944 = vst [vmem:[#allocation92_spill] sm:$0xff] %v8426_v14 }
 0x12e   :  { %v1126_v50 = vrot.slane %v1125_v20, 2  ;;  %v1162_v58 = vrot.slane %v1161_v60, 2  ;;  %v1198_v47 = vrot.slane %v1197_v38, 2  ;;  %v1234_v52 = vrot.slane %v1233_v28, 2  ;;  %11945 = vst [vmem:[#allocation93_spill] sm:$0xff] %v8436_v5 }
 0x12f   :  { %v1119_v16 = vrot.slane %v1118_v25, 1  ;;  %v1155_v40 = vrot.slane %v1154_v32, 1  ;;  %v1191_v6 = vrot.slane %v1190_v59, 1  ;;  %v1227_v51 = vrot.slane %v1226_v42, 1 }
 0x130   :  { %v1127_v53 = vadd.f32 %v1126_v50, %v1125_v20  ;;  %v1163_v63 = vadd.f32 %v1162_v58, %v1161_v60  ;;  %v1199_v48 = vadd.f32 %v1198_v47, %v1197_v38  ;;  %v1235_v21 = vadd.f32 %v1234_v52, %v1233_v28 }
 0x131   :  { %v8428_v26 = vadd.f32 %v1119_v16, %v1118_v25  ;;  %v8430_v55 = vadd.f32 %v1155_v40, %v1154_v32  ;;  %v8432_v61 = vadd.f32 %v1191_v6, %v1190_v59  ;;  %v8434_v29 = vadd.f32 %v1227_v51, %v1226_v42 }
 0x132   :  { %v1128_v44 = vrot.slane %v1127_v53, 1  ;;  %v1164_v10 = vrot.slane %v1163_v63, 1  ;;  %v1200_v13 = vrot.slane %v1199_v48, 1  ;;  %v1236_v11 = vrot.slane %v1235_v21, 1 }
 0x133   :  { %v1241_v27 = vsel %vm577_vm1, %v8428_v26, -inf  ;;  %v1248_v0 = vsel %vm577_vm1, %v8430_v55, -inf  ;;  %v1255_v17 = vsel %vm577_vm1, %v8432_v61, -inf  ;;  %v1262_v49 = vsel %vm577_vm1, %v8434_v29, -inf }
 0x134   :  { %v11946_v45 = vmax.f32 %v8122_v57, %v8126_v54  ;;  %v11947_v20 = vmax.f32 %v8130_v2, %v8134_v1  ;;  %v11948_v38 = vmax.f32 %v8290_v39, %v8294_v8  ;;  %v11949_v25 = vmax.f32 %v8298_v19, %v8302_v7  ;;  %v11950_v54 = vld [vmem:[#allocation47_spill] sm:$0xff]  ;;  %v11951_v1 = vld [vmem:[#allocation48_spill] sm:$0xff]  ;;  %v517_v19 = vpop.f32.mrf.mxu1  ;;  %v8470_v7 = vpop.permute.xlu1 %5084 }
 0x135   :  { %v1129_v59 = vadd.f32 %v1128_v44, %v1127_v53  ;;  %v1165_v42 = vadd.f32 %v1164_v10, %v1163_v63  ;;  %v1201_v50 = vadd.f32 %v1200_v13, %v1199_v48  ;;  %v8458_v58 = vadd.f32 %v1236_v11, %v1235_v21  ;;  %11952 = vst [vmem:[#allocation47_spill] sm:$0xff] %v8470_v7  ;;  %v8477_v21 = vpop.permute.xlu0 %5079 }
 0x136   :  { %v1242_v35 = vmax.f32 %v11946_v45, %v1241_v27  ;;  %v1249_v60 = vmax.f32 %v11947_v20, %v1248_v0  ;;  %v1256_v28 = vmax.f32 %v11948_v38, %v1255_v17  ;;  %v1263_v32 = vmax.f32 %v11949_v25, %v1262_v49  ;;  %11953 = vst [vmem:[#allocation48_spill] sm:$0xff] %v8477_v21  ;;  %v11954_v0 = vld [vmem:[#allocation58_spill] sm:$0xff] }
 0x137   :  { %v8462_v57 = vsel %vm577_vm1, %v8375_v33, 0.0  ;;  %v550_v2 = vmul.f32 %v8400_v36, %v11950_v54  ;;  %v558_v39 = vmul.f32 %v8400_v36, %v11951_v1  ;;  %v566_v8 = vmul.f32 %v8400_v36, %v8199_v24 }
 0x138   :  { %v1243_v53 = vsel %vm577_vm1, %v1129_v59, -inf  ;;  %v1250_v63 = vsel %vm577_vm1, %v1165_v42, -inf  ;;  %v1257_v48 = vsel %vm577_vm1, %v1201_v50, -inf  ;;  %v574_v33 = vmul.f32 %v8202_v41, %v8400_v36  ;;  %v8513_v20 = vpop.permute.xlu1 %5697 }
 0x139   :  { %v8479_v47 = vmax.f32 %v1242_v35, %v1243_v53  ;;  %v8481_v52 = vmax.f32 %v1249_v60, %v1250_v63  ;;  %v8483_v16 = vmax.f32 %v1256_v28, %v1257_v48  ;;  %v1264_v40 = vsel %vm577_vm1, %v8458_v58, -inf  ;;  %11955 = vst [vmem:[#allocation58_spill] sm:$0xff] %v8513_v20  ;;  %v8518_v25 = vpop.permute.xlu0 %5692 }
 0x13a   :  { %v8489_v6 = vsel %vm577_vm1, %v8378_v31, 0.0  ;;  %v8491_v51 = vmax.f32 %v1263_v32, %v1264_v40  ;;  %v597_v44 = vsel %vm577_vm1, %v550_v2, 0.0  ;;  %v518_v36 = vadd.f32 %v517_v19, %v11937_v9  ;;  %11956 = vst [vmem:[#allocation94_spill] sm:$0xff] %v8518_v25 }
 0x13b   :  { %v1266_v10 = vsub.f32 %v8112_v43, %v8479_v47  ;;  %v1267_v13 = vsub.f32 %v8116_v15, %v8479_v47  ;;  %v1269_v11 = vsub.f32 %v1129_v59, %v8479_v47  ;;  %v633_v27 = vsel %vm577_vm1, %v558_v39, 0.0 }
 0x13c   :  { %v1270_v31 = vsub.f32 %v8114_v37, %v8481_v52  ;;  %v1271_v17 = vsub.f32 %v11954_v0, %v8481_v52  ;;  %v1273_v49 = vsub.f32 %v1165_v42, %v8481_v52  ;;  %v669_v9 = vsel %vm577_vm1, %v566_v8, 0.0  ;;  %v8533_v48 = vpop.permute.xlu1 %5707 }
 0x13d   :  { %v1274_v43 = vsub.f32 %v8264_v22, %v8483_v16  ;;  %v1275_v15 = vsub.f32 %v8266_v12, %v8483_v16  ;;  %v1277_v45 = vsub.f32 %v1201_v50, %v8483_v16  ;;  %v705_v35 = vsel %vm577_vm1, %v574_v33, 0.0  ;;  %11957 = vst [vmem:[#allocation95_spill] sm:$0xff] %v8533_v48 }
 0x13e   :  { %v1278_v37 = vsub.f32 %v8268_v4, %v8491_v51  ;;  %v1282_v60 = vmul.f32 1.442695, %v1266_v10  ;;  %v1284_v38 = vmul.f32 1.442695, %v1267_v13  ;;  %v598_v28 = vadd.f32 %v597_v44, %v8372_v3  ;;  %v8535_v10 = vpop.permute.xlu0 %5702 }
 0x13f   :  { %v1279_v22 = vsub.f32 %v8270_v34, %v8491_v51  ;;  %v1281_v12 = vsub.f32 %v8458_v58, %v8491_v51  ;;  %v1288_v32 = vmul.f32 1.442695, %v1269_v11  ;;  %v634_v59 = vadd.f32 %v633_v27, %v8383_v62  ;;  %11958 = vst [vmem:[#allocation96_spill] sm:$0xff] %v8535_v10 }
 0x140   :  { %7182 = vpow2.f32 %v1282_v60  ;;  %v1290_v42 = vmul.f32 1.442695, %v1270_v31  ;;  %v1292_v50 = vmul.f32 1.442695, %v1271_v17  ;;  %v1296_v2 = vmul.f32 1.442695, %v1273_v49  ;;  %v8543_v60 = vpop.permute.xlu1 %5921 }
 0x141   :  { %7184 = vpow2.f32 %v1284_v38  ;;  %v8525_v4 = vmul.f32 1.442695, %v1274_v43  ;;  %v1300_v39 = vmul.f32 1.442695, %v1275_v15  ;;  %v1304_v3 = vmul.f32 1.442695, %v1277_v45 }
 0x142   :  { %v8527_v8 = vmul.f32 1.442695, %v1278_v37  ;;  %v599_v19 = vrot.slane %v598_v28, 4  ;;  %v635_v53 = vrot.slane %v634_v59, 4  ;;  %v670_v34 = vadd.f32 %v669_v9, %v8386_v30  ;;  %11959 = vst [vmem:[#allocation97_spill] sm:$0xff] %v8543_v60 }
 0x143   :  { %7186 = vpow2.f32 %v1288_v32  ;;  %v706_v58 = vadd.f32 %v705_v35, %v8389_v46  ;;  %v552_v62 = vmul.f32 %v518_v36, %v11950_v54  ;;  %v560_v63 = vmul.f32 %v518_v36, %v11951_v1 }
 0x144   :  { %7188 = vpow2.f32 %v1292_v50  ;;  %v600_v33 = vadd.f32 %v599_v19, %v598_v28  ;;  %v636_v40 = vadd.f32 %v635_v53, %v634_v59  ;;  %v671_v44 = vrot.slane %v670_v34, 4 }
 0x145   :  { %7190 = vpow2.f32 %v1296_v2  ;;  %v1308_v13 = vmul.f32 1.442695, %v1279_v22  ;;  %v1312_v11 = vmul.f32 1.442695, %v1281_v12  ;;  %v707_v27 = vrot.slane %v706_v58, 4  ;;  %v8545_v22 = vpop.permute.xlu0 %5916 }
 0x146   :  { %v601_v30 = vrot.slane %v600_v33, 2  ;;  %v637_v31 = vrot.slane %v636_v40, 2  ;;  %v672_v0 = vadd.f32 %v671_v44, %v670_v34  ;;  %v568_v46 = vmul.f32 %v518_v36, %v8199_v24  ;;  %11960 = vst [vmem:[#allocation98_spill] sm:$0xff] %v8545_v22  ;;  %v11964_v44 = vld [vmem:[#allocation2_spill] sm:$0xff] }
 0x147   :  { %7192 = vpow2.f32 %v1300_v39  ;;  %v708_v54 = vadd.f32 %v707_v27, %v706_v58  ;;  %v606_v1 = vsel %vm577_vm1, %v552_v62, 0.0  ;;  %v642_v17 = vsel %vm577_vm1, %v560_v63, 0.0  ;;  %v11962_v63 = vld [vmem:[#allocation90_spill] sm:$0xff] }
 0x148   :  { %7194 = vpow2.f32 %v1304_v3  ;;  %v602_v49 = vadd.f32 %v601_v30, %v600_v33  ;;  %v638_v9 = vadd.f32 %v637_v31, %v636_v40  ;;  %v673_v43 = vrot.slane %v672_v0, 2  ;;  %v11963_v33 = vld [vmem:[#allocation89_spill] sm:$0xff] }
 0x149   :  { %v709_v15 = vrot.slane %v708_v54, 2  ;;  %v576_v45 = vmul.f32 %v518_v36, %v8202_v41  ;;  %v607_v35 = vadd.f32 %v606_v1, %v8396_v18  ;;  %v643_v37 = vadd.f32 %v642_v17, %v8462_v57  ;;  %v8577_v31 = vpop.permute.xlu0 %5952 }
 0x14a   :  { %7196 = vpow2.f32 %v1308_v13  ;;  %v603_v24 = vrot.slane %v602_v49, 1  ;;  %v639_v38 = vrot.slane %v638_v9, 1  ;;  %v674_v28 = vadd.f32 %v673_v43, %v672_v0  ;;  %11966 = vst [vmem:[#allocation89_spill] sm:$0xff] %v8577_v31 }
 0x14b   :  { %7198 = vpow2.f32 %v1312_v11  ;;  %v710_v12 = vadd.f32 %v709_v15, %v708_v54  ;;  %v608_v32 = vrot.slane %v607_v35, 4  ;;  %v644_v59 = vrot.slane %v643_v37, 4  ;;  %v11968_v15 = vld [vmem:[#allocation65_spill] sm:$0xff] }
 0x14c   :  { %v8547_v50 = vadd.f32 %v603_v24, %v602_v49  ;;  %v8549_v2 = vadd.f32 %v639_v38, %v638_v9  ;;  %v675_v41 = vrot.slane %v674_v28, 1  ;;  %v678_v18 = vsel %vm577_vm1, %v568_v46, 0.0  ;;  %v11971_v24 = vld [vmem:[#allocation68_spill] sm:$0xff] }
 0x14d   :  { %v8552_v57 = vpop.eup %7182  ;;  %v711_v36 = vrot.slane %v710_v12, 1  ;;  %v609_v39 = vadd.f32 %v608_v32, %v607_v35  ;;  %v645_v3 = vadd.f32 %v644_v59, %v643_v37  ;;  %v679_v19 = vadd.f32 %v678_v18, %v8489_v6  ;;  %v8569_v6 = vpop.permute.xlu1 %5957 }
 0x14e   :  { %v8555_v53 = vpop.eup %7184  ;;  %v738_v34 = vmax.f32 %v8332_v23, %v8345_v56  ;;  %7200 = vpow2.f32 %v1290_v42  ;;  %v8559_v58 = vadd.f32 %v675_v41, %v674_v28  ;;  %v714_v62 = vsel %vm577_vm1, %v576_v45, 0.0  ;;  %11965 = vst [vmem:[#allocation90_spill] sm:$0xff] %v8569_v6  ;;  %v11969_v45 = vld [vmem:[#allocation69_spill] sm:$0xff] }
 0x14f   :  { %11961 = vst [vmem:[#allocation99_spill] sm:$0xff] %v8555_v53  ;;  %v745_v40 = vmax.f32 %v11963_v33, %v11962_v63  ;;  %v713_v13 = vsel %vm577_vm1, %v11964_v44, 0.0  ;;  %7202 = vpow2.f32 %v8525_v4  ;;  %v8567_v11 = vadd.f32 %v711_v36, %v710_v12 }
 0x150   :  { %v8571_v27 = vpop.eup %7186  ;;  %v725_v56 = vsel %vm577_vm1, %v8547_v50, -inf  ;;  %v732_v23 = vsel %vm577_vm1, %v8549_v2, -inf  ;;  %v610_v42 = vrot.slane %v609_v39, 2  ;;  %v646_v30 = vrot.slane %v645_v3, 2 }
 0x151   :  { %v8579_v0 = vpop.eup %7188  ;;  %7204 = vpow2.f32 %v8527_v8  ;;  %v739_v4 = vsel %vm577_vm1, %v8559_v58, -inf  ;;  %v680_v46 = vrot.slane %v679_v19, 4  ;;  %v715_v54 = vadd.f32 %v714_v62, %v713_v13  ;;  %v11972_v8 = vld [vmem:[#allocation70_spill] sm:$0xff]  ;;  %v8601_v13 = vpop.permute.xlu1 %5911 }
 0x152   :  { %11967 = vst [vmem:[#allocation2_spill] sm:$0xff] %v8579_v0  ;;  %v8584_v1 = vpop.eup %7190  ;;  %v746_v49 = vsel %vm577_vm1, %v8567_v11, -inf  ;;  %v611_v9 = vadd.f32 %v610_v42, %v609_v39  ;;  %v647_v43 = vadd.f32 %v646_v30, %v645_v3  ;;  %v11970_v35 = vmax.f32 %v11968_v15, %v11969_v45  ;;  %11975 = vst [vmem:[#allocation69_spill] sm:$0xff] %v8601_v13  ;;  %v8605_v30 = vpop.permute.xlu0 %5906 }
 0x153   :  { %v11973_v38 = vmax.f32 %v11971_v24, %v11972_v8  ;;  %v681_v12 = vadd.f32 %v680_v46, %v679_v19  ;;  %v716_v32 = vrot.slane %v715_v54, 4  ;;  %v740_v18 = vmax.f32 %v738_v34, %v739_v4  ;;  %11976 = vst [vmem:[#allocation68_spill] sm:$0xff] %v8605_v30  ;;  %v11993_v30 = vld [vmem:[#allocation53_spill] sm:$0xff] }
 0x154   :  { %v726_v37 = vmax.f32 %v11970_v35, %v725_v56  ;;  %v8595_v59 = vpop.eup %7192  ;;  %v612_v36 = vrot.slane %v611_v9, 1  ;;  %v648_v62 = vrot.slane %v647_v43, 1  ;;  %v747_v3 = vmax.f32 %v745_v40, %v746_v49 }
 0x155   :  { %v733_v28 = vmax.f32 %v11973_v38, %v732_v23  ;;  %11974 = vst [vmem:[#allocation65_spill] sm:$0xff] %v8595_v59  ;;  %v8598_v63 = vpop.eup %7194  ;;  %v682_v33 = vrot.slane %v681_v12, 2  ;;  %v717_v44 = vadd.f32 %v716_v32, %v715_v54  ;;  %v878_v45 = vlaneseq }
 0x156   :  { %v613_v23 = vadd.f32 %v612_v36, %v611_v9  ;;  %v649_v42 = vadd.f32 %v648_v62, %v647_v43  ;;  %v1268_v9 = vsub.f32 %v8428_v26, %v8479_v47  ;;  %v1272_v38 = vsub.f32 %v8430_v55, %v8481_v52  ;;  %v11979_v26 = vld [vmem:[#allocation59_spill] sm:$0xff]  ;;  %v8632_v55 = vpop.permute.xlu1 %5947 }
 0x157   :  { %v8607_v34 = vpop.eup %7196  ;;  %v683_v46 = vadd.f32 %v682_v33, %v681_v12  ;;  %v718_v15 = vrot.slane %v717_v44, 2  ;;  %v879_v36 = vshrl.u32 %v878_v45, 7  ;;  %v1276_v62 = vsub.f32 %v8432_v61, %v8483_v16  ;;  %11981 = vst [vmem:[#allocation59_spill] sm:$0xff] %v8632_v55  ;;  %v11984_v16 = vld [vmem:[#allocation62_spill] sm:$0xff] }
 0x158   :  { %11977 = vst [vmem:[#allocation70_spill] sm:$0xff] %v8607_v34  ;;  %v8610_v40 = vpop.eup %7198  ;;  %v727_v49 = vsel %vm577_vm1, %v613_v23, -inf  ;;  %v734_v35 = vsel %vm577_vm1, %v649_v42, -inf }
 0x159   :  { %v684_v43 = vrot.slane %v683_v46, 1  ;;  %v719_v24 = vadd.f32 %v718_v15, %v717_v44  ;;  %v8617_v8 = vmax.f32 %v726_v37, %v727_v49  ;;  %v8622_v32 = vmax.f32 %v733_v28, %v734_v35  ;;  %v11980_v37 = vld [vmem:[#allocation61_spill] sm:$0xff]  ;;  %v11983_v15 = vld [vmem:[#allocation60_spill] sm:$0xff]  ;;  %v8642_v49 = vpop.permute.xlu0 %5942 }
 0x15a   :  { %11985 = vst [vmem:[#allocation60_spill] sm:$0xff] %v8642_v49 }
 0x15b   :  { %v8626_v33 = vpop.eup %7200  ;;  %v685_v4 = vadd.f32 %v684_v43, %v683_v46  ;;  %v720_v56 = vrot.slane %v719_v24, 1  ;;  %v750_v47 = vsub.f32 %v11979_v26, %v8617_v8  ;;  %v751_v44 = vsub.f32 %v11980_v37, %v8617_v8 }
 0x15c   :  { %11978 = vst [vmem:[#allocation100_spill] sm:$0xff] %v8626_v33  ;;  %v8634_v52 = vpop.eup %7202  ;;  %v753_v28 = vsub.f32 %v613_v23, %v8617_v8  ;;  %v754_v61 = vsub.f32 %v11983_v15, %v8622_v32  ;;  %v755_v46 = vsub.f32 %v11984_v16, %v8622_v32  ;;  %v757_v45 = vsub.f32 %v649_v42, %v8622_v32  ;;  %v6795_v15 = vpop.f32.mrf.mxu0 }
 0x15d   :  { %11982 = vst [vmem:[#allocation61_spill] sm:$0xff] %v8634_v52  ;;  %v721_v35 = vadd.f32 %v720_v56, %v719_v24  ;;  %v741_v43 = vsel %vm577_vm1, %v685_v4, -inf  ;;  %v766_v26 = vmul.f32 1.442695, %v750_v47  ;;  %v768_v37 = vmul.f32 1.442695, %v751_v44  ;;  %v6154_v49 = vpop.permute.xlu0 %6153 }
 0x15e   :  { %v8645_v12 = vpop.eup %7204  ;;  %v8647_v41 = vmax.f32 %v740_v18, %v741_v43  ;;  %v772_v23 = vmul.f32 1.442695, %v753_v28  ;;  %v774_v54 = vmul.f32 1.442695, %v754_v61  ;;  %v776_v19 = vmul.f32 1.442695, %v755_v46  ;;  %v6811_v28 = vpop.f32.mrf.mxu1 }
 0x15f   :  { %11986 = vst [vmem:[#allocation62_spill] sm:$0xff] %v8645_v12  ;;  %v748_v39 = vsel %vm577_vm1, %v721_v35, -inf  ;;  %7206 = vpow2.f32 %v766_v26  ;;  %v780_v16 = vmul.f32 1.442695, %v757_v45  ;;  %v1280_v42 = vsub.f32 %v8434_v29, %v8491_v51  ;;  %v11987_v24 = vld [vmem:[#allocation83_spill] sm:$0xff]  ;;  %v11988_v44 = vld [vmem:[#allocation85_spill] sm:$0xff]  ;;  %v6159_v29 = vpop.permute.xlu1 %6158 }
 0x160   :  { %v749_v56 = vmax.f32 %v747_v3, %v748_v39  ;;  %v758_v47 = vsub.f32 %v11987_v24, %v8647_v41  ;;  %v759_v17 = vsub.f32 %v11988_v44, %v8647_v41  ;;  %v761_v18 = vsub.f32 %v685_v4, %v8647_v41  ;;  %v7160_v61 = vld [vmem:[%s11639_s4] sm:$0xff]   ;;  %v11991_v3 = vld [vmem:[#allocation87_spill] sm:$0xff]  ;;  %v449_v44 = vpop.f32.mrf.mxu0  ;;  %v530_v31 = vpop.f32.mrf.mxu1 }
 0x161   :  { %7208 = vpow2.f32 %v768_v37  ;;  %v8660_v46 = vsub.s32 0, %v879_v36  ;;  %v1286_v45 = vmul.f32 1.442695, %v1268_v9  ;;  %v1294_v43 = vmul.f32 1.442695, %v1272_v38  ;;  %v11990_v51 = vld [vmem:[#allocation86_spill] sm:$0xff]  ;;  %6817 = vmatprep.mubr.msk.bf16.mxu0 %vm202_vm0, %v7160_v61  ;;  %6825 = vmatprep.mubr.msk.bf16.mxu1 %vm202_vm0, %v7160_v61 }
 0x162   :  { %v762_v39 = vsub.f32 %v11990_v51, %v749_v56  ;;  %v763_v26 = vsub.f32 %v11991_v3, %v749_v56  ;;  %v765_v24 = vsub.f32 %v721_v35, %v749_v56  ;;  %7210 = vpow2.f32 %v772_v23  ;;  %v11992_v51 = vld [vmem:[#allocation6_spill] sm:$0xff]  ;;  %v11995_v23 = vld [vmem:[#allocation5_spill] sm:$0xff] }
 0x163   :  { %11989 = vst [vmem:[#allocation83_spill] sm:$0xff] %v8660_v46  ;;  %7212 = vpow2.f32 %v774_v54  ;;  %v782_v4 = vmul.f32 1.442695, %v758_v47  ;;  %v784_v37 = vmul.f32 1.442695, %v759_v17  ;;  %v8668_v3 = vadd.f32 %v11993_v30, %v11992_v51  ;;  %v6796_v30 = vpop.f32.mrf.mxu0 }
 0x164   :  { %v1302_v36 = vmul.f32 1.442695, %v1276_v62  ;;  %7214 = vpow2.f32 %v776_v19  ;;  %v788_v9 = vmul.f32 1.442695, %v761_v18  ;;  %v790_v38 = vmul.f32 1.442695, %v762_v39  ;;  %v6164_v18 = vpop.permute.xlu1 %6163 }
 0x165   :  { %v792_v6 = vmul.f32 1.442695, %v763_v26  ;;  %11994 = vst [vmem:[#allocation85_spill] sm:$0xff] %v8668_v3  ;;  %7216 = vpow2.f32 %v780_v16  ;;  %v796_v35 = vmul.f32 1.442695, %v765_v24  ;;  %v8671_v55 = vadd.f32 %v6795_v15, %v11995_v23 }
 0x166   :  { %7218 = vpow2.f32 %v782_v4  ;;  %v1310_v61 = vmul.f32 1.442695, %v1280_v42  ;;  %v11996_v17 = vrot.slane %v8555_v53, 7  ;;  %v11997_v54 = vrot.slane %v8579_v0, 7 }
 0x167   :  { %7220 = vpow2.f32 %v784_v37  ;;  %v11998_v15 = vrot.slane %v8595_v59, 7  ;;  %v752_v42 = vsub.f32 %v8547_v50, %v8617_v8  ;;  %v756_v47 = vsub.f32 %v8549_v2, %v8622_v32  ;;  %v6812_v37 = vpop.f32.mrf.mxu1  ;;  %v12000_v2 = vld [vmem:[#allocation7_spill] sm:$0xff] }
 0x168   :  { %v8677_v19 = vsel %vm815_vm2, %v11996_v17, %v8552_v57  ;;  %v8683_v62 = vsel %vm815_vm2, %v11997_v54, %v8626_v33  ;;  %7222 = vpow2.f32 %v788_v9  ;;  %v11999_v39 = vrot.slane %v8607_v34, 7  ;;  %v6149_v17 = vpop.permute.xlu0 %6148  ;;  %v8716_v9 = vld [vmem:[%s11640_s1] sm:$0x1f] }
 0x169   :  { %v8689_v16 = vsel %vm815_vm2, %v11998_v15, %v8634_v52  ;;  %v760_v24 = vsub.f32 %v8559_v58, %v8647_v41  ;;  %v764_v4 = vsub.f32 %v8567_v11, %v749_v56  ;;  %7224 = vpow2.f32 %v790_v38  ;;  %v12001_v41 = vld [vmem:[#allocation4_spill] sm:$0xff]  ;;  %v452_v38 = vpop.f32.mrf.mxu0 }
 0x16a   :  { %v8699_v26 = vsel %vm815_vm2, %v11999_v39, %v8645_v12  ;;  %v8705_v50 = vadd.f32 %v6811_v28, %v11995_v23  ;;  %v8708_v8 = vadd.f32 %v449_v44, %v12000_v2  ;;  %v8711_v32 = vadd.f32 %v530_v31, %v12000_v2  ;;  %v533_v31 = vpop.f32.mrf.mxu1 }
 0x16b   :  { %7226 = vpow2.f32 %v792_v6  ;;  %v770_v58 = vmul.f32 1.442695, %v752_v42  ;;  %v778_v11 = vmul.f32 1.442695, %v756_v47  ;;  %v8719_v56 = vadd.f32 %v6796_v30, %v12001_v41  ;;  %v6174_v47 = vpop.permute.xlu1 %6173 }
 0x16c   :  { %7228 = vpow2.f32 %v796_v35  ;;  %v786_v28 = vmul.f32 1.442695, %v760_v24  ;;  %v794_v23 = vmul.f32 1.442695, %v764_v4  ;;  %v8721_v44 = vpop.eup %7206  ;;  %v6188_v54 = vmul.f32 %v6159_v29, %v8716_v9 }
 0x16d   :  { %12002 = vst [vmem:[#allocation86_spill] sm:$0xff] %v8721_v44  ;;  %7230 = vpow2.f32 %v1286_v45  ;;  %v6187_v15 = vmul.f32 %v6154_v49, %v8716_v9  ;;  %v6189_v6 = vmul.f32 %v6164_v18, %v8716_v9  ;;  %v8727_v42 = vadd.f32 %v6812_v37, %v12001_v41  ;;  %v6169_v18 = vpop.permute.xlu0 %6168 }
 0x16e   :  { %7232 = vpow2.f32 %v1294_v43  ;;  %v8730_v30 = vadd.f32 %v452_v38, %v11992_v51  ;;  %v6186_v35 = vmul.f32 %v6149_v17, %v8716_v9  ;;  %v8733_v39 = vpop.eup %7208  ;;  %v6209_v45 = vsel %vm6194_vm3, %v6188_v54, 0.0 }
 0x16f   :  { %12003 = vst [vmem:[#allocation87_spill] sm:$0xff] %v8733_v39  ;;  %7234 = vpow2.f32 %v1302_v36  ;;  %v6202_v29 = vsel %vm6194_vm3, %v6187_v15, 0.0  ;;  %v6216_v49 = vsel %vm6194_vm3, %v6189_v6, 0.0  ;;  %v8738_v43 = vpop.eup %7210  ;;  %v8741_v24 = vadd.f32 %v533_v31, %v11992_v51 }
 0x170   :  { %7236 = vpow2.f32 %v1310_v61  ;;  %v6210_v4 = vrot.slane %v6209_v45, 4  ;;  %v6203_v37 = vrot.slane %v6202_v29, 4  ;;  %v8743_v17 = vpop.eup %7212  ;;  %v6217_v2 = vrot.slane %v6216_v49, 4 }
 0x171   :  { %12004 = vst [vmem:[#allocation6_spill] sm:$0xff] %v8743_v17  ;;  %7238 = vpow2.f32 %v770_v58  ;;  %v6195_v36 = vsel %vm6194_vm3, %v6186_v35, 0.0  ;;  %v6191_v41 = vmul.f32 %v6174_v47, %v8716_v9  ;;  %v8747_v38 = vpop.eup %7214  ;;  %v6190_v61 = vmul.f32 %v6169_v18, %v8716_v9  ;;  %v6179_v14 = vpop.permute.xlu0 %6178 }
 0x172   :  { %12005 = vst [vmem:[#allocation53_spill] sm:$0xff] %v8747_v38  ;;  %7240 = vpow2.f32 %v778_v11  ;;  %v6211_v54 = vadd.f32 %v6210_v4, %v6209_v45  ;;  %v6204_v15 = vadd.f32 %v6203_v37, %v6202_v29  ;;  %v8750_v51 = vpop.eup %7216  ;;  %v814_v31 = vrot.slane %v8733_v39, 7 }
 0x173   :  { %7242 = vpow2.f32 %v786_v28  ;;  %v6218_v58 = vadd.f32 %v6217_v2, %v6216_v49  ;;  %v6196_v6 = vrot.slane %v6195_v36, 4  ;;  %v8753_v60 = vpop.eup %7218  ;;  %v823_v29 = vrot.slane %v8747_v38, 7 }
 0x174   :  { %12006 = vst [vmem:[#allocation5_spill] sm:$0xff] %v8753_v60  ;;  %7244 = vpow2.f32 %v794_v23  ;;  %v6212_v47 = vrot.slane %v6211_v54, 2  ;;  %v6205_v11 = vrot.slane %v6204_v15, 2  ;;  %v8756_v45 = vpop.eup %7220  ;;  %v6230_v37 = vsel %vm6194_vm3, %v6191_v41, 0.0 }
 0x175   :  { %12007 = vst [vmem:[#allocation7_spill] sm:$0xff] %v8756_v45  ;;  %v6219_v18 = vrot.slane %v6218_v58, 2  ;;  %v6197_v4 = vadd.f32 %v6196_v6, %v6195_v36  ;;  %v8760_v22 = vpop.eup %7222  ;;  %v829_v28 = vrot.slane %v8756_v45, 7  ;;  %v6231_v13 = vrot.slane %v6230_v37, 4 }
 0x176   :  { %v6213_v49 = vadd.f32 %v6212_v47, %v6211_v54  ;;  %v6206_v2 = vadd.f32 %v6205_v11, %v6204_v15  ;;  %v8763_v35 = vpop.eup %7224  ;;  %v816_v23 = vsel %vm815_vm2, %v814_v31, %v8721_v44  ;;  %v6223_v10 = vsel %vm6194_vm3, %v6190_v61, 0.0 }
 0x177   :  { %12008 = vst [vmem:[#allocation4_spill] sm:$0xff] %v8763_v35  ;;  %v8767_v48 = vadd.f32 %v6219_v18, %v6218_v58  ;;  %v6198_v20 = vrot.slane %v6197_v4, 2  ;;  %v6232_v21 = vadd.f32 %v6231_v13, %v6230_v37  ;;  %v824_v47 = vsel %vm815_vm2, %v823_v29, %v8743_v17  ;;  %v6184_v37 = vpop.permute.xlu1 %6183 }
 0x178   :  { %v8770_v36 = vpop.eup %7226  ;;  %v6214_v6 = vrot.slane %v6213_v49, 1  ;;  %v6207_v25 = vrot.slane %v6206_v2, 1  ;;  %v6224_v58 = vrot.slane %v6223_v10, 4  ;;  %v833_v61 = vrot.slane %v8760_v22, 5 }
 0x179   :  { %12009 = vst [vmem:[#allocation101_spill] sm:$0xff] %v8770_v36  ;;  %v8773_v54 = vpop.eup %7228  ;;  %v835_v15 = vrot.slane %v8770_v36, 7  ;;  %v8778_v31 = vadd.f32 %v6198_v20, %v6197_v4  ;;  %v830_v18 = vsel %vm815_vm2, %v829_v28, %v8753_v60  ;;  %v6233_v13 = vrot.slane %v6232_v21, 2 }
 0x17a   :  { %v8780_v11 = vpop.eup %7230  ;;  %v839_v5 = vrot.slane %v8773_v54, 5  ;;  %v8790_v20 = vadd.f32 %v6214_v6, %v6213_v49  ;;  %v8792_v4 = vadd.f32 %v6207_v25, %v6206_v2  ;;  %v8807_v2 = vadd.f32 %v6224_v58, %v6223_v10 }
 0x17b   :  { %v8786_v7 = vpop.eup %7232  ;;  %v1332_v29 = vrot.slane %v8780_v11, 6  ;;  %v836_v28 = vsel %vm815_vm2, %v835_v15, %v8763_v35  ;;  %v8800_v60 = vadd.f32 %v6233_v13, %v6232_v21  ;;  %v8810_v6 = vmul.f32 %v6184_v37, %v8716_v9 }
 0x17c   :  { %v8794_v36 = vpop.eup %7234  ;;  %v1338_v45 = vrot.slane %v8786_v7, 6  ;;  %v12010_v15 = vrot.slane %v8571_v27, 5  ;;  %v12011_v10 = vrot.slane %v8584_v1, 5 }
 0x17d   :  { %v8802_v34 = vpop.eup %7236  ;;  %v1333_v49 = vsel %vm818_vm4, %v1332_v29, %v8677_v19  ;;  %v1344_v25 = vrot.slane %v8794_v36, 6  ;;  %v8821_v19 = vmul.f32 %v6179_v14, %v8716_v9 }
 0x17e   :  { %v8812_v12 = vpop.eup %7238  ;;  %v1335_v41 = vsel %vm821_vm5, %v12010_v15, %v1333_v49  ;;  %v1339_v21 = vsel %vm818_vm4, %v1338_v45, %v8683_v62  ;;  %v1350_v13 = vrot.slane %v8802_v34, 6  ;;  %v12012_v62 = vrot.slane %v8598_v63, 5 }
 0x17f   :  { %v8823_v29 = vpop.eup %7240  ;;  %v1341_v58 = vsel %vm821_vm5, %v12011_v10, %v1339_v21  ;;  %v1345_v37 = vsel %vm818_vm4, %v1344_v25, %v8689_v16  ;;  %v1358_v35 = vsel %vm845_vm6, %v1335_v41, 0.0  ;;  %v817_v49 = vrot.slane %v8812_v12, 6 }
 0x180   :  { %v8832_v15 = vpop.eup %7242  ;;  %v1347_v14 = vsel %vm821_vm5, %v12012_v62, %v1345_v37  ;;  %v1351_v9 = vsel %vm818_vm4, %v1350_v13, %v8699_v26  ;;  %v1359_v45 = vrot.slane %v1358_v35, 4  ;;  %v1365_v59 = vsel %vm845_vm6, %v1341_v58, 0.0 }
 0x181   :  { %v8840_v21 = vpop.eup %7244  ;;  %v12013_v16 = vrot.slane %v8610_v40, 5  ;;  %v1366_v25 = vrot.slane %v1365_v59, 4  ;;  %v1372_v10 = vsel %vm845_vm6, %v1347_v14, 0.0  ;;  %v819_v52 = vsel %vm818_vm4, %v817_v49, %v816_v23 }
 0x182   :  { %v1360_v38 = vadd.f32 %v1359_v45, %v1358_v35  ;;  %v1373_v17 = vrot.slane %v1372_v10, 4  ;;  %v12014_v26 = vrot.slane %v8738_v43, 5  ;;  %v825_v3 = vrot.slane %v8823_v29, 6 }
 0x183   :  { %v1353_v41 = vsel %vm821_vm5, %v12013_v16, %v1351_v9  ;;  %v1367_v58 = vadd.f32 %v1366_v25, %v1365_v59  ;;  %v831_v39 = vrot.slane %v8832_v15, 6  ;;  %v837_v14 = vrot.slane %v8840_v21, 6 }
 0x184   :  { %v1379_v37 = vsel %vm845_vm6, %v1353_v41, 0.0  ;;  %v822_v13 = vsel %vm821_vm5, %v12014_v26, %v819_v52  ;;  %v1361_v9 = vrot.slane %v1360_v38, 2  ;;  %v1374_v16 = vadd.f32 %v1373_v17, %v1372_v10 }
 0x185   :  { %v1380_v62 = vrot.slane %v1379_v37, 4  ;;  %v846_v23 = vsel %vm845_vm6, %v822_v13, 0.0  ;;  %v1368_v35 = vrot.slane %v1367_v58, 2  ;;  %v826_v45 = vsel %vm818_vm4, %v825_v3, %v824_v47 }
 0x186   :  { %v832_v41 = vsel %vm818_vm4, %v831_v39, %v830_v18  ;;  %v1362_v44 = vadd.f32 %v1361_v9, %v1360_v38  ;;  %v1375_v52 = vrot.slane %v1374_v16, 2  ;;  %v12015_v59 = vrot.slane %v8750_v51, 5 }
 0x187   :  { %v1381_v49 = vadd.f32 %v1380_v62, %v1379_v37  ;;  %v834_v26 = vsel %vm821_vm5, %v833_v61, %v832_v41  ;;  %v1369_v0 = vadd.f32 %v1368_v35, %v1367_v58  ;;  %v838_v10 = vsel %vm818_vm4, %v837_v14, %v836_v28 }
 0x188   :  { %v828_v25 = vsel %vm821_vm5, %v12015_v59, %v826_v45  ;;  %v847_v33 = vrot.slane %v846_v23, 4  ;;  %v1363_v13 = vrot.slane %v1362_v44, 1  ;;  %v1376_v53 = vadd.f32 %v1375_v52, %v1374_v16 }
 0x189   :  { %v1382_v17 = vrot.slane %v1381_v49, 2  ;;  %v840_v37 = vsel %vm821_vm5, %v839_v5, %v838_v10  ;;  %v853_v3 = vsel %vm845_vm6, %v828_v25, 0.0  ;;  %v1370_v39 = vrot.slane %v1369_v0, 1 }
 0x18a   :  { %v848_v47 = vadd.f32 %v847_v33, %v846_v23  ;;  %v854_v18 = vrot.slane %v853_v3, 4  ;;  %v1364_v62 = vadd.f32 %v1363_v13, %v1362_v44  ;;  %v1377_v9 = vrot.slane %v1376_v53, 1 }
 0x18b   :  { %v1383_v38 = vadd.f32 %v1382_v17, %v1381_v49  ;;  %v860_v45 = vsel %vm845_vm6, %v834_v26, 0.0  ;;  %v867_v61 = vsel %vm845_vm6, %v840_v37, 0.0  ;;  %v1371_v58 = vadd.f32 %v1370_v39, %v1369_v0 }
 0x18c   :  { %v849_v28 = vrot.slane %v848_v47, 2  ;;  %v855_v14 = vadd.f32 %v854_v18, %v853_v3  ;;  %v1378_v41 = vadd.f32 %v1377_v9, %v1376_v53  ;;  %7246 = vrcp.f32 %v1364_v62 }
 0x18d   :  { %v1384_v35 = vrot.slane %v1383_v38, 1  ;;  %v861_v16 = vrot.slane %v860_v45, 4  ;;  %v868_v5 = vrot.slane %v867_v61, 4  ;;  %7248 = vrcp.f32 %v1371_v58 }
 0x18e   :  { %v850_v59 = vadd.f32 %v849_v28, %v848_v47  ;;  %v856_v49 = vrot.slane %v855_v14, 2  ;;  %7250 = vrcp.f32 %v1378_v41  ;;  %v6235_v23 = vrot.slane %v8800_v60, 1 }
 0x18f   :  { %v1385_v52 = vadd.f32 %v1384_v35, %v1383_v38  ;;  %v862_v33 = vadd.f32 %v861_v16, %v860_v45  ;;  %v869_v44 = vadd.f32 %v868_v5, %v867_v61  ;;  %v6226_v0 = vrot.slane %v8807_v2, 2  ;;  %v8876_v61 = vpop.permute.xlu0 %6254 }
 0x190   :  { %v851_v25 = vrot.slane %v850_v59, 1  ;;  %v857_v26 = vadd.f32 %v856_v49, %v855_v14  ;;  %v6244_v53 = vsel %vm6194_vm3, %v8810_v6, 0.0  ;;  %v6237_v13 = vsel %vm6194_vm3, %v8821_v19, 0.0 }
 0x191   :  { %7252 = vrcp.f32 %v1385_v52  ;;  %v863_v17 = vrot.slane %v862_v33, 2  ;;  %v870_v10 = vrot.slane %v869_v44, 2  ;;  %v6227_v39 = vadd.f32 %v6226_v0, %v8807_v2 }
 0x192   :  { %v852_v37 = vadd.f32 %v851_v25, %v850_v59  ;;  %v858_v3 = vrot.slane %v857_v26, 1  ;;  %v6245_v38 = vrot.slane %v6244_v53, 4  ;;  %v12016_v62 = vrot.slane %v8767_v48, 1 }
 0x193   :  { %v864_v47 = vadd.f32 %v863_v17, %v862_v33  ;;  %v871_v18 = vadd.f32 %v870_v10, %v869_v44  ;;  %v6238_v45 = vrot.slane %v6237_v13, 4  ;;  %v6228_v6 = vrot.slane %v6227_v39, 1 }
 0x194   :  { %v6222_v9 = vadd.f32 %v12016_v62, %v8767_v48  ;;  %v859_v58 = vadd.f32 %v858_v3, %v857_v26  ;;  %7254 = vrcp.f32 %v852_v37  ;;  %v6246_v35 = vadd.f32 %v6245_v38, %v6244_v53 }
 0x195   :  { %v865_v28 = vrot.slane %v864_v47, 1  ;;  %v872_v19 = vrot.slane %v871_v18, 1  ;;  %v12017_v14 = vrot.slane %v8778_v31, 1  ;;  %v6239_v41 = vadd.f32 %v6238_v45, %v6237_v13 }
 0x196   :  { %7256 = vrcp.f32 %v859_v58  ;;  %v6236_v16 = vadd.f32 %v6235_v23, %v8800_v60  ;;  %v6247_v5 = vrot.slane %v6246_v35, 2  ;;  %v6256_v48 = vrot.slane %v8876_v61, 1 }
 0x197   :  { %v6201_v2 = vadd.f32 %v12017_v14, %v8778_v31  ;;  %v866_v52 = vadd.f32 %v865_v28, %v864_v47  ;;  %v873_v59 = vadd.f32 %v872_v19, %v871_v18  ;;  %v6240_v49 = vrot.slane %v6239_v41, 2 }
 0x198   :  { %v6257_v33 = vrot.slane %v8876_v61, 2  ;;  %v6229_v44 = vadd.f32 %v6228_v6, %v6227_v39  ;;  %v6248_v25 = vadd.f32 %v6247_v5, %v6246_v35  ;;  %v6258_v26 = vrot.slane %v8876_v61, 3 }
 0x199   :  { %v6259_v0 = vrot.slane %v8876_v61, 4  ;;  %7258 = vrcp.f32 %v866_v52  ;;  %v6241_v31 = vadd.f32 %v6240_v49, %v6239_v41  ;;  %v6260_v17 = vrot.slane %v8876_v61, 5  ;;  %v7247_v23 = vpop.eup %7246 }
 0x19a   :  { %v6261_v60 = vrot.slane %v8876_v61, 6  ;;  %7260 = vrcp.f32 %v873_v59  ;;  %v6249_v10 = vrot.slane %v6248_v25, 1  ;;  %v6262_v53 = vrot.slane %v8876_v61, 7  ;;  %v7249_v37 = vpop.eup %7248 }
 0x19b   :  { %v8890_v13 = vadd.f32 %v8876_v61, %v6201_v2  ;;  %v8893_v3 = vrot.slane %v7247_v23, %v8660_v46  ;;  %v6242_v39 = vrot.slane %v6241_v31, 1  ;;  %v8896_v38 = vadd.f32 %v6256_v48, %v8792_v4  ;;  %v7251_v18 = vpop.eup %7250 }
 0x19c   :  { %v8899_v47 = vadd.f32 %v6257_v33, %v8790_v20  ;;  %v8902_v62 = vrot.slane %v7249_v37, %v8660_v46  ;;  %v8904_v45 = vadd.f32 %v6258_v26, %v6222_v9  ;;  %v8906_v58 = vadd.f32 %v6259_v0, %v6229_v44 }
 0x19d   :  { %v8908_v6 = vadd.f32 %v6260_v17, %v6236_v16  ;;  %v8911_v28 = vrot.slane %v7251_v18, %v8660_v46  ;;  %v1408_v4 = vmul.f32 %v8780_v11, %v8893_v3  ;;  %v1409_v20 = vmul.f32 %v8571_v27, %v8893_v3 }
 0x19e   :  { %v7253_v35 = vpop.eup %7252  ;;  %v6250_v19 = vadd.f32 %v6249_v10, %v6248_v25  ;;  %v1412_v9 = vmul.f32 %v8786_v7, %v8902_v62  ;;  %v1413_v2 = vmul.f32 %v8584_v1, %v8902_v62  ;;  %v8924_v41 = vadd.f32 %v6242_v39, %v6241_v31 }
 0x19f   :  { %v8918_v14 = vrot.slane %v7253_v35, %v8660_v46  ;;  %v1416_v16 = vmul.f32 %v8794_v36, %v8911_v28  ;;  %v1433_v11 = vrot.slane %v1408_v4, %v8660_v46  ;;  %v1417_v27 = vmul.f32 %v8598_v63, %v8911_v28 }
 0x1a0   :  { %v1437_v5 = vrot.slane %v1409_v20, %v8660_v46  ;;  %v1449_v7 = vrot.slane %v1412_v9, %v8660_v46  ;;  %v1453_v52 = vrot.slane %v1413_v2, %v8660_v46  ;;  %v8943_v33 = vadd.f32 %v6262_v53, %v6250_v19 }
 0x1a1   :  { %v1420_v48 = vmul.f32 %v8802_v34, %v8918_v14  ;;  %v1421_v1 = vmul.f32 %v8610_v40, %v8918_v14  ;;  %v7255_v59 = vpop.eup %7254  ;;  %v1465_v36 = vrot.slane %v1416_v16, %v8660_v46  ;;  %v8940_v49 = vmul.f32 %v1433_v11, %v8671_v55 }
 0x1a2   :  { %v1469_v63 = vrot.slane %v1417_v27, %v8660_v46  ;;  %12018 = vst [vmem:[#allocation102_spill] sm:$0xff] %v8943_v33  ;;  %v8947_v34 = vmul.f32 %v1449_v7, %v8671_v55  ;;  %v8951_v40 = vmul.f32 %v1437_v5, %v8705_v50  ;;  %v8957_v31 = vmul.f32 %v1453_v52, %v8705_v50 }
 0x1a3   :  { %v1481_v44 = vrot.slane %v1420_v48, %v8660_v46  ;;  %v1485_v25 = vrot.slane %v1421_v1, %v8660_v46  ;;  %v7257_v26 = vpop.eup %7256  ;;  %v8954_v0 = vmul.f32 %v1465_v36, %v8671_v55  ;;  %v8963_v23 = vrot.slane %v7255_v59, %v8660_v46 }
 0x1a4   :  { %v8960_v17 = vmul.f32 %v1469_v63, %v8705_v50  ;;  %v8972_v37 = vrot.slane %v7257_v26, %v8660_v46  ;;  %v8975_v39 = vmul.f32 %v1433_v11, %v8719_v56  ;;  %v8982_v4 = vmul.f32 %v1449_v7, %v8719_v56 }
 0x1a5   :  { %v8966_v10 = vmul.f32 %v1481_v44, %v8671_v55  ;;  %v8969_v53 = vmul.f32 %v1485_v25, %v8705_v50  ;;  %v896_v18 = vmul.f32 %v8812_v12, %v8963_v23  ;;  %v897_v35 = vmul.f32 %v8738_v43, %v8963_v23 }
 0x1a6   :  { %v8985_v55 = vmul.f32 %v1465_v36, %v8719_v56  ;;  %v7259_v50 = vpop.eup %7258  ;;  %v900_v20 = vmul.f32 %v8823_v29, %v8972_v37  ;;  %v901_v19 = vmul.f32 %v8750_v51, %v8972_v37  ;;  %v8992_v9 = vmul.f32 %v1481_v44, %v8719_v56 }
 0x1a7   :  { %v8995_v12 = vmul.f32 %v1437_v5, %v8727_v42  ;;  %v7261_v43 = vpop.eup %7260  ;;  %v8998_v2 = vrot.slane %v7259_v50, %v8660_v46  ;;  %v921_v16 = vrot.slane %v896_v18, %v8660_v46  ;;  %v925_v11 = vrot.slane %v897_v35, %v8660_v46 }
 0x1a8   :  { %v9003_v27 = vmul.f32 %v1453_v52, %v8727_v42  ;;  %vm6279_vm7 = vcmp.ge.f32.partialorder %v8890_v13, 0.0  ;;  %v9007_v51 = vrot.slane %v7261_v43, %v8660_v46  ;;  %v937_v56 = vrot.slane %v900_v20, %v8660_v46 }
 0x1a9   :  { %v941_v29 = vrot.slane %v901_v19, %v8660_v46  ;;  %v9012_v5 = vmul.f32 %v1469_v63, %v8727_v42  ;;  %vm6280_vm8 = vcmp.ge.f32.partialorder %v8896_v38, 0.0  ;;  %v904_v48 = vmul.f32 %v8832_v15, %v8998_v2 }
 0x1aa   :  { %v9018_v7 = vmul.f32 %v921_v16, %v8708_v8  ;;  %v905_v1 = vmul.f32 %v8760_v22, %v8998_v2  ;;  %v9023_v52 = vmul.f32 %v1485_v25, %v8727_v42  ;;  %v908_v59 = vmul.f32 %v8840_v21, %v9007_v51 }
 0x1ab   :  { %v9028_v36 = vmul.f32 %v937_v56, %v8708_v8  ;;  %v909_v63 = vmul.f32 %v8773_v54, %v9007_v51  ;;  %v9033_v15 = vmul.f32 %v925_v11, %v8711_v32  ;;  %v953_v44 = vrot.slane %v904_v48, %v8660_v46 }
 0x1ac   :  { %v957_v26 = vrot.slane %v905_v1, %v8660_v46  ;;  %v9038_v22 = vmul.f32 %v941_v29, %v8711_v32  ;;  %v9041_v42 = vmul.f32 %v921_v16, %v8730_v30  ;;  %v969_v21 = vrot.slane %v908_v59, %v8660_v46 }
 0x1ad   :  { %v973_v25 = vrot.slane %v909_v63, %v8660_v46  ;;  %v9046_v18 = vmul.f32 %v937_v56, %v8730_v30  ;;  %v9049_v54 = vmul.f32 %v925_v11, %v8741_v24  ;;  %v9052_v35 = vmul.f32 %v953_v44, %v8708_v8 }
 0x1ae   :  { %v9055_v50 = vmul.f32 %v957_v26, %v8711_v32  ;;  %v9058_v20 = vmul.f32 %v953_v44, %v8730_v30  ;;  %v9061_v19 = vmul.f32 %v941_v29, %v8741_v24  ;;  %v9064_v43 = vmul.f32 %v969_v21, %v8708_v8 }
 0x1af   :  { %v9067_v16 = vmul.f32 %v973_v25, %v8711_v32  ;;  %v9070_v11 = vmul.f32 %v969_v21, %v8730_v30  ;;  %v9073_v56 = vmul.f32 %v957_v26, %v8741_v24  ;;  %v9076_v48 = vmul.f32 %v973_v25, %v8741_v24 }
 0x1b0   :  { %v9081_v29 = vadd.f32 %v6261_v60, %v8924_v41  ;;  %vm6281_vm9 = vcmp.ge.f32.partialorder %v8899_v47, 0.0  ;;  %vm6282_vm10 = vcmp.ge.f32.partialorder %v8904_v45, 0.0  ;;  %vm6283_vm11 = vcmp.ge.f32.partialorder %v8906_v58, 0.0  ;;  %v12019_v60 = vld [vmem:[#allocation99_spill] sm:$0xff] }
 0x1b1   :  { %vm6284_vm12 = vcmp.ge.f32.partialorder %v8908_v6, 0.0  ;;  %v6287_v8 = vmul.f32 0.2, %v8890_v13  ;;  %v6288_v32 = vmul.f32 0.2, %v8896_v38  ;;  %v1406_v61 = vmul.f32 %v8552_v57, %v8893_v3 }
 0x1b2   :  { %v6289_v30 = vmul.f32 0.2, %v8899_v47  ;;  %v6290_v24 = vmul.f32 0.2, %v8904_v45  ;;  %v1407_v41 = vmul.f32 %v12019_v60, %v8893_v3  ;;  %v6291_v1 = vmul.f32 0.2, %v8906_v58 }
 0x1b3   :  { %v6292_v59 = vmul.f32 0.2, %v8908_v6  ;;  %v9098_v63 = vmul.f32 0.2, %v9081_v29  ;;  %v6295_v44 = vsel %vm6279_vm7, %v8890_v13, %v6287_v8  ;;  %v9104_v26 = vmul.f32 0.2, %v8943_v33 }
 0x1b4   :  { %v6296_v57 = vsel %vm6280_vm8, %v8896_v38, %v6288_v32  ;;  %v6297_v3 = vsel %vm6281_vm9, %v8899_v47, %v6289_v30  ;;  %v9115_v21 = vsel %vm6282_vm10, %v8904_v45, %v6290_v24  ;;  %v9120_v13 = vsel %vm6283_vm11, %v8906_v58, %v6291_v1  ;;  %v12028_v30 = vld [vmem:[#allocation67_spill] sm:$0xff]  ;;  %v12030_v32 = vld [vmem:[#allocation100_spill] sm:$0xff] }
 0x1b5   :  { %12020 = vst [vmem:[#allocation99_spill] sm:$0xff] %v9098_v63  ;;  %12021 = vst [vmem:[#allocation103_spill] sm:$0xff] %v9104_v26  ;;  %v9125_v25 = vsel %vm6284_vm12, %v8908_v6, %v6292_v59  ;;  %v6311_v38 = vrot.slane %v6296_v57, 7  ;;  %v6313_v8 = vrot.slane %v6297_v3, 6  ;;  %v1425_v45 = vrot.slane %v1406_v61, %v8660_v46  ;;  %v12026_v59 = vld [vmem:[#allocation66_spill] sm:$0xff]  ;;  %v12027_v3 = vld [vmem:[#allocation81_spill] sm:$0xff] }
 0x1b6   :  { %12022 = vst [vmem:[#allocation104_spill] sm:$0xff] %v9115_v21  ;;  %12023 = vst [vmem:[#allocation105_spill] sm:$0xff] %v9120_v13  ;;  %v1429_v58 = vrot.slane %v1407_v41, %v8660_v46  ;;  %v1521_v60 = vsel %vm577_vm1, %v8940_v49, 0.0  ;;  %v1523_v6 = vsel %vm577_vm1, %v8951_v40, 0.0  ;;  %v1528_v61 = vsel %vm577_vm1, %v8975_v39, 0.0  ;;  %v12035_v33 = vld [vmem:[#allocation84_spill] sm:$0xff] }
 0x1b7   :  { %12024 = vst [vmem:[#allocation106_spill] sm:$0xff] %v9125_v25  ;;  %v6312_v24 = vsel %vm815_vm2, %v6311_v38, %v6295_v44  ;;  %v1486_v57 = vmul.f32 %v1425_v45, %v12026_v59  ;;  %v1487_v47 = vmul.f32 %v1425_v45, %v12027_v3  ;;  %v12029_v38 = vld [vmem:[#allocation82_spill] sm:$0xff]  ;;  %v1530_v49 = vsel %vm577_vm1, %v8995_v12, 0.0 }
 0x1b8   :  { %v9138_v1 = vsel %vm818_vm4, %v6313_v8, %v6312_v24  ;;  %v1488_v44 = vmul.f32 %v1429_v58, %v12028_v30  ;;  %v1489_v41 = vmul.f32 %v1429_v58, %v12029_v38  ;;  %v1410_v40 = vmul.f32 %v12030_v32, %v8902_v62  ;;  %v12031_v25 = vld [vmem:[#allocation2_spill] sm:$0xff] }
 0x1b9   :  { %12025 = vst [vmem:[#allocation107_spill] sm:$0xff] %v9138_v1  ;;  %v1518_v8 = vsel %vm577_vm1, %v1486_v57, 0.0  ;;  %v1525_v24 = vsel %vm577_vm1, %v1487_v47, 0.0  ;;  %v1411_v45 = vmul.f32 %v12031_v25, %v8902_v62  ;;  %v1535_v39 = vsel %vm577_vm1, %v8947_v34, 0.0 }
 0x1ba   :  { %v1519_v13 = vsel %vm577_vm1, %v1488_v44, 0.0  ;;  %v1526_v58 = vsel %vm577_vm1, %v1489_v41, 0.0  ;;  %v1441_v21 = vrot.slane %v1410_v40, %v8660_v46  ;;  %v1537_v12 = vsel %vm577_vm1, %v8957_v31, 0.0  ;;  %v12032_v44 = vld [vmem:[#allocation86_spill] sm:$0xff] }
 0x1bb   :  { %v1520_v32 = vadd.f32 %v1519_v13, %v1518_v8  ;;  %v1527_v1 = vadd.f32 %v1526_v58, %v1525_v24  ;;  %v1445_v57 = vrot.slane %v1411_v45, %v8660_v46  ;;  %v1542_v47 = vsel %vm577_vm1, %v8982_v4, 0.0  ;;  %v12033_v24 = vld [vmem:[#allocation87_spill] sm:$0xff] }
 0x1bc   :  { %v1494_v62 = vmul.f32 %v1441_v21, %v12026_v59  ;;  %v1495_v34 = vmul.f32 %v1441_v21, %v12027_v3  ;;  %v1544_v25 = vsel %vm577_vm1, %v9003_v27, 0.0  ;;  %v894_v41 = vmul.f32 %v12032_v44, %v8963_v23 }
 0x1bd   :  { %v1522_v40 = vadd.f32 %v1521_v60, %v1520_v32  ;;  %v1529_v26 = vadd.f32 %v1528_v61, %v1527_v1  ;;  %v1496_v31 = vmul.f32 %v1445_v57, %v12028_v30  ;;  %v1497_v13 = vmul.f32 %v1445_v57, %v12029_v38  ;;  %v12034_v57 = vld [vmem:[#allocation71_spill] sm:$0xff] }
 0x1be   :  { %v1532_v8 = vsel %vm577_vm1, %v1494_v62, 0.0  ;;  %v1539_v4 = vsel %vm577_vm1, %v1495_v34, 0.0  ;;  %v895_v45 = vmul.f32 %v12033_v24, %v8963_v23  ;;  %v913_v21 = vrot.slane %v894_v41, %v8660_v46  ;;  %v12036_v41 = vld [vmem:[#allocation80_spill] sm:$0xff] }
 0x1bf   :  { %v1524_v58 = vadd.f32 %v1523_v6, %v1522_v40  ;;  %v1531_v27 = vadd.f32 %v1530_v49, %v1529_v26  ;;  %v1533_v63 = vsel %vm577_vm1, %v1496_v31, 0.0  ;;  %v1540_v60 = vsel %vm577_vm1, %v1497_v13, 0.0  ;;  %v12037_v31 = vld [vmem:[#allocation85_spill] sm:$0xff] }
 0x1c0   :  { %v1534_v1 = vadd.f32 %v1533_v63, %v1532_v8  ;;  %v1541_v61 = vadd.f32 %v1540_v60, %v1539_v4  ;;  %v917_v32 = vrot.slane %v895_v45, %v8660_v46  ;;  %v974_v44 = vmul.f32 %v913_v21, %v12034_v57  ;;  %v12039_v60 = vld [vmem:[#allocation53_spill] sm:$0xff] }
 0x1c1   :  { %v1575_v62 = vpack.c.bf16 %v1531_v27, %v1524_v58  ;;  %v975_v34 = vmul.f32 %v913_v21, %v12035_v33  ;;  %v1009_v23 = vsel %vm577_vm1, %v9018_v7, 0.0  ;;  %v1011_v6 = vsel %vm577_vm1, %v9033_v15, 0.0  ;;  %v12038_v58 = vld [vmem:[#allocation6_spill] sm:$0xff] }
 0x1c2   :  { %v1536_v26 = vadd.f32 %v1535_v39, %v1534_v1  ;;  %v1543_v49 = vadd.f32 %v1542_v47, %v1541_v61  ;;  %v976_v40 = vmul.f32 %v917_v32, %v12036_v41  ;;  %v977_v63 = vmul.f32 %v917_v32, %v12037_v31 }
 0x1c3   :  { %6813 = vmatprep.subr.bf16.mxu0 %v1575_v62  ;;  %v1006_v13 = vsel %vm577_vm1, %v974_v44, 0.0  ;;  %v1013_v8 = vsel %vm577_vm1, %v975_v34, 0.0  ;;  %v1016_v4 = vsel %vm577_vm1, %v9041_v42, 0.0  ;;  %v1018_v7 = vsel %vm577_vm1, %v9049_v54, 0.0  ;;  %v12040_v34 = vld [vmem:[#allocation61_spill] sm:$0xff] }
 0x1c4   :  { %v1538_v24 = vadd.f32 %v1537_v12, %v1536_v26  ;;  %v1545_v45 = vadd.f32 %v1544_v25, %v1543_v49  ;;  %6814 = vmatpush3.bf16.msra.mxu0 %v1575_v62  ;;  %v1007_v15 = vsel %vm577_vm1, %v976_v40, 0.0  ;;  %v1014_v39 = vsel %vm577_vm1, %v977_v63, 0.0 }
 0x1c5   :  { %v1008_v47 = vadd.f32 %v1007_v15, %v1006_v13  ;;  %v1015_v21 = vadd.f32 %v1014_v39, %v1013_v8  ;;  %v898_v27 = vmul.f32 %v12038_v58, %v8972_v37  ;;  %v899_v1 = vmul.f32 %v12039_v60, %v8972_v37  ;;  %v9235_v60 = vld [vmem:[%s11639_s4 + $0x8] sm:$0xff]  }
 0x1c6   :  { %v1577_v61 = vpack.c.bf16 %v1545_v45, %v1538_v24  ;;  %v1023_v42 = vsel %vm577_vm1, %v9028_v36, 0.0  ;;  %v1025_v54 = vsel %vm577_vm1, %v9038_v22, 0.0  ;;  %v1030_v12 = vsel %vm577_vm1, %v9046_v18, 0.0  ;;  %v12041_v36 = vld [vmem:[#allocation65_spill] sm:$0xff] }
 0x1c7   :  { %v1010_v25 = vadd.f32 %v1009_v23, %v1008_v47  ;;  %v1017_v32 = vadd.f32 %v1016_v4, %v1015_v21  ;;  %v929_v44 = vrot.slane %v898_v27, %v8660_v46  ;;  %v933_v62 = vrot.slane %v899_v1, %v8660_v46 }
 0x1c8   :  { %6821 = vmatprep.subr.bf16.mxu1 %v1577_v61  ;;  %v1032_v37 = vsel %vm577_vm1, %v9061_v19, 0.0  ;;  %v1414_v26 = vmul.f32 %v12040_v34, %v8911_v28  ;;  %v1415_v49 = vmul.f32 %v12041_v36, %v8911_v28  ;;  %v1549_v22 = vsel %vm577_vm1, %v8954_v0, 0.0 }
 0x1c9   :  { %6822 = vmatpush3.bf16.msra.mxu1 %v1577_v61  ;;  %v1012_v18 = vadd.f32 %v1011_v6, %v1010_v25  ;;  %v1019_v23 = vadd.f32 %v1018_v7, %v1017_v32  ;;  %v982_v40 = vmul.f32 %v929_v44, %v12034_v57  ;;  %v983_v63 = vmul.f32 %v929_v44, %v12035_v33 }
 0x1ca   :  { %v984_v13 = vmul.f32 %v933_v62, %v12036_v41  ;;  %v985_v19 = vmul.f32 %v933_v62, %v12037_v31  ;;  %v1457_v8 = vrot.slane %v1414_v26, %v8660_v46  ;;  %v1461_v4 = vrot.slane %v1415_v49, %v8660_v46  ;;  %v12042_v49 = vld [vmem:[#allocation62_spill] sm:$0xff] }
 0x1cb   :  { %v1574_v24 = vpack.c.bf16 %v1019_v23, %v1012_v18  ;;  %v1020_v28 = vsel %vm577_vm1, %v982_v40, 0.0  ;;  %v1027_v0 = vsel %vm577_vm1, %v983_v63, 0.0  ;;  %v1551_v6 = vsel %vm577_vm1, %v8960_v17, 0.0  ;;  %v12043_v23 = vld [vmem:[#allocation70_spill] sm:$0xff] }
 0x1cc   :  { %v1021_v7 = vsel %vm577_vm1, %v984_v13, 0.0  ;;  %v1028_v45 = vsel %vm577_vm1, %v985_v19, 0.0  ;;  %v1502_v15 = vmul.f32 %v1457_v8, %v12026_v59  ;;  %v1503_v39 = vmul.f32 %v1457_v8, %v12027_v3 }
 0x1cd   :  { %6815 = vmatprep.subr.bf16.mxu0 %v1574_v24  ;;  %v1022_v47 = vadd.f32 %v1021_v7, %v1020_v28  ;;  %v1029_v21 = vadd.f32 %v1028_v45, %v1027_v0  ;;  %v1504_v58 = vmul.f32 %v1461_v4, %v12028_v30  ;;  %v1505_v27 = vmul.f32 %v1461_v4, %v12029_v38 }
 0x1ce   :  { %6816 = vmatpush3.bf16.msra.mxu0 %v1574_v24  ;;  %v1546_v17 = vsel %vm577_vm1, %v1502_v15, 0.0  ;;  %v1553_v1 = vsel %vm577_vm1, %v1503_v39, 0.0  ;;  %v1556_v61 = vsel %vm577_vm1, %v8985_v55, 0.0  ;;  %v1558_v25 = vsel %vm577_vm1, %v9012_v5, 0.0  ;;  %v12045_v15 = vld [vmem:[#allocation7_spill] sm:$0xff] }
 0x1cf   :  { %v1024_v32 = vadd.f32 %v1023_v42, %v1022_v47  ;;  %v1031_v44 = vadd.f32 %v1030_v12, %v1029_v21  ;;  %v1547_v62 = vsel %vm577_vm1, %v1504_v58, 0.0  ;;  %v1554_v34 = vsel %vm577_vm1, %v1505_v27, 0.0 }
 0x1d0   :  { %v1548_v26 = vadd.f32 %v1547_v62, %v1546_v17  ;;  %v1555_v36 = vadd.f32 %v1554_v34, %v1553_v1  ;;  %v1418_v18 = vmul.f32 %v12042_v49, %v8918_v14  ;;  %v1419_v40 = vmul.f32 %v12043_v23, %v8918_v14  ;;  %v7374_v14 = vld [vmem:[%s11639_s4] sm:$0xff]  }
 0x1d1   :  { %v1026_v63 = vadd.f32 %v1025_v54, %v1024_v32  ;;  %v1033_v13 = vadd.f32 %v1032_v37, %v1031_v44  ;;  %v1563_v55 = vsel %vm577_vm1, %v8966_v10, 0.0  ;;  %v1565_v5 = vsel %vm577_vm1, %v8969_v53, 0.0  ;;  %6818 = vmatmul.mubr.msk.bf16.vlgmr.msra.gmra.mxu0 %vm202_vm0, %v9235_v60  ;;  %v12044_v37 = vld [vmem:[#allocation5_spill] sm:$0xff] }
 0x1d2   :  { %v1550_v42 = vadd.f32 %v1549_v22, %v1548_v26  ;;  %v1557_v12 = vadd.f32 %v1556_v61, %v1555_v36  ;;  %v1473_v19 = vrot.slane %v1418_v18, %v8660_v46  ;;  %v1477_v8 = vrot.slane %v1419_v40, %v8660_v46  ;;  %6833 = vmatprep.mubr.msk.bf16.mxu0 %vm202_vm0, %v7374_v14  ;;  %v12046_v36 = vld [vmem:[#allocation4_spill] sm:$0xff]  ;;  %v12047_v18 = vld [vmem:[#allocation101_spill] sm:$0xff] }
 0x1d3   :  { %v1576_v54 = vpack.c.bf16 %v1033_v13, %v1026_v63  ;;  %v1570_v10 = vsel %vm577_vm1, %v8992_v9, 0.0  ;;  %v1572_v53 = vsel %vm577_vm1, %v9023_v52, 0.0  ;;  %v902_v22 = vmul.f32 %v12044_v37, %v8998_v2 }
 0x1d4   :  { %v1552_v4 = vadd.f32 %v1551_v6, %v1550_v42  ;;  %v1559_v24 = vadd.f32 %v1558_v25, %v1557_v12  ;;  %v1510_v28 = vmul.f32 %v1473_v19, %v12026_v59  ;;  %v1511_v0 = vmul.f32 %v1473_v19, %v12027_v3 }
 0x1d5   :  { %6823 = vmatprep.subr.bf16.mxu1 %v1576_v54  ;;  %v1512_v7 = vmul.f32 %v1477_v8, %v12028_v30  ;;  %v1513_v45 = vmul.f32 %v1477_v8, %v12029_v38  ;;  %v903_v9 = vmul.f32 %v12045_v15, %v8998_v2  ;;  %v945_v39 = vrot.slane %v902_v22, %v8660_v46  ;;  %v12048_v22 = vld [vmem:[#allocation102_spill] sm:$0xff]  ;;  %v12052_v15 = vld [vmem:[#allocation104_spill] sm:$0xff] }
 0x1d6   :  { %6824 = vmatpush3.bf16.msra.mxu1 %v1576_v54  ;;  %v1579_v52 = vpack.c.bf16 %v1559_v24, %v1552_v4  ;;  %v1560_v47 = vsel %vm577_vm1, %v1510_v28, 0.0  ;;  %v1567_v6 = vsel %vm577_vm1, %v1511_v0, 0.0  ;;  %v1037_v59 = vsel %vm577_vm1, %v9052_v35, 0.0  ;;  %v12049_v28 = vld [vmem:[#allocation99_spill] sm:$0xff] }
 0x1d7   :  { %vm6285_vm13 = vcmp.ge.f32.partialorder %v9081_v29, 0.0  ;;  %v1561_v30 = vsel %vm577_vm1, %v1512_v7, 0.0  ;;  %v1568_v3 = vsel %vm577_vm1, %v1513_v45, 0.0  ;;  %v949_v38 = vrot.slane %v903_v9, %v8660_v46  ;;  %v12051_v45 = vld [vmem:[#allocation107_spill] sm:$0xff] }
 0x1d8   :  { %v990_v2 = vmul.f32 %v945_v39, %v12034_v57  ;;  %6829 = vmatprep.subr.bf16.mxu0 %v1579_v52  ;;  %v1562_v21 = vadd.f32 %v1561_v30, %v1560_v47  ;;  %v1569_v58 = vadd.f32 %v1568_v3, %v1567_v6  ;;  %v991_v27 = vmul.f32 %v945_v39, %v12035_v33  ;;  %v12054_v6 = vld [vmem:[#allocation105_spill] sm:$0xff] }
 0x1d9   :  { %v1039_v17 = vsel %vm577_vm1, %v9055_v50, 0.0  ;;  %6826 = vmatmul.mubr.msk.bf16.vlgmr.msra.gmra.mxu1 %vm202_vm0, %v9235_v60  ;;  %6830 = vmatpush3.bf16.msra.mxu0 %v1579_v52  ;;  %v992_v35 = vmul.f32 %v949_v38, %v12036_v41  ;;  %v993_v1 = vmul.f32 %v949_v38, %v12037_v31  ;;  %v1044_v25 = vsel %vm577_vm1, %v9058_v20, 0.0  ;;  %v12056_v38 = vld [vmem:[#allocation106_spill] sm:$0xff] }
 0x1da   :  { %v1034_v61 = vsel %vm577_vm1, %v990_v2, 0.0  ;;  %v1564_v32 = vadd.f32 %v1563_v55, %v1562_v21  ;;  %v1571_v44 = vadd.f32 %v1570_v10, %v1569_v58  ;;  %v1041_v62 = vsel %vm577_vm1, %v991_v27, 0.0  ;;  %6841 = vmatprep.mubr.msk.bf16.mxu1 %vm202_vm0, %v7374_v14 }
 0x1db   :  { %v1046_v50 = vsel %vm577_vm1, %v9073_v56, 0.0  ;;  %v1035_v34 = vsel %vm577_vm1, %v992_v35, 0.0  ;;  %v1042_v26 = vsel %vm577_vm1, %v993_v1, 0.0  ;;  %v906_v49 = vmul.f32 %v12046_v36, %v9007_v51 }
 0x1dc   :  { %v907_v23 = vmul.f32 %v12047_v18, %v9007_v51  ;;  %v1566_v20 = vadd.f32 %v1565_v5, %v1564_v32  ;;  %v1573_v40 = vadd.f32 %v1572_v53, %v1571_v44  ;;  %v1036_v63 = vadd.f32 %v1035_v34, %v1034_v61  ;;  %v9347_v61 = vld [vmem:[%s11642_s8] sm:$0xff]   ;;  %v12058_v44 = vld [vmem:[#allocation9_spill] sm:$0xff]  ;;  %v12059_v34 = vld [vmem:[#allocation11_spill] sm:$0xff] }
 0x1dd   :  { %v1043_v13 = vadd.f32 %v1042_v26, %v1041_v62  ;;  %v961_v55 = vrot.slane %v906_v49, %v8660_v46  ;;  %v1051_v42 = vsel %vm577_vm1, %v9064_v43, 0.0  ;;  %v1053_v12 = vsel %vm577_vm1, %v9067_v16, 0.0  ;;  %v12060_v18 = vld [vmem:[#allocation10_spill] sm:$0xff] }
 0x1de   :  { %v965_v56 = vrot.slane %v907_v23, %v8660_v46  ;;  %v1581_v19 = vpack.c.bf16 %v1573_v40, %v1566_v20  ;;  %v1038_v8 = vadd.f32 %v1037_v59, %v1036_v63  ;;  %v1058_v51 = vsel %vm577_vm1, %v9070_v11, 0.0  ;;  %v12061_v20 = vld [vmem:[#allocation8_spill] sm:$0xff] }
 0x1df   :  { %v1045_v14 = vadd.f32 %v1044_v25, %v1043_v13  ;;  %v998_v5 = vmul.f32 %v961_v55, %v12034_v57  ;;  %v999_v54 = vmul.f32 %v961_v55, %v12035_v33  ;;  %v1060_v16 = vsel %vm577_vm1, %v9076_v48, 0.0  ;;  %v12050_v48 = vld [vmem:[#allocation103_spill] sm:$0xff]  ;;  %v7376_v13 = vld [vmem:[%s11838_s20 + $0x10] sm:$0xff] }
 0x1e0   :  { %v1000_v10 = vmul.f32 %v965_v56, %v12036_v41  ;;  %v1001_v53 = vmul.f32 %v965_v56, %v12037_v31  ;;  %6837 = vmatprep.subr.bf16.mxu1 %v1581_v19  ;;  %v1040_v37 = vadd.f32 %v1039_v17, %v1038_v8  ;;  %vm6286_vm14 = vcmp.ge.f32.partialorder %v12048_v22, 0.0  ;;  %v7377_v56 = vld [vmem:[%s11838_s20 + $0x8] sm:$0xff] }
 0x1e1   :  { %v1047_v43 = vadd.f32 %v1046_v50, %v1045_v14  ;;  %6838 = vmatpush3.bf16.msra.mxu1 %v1581_v19  ;;  %v1048_v4 = vsel %vm577_vm1, %v998_v5, 0.0  ;;  %v1055_v57 = vsel %vm577_vm1, %v999_v54, 0.0  ;;  %v6301_v0 = vsel %vm6285_vm13, %v9081_v29, %v12049_v28  ;;  %v7378_v14 = vld [vmem:[%s11838_s20 + $0x18] sm:$0xff]  ;;  %v7381_v28 = vld [vmem:[%s11838_s20 + $0x28] sm:$0xff] }
 0x1e2   :  { %v1049_v11 = vsel %vm577_vm1, %v1000_v10, 0.0  ;;  %v1056_v33 = vsel %vm577_vm1, %v1001_v53, 0.0  ;;  %v6302_v7 = vsel %vm6286_vm14, %v12048_v22, %v12050_v48  ;;  %v12053_v9 = vrot.slane %v12052_v15, 5  ;;  %v7379_v22 = vld [vmem:[%s11838_s20 + $0x20] sm:$0xff] }
 0x1e3   :  { %v1578_v41 = vpack.c.bf16 %v1047_v43, %v1040_v37  ;;  %v1050_v24 = vadd.f32 %v1049_v11, %v1048_v4  ;;  %v1057_v31 = vadd.f32 %v1056_v33, %v1055_v57  ;;  %vm6321_vm3 = vcmask 1045509  }
 0x1e4   :  { %v6316_v39 = vsel %vm821_vm5, %v12053_v9, %v12051_v45  ;;  %v12055_v59 = vrot.slane %v12054_v6, 4  ;;  %v6323_v3 = vrot.slane %v6301_v0, 2  ;;  %v12057_v29 = vrot.slane %v12056_v38, 3  ;;  %v7382_v45 = vld [vmem:[%s11838_s20 + $0x38] sm:$0xff] }
 0x1e5   :  { %6831 = vmatprep.subr.bf16.mxu0 %v1578_v41  ;;  %v1052_v52 = vadd.f32 %v1051_v42, %v1050_v24  ;;  %v1059_v47 = vadd.f32 %v1058_v51, %v1057_v31  ;;  %vm6324_vm7 = vcmask 1046534   ;;  %v6326_v21 = vrot.slane %v6302_v7, 1  ;;  %v7380_v24 = vld [vmem:[%s11838_s20 + $0x30] sm:$0xff] }
 0x1e6   :  { %v6319_v30 = vsel %vm6318_vm15, %v12055_v59, %v6316_v39  ;;  %6832 = vmatpush3.bf16.msra.mxu0 %v1578_v41  ;;  %vm6327_vm8 = vcmask 1047559   ;;  %vm2286_vm9 = vcmask 523264  }
 0x1e7   :  { %v6322_v2 = vsel %vm6321_vm3, %v12057_v29, %v6319_v30  ;;  %v1054_v58 = vadd.f32 %v1053_v12, %v1052_v52  ;;  %v1061_v27 = vadd.f32 %v1060_v16, %v1059_v47 }
 0x1e8   :  { %v6325_v17 = vsel %vm6324_vm7, %v6323_v3, %v6322_v2 }
 0x1e9   :  { %v6328_v35 = vsel %vm6327_vm8, %v6326_v21, %v6325_v17  ;;  %v1580_v1 = vpack.c.bf16 %v1061_v27, %v1054_v58  ;;  %6834 = vmatmul.mubr.msk.bf16.vlgmr.msra.gmra.mxu0 %vm202_vm0, %v9235_v60 }
 0x1ea   :  { %6331 = vst.msk [vmem:[%s11641_s18 + $0x8] sm:$0xff] %vm577_vm1, %v6328_v35  ;;  %6849 = vmatprep.mubr.msk.bf16.mxu0 %vm202_vm0, %v9347_v61 }
 0x1eb   :  { %6839 = vmatprep.subr.bf16.mxu1 %v1580_v1 }
 0x1ec   :  { %6840 = vmatpush3.bf16.msra.mxu1 %v1580_v1 }
 0x1ef   :  { %6842 = vmatmul.mubr.msk.bf16.vlgmr.msra.gmra.mxu1 %vm202_vm0, %v9235_v60  ;;  %v7375_v60 = vld [vmem:[%s11838_s20] sm:$0xff] }
 0x291   :  { %v6819_v25 = vpop.f32.mrf.mxu0 }
 0x292   :  { %v1820_v26 = vadd.f32 %v6819_v25, %v12059_v34 }
 0x293   :  { %v1632_v32 = vpop.f32.mrf.mxu0 }
 0x294   :  { %v1818_v62 = vadd.f32 %v12058_v44, %v1632_v32  ;;  %v1836_v55 = vadd.f32 %v7376_v13, %v1820_v26 }
 0x295   :  { %v6820_v50 = vpop.f32.mrf.mxu0 }
 0x296   :  { %v1834_v49 = vadd.f32 %v7375_v60, %v1818_v62  ;;  %v1821_v23 = vadd.f32 %v6820_v50, %v12060_v18  ;;  %v1861_v53 = vsel %vm577_vm1, %v1836_v55, 0.0 }
 0x297   :  { %v1635_v36 = vpop.f32.mrf.mxu0 }
 0x298   :  { %v1819_v40 = vadd.f32 %v12061_v20, %v1635_v36  ;;  %v1858_v19 = vsel %vm577_vm1, %v1834_v49, 0.0  ;;  %v1837_v51 = vadd.f32 %v7378_v14, %v1821_v23 }
 0x299   :  { %v6827_v63 = vpop.f32.mrf.mxu1 }
 0x29a   :  { %v1835_v42 = vadd.f32 %v7377_v56, %v1819_v40  ;;  %v1824_v37 = vadd.f32 %v6827_v63, %v12059_v34  ;;  %v1863_v11 = vsel %vm577_vm1, %v1837_v51, 0.0  ;;  %v7383_v56 = vld [vmem:[%s11838_s20 + $0x50] sm:$0xff] }
 0x29b   :  { %v1681_v12 = vpop.f32.mrf.mxu1 }
 0x29c   :  { %v1822_v8 = vadd.f32 %v12058_v44, %v1681_v12  ;;  %v1859_v5 = vsel %vm577_vm1, %v1835_v42, 0.0  ;;  %v9383_v31 = vadd.f32 %v7380_v24, %v1824_v37 }
 0x29d   :  { %v6828_v54 = vpop.f32.mrf.mxu1  ;;  %v1860_v10 = vadd.f32 %v1859_v5, %v1858_v19  ;;  %v7384_v19 = vld [vmem:[%s11838_s20 + $0x40] sm:$0xff] }
 0x29e   :  { %v9375_v4 = vadd.f32 %v7379_v22, %v1822_v8  ;;  %v1825_v57 = vadd.f32 %v6828_v54, %v12060_v18  ;;  %v1874_v47 = vsel %vm577_vm1, %v9383_v31, 0.0  ;;  %v7385_v22 = vld [vmem:[%s11838_s20 + $0x60] sm:$0xff] }
 0x29f   :  { %v1862_v43 = vadd.f32 %v1861_v53, %v1860_v10  ;;  %v1684_v16 = vpop.f32.mrf.mxu1 }
 0x2a0   :  { %v1823_v33 = vadd.f32 %v12061_v20, %v1684_v16  ;;  %v1871_v7 = vsel %vm577_vm1, %v9375_v4, 0.0  ;;  %v9395_v15 = vadd.f32 %v7382_v45, %v1825_v57 }
 0x2a1   :  { %v1864_v41 = vadd.f32 %v1863_v11, %v1862_v43 }
 0x2a2   :  { %v9388_v0 = vadd.f32 %v7381_v28, %v1823_v33  ;;  %v1876_v30 = vsel %vm577_vm1, %v9395_v15, 0.0 }
 0x2a3   :  { %v1865_v48 = vrot.slane %v1864_v41, 4 }
 0x2a4   :  { %v1872_v9 = vsel %vm577_vm1, %v9388_v0, 0.0 }
 0x2a5   :  { %v1866_v39 = vadd.f32 %v1865_v48, %v1864_v41  ;;  %v1873_v52 = vadd.f32 %v1872_v9, %v1871_v7  ;;  %v7386_v48 = vld [vmem:[%s11838_s20 + $0x48] sm:$0xff] }
 0x2a7   :  { %v1867_v6 = vrot.slane %v1866_v39, 2  ;;  %v1875_v59 = vadd.f32 %v1874_v47, %v1873_v52  ;;  %v7387_v52 = vld [vmem:[%s11838_s20 + $0x70] sm:$0xff] }
 0x2a9   :  { %v6835_v3 = vpop.f32.mrf.mxu0  ;;  %v1868_v38 = vadd.f32 %v1867_v6, %v1866_v39  ;;  %v1877_v29 = vadd.f32 %v1876_v30, %v1875_v59 }
 0x2aa   :  { %v1828_v1 = vadd.f32 %v6835_v3, %v12059_v34  ;;  %v7389_v3 = vld [vmem:[%s11838_s20 + $0x68] sm:$0xff] }
 0x2ab   :  { %v1730_v2 = vpop.f32.mrf.mxu0  ;;  %v1869_v21 = vrot.slane %v1868_v38, 1  ;;  %v1878_v58 = vrot.slane %v1877_v29, 4 }
 0x2ac   :  { %v1826_v32 = vadd.f32 %v12058_v44, %v1730_v2  ;;  %v9416_v12 = vadd.f32 %v7383_v56, %v1828_v1 }
 0x2ad   :  { %v6836_v27 = vpop.f32.mrf.mxu0  ;;  %v1870_v17 = vadd.f32 %v1869_v21, %v1868_v38  ;;  %v1879_v35 = vadd.f32 %v1878_v58, %v1877_v29 }
 0x2ae   :  { %v9421_v8 = vadd.f32 %v7384_v19, %v1826_v32  ;;  %v1829_v53 = vadd.f32 %v6836_v27, %v12060_v18 }
 0x2af   :  { %v6843_v25 = vpop.f32.mrf.mxu1  ;;  %v1911_v62 = vmul.f32 0.03125, %v1870_v17  ;;  %v1880_v50 = vrot.slane %v1879_v35, 2  ;;  %v1733_v36 = vpop.f32.mrf.mxu0  ;;  %v7390_v17 = vld [vmem:[%s11838_s20 + $0x78] sm:$0xff] }
 0x2b0   :  { %v1827_v5 = vadd.f32 %v12061_v20, %v1733_v36  ;;  %v1832_v10 = vadd.f32 %v6843_v25, %v12059_v34  ;;  %v1887_v34 = vsel %vm577_vm1, %v9416_v12, 0.0  ;;  %v1884_v41 = vsel %vm577_vm1, %v9421_v8, 0.0 }
 0x2b1   :  { %v1779_v26 = vpop.f32.mrf.mxu1  ;;  %v9405_v60 = vsub.f32 %v1834_v49, %v1911_v62  ;;  %v9407_v23 = vsub.f32 %v1835_v42, %v1911_v62  ;;  %v9409_v40 = vsub.f32 %v1836_v55, %v1911_v62  ;;  %v9411_v63 = vsub.f32 %v1837_v51, %v1911_v62 }
 0x2b2   :  { %v1881_v13 = vadd.f32 %v1880_v50, %v1879_v35  ;;  %v1830_v49 = vadd.f32 %v12058_v44, %v1779_v26  ;;  %v9451_v7 = vadd.f32 %v7386_v48, %v1827_v5  ;;  %v9457_v47 = vadd.f32 %v7387_v52, %v1832_v10 }
 0x2b3   :  { %v6844_v42 = vpop.f32.mrf.mxu1  ;;  %v1931_v55 = vmul.f32 %v9405_v60, %v9405_v60  ;;  %v1932_v14 = vmul.f32 %v9407_v23, %v9407_v23  ;;  %v1933_v51 = vmul.f32 %v9409_v40, %v9409_v40  ;;  %v1934_v44 = vmul.f32 %v9411_v63, %v9411_v63 }
 0x2b4   :  { %v1882_v54 = vrot.slane %v1881_v13, 1  ;;  %v9440_v11 = vadd.f32 %v7385_v22, %v1830_v49  ;;  %v1833_v28 = vadd.f32 %v6844_v42, %v12060_v18  ;;  %v7388_v18 = vld [vmem:[%s11838_s20 + $0x58] sm:$0xff]  ;;  %v1900_v32 = vsel %vm577_vm1, %v9457_v47, 0.0 }
 0x2b5   :  { %v1782_v37 = vpop.f32.mrf.mxu1  ;;  %v1947_v43 = vsel %vm577_vm1, %v1931_v55, 0.0  ;;  %v1948_v16 = vsel %vm577_vm1, %v1932_v14, 0.0  ;;  %v1950_v24 = vsel %vm577_vm1, %v1933_v51, 0.0  ;;  %v9462_v6 = vadd.f32 %v7388_v18, %v1829_v53 }
 0x2b6   :  { %v1949_v57 = vadd.f32 %v1948_v16, %v1947_v43  ;;  %v1883_v33 = vadd.f32 %v1882_v54, %v1881_v13  ;;  %v1831_v45 = vadd.f32 %v12061_v20, %v1782_v37  ;;  %v1952_v59 = vsel %vm577_vm1, %v1934_v44, 0.0 }
 0x2b7   :  { %v1897_v30 = vsel %vm577_vm1, %v9440_v11, 0.0  ;;  %v1885_v20 = vsel %vm577_vm1, %v9451_v7, 0.0  ;;  %v9489_v35 = vadd.f32 %v7390_v17, %v1833_v28  ;;  %v1889_v62 = vsel %vm577_vm1, %v9462_v6, 0.0 }
 0x2b8   :  { %v1951_v9 = vadd.f32 %v1950_v24, %v1949_v57  ;;  %v1912_v39 = vmul.f32 0.03125, %v1883_v33  ;;  %v9472_v38 = vadd.f32 %v7389_v3, %v1831_v45  ;;  %v1886_v1 = vadd.f32 %v1885_v20, %v1884_v41 }
 0x2b9   :  { %v1902_v5 = vsel %vm577_vm1, %v9489_v35, 0.0 }
 0x2ba   :  { %v1953_v29 = vadd.f32 %v1952_v59, %v1951_v9  ;;  %v9475_v2 = vsub.f32 %v9375_v4, %v1912_v39  ;;  %v9478_v21 = vsub.f32 %v9388_v0, %v1912_v39  ;;  %v9481_v58 = vsub.f32 %v9383_v31, %v1912_v39 }
 0x2bb   :  { %v9484_v27 = vsub.f32 %v9395_v15, %v1912_v39  ;;  %v1898_v4 = vsel %vm577_vm1, %v9472_v38, 0.0  ;;  %v1888_v50 = vadd.f32 %v1887_v34, %v1886_v1 }
 0x2bc   :  { %v1954_v25 = vrot.slane %v1953_v29, 4  ;;  %v1935_v0 = vmul.f32 %v9475_v2, %v9475_v2  ;;  %v1936_v31 = vmul.f32 %v9478_v21, %v9478_v21  ;;  %v1937_v15 = vmul.f32 %v9481_v58, %v9481_v58 }
 0x2bd   :  { %v1899_v26 = vadd.f32 %v1898_v4, %v1897_v30  ;;  %v1938_v13 = vmul.f32 %v9484_v27, %v9484_v27  ;;  %v1890_v42 = vadd.f32 %v1889_v62, %v1888_v50 }
 0x2be   :  { %v1955_v36 = vadd.f32 %v1954_v25, %v1953_v29  ;;  %v1960_v56 = vsel %vm577_vm1, %v1935_v0, 0.0  ;;  %v1961_v19 = vsel %vm577_vm1, %v1936_v31, 0.0  ;;  %v1963_v51 = vsel %vm577_vm1, %v1937_v15, 0.0 }
 0x2bf   :  { %v1962_v49 = vadd.f32 %v1961_v19, %v1960_v56  ;;  %v1901_v55 = vadd.f32 %v1900_v32, %v1899_v26  ;;  %v1891_v10 = vrot.slane %v1890_v42, 4  ;;  %v1965_v44 = vsel %vm577_vm1, %v1938_v13, 0.0 }
 0x2c0   :  { %v1956_v14 = vrot.slane %v1955_v36, 2 }
 0x2c1   :  { %v1964_v54 = vadd.f32 %v1963_v51, %v1962_v49  ;;  %v1903_v53 = vadd.f32 %v1902_v5, %v1901_v55  ;;  %v1892_v16 = vadd.f32 %v1891_v10, %v1890_v42 }
 0x2c2   :  { %v1957_v37 = vadd.f32 %v1956_v14, %v1955_v36 }
 0x2c3   :  { %v1966_v43 = vadd.f32 %v1965_v44, %v1964_v54  ;;  %v1904_v22 = vrot.slane %v1903_v53, 4  ;;  %v1893_v34 = vrot.slane %v1892_v16, 2 }
 0x2c4   :  { %v1958_v57 = vrot.slane %v1957_v37, 1 }
 0x2c5   :  { %v1967_v33 = vrot.slane %v1966_v43, 4  ;;  %v1905_v41 = vadd.f32 %v1904_v22, %v1903_v53  ;;  %v1894_v48 = vadd.f32 %v1893_v34, %v1892_v16 }
 0x2c6   :  { %v1959_v24 = vadd.f32 %v1958_v57, %v1957_v37 }
 0x2c7   :  { %v1968_v28 = vadd.f32 %v1967_v33, %v1966_v43  ;;  %v1906_v45 = vrot.slane %v1905_v41, 2  ;;  %v1895_v52 = vrot.slane %v1894_v48, 1 }
 0x2c8   :  { %v1999_v9 = vmul.f32 0.03125, %v1959_v24 }
 0x2c9   :  { %v1969_v39 = vrot.slane %v1968_v28, 2  ;;  %v1907_v18 = vadd.f32 %v1906_v45, %v1905_v41  ;;  %v1896_v20 = vadd.f32 %v1895_v52, %v1894_v48  ;;  %v12062_v48 = vld [vmem:[#allocation13_spill] sm:$0xff]  ;;  %v12064_v52 = vld [vmem:[#allocation12_spill] sm:$0xff] }
 0x2ca   :  { %v2003_v59 = vadd.f32 1e-05, %v1999_v9  ;;  %v12063_v9 = vld [vmem:[#allocation16_spill] sm:$0xff] }
 0x2cb   :  { %v1970_v30 = vadd.f32 %v1969_v39, %v1968_v28  ;;  %v1908_v3 = vrot.slane %v1907_v18, 1  ;;  %v1913_v17 = vmul.f32 0.03125, %v1896_v20 }
 0x2cc   :  { %7262 = vrsqrt.f32 %v2003_v59  ;;  %v12065_v59 = vld [vmem:[#allocation17_spill] sm:$0xff] }
 0x2cd   :  { %v1971_v29 = vrot.slane %v1970_v30, 1  ;;  %v1909_v1 = vadd.f32 %v1908_v3, %v1907_v18  ;;  %v9512_v25 = vsub.f32 %v9421_v8, %v1913_v17  ;;  %v9515_v0 = vsub.f32 %v9451_v7, %v1913_v17  ;;  %v12066_v3 = vld [vmem:[#allocation15_spill] sm:$0xff] }
 0x2ce   :  { %v9518_v31 = vsub.f32 %v9416_v12, %v1913_v17  ;;  %v9521_v15 = vsub.f32 %v9462_v6, %v1913_v17 }
 0x2cf   :  { %v1972_v4 = vadd.f32 %v1971_v29, %v1970_v30  ;;  %v1914_v32 = vmul.f32 0.03125, %v1909_v1  ;;  %v1939_v50 = vmul.f32 %v9512_v25, %v9512_v25  ;;  %v1940_v26 = vmul.f32 %v9515_v0, %v9515_v0  ;;  %v12067_v29 = vld [vmem:[#allocation18_spill] sm:$0xff]  ;;  %v12069_v1 = vld [vmem:[#allocation19_spill] sm:$0xff] }
 0x2d0   :  { %v1941_v8 = vmul.f32 %v9518_v31, %v9518_v31  ;;  %v1942_v13 = vmul.f32 %v9521_v15, %v9521_v15 }
 0x2d1   :  { %v2000_v62 = vmul.f32 0.03125, %v1972_v4  ;;  %v9530_v7 = vsub.f32 %v9440_v11, %v1914_v32  ;;  %v9533_v12 = vsub.f32 %v9472_v38, %v1914_v32  ;;  %v9536_v6 = vsub.f32 %v9457_v47, %v1914_v32 }
 0x2d2   :  { %v1973_v56 = vsel %vm577_vm1, %v1939_v50, 0.0  ;;  %v1974_v19 = vsel %vm577_vm1, %v1940_v26, 0.0  ;;  %v9543_v42 = vsub.f32 %v9489_v35, %v1914_v32  ;;  %v1976_v38 = vsel %vm577_vm1, %v1941_v8, 0.0 }
 0x2d3   :  { %v2004_v36 = vadd.f32 1e-05, %v2000_v62  ;;  %v1975_v49 = vadd.f32 %v1974_v19, %v1973_v56  ;;  %v1943_v11 = vmul.f32 %v9530_v7, %v9530_v7  ;;  %v1944_v47 = vmul.f32 %v9533_v12, %v9533_v12 }
 0x2d4   :  { %v1945_v55 = vmul.f32 %v9536_v6, %v9536_v6  ;;  %v1978_v5 = vsel %vm577_vm1, %v1942_v13, 0.0  ;;  %v1946_v35 = vmul.f32 %v9543_v42, %v9543_v42 }
 0x2d5   :  { %7264 = vrsqrt.f32 %v2004_v36  ;;  %v1977_v14 = vadd.f32 %v1976_v38, %v1975_v49  ;;  %v1986_v51 = vsel %vm577_vm1, %v1943_v11, 0.0  ;;  %v1987_v54 = vsel %vm577_vm1, %v1944_v47, 0.0 }
 0x2d6   :  { %v1988_v53 = vadd.f32 %v1987_v54, %v1986_v51  ;;  %v1989_v44 = vsel %vm577_vm1, %v1945_v55, 0.0  ;;  %v1991_v33 = vsel %vm577_vm1, %v1946_v35, 0.0 }
 0x2d7   :  { %v1979_v10 = vadd.f32 %v1978_v5, %v1977_v14 }
 0x2d8   :  { %v1990_v22 = vadd.f32 %v1989_v44, %v1988_v53  ;;  %v9611_v44 = vld [vmem:[%s11642_s8 + $0x10] sm:$0xff]  }
 0x2d9   :  { %v7263_v37 = vpop.eup %7262  ;;  %v1980_v16 = vrot.slane %v1979_v10, 4 }
 0x2da   :  { %v2012_v43 = vmul.f32 %v7263_v37, %v9407_v23  ;;  %v2013_v57 = vmul.f32 %v7263_v37, %v9409_v40  ;;  %v2014_v34 = vmul.f32 %v7263_v37, %v9411_v63  ;;  %v2011_v41 = vmul.f32 %v7263_v37, %v9405_v60  ;;  %v12068_v63 = vld [vmem:[#allocation14_spill] sm:$0xff] }
 0x2db   :  { %v1981_v24 = vadd.f32 %v1980_v16, %v1979_v10  ;;  %v1992_v28 = vadd.f32 %v1991_v33, %v1990_v22  ;;  %v7165_v33 = vld [vmem:[%s11642_s8 + $0x18] sm:$0xff]  }
 0x2dc   :  { %v2049_v45 = vmul.f32 %v12062_v48, %v2013_v57  ;;  %v2048_v39 = vmul.f32 %v12063_v9, %v2012_v43  ;;  %v2050_v18 = vmul.f32 %v12064_v52, %v2014_v34  ;;  %v2047_v23 = vmul.f32 %v12065_v59, %v2011_v41 }
 0x2dd   :  { %v1982_v30 = vrot.slane %v1981_v24, 2  ;;  %v1993_v20 = vrot.slane %v1992_v28, 4 }
 0x2de   :  { %v9568_v40 = vadd.f32 %v12066_v3, %v2049_v45  ;;  %v9571_v17 = vadd.f32 %v12067_v29, %v2048_v39  ;;  %v9574_v60 = vadd.f32 %v12068_v63, %v2050_v18  ;;  %v9577_v4 = vadd.f32 %v12069_v1, %v2047_v23 }
 0x2df   :  { %v1983_v32 = vadd.f32 %v1982_v30, %v1981_v24  ;;  %v1994_v62 = vadd.f32 %v1993_v20, %v1992_v28 }
 0x2e0   :  { %v2100_v50 = vpack.c.bf16 %v9574_v60, %v9568_v40  ;;  %v2099_v13 = vpack.c.bf16 %v9571_v17, %v9577_v4 }
 0x2e1   :  { %v1984_v8 = vrot.slane %v1983_v32, 1  ;;  %v1995_v36 = vrot.slane %v1994_v62, 2 }
 0x2e2   :  { %v7265_v26 = vpop.eup %7264  ;;  %6845 = vmatprep.subr.bf16.mxu0 %v2100_v50 }
 0x2e3   :  { %v2016_v56 = vmul.f32 %v7265_v26, %v9478_v21  ;;  %v2017_v19 = vmul.f32 %v7265_v26, %v9481_v58  ;;  %v2018_v49 = vmul.f32 %v7265_v26, %v9484_v27  ;;  %v2015_v11 = vmul.f32 %v7265_v26, %v9475_v2  ;;  %6846 = vmatpush3.bf16.msra.mxu0 %v2100_v50  ;;  %v9600_v2 = vld [vmem:[%s11642_s8 + $0x8] sm:$0xff]  }
 0x2e4   :  { %v1985_v38 = vadd.f32 %v1984_v8, %v1983_v32  ;;  %v1996_v47 = vadd.f32 %v1995_v36, %v1994_v62  ;;  %6847 = vmatprep.subr.bf16.mxu0 %v2099_v13 }
 0x2e5   :  { %v2053_v55 = vmul.f32 %v12062_v48, %v2017_v19  ;;  %v2054_v14 = vmul.f32 %v12064_v52, %v2018_v49  ;;  %v2051_v51 = vmul.f32 %v12065_v59, %v2015_v11  ;;  %v2052_v5 = vmul.f32 %v12063_v9, %v2016_v56  ;;  %v12070_v11 = vld [vmem:[#allocation21_spill] sm:$0xff] }
 0x2e6   :  { %v2001_v21 = vmul.f32 0.03125, %v1985_v38  ;;  %v1997_v35 = vrot.slane %v1996_v47, 1 }
 0x2e7   :  { %v9592_v58 = vadd.f32 %v12066_v3, %v2053_v55  ;;  %v9595_v27 = vadd.f32 %v12068_v63, %v2054_v14  ;;  %v9603_v54 = vadd.f32 %v12069_v1, %v2051_v51  ;;  %v9606_v10 = vadd.f32 %v12067_v29, %v2052_v5  ;;  %6848 = vmatpush3.bf16.msra.mxu0 %v2099_v13  ;;  %v12071_v55 = vld [vmem:[#allocation23_spill] sm:$0xff]  ;;  %v12072_v51 = vld [vmem:[#allocation20_spill] sm:$0xff] }
 0x2e8   :  { %v2005_v53 = vadd.f32 1e-05, %v2001_v21  ;;  %v1998_v37 = vadd.f32 %v1997_v35, %v1996_v47  ;;  %v12073_v35 = vld [vmem:[#allocation24_spill] sm:$0xff] }
 0x2e9   :  { %v2102_v43 = vpack.c.bf16 %v9595_v27, %v9592_v58  ;;  %v2101_v22 = vpack.c.bf16 %v9606_v10, %v9603_v54 }
 0x2ea   :  { %7266 = vrsqrt.f32 %v2005_v53  ;;  %v2002_v16 = vmul.f32 0.03125, %v1998_v37  ;;  %6850 = vmatmul.mubr.msk.bf16.vlgmr.msra.gmra.mxu0 %vm202_vm0, %v9600_v2 }
 0x2eb   :  { %6869 = vmatprep.subr.bf16.mxu0 %v2102_v43  ;;  %6853 = vmatprep.mubr.msk.bf16.mxu0 %vm202_vm0, %v9611_v44 }
 0x2ec   :  { %v2006_v57 = vadd.f32 1e-05, %v2002_v16  ;;  %6870 = vmatpush3.bf16.msra.mxu0 %v2102_v43 }
 0x2ed   :  { %6871 = vmatprep.subr.bf16.mxu0 %v2101_v22 }
 0x2ee   :  { %7268 = vrsqrt.f32 %v2006_v57 }
 0x2f0   :  { %6872 = vmatpush3.bf16.msra.mxu0 %v2101_v22  ;;  %v12075_v22 = vld [vmem:[#allocation25_spill] sm:$0xff] }
 0x2f2   :  { %6854 = vmatmul.mubr.msk.bf16.gmra.mxu0 %vm202_vm0, %v7165_v33 }
 0x2f3   :  { %6873 = vmatprep.mubr.msk.bf16.mxu0 %vm202_vm0, %v9347_v61 }
 0x2f7   :  { %v7267_v34 = vpop.eup %7266 }
 0x2f8   :  { %v2020_v41 = vmul.f32 %v7267_v34, %v9515_v0  ;;  %v2021_v24 = vmul.f32 %v7267_v34, %v9518_v31  ;;  %v2022_v28 = vmul.f32 %v7267_v34, %v9521_v15  ;;  %v2019_v45 = vmul.f32 %v7267_v34, %v9512_v25 }
 0x2fa   :  { %v2057_v39 = vmul.f32 %v12062_v48, %v2021_v24  ;;  %v2058_v18 = vmul.f32 %v12064_v52, %v2022_v28  ;;  %v2055_v23 = vmul.f32 %v12065_v59, %v2019_v45  ;;  %v2056_v30 = vmul.f32 %v12063_v9, %v2020_v41  ;;  %6874 = vmatmul.mubr.msk.bf16.vlgmr.msra.gmra.mxu0 %vm202_vm0, %v9600_v2  ;;  %v12076_v45 = vld [vmem:[#allocation26_spill] sm:$0xff] }
 0x2fb   :  { %v7269_v20 = vpop.eup %7268  ;;  %6877 = vmatprep.mubr.msk.bf16.mxu0 %vm202_vm0, %v9611_v44 }
 0x2fc   :  { %v9638_v0 = vadd.f32 %v12066_v3, %v2057_v39  ;;  %v9641_v31 = vadd.f32 %v12068_v63, %v2058_v18  ;;  %v9644_v25 = vadd.f32 %v12069_v1, %v2055_v23  ;;  %v9649_v15 = vadd.f32 %v12067_v29, %v2056_v30 }
 0x2fd   :  { %v2025_v32 = vmul.f32 %v7269_v20, %v9536_v6  ;;  %v2026_v62 = vmul.f32 %v7269_v20, %v9543_v42  ;;  %v2024_v26 = vmul.f32 %v7269_v20, %v9533_v12  ;;  %v2023_v13 = vmul.f32 %v7269_v20, %v9530_v7  ;;  %v12077_v20 = vld [vmem:[#allocation27_spill] sm:$0xff] }
 0x2fe   :  { %v2104_v50 = vpack.c.bf16 %v9641_v31, %v9638_v0  ;;  %v2103_v56 = vpack.c.bf16 %v9649_v15, %v9644_v25 }
 0x2ff   :  { %v2061_v8 = vmul.f32 %v12062_v48, %v2025_v32  ;;  %v2062_v36 = vmul.f32 %v12064_v52, %v2026_v62  ;;  %v2059_v12 = vmul.f32 %v12065_v59, %v2023_v13  ;;  %v2060_v48 = vmul.f32 %v12063_v9, %v2024_v26  ;;  %v9697_v59 = vld [vmem:[%s11643_s10] sm:$0xff]  }
 0x300   :  { %6893 = vmatprep.subr.bf16.mxu0 %v2104_v50  ;;  %6865 = vmatprep.mubr.msk.bf16.mxu1 %vm2286_vm9, %v9697_v59 }
 0x301   :  { %6894 = vmatpush3.bf16.msra.mxu0 %v2104_v50  ;;  %v9662_v6 = vadd.f32 %v12066_v3, %v2061_v8  ;;  %v9665_v42 = vadd.f32 %v12068_v63, %v2062_v36  ;;  %v9675_v52 = vadd.f32 %v12069_v1, %v2059_v12  ;;  %v9678_v3 = vadd.f32 %v12067_v29, %v2060_v48 }
 0x302   :  { %6895 = vmatprep.subr.bf16.mxu0 %v2103_v56  ;;  %6878 = vmatmul.mubr.msk.bf16.gmra.mxu0 %vm202_vm0, %v7165_v33 }
 0x303   :  { %v2106_v7 = vpack.c.bf16 %v9665_v42, %v9662_v6  ;;  %6897 = vmatprep.mubr.msk.bf16.mxu0 %vm202_vm0, %v9347_v61  ;;  %v2105_v9 = vpack.c.bf16 %v9678_v3, %v9675_v52 }
 0x305   :  { %6896 = vmatpush3.bf16.msra.mxu0 %v2103_v56 }
 0x306   :  { %6917 = vmatprep.subr.bf16.mxu0 %v2106_v7 }
 0x30a   :  { %6898 = vmatmul.mubr.msk.bf16.vlgmr.msra.gmra.mxu0 %vm202_vm0, %v9600_v2 }
 0x30b   :  { %6918 = vmatpush3.bf16.msra.mxu0 %v2106_v7  ;;  %6901 = vmatprep.mubr.msk.bf16.mxu0 %vm202_vm0, %v9611_v44 }
 0x30c   :  { %6919 = vmatprep.subr.bf16.mxu0 %v2105_v9 }
 0x30f   :  { %6920 = vmatpush3.bf16.msra.mxu0 %v2105_v9 }
 0x312   :  { %6902 = vmatmul.mubr.msk.bf16.gmra.mxu0 %vm202_vm0, %v7165_v33 }
 0x313   :  { %6921 = vmatprep.mubr.msk.bf16.mxu0 %vm202_vm0, %v9347_v61 }
 0x31a   :  { %6922 = vmatmul.mubr.msk.bf16.vlgmr.msra.gmra.mxu0 %vm202_vm0, %v9600_v2 }
 0x31b   :  { %6925 = vmatprep.mubr.msk.bf16.mxu0 %vm202_vm0, %v9611_v44  ;;  %v12074_v44 = vld [vmem:[#allocation22_spill] sm:$0xff] }
 0x322   :  { %6926 = vmatmul.mubr.msk.bf16.gmra.mxu0 %vm202_vm0, %v7165_v33 }
 0x3aa   :  { %v6851_v29 = vpop.f32.mrf.mxu0 }
 0x3ab   :  { %v2242_v57 = vadd.f32 %v6851_v29, %v12075_v22 }
 0x3ac   :  { %v2233_v63 = vpop.f32.mrf.mxu0 }
 0x3ad   :  { %v2266_v30 = vmax.f32 %v2242_v57, 0.0  ;;  %v2234_v32 = vadd.f32 %v2233_v63, %v12077_v20 }
 0x3ae   :  { %v6852_v61 = vpop.f32.mrf.mxu0 }
 0x3af   :  { %v2245_v2 = vadd.f32 %v6852_v61, %v12073_v35  ;;  %v2264_v36 = vmax.f32 %v2234_v32, 0.0 }
 0x3b0   :  { %v2236_v1 = vpop.f32.mrf.mxu0 }
 0x3b1   :  { %v2267_v28 = vmax.f32 %v2245_v2, 0.0  ;;  %v2237_v39 = vadd.f32 %v2236_v1, %v12076_v45 }
 0x3b2   :  { %v6855_v19 = vpop.f32.mrf.mxu0 }
 0x3b3   :  { %v2258_v38 = vadd.f32 %v6855_v19, %v12070_v11  ;;  %v2273_v50 = vpack.c.bf16 %v2267_v28, %v2266_v30  ;;  %v2265_v26 = vmax.f32 %v2237_v39, 0.0 }
 0x3b4   :  { %v2249_v49 = vpop.f32.mrf.mxu0 }
 0x3b5   :  { %v2250_v14 = vadd.f32 %v2249_v49, %v12071_v55  ;;  %v2270_v53 = vmax.f32 %v2258_v38, 0.0  ;;  %v2272_v56 = vpack.c.bf16 %v2265_v26, %v2264_v36  ;;  %v9717_v49 = vld [vmem:[%s11643_s10 + $0x8] sm:$0xff]  }
 0x3b6   :  { %v6856_v47 = vpop.f32.mrf.mxu0 }
 0x3b7   :  { %v2261_v5 = vadd.f32 %v6856_v47, %v12072_v51  ;;  %v2268_v33 = vmax.f32 %v2250_v14, 0.0 }
 0x3b8   :  { %v2252_v21 = vpop.f32.mrf.mxu0 }
 0x3b9   :  { %v2271_v37 = vmax.f32 %v2261_v5, 0.0  ;;  %v2253_v43 = vadd.f32 %v2252_v21, %v12074_v44 }
 0x3ba   :  { %v6875_v16 = vpop.f32.mrf.mxu0 }
 0x3bb   :  { %v2275_v34 = vpack.c.bf16 %v2271_v37, %v2270_v53  ;;  %v2269_v41 = vmax.f32 %v2253_v43, 0.0  ;;  %v2385_v47 = vadd.f32 %v6875_v16, %v12075_v22 }
 0x3bc   :  { %v2376_v24 = vpop.f32.mrf.mxu0 }
 0x3bd   :  { %v2274_v18 = vpack.c.bf16 %v2269_v41, %v2268_v33  ;;  %6857 = vmatprep.subr.bf16.mxu1 %v2275_v34  ;;  %v2409_v33 = vmax.f32 %v2385_v47, 0.0  ;;  %v2377_v16 = vadd.f32 %v2376_v24, %v12077_v20 }
 0x3be   :  { %6858 = vmatpush3.bf16.msra.mxu1 %v2275_v34  ;;  %v6876_v23 = vpop.f32.mrf.mxu0 }
 0x3bf   :  { %6859 = vmatprep.subr.bf16.mxu1 %v2274_v18  ;;  %v2388_v63 = vadd.f32 %v6876_v23, %v12073_v35 }
 0x3c0   :  { %v2379_v62 = vpop.f32.mrf.mxu0 }
 0x3c1   :  { %v2410_v53 = vmax.f32 %v2388_v63, 0.0  ;;  %v2380_v37 = vadd.f32 %v2379_v62, %v12076_v45 }
 0x3c2   :  { %6860 = vmatpush3.bf16.msra.mxu1 %v2274_v18  ;;  %v6879_v8 = vpop.f32.mrf.mxu0  ;;  %v2407_v18 = vmax.f32 %v2377_v16, 0.0 }
 0x3c3   :  { %6861 = vmatprep.subr.bf16.mxu1 %v2273_v50  ;;  %v2401_v12 = vadd.f32 %v6879_v8, %v12070_v11  ;;  %v2416_v41 = vpack.c.bf16 %v2410_v53, %v2409_v33  ;;  %v2408_v28 = vmax.f32 %v2380_v37, 0.0 }
 0x3c4   :  { %v2392_v13 = vpop.f32.mrf.mxu0 }
 0x3c5   :  { %v2393_v7 = vadd.f32 %v2392_v13, %v12071_v55  ;;  %v2413_v61 = vmax.f32 %v2401_v12, 0.0  ;;  %v2415_v30 = vpack.c.bf16 %v2408_v28, %v2407_v18 }
 0x3c6   :  { %6862 = vmatpush3.bf16.msra.mxu1 %v2273_v50  ;;  %v6880_v48 = vpop.f32.mrf.mxu0 }
 0x3c7   :  { %v2404_v9 = vadd.f32 %v6880_v48, %v12072_v51  ;;  %6863 = vmatprep.subr.bf16.mxu1 %v2272_v56  ;;  %v2411_v14 = vmax.f32 %v2393_v7, 0.0 }
 0x3c8   :  { %v2395_v29 = vpop.f32.mrf.mxu0 }
 0x3c9   :  { %v2414_v1 = vmax.f32 %v2404_v9, 0.0  ;;  %v2396_v19 = vadd.f32 %v2395_v29, %v12074_v44 }
 0x3ca   :  { %6864 = vmatpush3.bf16.msra.mxu1 %v2272_v56  ;;  %v6899_v38 = vpop.f32.mrf.mxu0 }
 0x3cb   :  { %v2418_v5 = vpack.c.bf16 %v2414_v1, %v2413_v61  ;;  %v2412_v21 = vmax.f32 %v2396_v19, 0.0  ;;  %v2511_v48 = vadd.f32 %v6899_v38, %v12075_v22 }
 0x3cc   :  { %v2502_v2 = vpop.f32.mrf.mxu0 }
 0x3cd   :  { %v2417_v43 = vpack.c.bf16 %v2412_v21, %v2411_v14  ;;  %6866 = vmatmul.mubr.msk.bf16.vlgmr.msra.gmra.mxu1 %vm2286_vm9, %v9717_v49  ;;  %6881 = vmatprep.subr.bf16.mxu1 %v2418_v5  ;;  %v2535_v14 = vmax.f32 %v2511_v48, 0.0  ;;  %v2503_v38 = vadd.f32 %v2502_v2, %v12077_v20 }
 0x3ce   :  { %6882 = vmatpush3.bf16.msra.mxu1 %v2418_v5  ;;  %v6900_v57 = vpop.f32.mrf.mxu0  ;;  %6889 = vmatprep.mubr.msk.bf16.mxu1 %vm2286_vm9, %v9697_v59 }
 0x3cf   :  { %6883 = vmatprep.subr.bf16.mxu1 %v2417_v43  ;;  %v2514_v8 = vadd.f32 %v6900_v57, %v12073_v35 }
 0x3d0   :  { %v2505_v34 = vpop.f32.mrf.mxu0 }
 0x3d1   :  { %v2536_v61 = vmax.f32 %v2514_v8, 0.0  ;;  %v2506_v1 = vadd.f32 %v2505_v34, %v12076_v45 }
 0x3d2   :  { %6884 = vmatpush3.bf16.msra.mxu1 %v2417_v43  ;;  %v6903_v39 = vpop.f32.mrf.mxu0  ;;  %v2533_v43 = vmax.f32 %v2503_v38, 0.0 }
 0x3d3   :  { %6885 = vmatprep.subr.bf16.mxu1 %v2416_v41  ;;  %v2527_v32 = vadd.f32 %v6903_v39, %v12070_v11  ;;  %v2542_v21 = vpack.c.bf16 %v2536_v61, %v2535_v14  ;;  %v2534_v53 = vmax.f32 %v2506_v1, 0.0  ;;  %v12080_v1 = vld [vmem:[#allocation28_spill] sm:$0xff]  ;;  %v12081_v14 = vld [vmem:[#allocation30_spill] sm:$0xff] }
 0x3d4   :  { %v2518_v23 = vpop.f32.mrf.mxu0 }
 0x3d5   :  { %v2519_v50 = vadd.f32 %v2518_v23, %v12071_v55  ;;  %v2539_v36 = vmax.f32 %v2527_v32, 0.0  ;;  %v2541_v33 = vpack.c.bf16 %v2534_v53, %v2533_v43 }
 0x3d6   :  { %6886 = vmatpush3.bf16.msra.mxu1 %v2416_v41  ;;  %v6904_v62 = vpop.f32.mrf.mxu0 }
 0x3d7   :  { %v2530_v26 = vadd.f32 %v6904_v62, %v12072_v51  ;;  %6887 = vmatprep.subr.bf16.mxu1 %v2415_v30  ;;  %v2537_v7 = vmax.f32 %v2519_v50, 0.0 }
 0x3d8   :  { %v2521_v24 = vpop.f32.mrf.mxu0 }
 0x3d9   :  { %v2540_v13 = vmax.f32 %v2530_v26, 0.0  ;;  %v2522_v56 = vadd.f32 %v2521_v24, %v12074_v44 }
 0x3da   :  { %6888 = vmatpush3.bf16.msra.mxu1 %v2415_v30  ;;  %v6923_v12 = vpop.f32.mrf.mxu0 }
 0x3db   :  { %v2544_v9 = vpack.c.bf16 %v2540_v13, %v2539_v36  ;;  %v2538_v29 = vmax.f32 %v2522_v56, 0.0  ;;  %v2637_v32 = vadd.f32 %v6923_v12, %v12075_v22 }
 0x3dc   :  { %v2628_v63 = vpop.f32.mrf.mxu0 }
 0x3dd   :  { %v2543_v19 = vpack.c.bf16 %v2538_v29, %v2537_v7  ;;  %6890 = vmatmul.mubr.msk.bf16.vlgmr.msra.gmra.mxu1 %vm2286_vm9, %v9717_v49  ;;  %6905 = vmatprep.subr.bf16.mxu1 %v2544_v9 }
 0x3de   :  { %6906 = vmatpush3.bf16.msra.mxu1 %v2544_v9  ;;  %v6924_v47 = vpop.f32.mrf.mxu0  ;;  %6913 = vmatprep.mubr.msk.bf16.mxu1 %vm2286_vm9, %v9697_v59 }
 0x3df   :  { %6907 = vmatprep.subr.bf16.mxu1 %v2543_v19  ;;  %v2640_v39 = vadd.f32 %v6924_v47, %v12073_v35  ;;  %v2629_v35 = vadd.f32 %v2628_v63, %v12077_v20  ;;  %v12079_v63 = vld [vmem:[#allocation31_spill] sm:$0xff] }
 0x3e0   :  { %v2631_v5 = vpop.f32.mrf.mxu0 }
 0x3e1   :  { %v2662_v26 = vmax.f32 %v2640_v39, 0.0  ;;  %v2632_v24 = vadd.f32 %v2631_v5, %v12076_v45  ;;  %v2659_v8 = vmax.f32 %v2629_v35, 0.0 }
 0x3e2   :  { %6908 = vmatpush3.bf16.msra.mxu1 %v2543_v19  ;;  %v6927_v37 = vpop.f32.mrf.mxu0 }
 0x3e3   :  { %6909 = vmatprep.subr.bf16.mxu1 %v2542_v21  ;;  %v2653_v16 = vadd.f32 %v6927_v37, %v12070_v11  ;;  %v2660_v22 = vmax.f32 %v2632_v24, 0.0 }
 0x3e4   :  { %v2644_v57 = vpop.f32.mrf.mxu0 }
 0x3e5   :  { %v2645_v41 = vadd.f32 %v2644_v57, %v12071_v55  ;;  %v2665_v18 = vmax.f32 %v2653_v16, 0.0  ;;  %v2667_v36 = vpack.c.bf16 %v2660_v22, %v2659_v8 }
 0x3e6   :  { %6910 = vmatpush3.bf16.msra.mxu1 %v2542_v21  ;;  %v6928_v34 = vpop.f32.mrf.mxu0 }
 0x3e7   :  { %v2656_v28 = vadd.f32 %v6928_v34, %v12072_v51  ;;  %6911 = vmatprep.subr.bf16.mxu1 %v2541_v33  ;;  %v2663_v62 = vmax.f32 %v2645_v41, 0.0  ;;  %v2661_v51 = vmax.f32 %v2637_v32, 0.0 }
 0x3e8   :  { %v2647_v2 = vpop.f32.mrf.mxu0 }
 0x3e9   :  { %v2666_v23 = vmax.f32 %v2656_v28, 0.0  ;;  %v2648_v30 = vadd.f32 %v2647_v2, %v12074_v44  ;;  %v2668_v44 = vpack.c.bf16 %v2662_v26, %v2661_v51 }
 0x3ea   :  { %6912 = vmatpush3.bf16.msra.mxu1 %v2541_v33 }
 0x3eb   :  { %v2670_v50 = vpack.c.bf16 %v2666_v23, %v2665_v18  ;;  %v2664_v11 = vmax.f32 %v2648_v30, 0.0 }
 0x3ed   :  { %v2669_v55 = vpack.c.bf16 %v2664_v11, %v2663_v62  ;;  %6914 = vmatmul.mubr.msk.bf16.vlgmr.msra.gmra.mxu1 %vm2286_vm9, %v9717_v49  ;;  %6929 = vmatprep.subr.bf16.mxu1 %v2670_v50 }
 0x3ee   :  { %6930 = vmatpush3.bf16.msra.mxu1 %v2670_v50  ;;  %6937 = vmatprep.mubr.msk.bf16.mxu1 %vm2286_vm9, %v9697_v59  ;;  %v9755_v59 = vld [vmem:[%s11839_s27 + $0x30] sm:$0xff]  }
 0x3ef   :  { %6931 = vmatprep.subr.bf16.mxu1 %v2669_v55  ;;  %6945 = vmatprep.mubr.msk.bf16.mxu0 %vm202_vm0, %v9755_v59 }
 0x3f2   :  { %6932 = vmatpush3.bf16.msra.mxu1 %v2669_v55 }
 0x3f3   :  { %6933 = vmatprep.subr.bf16.mxu1 %v2668_v44 }
 0x3f6   :  { %6934 = vmatpush3.bf16.msra.mxu1 %v2668_v44 }
 0x3f7   :  { %6935 = vmatprep.subr.bf16.mxu1 %v2667_v36 }
 0x3fa   :  { %6936 = vmatpush3.bf16.msra.mxu1 %v2667_v36 }
 0x3fd   :  { %6938 = vmatmul.mubr.msk.bf16.vlgmr.msra.gmra.mxu1 %vm2286_vm9, %v9717_v49  ;;  %v12078_v49 = vld [vmem:[#allocation29_spill] sm:$0xff] }
 0x3fe   :  { %6961 = vmatprep.mubr.msk.bf16.mxu1 %vm202_vm0, %v9755_v59 }
 0x48d   :  { %v6867_v45 = vpop.f32.mrf.mxu1 }
 0x48e   :  { %v2722_v12 = vadd.f32 %v6867_v45, %v9568_v40 }
 0x48f   :  { %v2327_v20 = vpop.f32.mrf.mxu1 }
 0x490   :  { %v2720_v13 = vadd.f32 %v2327_v20, %v9577_v4  ;;  %v2762_v61 = vadd.f32 %v12079_v63, %v2722_v12 }
 0x491   :  { %v6868_v56 = vpop.f32.mrf.mxu1 }
 0x492   :  { %v2760_v7 = vadd.f32 %v12078_v49, %v2720_v13  ;;  %v2723_v9 = vadd.f32 %v6868_v56, %v9574_v60  ;;  %v2787_v40 = vsel %vm577_vm1, %v2762_v61, 0.0 }
 0x493   :  { %v2330_v48 = vpop.f32.mrf.mxu1 }
 0x494   :  { %v2721_v29 = vadd.f32 %v2330_v48, %v9571_v17  ;;  %v2784_v47 = vsel %vm577_vm1, %v2760_v7, 0.0  ;;  %v2763_v38 = vadd.f32 %v12081_v14, %v2723_v9 }
 0x496   :  { %v2761_v19 = vadd.f32 %v12080_v1, %v2721_v29  ;;  %v2789_v53 = vsel %vm577_vm1, %v2763_v38, 0.0 }
 0x498   :  { %v2785_v4 = vsel %vm577_vm1, %v2761_v19, 0.0 }
 0x499   :  { %v2786_v5 = vadd.f32 %v2785_v4, %v2784_v47 }
 0x49b   :  { %v2788_v21 = vadd.f32 %v2787_v40, %v2786_v5 }
 0x49d   :  { %v2790_v37 = vadd.f32 %v2789_v53, %v2788_v21  ;;  %v6891_v60 = vpop.f32.mrf.mxu1 }
 0x49e   :  { %v2726_v34 = vadd.f32 %v6891_v60, %v9592_v58 }
 0x49f   :  { %v2791_v43 = vrot.slane %v2790_v37, 4  ;;  %v2453_v17 = vpop.f32.mrf.mxu1 }
 0x4a0   :  { %v2724_v57 = vadd.f32 %v2453_v17, %v9603_v54  ;;  %v2766_v30 = vadd.f32 %v12079_v63, %v2726_v34 }
 0x4a1   :  { %v2792_v33 = vadd.f32 %v2791_v43, %v2790_v37  ;;  %v6892_v16 = vpop.f32.mrf.mxu1 }
 0x4a2   :  { %v9776_v2 = vadd.f32 %v12078_v49, %v2724_v57  ;;  %v2727_v39 = vadd.f32 %v6892_v16, %v9595_v27  ;;  %v2800_v24 = vsel %vm577_vm1, %v2766_v30, 0.0 }
 0x4a3   :  { %v2793_v41 = vrot.slane %v2792_v33, 2  ;;  %v2456_v28 = vpop.f32.mrf.mxu1 }
 0x4a4   :  { %v2725_v18 = vadd.f32 %v2456_v28, %v9606_v10  ;;  %v2797_v54 = vsel %vm577_vm1, %v9776_v2, 0.0  ;;  %v2767_v58 = vadd.f32 %v12081_v14, %v2727_v39 }
 0x4a5   :  { %v2794_v23 = vadd.f32 %v2793_v41, %v2792_v33 }
 0x4a6   :  { %v2765_v32 = vadd.f32 %v12080_v1, %v2725_v18  ;;  %v2802_v10 = vsel %vm577_vm1, %v2767_v58, 0.0 }
 0x4a7   :  { %v2795_v62 = vrot.slane %v2794_v23, 1 }
 0x4a8   :  { %v2798_v50 = vsel %vm577_vm1, %v2765_v32, 0.0 }
 0x4a9   :  { %v2796_v11 = vadd.f32 %v2795_v62, %v2794_v23  ;;  %v2799_v26 = vadd.f32 %v2798_v50, %v2797_v54 }
 0x4ab   :  { %v2836_v27 = vmul.f32 0.03125, %v2796_v11  ;;  %v2801_v55 = vadd.f32 %v2800_v24, %v2799_v26 }
 0x4ad   :  { %v9788_v51 = vsub.f32 %v2760_v7, %v2836_v27  ;;  %v9790_v35 = vsub.f32 %v2761_v19, %v2836_v27  ;;  %v9792_v44 = vsub.f32 %v2762_v61, %v2836_v27  ;;  %v9794_v22 = vsub.f32 %v2763_v38, %v2836_v27  ;;  %v6915_v8 = vpop.f32.mrf.mxu1 }
 0x4ae   :  { %v2803_v36 = vadd.f32 %v2802_v10, %v2801_v55  ;;  %v2730_v38 = vadd.f32 %v6915_v8, %v9638_v0 }
 0x4af   :  { %v2856_v45 = vmul.f32 %v9788_v51, %v9788_v51  ;;  %v2857_v20 = vmul.f32 %v9790_v35, %v9790_v35  ;;  %v2858_v13 = vmul.f32 %v9792_v44, %v9792_v44  ;;  %v2579_v56 = vpop.f32.mrf.mxu1  ;;  %v2859_v7 = vmul.f32 %v9794_v22, %v9794_v22 }
 0x4b0   :  { %v2804_v12 = vrot.slane %v2803_v36, 4  ;;  %v2728_v48 = vadd.f32 %v2579_v56, %v9644_v25  ;;  %v9816_v57 = vadd.f32 %v12079_v63, %v2730_v38 }
 0x4b1   :  { %v2872_v9 = vsel %vm577_vm1, %v2856_v45, 0.0  ;;  %v2873_v29 = vsel %vm577_vm1, %v2857_v20, 0.0  ;;  %v6916_v61 = vpop.f32.mrf.mxu1  ;;  %v2875_v4 = vsel %vm577_vm1, %v2858_v13, 0.0  ;;  %v2877_v60 = vsel %vm577_vm1, %v2859_v7, 0.0 }
 0x4b2   :  { %v2874_v19 = vadd.f32 %v2873_v29, %v2872_v9  ;;  %v2805_v47 = vadd.f32 %v2804_v12, %v2803_v36  ;;  %v9810_v5 = vadd.f32 %v12078_v49, %v2728_v48  ;;  %v2731_v53 = vadd.f32 %v6916_v61, %v9641_v31 }
 0x4b3   :  { %v2582_v40 = vpop.f32.mrf.mxu1  ;;  %v2813_v18 = vsel %vm577_vm1, %v9816_v57, 0.0 }
 0x4b4   :  { %v2876_v21 = vadd.f32 %v2875_v4, %v2874_v19  ;;  %v2806_v25 = vrot.slane %v2805_v47, 2  ;;  %v2729_v37 = vadd.f32 %v2582_v40, %v9649_v15  ;;  %v2810_v33 = vsel %vm577_vm1, %v9810_v5, 0.0 }
 0x4b5   :  { %v9824_v41 = vadd.f32 %v12081_v14, %v2731_v53 }
 0x4b6   :  { %v2878_v43 = vadd.f32 %v2877_v60, %v2876_v21  ;;  %v2807_v17 = vadd.f32 %v2806_v25, %v2805_v47  ;;  %v9819_v0 = vadd.f32 %v12080_v1, %v2729_v37 }
 0x4b7   :  { %v2815_v50 = vsel %vm577_vm1, %v9824_v41, 0.0 }
 0x4b8   :  { %v2879_v16 = vrot.slane %v2878_v43, 4  ;;  %v2808_v34 = vrot.slane %v2807_v17, 1  ;;  %v2811_v31 = vsel %vm577_vm1, %v9819_v0, 0.0 }
 0x4b9   :  { %v2812_v15 = vadd.f32 %v2811_v31, %v2810_v33 }
 0x4ba   :  { %v2880_v28 = vadd.f32 %v2879_v16, %v2878_v43  ;;  %v2809_v39 = vadd.f32 %v2808_v34, %v2807_v17 }
 0x4bb   :  { %v2814_v23 = vadd.f32 %v2813_v18, %v2812_v15 }
 0x4bc   :  { %v2881_v62 = vrot.slane %v2880_v28, 2  ;;  %v2837_v54 = vmul.f32 0.03125, %v2809_v39 }
 0x4bd   :  { %v2816_v11 = vadd.f32 %v2815_v50, %v2814_v23  ;;  %v6939_v26 = vpop.f32.mrf.mxu1 }
 0x4be   :  { %v2882_v24 = vadd.f32 %v2881_v62, %v2880_v28  ;;  %v9833_v27 = vsub.f32 %v9776_v2, %v2837_v54  ;;  %v9835_v55 = vsub.f32 %v2765_v32, %v2837_v54  ;;  %v9837_v10 = vsub.f32 %v2766_v30, %v2837_v54 }
 0x4bf   :  { %v9839_v8 = vsub.f32 %v2767_v58, %v2837_v54  ;;  %v2817_v36 = vrot.slane %v2816_v11, 4  ;;  %v2705_v45 = vpop.f32.mrf.mxu1  ;;  %v2734_v32 = vadd.f32 %v6939_v26, %v9662_v6 }
 0x4c0   :  { %v2883_v20 = vrot.slane %v2882_v24, 1  ;;  %v2860_v13 = vmul.f32 %v9833_v27, %v9833_v27  ;;  %v2861_v56 = vmul.f32 %v9835_v55, %v9835_v55  ;;  %v2862_v12 = vmul.f32 %v9837_v10, %v9837_v10 }
 0x4c1   :  { %v2818_v2 = vadd.f32 %v2817_v36, %v2816_v11  ;;  %v2732_v30 = vadd.f32 %v2705_v45, %v9675_v52  ;;  %v6940_v48 = vpop.f32.mrf.mxu1  ;;  %v2863_v7 = vmul.f32 %v9839_v8, %v9839_v8  ;;  %v9861_v60 = vadd.f32 %v12079_v63, %v2734_v32 }
 0x4c2   :  { %v2884_v58 = vadd.f32 %v2883_v20, %v2882_v24  ;;  %v2885_v9 = vsel %vm577_vm1, %v2860_v13, 0.0  ;;  %v2886_v29 = vsel %vm577_vm1, %v2861_v56, 0.0  ;;  %v2888_v19 = vsel %vm577_vm1, %v2862_v12, 0.0 }
 0x4c3   :  { %v2887_v61 = vadd.f32 %v2886_v29, %v2885_v9  ;;  %v2819_v47 = vrot.slane %v2818_v2, 2  ;;  %v2708_v38 = vpop.f32.mrf.mxu1  ;;  %v9855_v40 = vadd.f32 %v12078_v49, %v2732_v30  ;;  %v2735_v6 = vadd.f32 %v6940_v48, %v9665_v42 }
 0x4c4   :  { %v2924_v4 = vmul.f32 0.03125, %v2884_v58  ;;  %v2733_v52 = vadd.f32 %v2708_v38, %v9678_v3  ;;  %v2890_v37 = vsel %vm577_vm1, %v2863_v7, 0.0  ;;  %v2826_v63 = vsel %vm577_vm1, %v9861_v60, 0.0 }
 0x4c5   :  { %v2889_v21 = vadd.f32 %v2888_v19, %v2887_v61  ;;  %v2820_v25 = vadd.f32 %v2819_v47, %v2818_v2  ;;  %v2823_v49 = vsel %vm577_vm1, %v9855_v40, 0.0  ;;  %v2775_v42 = vadd.f32 %v12081_v14, %v2735_v6 }
 0x4c6   :  { %v2928_v53 = vadd.f32 1e-05, %v2924_v4  ;;  %v9864_v43 = vadd.f32 %v12080_v1, %v2733_v52  ;;  %v12082_v52 = vld [vmem:[#allocation33_spill] sm:$0xff] }
 0x4c7   :  { %v2891_v17 = vadd.f32 %v2890_v37, %v2889_v21  ;;  %v2821_v33 = vrot.slane %v2820_v25, 1  ;;  %v2828_v39 = vsel %vm577_vm1, %v2775_v42, 0.0  ;;  %v12084_v37 = vld [vmem:[#allocation32_spill] sm:$0xff] }
 0x4c8   :  { %7270 = vrsqrt.f32 %v2928_v53  ;;  %v2824_v3 = vsel %vm577_vm1, %v9864_v43, 0.0 }
 0x4c9   :  { %v2892_v16 = vrot.slane %v2891_v17, 4  ;;  %v2822_v34 = vadd.f32 %v2821_v33, %v2820_v25  ;;  %v2825_v31 = vadd.f32 %v2824_v3, %v2823_v49  ;;  %v12083_v25 = vld [vmem:[#allocation36_spill] sm:$0xff]  ;;  %v12085_v33 = vld [vmem:[#allocation37_spill] sm:$0xff] }
 0x4cb   :  { %v2893_v15 = vadd.f32 %v2892_v16, %v2891_v17  ;;  %v2838_v1 = vmul.f32 0.03125, %v2822_v34  ;;  %v2827_v28 = vadd.f32 %v2826_v63, %v2825_v31  ;;  %v12086_v16 = vld [vmem:[#allocation35_spill] sm:$0xff]  ;;  %v12088_v34 = vld [vmem:[#allocation34_spill] sm:$0xff] }
 0x4cc   :  { %v12092_v63 = vld [vmem:[#allocation38_spill] sm:$0xff] }
 0x4cd   :  { %v2894_v18 = vrot.slane %v2893_v15, 2  ;;  %v9875_v23 = vsub.f32 %v9810_v5, %v2838_v1  ;;  %v9878_v14 = vsub.f32 %v9819_v0, %v2838_v1  ;;  %v9881_v62 = vsub.f32 %v9816_v57, %v2838_v1 }
 0x4ce   :  { %v9884_v54 = vsub.f32 %v9824_v41, %v2838_v1  ;;  %v2829_v50 = vadd.f32 %v2828_v39, %v2827_v28 }
 0x4cf   :  { %v2895_v11 = vadd.f32 %v2894_v18, %v2893_v15  ;;  %v2864_v26 = vmul.f32 %v9875_v23, %v9875_v23  ;;  %v2865_v24 = vmul.f32 %v9878_v14, %v9878_v14  ;;  %v2866_v5 = vmul.f32 %v9881_v62, %v9881_v62 }
 0x4d0   :  { %v2830_v36 = vrot.slane %v2829_v50, 4  ;;  %v2867_v57 = vmul.f32 %v9884_v54, %v9884_v54 }
 0x4d1   :  { %v2896_v0 = vrot.slane %v2895_v11, 1  ;;  %v2898_v45 = vsel %vm577_vm1, %v2864_v26, 0.0  ;;  %v2899_v41 = vsel %vm577_vm1, %v2865_v24, 0.0  ;;  %v2901_v12 = vsel %vm577_vm1, %v2866_v5, 0.0 }
 0x4d2   :  { %v2900_v20 = vadd.f32 %v2899_v41, %v2898_v45  ;;  %v2831_v13 = vadd.f32 %v2830_v36, %v2829_v50  ;;  %v2903_v58 = vsel %vm577_vm1, %v2867_v57, 0.0 }
 0x4d3   :  { %v2897_v56 = vadd.f32 %v2896_v0, %v2895_v11 }
 0x4d4   :  { %v2902_v2 = vadd.f32 %v2901_v12, %v2900_v20  ;;  %v2832_v32 = vrot.slane %v2831_v13, 2  ;;  %v9946_v20 = vld [vmem:[%s11839_s27 + $0x38] sm:$0xff]   ;;  %v9952_v12 = vld [vmem:[%s11839_s27 + $0x40] sm:$0xff]  }
 0x4d5   :  { %v7271_v30 = vpop.eup %7270  ;;  %v2925_v48 = vmul.f32 0.03125, %v2897_v56 }
 0x4d6   :  { %v2937_v7 = vmul.f32 %v7271_v30, %v9790_v35  ;;  %v2904_v9 = vadd.f32 %v2903_v58, %v2902_v2  ;;  %v2833_v29 = vadd.f32 %v2832_v32, %v2831_v13  ;;  %v2938_v61 = vmul.f32 %v7271_v30, %v9792_v44 }
 0x4d7   :  { %v2929_v19 = vadd.f32 1e-05, %v2925_v48  ;;  %v2939_v47 = vmul.f32 %v7271_v30, %v9794_v22  ;;  %v2936_v38 = vmul.f32 %v7271_v30, %v9788_v51  ;;  %v12090_v51 = vld [vmem:[#allocation39_spill] sm:$0xff] }
 0x4d8   :  { %v2905_v4 = vrot.slane %v2904_v9, 4  ;;  %v2834_v6 = vrot.slane %v2833_v29, 1  ;;  %v2974_v21 = vmul.f32 %v12082_v52, %v2938_v61  ;;  %v2973_v53 = vmul.f32 %v12083_v25, %v2937_v7 }
 0x4d9   :  { %7272 = vrsqrt.f32 %v2929_v19  ;;  %v2975_v17 = vmul.f32 %v12084_v37, %v2939_v47  ;;  %v2972_v35 = vmul.f32 %v12085_v33, %v2936_v38 }
 0x4da   :  { %v2906_v49 = vadd.f32 %v2905_v4, %v2904_v9  ;;  %v2835_v3 = vadd.f32 %v2834_v6, %v2833_v29  ;;  %v9907_v44 = vadd.f32 %v12086_v16, %v2974_v21  ;;  %v9916_v15 = vadd.f32 %v12092_v63, %v2973_v53 }
 0x4db   :  { %v9910_v22 = vadd.f32 %v12088_v34, %v2975_v17  ;;  %v9913_v31 = vadd.f32 %v12090_v51, %v2972_v35  ;;  %v9987_v17 = vld [vmem:[%s11839_s27 + $0x50] sm:$0xff]  }
 0x4dc   :  { %12087 = vst [vmem:[#allocation66_spill] sm:$0xff] %v9907_v44  ;;  %12093 = vst [vmem:[#allocation82_spill] sm:$0xff] %v9916_v15  ;;  %v2907_v1 = vrot.slane %v2906_v49, 2  ;;  %v2839_v28 = vmul.f32 0.03125, %v2835_v3 }
 0x4dd   :  { %12089 = vst [vmem:[#allocation81_spill] sm:$0xff] %v9910_v22  ;;  %12091 = vst [vmem:[#allocation67_spill] sm:$0xff] %v9913_v31  ;;  %v3056_v39 = vpack.c.bf16 %v9910_v22, %v9907_v44  ;;  %v3055_v5 = vpack.c.bf16 %v9916_v15, %v9913_v31 }
 0x4de   :  { %v2908_v18 = vadd.f32 %v2907_v1, %v2906_v49  ;;  %v9921_v50 = vsub.f32 %v9855_v40, %v2839_v28  ;;  %v9924_v11 = vsub.f32 %v9864_v43, %v2839_v28  ;;  %v9927_v26 = vsub.f32 %v9861_v60, %v2839_v28 }
 0x4df   :  { %v9929_v24 = vsub.f32 %v2775_v42, %v2839_v28  ;;  %6941 = vmatprep.subr.bf16.mxu0 %v3056_v39 }
 0x4e0   :  { %v2909_v36 = vrot.slane %v2908_v18, 1  ;;  %v2868_v0 = vmul.f32 %v9921_v50, %v9921_v50  ;;  %v2869_v40 = vmul.f32 %v9924_v11, %v9924_v11  ;;  %v2870_v43 = vmul.f32 %v9927_v26, %v9927_v26  ;;  %6942 = vmatpush3.bf16.msra.mxu0 %v3056_v39 }
 0x4e1   :  { %6943 = vmatprep.subr.bf16.mxu0 %v3055_v5  ;;  %v2871_v42 = vmul.f32 %v9929_v24, %v9929_v24 }
 0x4e2   :  { %v2910_v60 = vadd.f32 %v2909_v36, %v2908_v18  ;;  %v2911_v57 = vsel %vm577_vm1, %v2868_v0, 0.0  ;;  %v2912_v45 = vsel %vm577_vm1, %v2869_v40, 0.0  ;;  %v2914_v56 = vsel %vm577_vm1, %v2870_v43, 0.0  ;;  %v7173_v18 = vld [vmem:[%s11839_s27 + $0x58] sm:$0xff]  }
 0x4e3   :  { %v2913_v41 = vadd.f32 %v2912_v45, %v2911_v57  ;;  %v2916_v48 = vsel %vm577_vm1, %v2871_v42, 0.0 }
 0x4e4   :  { %v2926_v13 = vmul.f32 0.03125, %v2910_v60  ;;  %6944 = vmatpush3.bf16.msra.mxu0 %v3055_v5 }
 0x4e5   :  { %v2915_v2 = vadd.f32 %v2914_v56, %v2913_v41 }
 0x4e6   :  { %v7273_v32 = vpop.eup %7272  ;;  %v2930_v30 = vadd.f32 1e-05, %v2926_v13 }
 0x4e7   :  { %v2941_v58 = vmul.f32 %v7273_v32, %v9835_v55  ;;  %v2917_v7 = vadd.f32 %v2916_v48, %v2915_v2  ;;  %6946 = vmatmul.mubr.msk.bf16.vlgmr.msra.gmra.mxu0 %vm202_vm0, %v9946_v20  ;;  %v2942_v9 = vmul.f32 %v7273_v32, %v9837_v10  ;;  %v2943_v29 = vmul.f32 %v7273_v32, %v9839_v8  ;;  %v9970_v10 = vld [vmem:[%s11839_s27 + $0x48] sm:$0xff]  }
 0x4e8   :  { %7274 = vrsqrt.f32 %v2930_v30  ;;  %6949 = vmatprep.mubr.msk.bf16.mxu0 %vm202_vm0, %v9952_v12  ;;  %v2940_v61 = vmul.f32 %v7273_v32, %v9833_v27 }
 0x4e9   :  { %v2918_v19 = vrot.slane %v2917_v7, 4  ;;  %v2978_v47 = vmul.f32 %v12082_v52, %v2942_v9  ;;  %v2979_v38 = vmul.f32 %v12084_v37, %v2943_v29  ;;  %v2977_v55 = vmul.f32 %v12083_v25, %v2941_v58 }
 0x4ea   :  { %v2976_v4 = vmul.f32 %v12085_v33, %v2940_v61 }
 0x4eb   :  { %v2919_v6 = vadd.f32 %v2918_v19, %v2917_v7  ;;  %v9973_v8 = vadd.f32 %v12086_v16, %v2978_v47  ;;  %v9976_v27 = vadd.f32 %v12088_v34, %v2979_v38  ;;  %v9979_v21 = vadd.f32 %v12092_v63, %v2977_v55  ;;  %v12107_v47 = vld [vmem:[#allocation42_spill] sm:$0xff] }
 0x4ec   :  { %v9982_v53 = vadd.f32 %v12090_v51, %v2976_v4 }
 0x4ed   :  { %12094 = vst [vmem:[#allocation100_spill] sm:$0xff] %v9973_v8  ;;  %12095 = vst [vmem:[#allocation2_spill] sm:$0xff] %v9976_v27  ;;  %v2920_v35 = vrot.slane %v2919_v6, 2  ;;  %v3058_v49 = vpack.c.bf16 %v9976_v27, %v9973_v8 }
 0x4ee   :  { %12096 = vst [vmem:[#allocation86_spill] sm:$0xff] %v9979_v21  ;;  %12097 = vst [vmem:[#allocation87_spill] sm:$0xff] %v9982_v53  ;;  %v3057_v1 = vpack.c.bf16 %v9979_v21, %v9982_v53 }
 0x4ef   :  { %v2921_v3 = vadd.f32 %v2920_v35, %v2919_v6  ;;  %6950 = vmatmul.mubr.msk.bf16.gmra.mxu0 %vm202_vm0, %v9970_v10  ;;  %6957 = vmatprep.subr.bf16.mxu1 %v3058_v49  ;;  %v12109_v6 = vld [vmem:[#allocation52_spill] sm:$0xff] }
 0x4f0   :  { %6958 = vmatpush3.bf16.msra.mxu1 %v3058_v49  ;;  %6953 = vmatprep.mubr.msk.bf16.mxu0 %vm202_vm0, %v9987_v17 }
 0x4f1   :  { %v2922_v28 = vrot.slane %v2921_v3, 1  ;;  %6959 = vmatprep.subr.bf16.mxu1 %v3057_v1 }
 0x4f3   :  { %v2923_v39 = vadd.f32 %v2922_v28, %v2921_v3  ;;  %v12113_v3 = vld [vmem:[#allocation49_spill] sm:$0xff] }
 0x4f4   :  { %6960 = vmatpush3.bf16.msra.mxu1 %v3057_v1 }
 0x4f5   :  { %v7275_v5 = vpop.eup %7274  ;;  %v2927_v36 = vmul.f32 0.03125, %v2923_v39  ;;  %v12114_v39 = vld [vmem:[#allocation51_spill] sm:$0xff] }
 0x4f6   :  { %v2945_v0 = vmul.f32 %v7275_v5, %v9878_v14  ;;  %v2946_v40 = vmul.f32 %v7275_v5, %v9881_v62  ;;  %v2947_v43 = vmul.f32 %v7275_v5, %v9884_v54  ;;  %v2944_v60 = vmul.f32 %v7275_v5, %v9875_v23 }
 0x4f7   :  { %v2931_v42 = vadd.f32 1e-05, %v2927_v36  ;;  %6954 = vmatmul.mubr.msk.bf16.gmra.mxu0 %vm202_vm0, %v7173_v18  ;;  %6962 = vmatmul.mubr.msk.bf16.vlgmr.msra.gmra.mxu1 %vm202_vm0, %v9946_v20 }
 0x4f8   :  { %6965 = vmatprep.mubr.msk.bf16.mxu1 %vm202_vm0, %v9952_v12  ;;  %v2982_v57 = vmul.f32 %v12082_v52, %v2946_v40  ;;  %v2983_v45 = vmul.f32 %v12084_v37, %v2947_v43  ;;  %v2980_v14 = vmul.f32 %v12085_v33, %v2944_v60  ;;  %v2981_v62 = vmul.f32 %v12083_v25, %v2945_v0  ;;  %v12116_v0 = vld [vmem:[#allocation54_spill] sm:$0xff] }
 0x4f9   :  { %7276 = vrsqrt.f32 %v2931_v42  ;;  %6977 = vmatprep.mubr.msk.bf16.mxu0 %vm202_vm0, %v9755_v59 }
 0x4fa   :  { %v10016_v23 = vadd.f32 %v12086_v16, %v2982_v57  ;;  %v10019_v54 = vadd.f32 %v12088_v34, %v2983_v45  ;;  %v10022_v41 = vadd.f32 %v12090_v51, %v2980_v14  ;;  %v10025_v13 = vadd.f32 %v12092_v63, %v2981_v62 }
 0x4fc   :  { %12098 = vst [vmem:[#allocation71_spill] sm:$0xff] %v10016_v23  ;;  %12099 = vst [vmem:[#allocation84_spill] sm:$0xff] %v10019_v54  ;;  %v3060_v56 = vpack.c.bf16 %v10019_v54, %v10016_v23  ;;  %v3059_v2 = vpack.c.bf16 %v10025_v13, %v10022_v41 }
 0x4fd   :  { %12100 = vst [vmem:[#allocation80_spill] sm:$0xff] %v10022_v41  ;;  %12101 = vst [vmem:[#allocation85_spill] sm:$0xff] %v10025_v13 }
 0x4fe   :  { %6973 = vmatprep.subr.bf16.mxu0 %v3060_v56 }
 0x4ff   :  { %6966 = vmatmul.mubr.msk.bf16.gmra.mxu1 %vm202_vm0, %v9970_v10  ;;  %6974 = vmatpush3.bf16.msra.mxu0 %v3060_v56 }
 0x500   :  { %6975 = vmatprep.subr.bf16.mxu0 %v3059_v2  ;;  %6969 = vmatprep.mubr.msk.bf16.mxu1 %vm202_vm0, %v9987_v17 }
 0x503   :  { %6976 = vmatpush3.bf16.msra.mxu0 %v3059_v2 }
 0x506   :  { %v7277_v32 = vpop.eup %7276  ;;  %6978 = vmatmul.mubr.msk.bf16.vlgmr.msra.gmra.mxu0 %vm202_vm0, %v9946_v20 }
 0x507   :  { %v2949_v30 = vmul.f32 %v7277_v32, %v9924_v11  ;;  %6970 = vmatmul.mubr.msk.bf16.gmra.mxu1 %vm202_vm0, %v7173_v18  ;;  %6981 = vmatprep.mubr.msk.bf16.mxu0 %vm202_vm0, %v9952_v12  ;;  %v2950_v48 = vmul.f32 %v7277_v32, %v9927_v26  ;;  %v2951_v58 = vmul.f32 %v7277_v32, %v9929_v24 }
 0x508   :  { %v2948_v7 = vmul.f32 %v7277_v32, %v9921_v50  ;;  %6993 = vmatprep.mubr.msk.bf16.mxu1 %vm202_vm0, %v9755_v59 }
 0x509   :  { %v2986_v9 = vmul.f32 %v12082_v52, %v2950_v48  ;;  %v2987_v29 = vmul.f32 %v12084_v37, %v2951_v58  ;;  %v2985_v11 = vmul.f32 %v12083_v25, %v2949_v30 }
 0x50a   :  { %v2984_v61 = vmul.f32 %v12085_v33, %v2948_v7 }
 0x50b   :  { %v10051_v19 = vadd.f32 %v12086_v16, %v2986_v9  ;;  %v10054_v26 = vadd.f32 %v12088_v34, %v2987_v29  ;;  %v10057_v24 = vadd.f32 %v12092_v63, %v2985_v11 }
 0x50c   :  { %v10060_v50 = vadd.f32 %v12090_v51, %v2984_v61  ;;  %v12106_v51 = vld [vmem:[#allocation50_spill] sm:$0xff] }
 0x50d   :  { %12102 = vst [vmem:[#allocation6_spill] sm:$0xff] %v10051_v19  ;;  %12103 = vst [vmem:[#allocation53_spill] sm:$0xff] %v10054_v26  ;;  %v3062_v59 = vpack.c.bf16 %v10054_v26, %v10051_v19 }
 0x50e   :  { %12104 = vst [vmem:[#allocation61_spill] sm:$0xff] %v10057_v24  ;;  %12105 = vst [vmem:[#allocation65_spill] sm:$0xff] %v10060_v50  ;;  %6982 = vmatmul.mubr.msk.bf16.gmra.mxu0 %vm202_vm0, %v9970_v10  ;;  %v3061_v52 = vpack.c.bf16 %v10057_v24, %v10060_v50 }
 0x50f   :  { %6989 = vmatprep.subr.bf16.mxu1 %v3062_v59  ;;  %6985 = vmatprep.mubr.msk.bf16.mxu0 %vm202_vm0, %v9987_v17 }
 0x510   :  { %6990 = vmatpush3.bf16.msra.mxu1 %v3062_v59 }
 0x511   :  { %6991 = vmatprep.subr.bf16.mxu1 %v3061_v52 }
 0x514   :  { %6992 = vmatpush3.bf16.msra.mxu1 %v3061_v52 }
 0x516   :  { %6986 = vmatmul.mubr.msk.bf16.gmra.mxu0 %vm202_vm0, %v7173_v18 }
 0x517   :  { %6994 = vmatmul.mubr.msk.bf16.vlgmr.msra.gmra.mxu1 %vm202_vm0, %v9946_v20 }
 0x518   :  { %6997 = vmatprep.mubr.msk.bf16.mxu1 %vm202_vm0, %v9952_v12  ;;  %v12108_v12 = vld [vmem:[#allocation55_spill] sm:$0xff] }
 0x51f   :  { %6998 = vmatmul.mubr.msk.bf16.gmra.mxu1 %vm202_vm0, %v9970_v10 }
 0x520   :  { %7001 = vmatprep.mubr.msk.bf16.mxu1 %vm202_vm0, %v9987_v17  ;;  %v12111_v17 = vld [vmem:[#allocation41_spill] sm:$0xff] }
 0x527   :  { %7002 = vmatmul.mubr.msk.bf16.gmra.mxu1 %vm202_vm0, %v7173_v18 }
 0x5a7   :  { %v6947_v25 = vpop.f32.mrf.mxu0 }
 0x5a8   :  { %v10084_v38 = vadd.f32 %v6947_v25, %v12107_v47 }
 0x5a9   :  { %v3205_v37 = vpop.f32.mrf.mxu0 }
 0x5aa   :  { %v10090_v10 = vadd.f32 %v3205_v37, %v12109_v6 }
 0x5ab   :  { %v6948_v33 = vpop.f32.mrf.mxu0 }
 0x5ac   :  { %12110 = vst [vmem:[#allocation62_spill] sm:$0xff] %v10090_v10  ;;  %v10093_v35 = vadd.f32 %v6948_v33, %v12111_v17 }
 0x5ad   :  { %v3208_v16 = vpop.f32.mrf.mxu0 }
 0x5ae   :  { %12112 = vst [vmem:[#allocation70_spill] sm:$0xff] %v10093_v35  ;;  %v10101_v18 = vadd.f32 %v3208_v16, %v12114_v39 }
 0x5af   :  { %v6951_v34 = vpop.f32.mrf.mxu0 }
 0x5b0   :  { %v10081_v63 = vadd.f32 %v6951_v34, %v12106_v51  ;;  %12115 = vst [vmem:[#allocation5_spill] sm:$0xff] %v10101_v18 }
 0x5b1   :  { %v3221_v20 = vpop.f32.mrf.mxu0 }
 0x5b2   :  { %v10087_v55 = vadd.f32 %v3221_v20, %v12108_v12  ;;  %v4007_v49 = vmul.f32 %v10081_v63, %v10084_v38 }
 0x5b3   :  { %v6952_v4 = vpop.f32.mrf.mxu0 }
 0x5b4   :  { %v10098_v1 = vadd.f32 %v6952_v4, %v12113_v3  ;;  %v3495_v5 = vmul.f32 %v10087_v55, %v10090_v10  ;;  %v4039_v60 = vsel %vm577_vm1, %v4007_v49, 0.0 }
 0x5b5   :  { %v3224_v28 = vpop.f32.mrf.mxu0 }
 0x5b6   :  { %v4008_v36 = vmul.f32 %v10098_v1, %v10093_v35  ;;  %v10108_v40 = vadd.f32 %v3224_v28, %v12116_v0  ;;  %v3527_v2 = vsel %vm577_vm1, %v3495_v5, 0.0 }
 0x5b7   :  { %v6963_v43 = vpop.f32.mrf.mxu1  ;;  %v10114_v45 = vpop.f32.mrf.mxu0 }
 0x5b8   :  { %v4040_v42 = vsel %vm577_vm1, %v4008_v36, 0.0  ;;  %v3496_v57 = vmul.f32 %v10108_v40, %v10101_v18  ;;  %12117 = vst [vmem:[#allocation7_spill] sm:$0xff] %v10114_v45  ;;  %v10117_v14 = vadd.f32 %v6963_v43, %v12107_v47 }
 0x5b9   :  { %v4041_v62 = vadd.f32 %v4040_v42, %v4039_v60  ;;  %v3286_v56 = vpop.f32.mrf.mxu1  ;;  %v10126_v29 = vpop.f32.mrf.mxu0 }
 0x5ba   :  { %v3528_v32 = vsel %vm577_vm1, %v3496_v57, 0.0  ;;  %v10122_v30 = vadd.f32 %v3286_v56, %v12109_v6  ;;  %v4015_v9 = vmul.f32 %v10117_v14, %v10081_v63  ;;  %12119 = vst [vmem:[#allocation101_spill] sm:$0xff] %v10126_v29 }
 0x5bb   :  { %v4042_v48 = vrot.slane %v4041_v62, 4  ;;  %v3529_v58 = vadd.f32 %v3528_v32, %v3527_v2  ;;  %v6964_v7 = vpop.f32.mrf.mxu1  ;;  %v10139_v4 = vpop.f32.mrf.mxu0 }
 0x5bc   :  { %12118 = vst [vmem:[#allocation4_spill] sm:$0xff] %v10122_v30  ;;  %v10129_v11 = vadd.f32 %v6964_v7, %v12111_v17  ;;  %v3503_v25 = vmul.f32 %v10122_v30, %v10087_v55  ;;  %v4075_v20 = vsel %vm577_vm1, %v4015_v9, 0.0  ;;  %12122 = vst [vmem:[#allocation103_spill] sm:$0xff] %v10139_v4 }
 0x5bd   :  { %v3530_v61 = vrot.slane %v3529_v58, 4  ;;  %v3289_v59 = vpop.f32.mrf.mxu1  ;;  %v4043_v52 = vadd.f32 %v4042_v48, %v4041_v62 }
 0x5be   :  { %12120 = vst [vmem:[#allocation102_spill] sm:$0xff] %v10129_v11  ;;  %v4016_v37 = vmul.f32 %v10129_v11, %v10098_v1  ;;  %v10136_v33 = vadd.f32 %v3289_v59, %v12114_v39  ;;  %v3563_v42 = vsel %vm577_vm1, %v3503_v25, 0.0 }
 0x5bf   :  { %v6967_v16 = vpop.f32.mrf.mxu1  ;;  %v3531_v34 = vadd.f32 %v3530_v61, %v3529_v58  ;;  %v4044_v60 = vrot.slane %v4043_v52, 2  ;;  %v10152_v58 = vpop.f32.mrf.mxu0 }
 0x5c0   :  { %12121 = vst [vmem:[#allocation99_spill] sm:$0xff] %v10136_v33  ;;  %v4076_v49 = vsel %vm577_vm1, %v4016_v37, 0.0  ;;  %v3504_v28 = vmul.f32 %v10136_v33, %v10108_v40  ;;  %v10145_v36 = vadd.f32 %v6967_v16, %v12106_v51  ;;  %12123 = vst [vmem:[#allocation107_spill] sm:$0xff] %v10152_v58 }
 0x5c1   :  { %v4077_v5 = vadd.f32 %v4076_v49, %v4075_v20  ;;  %v3302_v43 = vpop.f32.mrf.mxu1  ;;  %v3532_v48 = vrot.slane %v3531_v34, 2  ;;  %v4045_v37 = vadd.f32 %v4044_v60, %v4043_v52 }
 0x5c2   :  { %v3564_v57 = vsel %vm577_vm1, %v3504_v28, 0.0  ;;  %v10150_v2 = vadd.f32 %v3302_v43, %v12108_v12  ;;  %v4009_v61 = vmul.f32 %v10145_v36, %v10084_v38  ;;  %v4017_v59 = vmul.f32 %v10145_v36, %v10117_v14 }
 0x5c3   :  { %v4078_v62 = vrot.slane %v4077_v5, 4  ;;  %v3565_v56 = vadd.f32 %v3564_v57, %v3563_v42  ;;  %v6968_v32 = vpop.f32.mrf.mxu1 }
 0x5c4   :  { %v10159_v16 = vadd.f32 %v6968_v32, %v12113_v3  ;;  %v3505_v42 = vmul.f32 %v10150_v2, %v10122_v30  ;;  %v4084_v26 = vsel %vm577_vm1, %v4017_v59, 0.0 }
 0x5c5   :  { %v4079_v7 = vadd.f32 %v4078_v62, %v4077_v5  ;;  %v3566_v9 = vrot.slane %v3565_v56, 4  ;;  %v3305_v25 = vpop.f32.mrf.mxu1  ;;  %v3497_v5 = vmul.f32 %v10150_v2, %v10090_v10 }
 0x5c6   :  { %v10162_v20 = vadd.f32 %v3305_v25, %v12116_v0  ;;  %v6979_v49 = vpop.f32.mrf.mxu0  ;;  %v4010_v57 = vmul.f32 %v10159_v16, %v10093_v35  ;;  %v4018_v52 = vmul.f32 %v10159_v16, %v10129_v11  ;;  %v4048_v25 = vsel %vm577_vm1, %v4009_v61, 0.0 }
 0x5c7   :  { %v4080_v28 = vrot.slane %v4079_v7, 2  ;;  %v3567_v43 = vadd.f32 %v3566_v9, %v3565_v56  ;;  %v3533_v56 = vadd.f32 %v3532_v48, %v3531_v34  ;;  %v3536_v23 = vsel %vm577_vm1, %v3497_v5, 0.0  ;;  %v10272_v29 = vpop.f32.mrf.mxu1 }
 0x5c8   :  { %v3498_v60 = vmul.f32 %v10162_v20, %v10101_v18  ;;  %v3506_v62 = vmul.f32 %v10162_v20, %v10136_v33  ;;  %v3367_v32 = vpop.f32.mrf.mxu0  ;;  %v4049_v24 = vsel %vm577_vm1, %v4010_v57, 0.0  ;;  %v4085_v19 = vsel %vm577_vm1, %v4018_v52, 0.0  ;;  %12135 = vst [vmem:[#allocation15_spill] sm:$0xff] %v10272_v29 }
 0x5c9   :  { %v3568_v9 = vrot.slane %v3567_v43, 2  ;;  %v3572_v13 = vsel %vm577_vm1, %v3505_v42, 0.0  ;;  %v4050_v41 = vadd.f32 %v4049_v24, %v4048_v25  ;;  %v4086_v27 = vadd.f32 %v4085_v19, %v4084_v26  ;;  %v10296_v29 = vpop.f32.mrf.mxu1 }
 0x5ca   :  { %v3537_v50 = vsel %vm577_vm1, %v3498_v60, 0.0  ;;  %v3573_v54 = vsel %vm577_vm1, %v3506_v62, 0.0  ;;  %v6980_v34 = vpop.f32.mrf.mxu0  ;;  %v4046_v48 = vrot.slane %v4045_v37, 1  ;;  %v4081_v21 = vadd.f32 %v4080_v28, %v4079_v7  ;;  %12136 = vst [vmem:[#allocation18_spill] sm:$0xff] %v10296_v29 }
 0x5cb   :  { %v3538_v61 = vadd.f32 %v3537_v50, %v3536_v23  ;;  %v3574_v8 = vadd.f32 %v3573_v54, %v3572_v13  ;;  %v3569_v59 = vadd.f32 %v3568_v9, %v3567_v43  ;;  %v4051_v53 = vrot.slane %v4050_v41, 4 }
 0x5cc   :  { %v4087_v57 = vrot.slane %v4086_v27, 4  ;;  %v10185_v52 = vadd.f32 %v6979_v49, %v12107_v47  ;;  %v3534_v62 = vrot.slane %v3533_v56, 1  ;;  %v3370_v44 = vpop.f32.mrf.mxu0  ;;  %v10187_v42 = vadd.f32 %v4046_v48, %v4045_v37 }
 0x5cd   :  { %v3539_v60 = vrot.slane %v3538_v61, 4  ;;  %v3575_v22 = vrot.slane %v3574_v8, 4  ;;  %v4052_v15 = vadd.f32 %v4051_v53, %v4050_v41  ;;  %v4082_v19 = vrot.slane %v4081_v21, 1 }
 0x5ce   :  { %v4088_v5 = vadd.f32 %v4087_v57, %v4086_v27  ;;  %12124 = vst [vmem:[#allocation104_spill] sm:$0xff] %v10187_v42  ;;  %v3570_v7 = vrot.slane %v3569_v59, 1  ;;  %v4023_v13 = vmul.f32 %v10185_v52, %v10081_v63  ;;  %v4025_v28 = vmul.f32 %v10185_v52, %v10145_v36 }
 0x5cf   :  { %v3540_v26 = vadd.f32 %v3539_v60, %v3538_v61  ;;  %v3576_v24 = vadd.f32 %v3575_v22, %v3574_v8  ;;  %v4053_v23 = vrot.slane %v4052_v15, 2  ;;  %v10194_v53 = vadd.f32 %v6980_v34, %v12111_v17  ;;  %v6983_v8 = vpop.f32.mrf.mxu0 }
 0x5d0   :  { %v4089_v54 = vrot.slane %v4088_v5, 2  ;;  %v10196_v27 = vadd.f32 %v3534_v62, %v3533_v56  ;;  %v10199_v22 = vadd.f32 %v3367_v32, %v12109_v6  ;;  %v10201_v43 = vadd.f32 %v4082_v19, %v4081_v21 }
 0x5d1   :  { %v3541_v50 = vrot.slane %v3540_v26, 2  ;;  %v3577_v49 = vrot.slane %v3576_v24, 2  ;;  %12125 = vst [vmem:[#allocation105_spill] sm:$0xff] %v10194_v53  ;;  %v4054_v41 = vadd.f32 %v4053_v23, %v4052_v15  ;;  %v4024_v25 = vmul.f32 %v10194_v53, %v10098_v1 }
 0x5d2   :  { %12126 = vst [vmem:[#allocation106_spill] sm:$0xff] %v10196_v27  ;;  %v4090_v37 = vadd.f32 %v4089_v54, %v4088_v5  ;;  %12127 = vst [vmem:[#allocation9_spill] sm:$0xff] %v10199_v22  ;;  %v4026_v48 = vmul.f32 %v10194_v53, %v10159_v16  ;;  %v10207_v61 = vadd.f32 %v3570_v7, %v3569_v59  ;;  %v4111_v15 = vsel %vm577_vm1, %v4023_v13, 0.0 }
 0x5d3   :  { %12128 = vst [vmem:[#allocation11_spill] sm:$0xff] %v10201_v43  ;;  %v3542_v9 = vadd.f32 %v3541_v50, %v3540_v26  ;;  %v4055_v34 = vrot.slane %v4054_v41, 1  ;;  %v3578_v56 = vadd.f32 %v3577_v49, %v3576_v24  ;;  %v4120_v32 = vsel %vm577_vm1, %v4025_v28, 0.0  ;;  %v3383_v26 = vpop.f32.mrf.mxu0 }
 0x5d4   :  { %12129 = vst [vmem:[#allocation10_spill] sm:$0xff] %v10207_v61  ;;  %v4091_v57 = vrot.slane %v4090_v37, 1  ;;  %v4112_v60 = vsel %vm577_vm1, %v4024_v25, 0.0  ;;  %v4121_v21 = vsel %vm577_vm1, %v4026_v48, 0.0  ;;  %v3511_v62 = vmul.f32 %v10199_v22, %v10087_v55 }
 0x5d5   :  { %v3513_v5 = vmul.f32 %v10199_v22, %v10150_v2  ;;  %v4113_v19 = vadd.f32 %v4112_v60, %v4111_v15  ;;  %v4122_v59 = vadd.f32 %v4121_v21, %v4120_v32  ;;  %v10219_v24 = vsel %vm577_vm1, %v10187_v42, -inf  ;;  %v6984_v60 = vpop.f32.mrf.mxu0 }
 0x5d6   :  { %v3543_v7 = vrot.slane %v3542_v9, 1  ;;  %v10222_v23 = vadd.f32 %v3370_v44, %v12114_v39  ;;  %v10224_v54 = vadd.f32 %v4055_v34, %v4054_v41  ;;  %v3579_v13 = vrot.slane %v3578_v56, 1 }
 0x5d7   :  { %v4114_v50 = vrot.slane %v4113_v19, 4  ;;  %v4123_v49 = vrot.slane %v4122_v59, 4  ;;  %v10228_v28 = vsel %vm577_vm1, %v10196_v27, -inf  ;;  %v10232_v25 = vsel %vm577_vm1, %v10201_v43, -inf }
 0x5d8   :  { %12130 = vst [vmem:[#allocation8_spill] sm:$0xff] %v10222_v23  ;;  %12131 = vst [vmem:[#allocation13_spill] sm:$0xff] %v10224_v54  ;;  %v10236_v48 = vsel %vm577_vm1, %v10207_v61, -inf  ;;  %v10238_v15 = vadd.f32 %v4091_v57, %v4090_v37  ;;  %v3599_v44 = vsel %vm577_vm1, %v3511_v62, 0.0  ;;  %v3608_v41 = vsel %vm577_vm1, %v3513_v5, 0.0 }
 0x5d9   :  { %v4115_v34 = vadd.f32 %v4114_v50, %v4113_v19  ;;  %v4124_v32 = vadd.f32 %v4123_v49, %v4122_v59  ;;  %v10242_v21 = vadd.f32 %v3543_v7, %v3542_v9  ;;  %v3512_v31 = vmul.f32 %v10222_v23, %v10108_v40 }
 0x5da   :  { %12132 = vst [vmem:[#allocation16_spill] sm:$0xff] %v10238_v15  ;;  %v3514_v46 = vmul.f32 %v10222_v23, %v10162_v20  ;;  %v10249_v58 = vadd.f32 %v6983_v8, %v12106_v51  ;;  %v10253_v37 = vsel %vm577_vm1, %v10224_v54, -inf  ;;  %v10255_v57 = vadd.f32 %v3579_v13, %v3578_v56  ;;  %v3386_v13 = vpop.f32.mrf.mxu0 }
 0x5db   :  { %12133 = vst [vmem:[#allocation12_spill] sm:$0xff] %v10242_v21  ;;  %v4116_v62 = vrot.slane %v4115_v34, 2  ;;  %v4125_v5 = vrot.slane %v4124_v32, 2  ;;  %v10259_v9 = vsel %vm577_vm1, %v10238_v15, -inf  ;;  %v3600_v19 = vsel %vm577_vm1, %v3512_v31, 0.0 }
 0x5dc   :  { %12134 = vst [vmem:[#allocation17_spill] sm:$0xff] %v10255_v57  ;;  %v3609_v59 = vsel %vm577_vm1, %v3514_v46, 0.0  ;;  %v4011_v8 = vmul.f32 %v10249_v58, %v10084_v38  ;;  %v3601_v7 = vadd.f32 %v3600_v19, %v3599_v44  ;;  %v4019_v49 = vmul.f32 %v10249_v58, %v10117_v14 }
 0x5dd   :  { %v3610_v50 = vadd.f32 %v3609_v59, %v3608_v41  ;;  %v10268_v56 = vadd.f32 %v3383_v26, %v12108_v12  ;;  %v4117_v31 = vadd.f32 %v4116_v62, %v4115_v34  ;;  %v4126_v45 = vadd.f32 %v4125_v5, %v4124_v32 }
 0x5de   :  { %v10275_v46 = vadd.f32 %v6984_v60, %v12113_v3  ;;  %v3602_v41 = vrot.slane %v3601_v7, 4  ;;  %v4027_v26 = vmul.f32 %v10249_v58, %v10185_v52  ;;  %v10283_v59 = vsel %vm577_vm1, %v10242_v21, -inf }
 0x5df   :  { %v3611_v19 = vrot.slane %v3610_v50, 4  ;;  %v10287_v4 = vsel %vm577_vm1, %v10255_v57, -inf  ;;  %v4057_v34 = vsel %vm577_vm1, %v4011_v8, 0.0  ;;  %v10291_v32 = vadd.f32 %v3386_v13, %v12116_v0  ;;  %v10312_v0 = vpop.f32.mrf.mxu1 }
 0x5e0   :  { %v3603_v60 = vadd.f32 %v3602_v41, %v3601_v7  ;;  %v4093_v5 = vsel %vm577_vm1, %v4019_v49, 0.0  ;;  %v3499_v44 = vmul.f32 %v10268_v56, %v10090_v10  ;;  %v4118_v61 = vrot.slane %v4117_v31, 1  ;;  %12137 = vst [vmem:[#allocation14_spill] sm:$0xff] %v10312_v0 }
 0x5e1   :  { %v3612_v62 = vadd.f32 %v3611_v19, %v3610_v50  ;;  %v4127_v21 = vrot.slane %v4126_v45, 1  ;;  %v4012_v57 = vmul.f32 %v10275_v46, %v10093_v35  ;;  %v4020_v8 = vmul.f32 %v10275_v46, %v10129_v11 }
 0x5e2   :  { %v3604_v27 = vrot.slane %v3603_v60, 2  ;;  %v4129_v7 = vsel %vm577_vm1, %v4027_v26, 0.0  ;;  %v3507_v50 = vmul.f32 %v10268_v56, %v10122_v30  ;;  %v3515_v49 = vmul.f32 %v10268_v56, %v10199_v22 }
 0x5e3   :  { %v3613_v13 = vrot.slane %v3612_v62, 2  ;;  %v4028_v41 = vmul.f32 %v10275_v46, %v10194_v53  ;;  %v4058_v19 = vsel %vm577_vm1, %v4012_v57, 0.0  ;;  %v4094_v29 = vsel %vm577_vm1, %v4020_v8, 0.0 }
 0x5e4   :  { %v3605_v15 = vadd.f32 %v3604_v27, %v3603_v60  ;;  %v3545_v43 = vsel %vm577_vm1, %v3499_v44, 0.0  ;;  %v4059_v54 = vadd.f32 %v4058_v19, %v4057_v34  ;;  %v4095_v42 = vadd.f32 %v4094_v29, %v4093_v5 }
 0x5e5   :  { %v4130_v26 = vsel %vm577_vm1, %v4028_v41, 0.0  ;;  %v3500_v11 = vmul.f32 %v10291_v32, %v10101_v18  ;;  %v3508_v35 = vmul.f32 %v10291_v32, %v10136_v33  ;;  %v3516_v57 = vmul.f32 %v10291_v32, %v10222_v23  ;;  %v10326_v18 = vpop.f32.mrf.mxu1 }
 0x5e6   :  { %v3614_v53 = vadd.f32 %v3613_v13, %v3612_v62  ;;  %v3581_v27 = vsel %vm577_vm1, %v3507_v50, 0.0  ;;  %v4060_v60 = vrot.slane %v4059_v54, 4  ;;  %v4096_v44 = vrot.slane %v4095_v42, 4  ;;  %12138 = vst [vmem:[#allocation19_spill] sm:$0xff] %v10326_v18 }
 0x5e7   :  { %v4131_v34 = vadd.f32 %v4130_v26, %v4129_v7  ;;  %v3546_v29 = vsel %vm577_vm1, %v3500_v11, 0.0  ;;  %v3582_v5 = vsel %vm577_vm1, %v3508_v35, 0.0  ;;  %v3618_v8 = vsel %vm577_vm1, %v3516_v57, 0.0 }
 0x5e8   :  { %v3606_v41 = vrot.slane %v3605_v15, 1  ;;  %v3617_v19 = vsel %vm577_vm1, %v3515_v49, 0.0  ;;  %v4061_v0 = vadd.f32 %v4060_v60, %v4059_v54  ;;  %v4097_v33 = vadd.f32 %v4096_v44, %v4095_v42  ;;  %v6995_v49 = vpop.f32.mrf.mxu1 }
 0x5e9   :  { %v4132_v23 = vrot.slane %v4131_v34, 4  ;;  %v3547_v62 = vadd.f32 %v3546_v29, %v3545_v43  ;;  %v3583_v13 = vadd.f32 %v3582_v5, %v3581_v27  ;;  %v3619_v50 = vadd.f32 %v3618_v8, %v3617_v19 }
 0x5ea   :  { %v3615_v26 = vrot.slane %v3614_v53, 1  ;;  %v4062_v11 = vrot.slane %v4061_v0, 2  ;;  %v4098_v22 = vrot.slane %v4097_v33, 2  ;;  %v10330_v35 = vadd.f32 %v4118_v61, %v4117_v31 }
 0x5eb   :  { %v4133_v57 = vadd.f32 %v4132_v23, %v4131_v34  ;;  %v3548_v30 = vrot.slane %v3547_v62, 4  ;;  %v3584_v10 = vrot.slane %v3583_v13, 4  ;;  %v10332_v54 = vadd.f32 %v4127_v21, %v4126_v45  ;;  %v3448_v45 = vpop.f32.mrf.mxu1 }
 0x5ec   :  { %v4063_v42 = vadd.f32 %v4062_v11, %v4061_v0  ;;  %v4099_v60 = vadd.f32 %v4098_v22, %v4097_v33  ;;  %v3620_v44 = vrot.slane %v3619_v50, 4  ;;  %v10334_v43 = vadd.f32 %v3606_v41, %v3605_v15 }
 0x5ed   :  { %v4134_v27 = vrot.slane %v4133_v57, 2  ;;  %v3549_v29 = vadd.f32 %v3548_v30, %v3547_v62  ;;  %v3585_v5 = vadd.f32 %v3584_v10, %v3583_v13  ;;  %v10336_v8 = vadd.f32 %v3615_v26, %v3614_v53  ;;  %v6996_v26 = vpop.f32.mrf.mxu1 }
 0x5ee   :  { %v4064_v19 = vrot.slane %v4063_v42, 1  ;;  %v4100_v7 = vrot.slane %v4099_v60, 1  ;;  %v3621_v61 = vadd.f32 %v3620_v44, %v3619_v50  ;;  %v10339_v18 = vadd.f32 %v6995_v49, %v12107_v47 }
 0x5ef   :  { %v4135_v31 = vadd.f32 %v4134_v27, %v4133_v57  ;;  %v3550_v23 = vrot.slane %v3549_v29, 2  ;;  %v3586_v34 = vrot.slane %v3585_v5, 2  ;;  %v3680_v0 = vmax.f32 %v10236_v48, %v10287_v4 }
 0x5f0   :  { %v10343_v33 = vadd.f32 %v4064_v19, %v4063_v42  ;;  %v10345_v22 = vadd.f32 %v4100_v7, %v4099_v60  ;;  %v3622_v10 = vrot.slane %v3621_v61, 2  ;;  %v4197_v30 = vsel %vm577_vm1, %v10330_v35, -inf }
 0x5f1   :  { %v4136_v53 = vrot.slane %v4135_v31, 1  ;;  %v3551_v15 = vadd.f32 %v3550_v23, %v3549_v29  ;;  %v3587_v21 = vadd.f32 %v3586_v34, %v3585_v5  ;;  %v4198_v41 = vsel %vm577_vm1, %v10332_v54, -inf }
 0x5f2   :  { %v10353_v47 = vsel %vm577_vm1, %v10334_v43, -inf  ;;  %v10357_v4 = vsel %vm577_vm1, %v10336_v8, -inf  ;;  %v3623_v48 = vadd.f32 %v3622_v10, %v3621_v61  ;;  %v4031_v50 = vmul.f32 %v10339_v18, %v10081_v63 }
 0x5f3   :  { %v10359_v62 = vadd.f32 %v4136_v53, %v4135_v31  ;;  %v3552_v13 = vrot.slane %v3551_v15, 1  ;;  %v4033_v7 = vmul.f32 %v10339_v18, %v10145_v36  ;;  %v4186_v11 = vsel %vm577_vm1, %v10343_v33, -inf }
 0x5f4   :  { %v4193_v57 = vsel %vm577_vm1, %v10345_v22, -inf  ;;  %v3588_v49 = vrot.slane %v3587_v21, 1  ;;  %v3624_v42 = vrot.slane %v3623_v48, 1  ;;  %v4199_v60 = vmax.f32 %v4197_v30, %v4198_v41 }
 0x5f5   :  { %v10369_v44 = vadd.f32 %v3552_v13, %v3551_v15  ;;  %v4035_v27 = vmul.f32 %v10339_v18, %v10249_v58  ;;  %v10374_v63 = vadd.f32 %v3448_v45, %v12109_v6  ;;  %v3687_v36 = vmax.f32 %v10353_v47, %v10357_v4  ;;  %v3451_v45 = vpop.f32.mrf.mxu1 }
 0x5f6   :  { %v4200_v29 = vsel %vm577_vm1, %v10359_v62, -inf  ;;  %v10380_v5 = vadd.f32 %v3588_v49, %v3587_v21  ;;  %v10383_v19 = vadd.f32 %v6996_v26, %v12111_v17  ;;  %v12139_v61 = vmax.f32 %v10219_v24, %v10253_v37 }
 0x5f7   :  { %v12140_v6 = vmax.f32 %v10232_v25, %v10259_v9  ;;  %v10395_v23 = vadd.f32 %v3624_v42, %v3623_v48  ;;  %v4147_v34 = vsel %vm577_vm1, %v4031_v50, 0.0  ;;  %v3674_v10 = vsel %vm577_vm1, %v10369_v44, -inf }
 0x5f8   :  { %v10388_v31 = vmax.f32 %v12139_v61, %v4186_v11  ;;  %v4156_v17 = vsel %vm577_vm1, %v4033_v7, 0.0  ;;  %v3519_v24 = vmul.f32 %v10374_v63, %v10087_v55  ;;  %v4032_v37 = vmul.f32 %v10383_v19, %v10098_v1 }
 0x5f9   :  { %v10393_v58 = vmax.f32 %v12140_v6, %v4193_v57  ;;  %v10405_v30 = vmax.f32 %v4199_v60, %v4200_v29  ;;  %v3681_v25 = vsel %vm577_vm1, %v10380_v5, -inf  ;;  %v4165_v9 = vsel %vm577_vm1, %v4035_v27, 0.0 }
 0x5fa   :  { %v3521_v53 = vmul.f32 %v10374_v63, %v10150_v2  ;;  %v3523_v15 = vmul.f32 %v10374_v63, %v10268_v56  ;;  %v4034_v21 = vmul.f32 %v10383_v19, %v10159_v16  ;;  %v4036_v55 = vmul.f32 %v10383_v19, %v10275_v46  ;;  %v6999_v56 = vpop.f32.mrf.mxu1 }
 0x5fb   :  { %v4148_v1 = vsel %vm577_vm1, %v4032_v37, 0.0  ;;  %v12141_v41 = vmax.f32 %v10228_v28, %v10283_v59  ;;  %v3688_v4 = vsel %vm577_vm1, %v10395_v23, -inf  ;;  %v10427_v48 = vadd.f32 %v3451_v45, %v12114_v39 }
 0x5fc   :  { %v4149_v2 = vadd.f32 %v4148_v1, %v4147_v34  ;;  %v10429_v13 = vmax.f32 %v3680_v0, %v3681_v25  ;;  %v3635_v16 = vsel %vm577_vm1, %v3519_v24, 0.0  ;;  %v4157_v46 = vsel %vm577_vm1, %v4034_v21, 0.0  ;;  %v3464_v29 = vpop.f32.mrf.mxu1 }
 0x5fd   :  { %v10422_v47 = vmax.f32 %v12141_v41, %v3674_v10  ;;  %v4166_v50 = vsel %vm577_vm1, %v4036_v55, 0.0  ;;  %v4158_v28 = vadd.f32 %v4157_v46, %v4156_v17  ;;  %v3520_v26 = vmul.f32 %v10427_v48, %v10108_v40 }
 0x5fe   :  { %v4150_v7 = vrot.slane %v4149_v2, 4  ;;  %v4167_v59 = vadd.f32 %v4166_v50, %v4165_v9  ;;  %v3644_v11 = vsel %vm577_vm1, %v3521_v53, 0.0  ;;  %v3653_v39 = vsel %vm577_vm1, %v3523_v15, 0.0  ;;  %v7000_v55 = vpop.f32.mrf.mxu1 }
 0x5ff   :  { %v3522_v0 = vmul.f32 %v10427_v48, %v10162_v20  ;;  %v3524_v57 = vmul.f32 %v10427_v48, %v10291_v32  ;;  %v4159_v42 = vrot.slane %v4158_v28, 4  ;;  %v3636_v27 = vsel %vm577_vm1, %v3520_v26, 0.0 }
 0x600   :  { %v4151_v49 = vadd.f32 %v4150_v7, %v4149_v2  ;;  %v4168_v60 = vrot.slane %v4167_v59, 4  ;;  %v3637_v61 = vadd.f32 %v3636_v27, %v3635_v16  ;;  %v3473_v34 = vadd.f32 %v6999_v56, %v12106_v51 }
 0x601   :  { %v3645_v6 = vsel %vm577_vm1, %v3522_v0, 0.0  ;;  %v3654_v40 = vsel %vm577_vm1, %v3524_v57, 0.0  ;;  %v4160_v10 = vadd.f32 %v4159_v42, %v4158_v28  ;;  %v10446_v24 = vmax.f32 %v3687_v36, %v3688_v4 }
 0x602   :  { %v4152_v45 = vrot.slane %v4151_v49, 2  ;;  %v4169_v17 = vadd.f32 %v4168_v60, %v4167_v59  ;;  %v3646_v20 = vadd.f32 %v3645_v6, %v3644_v11  ;;  %v3638_v32 = vrot.slane %v3637_v61, 4  ;;  %v12142_v60 = vld [vmem:[#allocation62_spill] sm:$0xff] }
 0x603   :  { %v3655_v37 = vadd.f32 %v3654_v40, %v3653_v39  ;;  %v3465_v25 = vadd.f32 %v3464_v29, %v12108_v12  ;;  %v4161_v53 = vrot.slane %v4160_v10, 2  ;;  %v4013_v2 = vmul.f32 %v3473_v34, %v10084_v38 }
 0x604   :  { %v4153_v9 = vadd.f32 %v4152_v45, %v4151_v49  ;;  %v4170_v15 = vrot.slane %v4169_v17, 2  ;;  %v3647_v21 = vrot.slane %v3646_v20, 4  ;;  %v3639_v1 = vadd.f32 %v3638_v32, %v3637_v61  ;;  %v12143_v61 = vld [vmem:[#allocation4_spill] sm:$0xff]  ;;  %v12144_v45 = vld [vmem:[#allocation9_spill] sm:$0xff] }
 0x605   :  { %v3656_v41 = vrot.slane %v3655_v37, 4  ;;  %v4021_v51 = vmul.f32 %v3473_v34, %v10117_v14  ;;  %v4162_v16 = vadd.f32 %v4161_v53, %v4160_v10  ;;  %v4029_v7 = vmul.f32 %v3473_v34, %v10185_v52 }
 0x606   :  { %v4154_v56 = vrot.slane %v4153_v9, 1  ;;  %v4171_v46 = vadd.f32 %v4170_v15, %v4169_v17  ;;  %v3648_v36 = vadd.f32 %v3647_v21, %v3646_v20  ;;  %v3640_v4 = vrot.slane %v3639_v1, 2  ;;  %v12145_v15 = vld [vmem:[#allocation70_spill] sm:$0xff] }
 0x607   :  { %v3657_v50 = vadd.f32 %v3656_v41, %v3655_v37  ;;  %v3476_v12 = vadd.f32 %v7000_v55, %v12113_v3  ;;  %v4163_v59 = vrot.slane %v4162_v16, 1  ;;  %v4037_v11 = vmul.f32 %v3473_v34, %v10339_v18  ;;  %v12146_v55 = vld [vmem:[#allocation102_spill] sm:$0xff] }
 0x608   :  { %v10453_v28 = vadd.f32 %v4154_v56, %v4153_v9  ;;  %v3649_v26 = vrot.slane %v3648_v36, 2  ;;  %v4172_v39 = vrot.slane %v4171_v46, 1  ;;  %v3641_v38 = vadd.f32 %v3640_v4, %v3639_v1  ;;  %v12147_v56 = vld [vmem:[#allocation105_spill] sm:$0xff] }
 0x609   :  { %v3658_v0 = vrot.slane %v3657_v50, 2  ;;  %v4066_v14 = vsel %vm577_vm1, %v4013_v2, 0.0  ;;  %v10457_v57 = vadd.f32 %v4163_v59, %v4162_v16  ;;  %v4102_v42 = vsel %vm577_vm1, %v4021_v51, 0.0 }
 0x60a   :  { %v3650_v49 = vadd.f32 %v3649_v26, %v3648_v36  ;;  %v3501_v52 = vmul.f32 %v3465_v25, %v12142_v60  ;;  %v3642_v27 = vrot.slane %v3641_v38, 1  ;;  %v4138_v29 = vsel %vm577_vm1, %v4029_v7, 0.0 }
 0x60b   :  { %v3659_v3 = vadd.f32 %v3658_v0, %v3657_v50  ;;  %v3509_v6 = vmul.f32 %v3465_v25, %v12143_v61  ;;  %v10465_v18 = vsel %vm577_vm1, %v10453_v28, -inf  ;;  %v10469_v40 = vsel %vm577_vm1, %v10457_v57, -inf  ;;  %v12148_v0 = vld [vmem:[#allocation54_spill] sm:$0xff] }
 0x60c   :  { %v3651_v34 = vrot.slane %v3650_v49, 1  ;;  %v3517_v10 = vmul.f32 %v3465_v25, %v12144_v45  ;;  %v10472_v17 = vadd.f32 %v4172_v39, %v4171_v46  ;;  %v4174_v32 = vsel %vm577_vm1, %v4037_v11, 0.0  ;;  %v3467_v46 = vpop.f32.mrf.mxu1 }
 0x60d   :  { %v3660_v20 = vrot.slane %v3659_v3, 1  ;;  %v3525_v37 = vmul.f32 %v3465_v25, %v10374_v63  ;;  %v10476_v9 = vadd.f32 %v3642_v27, %v3641_v38  ;;  %v3554_v53 = vsel %vm577_vm1, %v3501_v52, 0.0 }
 0x60e   :  { %v4014_v21 = vmul.f32 %v3476_v12, %v12145_v15  ;;  %v4022_v1 = vmul.f32 %v3476_v12, %v12146_v55  ;;  %v4206_v41 = vmax.f32 %v10465_v18, %v10469_v40  ;;  %v10483_v2 = vadd.f32 %v3651_v34, %v3650_v49 }
 0x60f   :  { %v3590_v51 = vsel %vm577_vm1, %v3509_v6, 0.0  ;;  %v4030_v16 = vmul.f32 %v3476_v12, %v12147_v56  ;;  %v3626_v63 = vsel %vm577_vm1, %v3517_v10, 0.0  ;;  %v4038_v25 = vmul.f32 %v3476_v12, %v10383_v19  ;;  %v12151_v6 = vld [vmem:[#allocation8_spill] sm:$0xff] }
 0x610   :  { %v4067_v36 = vsel %vm577_vm1, %v4014_v21, 0.0  ;;  %v4103_v4 = vsel %vm577_vm1, %v4022_v1, 0.0  ;;  %v10491_v50 = vadd.f32 %v3660_v20, %v3659_v3  ;;  %v3662_v7 = vsel %vm577_vm1, %v3525_v37, 0.0  ;;  %v12150_v3 = vld [vmem:[#allocation99_spill] sm:$0xff] }
 0x611   :  { %v4068_v59 = vadd.f32 %v4067_v36, %v4066_v14  ;;  %v4104_v26 = vadd.f32 %v4103_v4, %v4102_v42  ;;  %v10496_v11 = vsel %vm577_vm1, %v10476_v9, -inf  ;;  %v4139_v39 = vsel %vm577_vm1, %v4030_v16, 0.0  ;;  %v12149_v14 = vld [vmem:[#allocation5_spill] sm:$0xff] }
 0x612   :  { %v4175_v38 = vsel %vm577_vm1, %v4038_v25, 0.0  ;;  %v3468_v19 = vadd.f32 %v3467_v46, %v12148_v0  ;;  %v10503_v12 = vsel %vm577_vm1, %v10483_v2, -inf  ;;  %v4140_v52 = vadd.f32 %v4139_v39, %v4138_v29 }
 0x613   :  { %v4069_v49 = vrot.slane %v4068_v59, 4  ;;  %v4105_v60 = vrot.slane %v4104_v26, 4  ;;  %v4176_v27 = vadd.f32 %v4175_v38, %v4174_v32 }
 0x614   :  { %v3502_v42 = vmul.f32 %v3468_v19, %v12149_v14  ;;  %v3510_v61 = vmul.f32 %v3468_v19, %v12150_v3  ;;  %v3518_v34 = vmul.f32 %v3468_v19, %v12151_v6  ;;  %v4141_v20 = vrot.slane %v4140_v52, 4 }
 0x615   :  { %v4070_v45 = vadd.f32 %v4069_v49, %v4068_v59  ;;  %v4106_v10 = vadd.f32 %v4105_v60, %v4104_v26  ;;  %v3526_v37 = vmul.f32 %v3468_v19, %v10427_v48  ;;  %v4177_v15 = vrot.slane %v4176_v27, 4  ;;  %v10516_v60 = vld [vmem:[%s11639_s4 + $0x10] sm:$0xff]  }
 0x616   :  { %v3555_v21 = vsel %vm577_vm1, %v3502_v42, 0.0  ;;  %v3591_v55 = vsel %vm577_vm1, %v3510_v61, 0.0  ;;  %v3627_v1 = vsel %vm577_vm1, %v3518_v34, 0.0  ;;  %v4142_v56 = vadd.f32 %v4141_v20, %v4140_v52  ;;  %12152 = vst [vmem:[#allocation21_spill] sm:$0xff] %v10516_v60  ;;  %7009 = vmatprep.mubr.msk.bf16.mxu0 %vm202_vm0, %v10516_v60  ;;  %7017 = vmatprep.mubr.msk.bf16.mxu1 %vm202_vm0, %v10516_v60 }
 0x617   :  { %v4071_v29 = vrot.slane %v4070_v45, 2  ;;  %v4107_v32 = vrot.slane %v4106_v10, 2  ;;  %v3556_v16 = vadd.f32 %v3555_v21, %v3554_v53  ;;  %v4178_v46 = vadd.f32 %v4177_v15, %v4176_v27 }
 0x618   :  { %v3592_v25 = vadd.f32 %v3591_v55, %v3590_v51  ;;  %v3628_v36 = vadd.f32 %v3627_v1, %v3626_v63  ;;  %v3663_v4 = vsel %vm577_vm1, %v3526_v37, 0.0  ;;  %v4143_v39 = vrot.slane %v4142_v56, 2 }
 0x619   :  { %v4072_v59 = vadd.f32 %v4071_v29, %v4070_v45  ;;  %v4108_v26 = vadd.f32 %v4107_v32, %v4106_v10  ;;  %v3557_v48 = vrot.slane %v3556_v16, 4  ;;  %v4179_v38 = vrot.slane %v4178_v46, 2 }
 0x61a   :  { %v3593_v0 = vrot.slane %v3592_v25, 4  ;;  %v3629_v19 = vrot.slane %v3628_v36, 4  ;;  %v3664_v49 = vadd.f32 %v3663_v4, %v3662_v7  ;;  %v4144_v27 = vadd.f32 %v4143_v39, %v4142_v56 }
 0x61b   :  { %v4073_v52 = vrot.slane %v4072_v59, 1  ;;  %v4109_v53 = vrot.slane %v4108_v26, 1  ;;  %v3558_v51 = vadd.f32 %v3557_v48, %v3556_v16  ;;  %v4180_v63 = vadd.f32 %v4179_v38, %v4178_v46  ;;  %v12155_v38 = vld [vmem:[#allocation11_spill] sm:$0xff] }
 0x61c   :  { %v3594_v14 = vadd.f32 %v3593_v0, %v3592_v25  ;;  %v3630_v42 = vadd.f32 %v3629_v19, %v3628_v36  ;;  %v3665_v3 = vrot.slane %v3664_v49, 4  ;;  %v4145_v6 = vrot.slane %v4144_v27, 1 }
 0x61d   :  { %v4074_v7 = vadd.f32 %v4073_v52, %v4072_v59  ;;  %v4110_v61 = vadd.f32 %v4109_v53, %v4108_v26  ;;  %v3559_v34 = vrot.slane %v3558_v51, 2  ;;  %v4207_v45 = vsel %vm577_vm1, %v10472_v17, -inf  ;;  %v12153_v59 = vld [vmem:[#allocation104_spill] sm:$0xff]  ;;  %v12154_v26 = vld [vmem:[#allocation13_spill] sm:$0xff] }
 0x61e   :  { %v3694_v10 = vmax.f32 %v10496_v11, %v10503_v12  ;;  %v4181_v20 = vrot.slane %v4180_v63, 1  ;;  %v3595_v37 = vrot.slane %v3594_v14, 2  ;;  %v4146_v15 = vadd.f32 %v4145_v6, %v4144_v27  ;;  %v12156_v52 = vld [vmem:[#allocation16_spill] sm:$0xff] }
 0x61f   :  { %v4188_v21 = vsel %vm577_vm1, %v4074_v7, -inf  ;;  %v4195_v55 = vsel %vm577_vm1, %v4110_v61, -inf  ;;  %v3631_v1 = vrot.slane %v3630_v42, 2  ;;  %v3560_v16 = vadd.f32 %v3559_v34, %v3558_v51 }
 0x620   :  { %v10528_v29 = vadd.f32 %v4181_v20, %v4180_v63  ;;  %v4189_v32 = vmax.f32 %v10388_v31, %v4188_v21  ;;  %v4196_v56 = vmax.f32 %v10393_v58, %v4195_v55  ;;  %v4208_v46 = vmax.f32 %v4206_v41, %v4207_v45 }
 0x621   :  { %v3695_v11 = vsel %vm577_vm1, %v10491_v50, -inf  ;;  %v4202_v12 = vsel %vm577_vm1, %v4146_v15, -inf  ;;  %v3666_v25 = vadd.f32 %v3665_v3, %v3664_v49  ;;  %v3596_v41 = vadd.f32 %v3595_v37, %v3594_v14 }
 0x622   :  { %v10538_v36 = vmax.f32 %v3694_v10, %v3695_v11  ;;  %v4203_v4 = vmax.f32 %v10405_v30, %v4202_v12  ;;  %v4209_v31 = vsel %vm577_vm1, %v10528_v29, -inf  ;;  %v4211_v58 = vsub.f32 %v12153_v59, %v4189_v32 }
 0x623   :  { %v4212_v39 = vsub.f32 %v12154_v26, %v4189_v32  ;;  %v4213_v18 = vsub.f32 %v10343_v33, %v4189_v32  ;;  %v4214_v40 = vsub.f32 %v4074_v7, %v4189_v32  ;;  %v4210_v48 = vmax.f32 %v4208_v46, %v4209_v31 }
 0x624   :  { %v4215_v0 = vsub.f32 %v12155_v38, %v4196_v56  ;;  %v3561_v19 = vrot.slane %v3560_v16, 1  ;;  %v3632_v49 = vadd.f32 %v3631_v1, %v3630_v42  ;;  %v4216_v53 = vsub.f32 %v12156_v52, %v4196_v56 }
 0x625   :  { %v4217_v30 = vsub.f32 %v10345_v22, %v4196_v56  ;;  %v4218_v27 = vsub.f32 %v4110_v61, %v4196_v56  ;;  %v3667_v51 = vrot.slane %v3666_v25, 2  ;;  %v4219_v63 = vsub.f32 %v10330_v35, %v4203_v4 }
 0x626   :  { %v4220_v3 = vsub.f32 %v10332_v54, %v4203_v4  ;;  %v4221_v6 = vsub.f32 %v10359_v62, %v4203_v4  ;;  %v4227_v33 = vmul.f32 1.442695, %v4211_v58  ;;  %v4222_v7 = vsub.f32 %v4146_v15, %v4203_v4 }
 0x627   :  { %v4229_v14 = vmul.f32 1.442695, %v4212_v39  ;;  %v4231_v34 = vmul.f32 1.442695, %v4213_v18  ;;  %v4233_v45 = vmul.f32 1.442695, %v4214_v40  ;;  %v4223_v10 = vsub.f32 %v10453_v28, %v4210_v48 }
 0x628   :  { %v4224_v42 = vsub.f32 %v10457_v57, %v4210_v48  ;;  %7278 = vpow2.f32 %v4227_v33  ;;  %v4235_v20 = vmul.f32 1.442695, %v4215_v0  ;;  %v4225_v22 = vsub.f32 %v10472_v17, %v4210_v48 }
 0x629   :  { %7280 = vpow2.f32 %v4229_v14  ;;  %v4237_v61 = vmul.f32 1.442695, %v4216_v53  ;;  %v10555_v35 = vadd.f32 %v3561_v19, %v3560_v16  ;;  %v4226_v54 = vsub.f32 %v10528_v29, %v4210_v48 }
 0x62a   :  { %7282 = vpow2.f32 %v4231_v34  ;;  %v4239_v62 = vmul.f32 1.442695, %v4217_v30  ;;  %v4241_v37 = vmul.f32 1.442695, %v4218_v27  ;;  %v4243_v15 = vmul.f32 1.442695, %v4219_v63 }
 0x62b   :  { %7284 = vpow2.f32 %v4233_v45  ;;  %v4245_v21 = vmul.f32 1.442695, %v4220_v3  ;;  %v4247_v55 = vmul.f32 1.442695, %v4221_v6  ;;  %v3597_v28 = vrot.slane %v3596_v41, 1 }
 0x62c   :  { %7286 = vpow2.f32 %v4235_v20  ;;  %v3633_v57 = vrot.slane %v3632_v49, 1  ;;  %v3668_v1 = vadd.f32 %v3667_v51, %v3666_v25  ;;  %v4249_v32 = vmul.f32 1.442695, %v4222_v7 }
 0x62d   :  { %7288 = vpow2.f32 %v4237_v61  ;;  %v4251_v17 = vmul.f32 1.442695, %v4223_v10  ;;  %v3676_v56 = vsel %vm577_vm1, %v10555_v35, -inf  ;;  %v10560_v16 = vadd.f32 %v3597_v28, %v3596_v41  ;;  %v12158_v41 = vld [vmem:[#allocation12_spill] sm:$0xff] }
 0x62e   :  { %7290 = vpow2.f32 %v4239_v62  ;;  %v10562_v29 = vadd.f32 %v3633_v57, %v3632_v49  ;;  %v3669_v46 = vrot.slane %v3668_v1, 1  ;;  %v4253_v11 = vmul.f32 1.442695, %v4224_v42 }
 0x62f   :  { %7292 = vpow2.f32 %v4241_v37  ;;  %v4255_v12 = vmul.f32 1.442695, %v4225_v22  ;;  %v3677_v4 = vmax.f32 %v10422_v47, %v3676_v56  ;;  %v3683_v25 = vsel %vm577_vm1, %v10560_v16, -inf  ;;  %v12157_v47 = vld [vmem:[#allocation106_spill] sm:$0xff] }
 0x630   :  { %7294 = vpow2.f32 %v4243_v15  ;;  %v10565_v31 = vadd.f32 %v3669_v46, %v3668_v1  ;;  %v3690_v59 = vsel %vm577_vm1, %v10562_v29, -inf  ;;  %v4257_v58 = vmul.f32 1.442695, %v4226_v54 }
 0x631   :  { %7296 = vpow2.f32 %v4245_v21  ;;  %v3684_v26 = vmax.f32 %v10429_v13, %v3683_v25  ;;  %v3691_v39 = vmax.f32 %v10446_v24, %v3690_v59  ;;  %v3699_v40 = vsub.f32 %v12157_v47, %v3677_v4  ;;  %v12159_v13 = vld [vmem:[#allocation10_spill] sm:$0xff]  ;;  %v12160_v24 = vld [vmem:[#allocation17_spill] sm:$0xff] }
 0x632   :  { %7298 = vpow2.f32 %v4247_v55  ;;  %v3697_v18 = vsel %vm577_vm1, %v10565_v31, -inf  ;;  %v3700_v48 = vsub.f32 %v12158_v41, %v3677_v4  ;;  %v3701_v0 = vsub.f32 %v10369_v44, %v3677_v4 }
 0x633   :  { %7300 = vpow2.f32 %v4249_v32  ;;  %v10578_v38 = vmax.f32 %v10538_v36, %v3697_v18  ;;  %v3702_v19 = vsub.f32 %v10555_v35, %v3677_v4  ;;  %v3703_v49 = vsub.f32 %v12159_v13, %v3684_v26 }
 0x634   :  { %7302 = vpow2.f32 %v4251_v17  ;;  %v3704_v52 = vsub.f32 %v12160_v24, %v3684_v26  ;;  %v3705_v53 = vsub.f32 %v10380_v5, %v3684_v26  ;;  %v3706_v27 = vsub.f32 %v10560_v16, %v3684_v26 }
 0x635   :  { %v10585_v30 = vpop.eup %7278  ;;  %7304 = vpow2.f32 %v4253_v11  ;;  %v3707_v51 = vsub.f32 %v10334_v43, %v3691_v39  ;;  %v3708_v36 = vsub.f32 %v10336_v8, %v3691_v39  ;;  %v3709_v44 = vsub.f32 %v10395_v23, %v3691_v39 }
 0x636   :  { %v10590_v63 = vpop.eup %7280  ;;  %7306 = vpow2.f32 %v4255_v12  ;;  %v3710_v3 = vsub.f32 %v10562_v29, %v3691_v39  ;;  %v3711_v6 = vsub.f32 %v10476_v9, %v10578_v38  ;;  %v3712_v43 = vsub.f32 %v10483_v2, %v10578_v38 }
 0x637   :  { %v10596_v5 = vpop.eup %7282  ;;  %7308 = vpow2.f32 %v4257_v58  ;;  %v4275_v33 = vrot.slane %v10590_v63, 7  ;;  %v3713_v8 = vsub.f32 %v10491_v50, %v10578_v38  ;;  %v3714_v14 = vsub.f32 %v10565_v31, %v10578_v38 }
 0x638   :  { %v10603_v7 = vpop.eup %7284  ;;  %v4277_v23 = vrot.slane %v10596_v5, 6  ;;  %v3715_v34 = vmul.f32 1.442695, %v3699_v40  ;;  %v3717_v9 = vmul.f32 1.442695, %v3700_v48 }
 0x639   :  { %v10608_v45 = vpop.eup %7286  ;;  %v4276_v10 = vsel %vm815_vm2, %v4275_v33, %v10585_v30  ;;  %v4279_v42 = vrot.slane %v10603_v7, 5  ;;  %v3719_v2 = vmul.f32 1.442695, %v3701_v0  ;;  %v3721_v20 = vmul.f32 1.442695, %v3702_v19 }
 0x63a   :  { %v10613_v22 = vpop.eup %7288  ;;  %v4278_v50 = vsel %vm818_vm4, %v4277_v23, %v4276_v10  ;;  %7310 = vpow2.f32 %v3715_v34  ;;  %v3723_v61 = vmul.f32 1.442695, %v3703_v49  ;;  %v3725_v35 = vmul.f32 1.442695, %v3704_v52 }
 0x63b   :  { %v10616_v54 = vpop.eup %7290  ;;  %v4280_v62 = vsel %vm821_vm5, %v4279_v42, %v4278_v50  ;;  %v4281_v37 = vrot.slane %v10613_v22, 7  ;;  %7312 = vpow2.f32 %v3717_v9  ;;  %v3727_v15 = vmul.f32 1.442695, %v3705_v53 }
 0x63c   :  { %v10620_v21 = vpop.eup %7292  ;;  %v4283_v55 = vrot.slane %v10616_v54, 6  ;;  %7314 = vpow2.f32 %v3719_v2  ;;  %v3729_v28 = vmul.f32 1.442695, %v3706_v27  ;;  %v3731_v57 = vmul.f32 1.442695, %v3707_v51 }
 0x63d   :  { %v10623_v1 = vpop.eup %7294  ;;  %v4282_v32 = vsel %vm815_vm2, %v4281_v37, %v10608_v45  ;;  %v4285_v17 = vrot.slane %v10620_v21, 5  ;;  %7316 = vpow2.f32 %v3721_v20  ;;  %v3733_v56 = vmul.f32 1.442695, %v3708_v36 }
 0x63e   :  { %v10628_v16 = vpop.eup %7296  ;;  %v4284_v29 = vsel %vm818_vm4, %v4283_v55, %v4282_v32  ;;  %7318 = vpow2.f32 %v3723_v61  ;;  %v3735_v46 = vmul.f32 1.442695, %v3709_v44  ;;  %v3737_v11 = vmul.f32 1.442695, %v3710_v3 }
 0x63f   :  { %v10631_v12 = vpop.eup %7298  ;;  %v4286_v4 = vsel %vm821_vm5, %v4285_v17, %v4284_v29  ;;  %v4287_v31 = vrot.slane %v10628_v16, 7  ;;  %7320 = vpow2.f32 %v3725_v35  ;;  %v3739_v25 = vmul.f32 1.442695, %v3711_v6 }
 0x640   :  { %v10635_v59 = vpop.eup %7300  ;;  %v4289_v58 = vrot.slane %v10631_v12, 6  ;;  %7322 = vpow2.f32 %v3727_v15  ;;  %v3741_v26 = vmul.f32 1.442695, %v3712_v43  ;;  %v3743_v39 = vmul.f32 1.442695, %v3713_v8 }
 0x641   :  { %v10638_v18 = vpop.eup %7302  ;;  %v4288_v47 = vsel %vm815_vm2, %v4287_v31, %v10623_v1  ;;  %v4291_v40 = vrot.slane %v10635_v59, 5  ;;  %7324 = vpow2.f32 %v3729_v28  ;;  %v3745_v41 = vmul.f32 1.442695, %v3714_v14 }
 0x642   :  { %v10643_v48 = vpop.eup %7304  ;;  %v4290_v38 = vsel %vm818_vm4, %v4289_v58, %v4288_v47  ;;  %7326 = vpow2.f32 %v3731_v57  ;;  %v4303_v0 = vsel %vm845_vm6, %v4280_v62, 0.0  ;;  %v4310_v19 = vsel %vm845_vm6, %v4286_v4, 0.0 }
 0x643   :  { %v10648_v13 = vpop.eup %7306  ;;  %v4292_v49 = vsel %vm821_vm5, %v4291_v40, %v4290_v38  ;;  %v4293_v24 = vrot.slane %v10643_v48, 7  ;;  %7328 = vpow2.f32 %v3733_v56  ;;  %v4304_v52 = vrot.slane %v4303_v0, 4 }
 0x644   :  { %v10652_v53 = vpop.eup %7308  ;;  %v4295_v27 = vrot.slane %v10648_v13, 6  ;;  %7330 = vpow2.f32 %v3735_v46  ;;  %v4311_v51 = vrot.slane %v4310_v19, 4  ;;  %v4317_v36 = vsel %vm845_vm6, %v4292_v49, 0.0 }
 0x645   :  { %v4294_v44 = vsel %vm815_vm2, %v4293_v24, %v10638_v18  ;;  %v4297_v3 = vrot.slane %v10652_v53, 5  ;;  %7332 = vpow2.f32 %v3737_v11  ;;  %v4305_v6 = vadd.f32 %v4304_v52, %v4303_v0 }
 0x646   :  { %v4296_v33 = vsel %vm818_vm4, %v4295_v27, %v4294_v44  ;;  %7334 = vpow2.f32 %v3739_v25  ;;  %v4312_v43 = vadd.f32 %v4311_v51, %v4310_v19  ;;  %v4318_v8 = vrot.slane %v4317_v36, 4 }
 0x647   :  { %v10660_v23 = vpop.eup %7310  ;;  %v4298_v14 = vsel %vm821_vm5, %v4297_v3, %v4296_v33  ;;  %7336 = vpow2.f32 %v3741_v26  ;;  %v4306_v34 = vrot.slane %v4305_v6, 2 }
 0x648   :  { %v10663_v9 = vpop.eup %7312  ;;  %7338 = vpow2.f32 %v3743_v39  ;;  %v4313_v10 = vrot.slane %v4312_v43, 2  ;;  %v4319_v42 = vadd.f32 %v4318_v8, %v4317_v36  ;;  %v4324_v2 = vsel %vm845_vm6, %v4298_v14, 0.0 }
 0x649   :  { %v10666_v20 = vpop.eup %7314  ;;  %7340 = vpow2.f32 %v3745_v41  ;;  %v3763_v50 = vrot.slane %v10663_v9, 7  ;;  %v4307_v61 = vadd.f32 %v4306_v34, %v4305_v6  ;;  %v4325_v35 = vrot.slane %v4324_v2, 4 }
 0x64a   :  { %v10669_v62 = vpop.eup %7316  ;;  %v3765_v37 = vrot.slane %v10666_v20, 6  ;;  %v4314_v15 = vadd.f32 %v4313_v10, %v4312_v43  ;;  %v4320_v55 = vrot.slane %v4319_v42, 2 }
 0x64b   :  { %v10672_v28 = vpop.eup %7318  ;;  %v3764_v57 = vsel %vm815_vm2, %v3763_v50, %v10660_v23  ;;  %v3767_v32 = vrot.slane %v10669_v62, 5  ;;  %v4308_v17 = vrot.slane %v4307_v61, 1  ;;  %v4326_v56 = vadd.f32 %v4325_v35, %v4324_v2  ;;  %v6987_v2 = vpop.f32.mrf.mxu0 }
 0x64c   :  { %v10677_v29 = vpop.eup %7320  ;;  %v3766_v46 = vsel %vm818_vm4, %v3765_v37, %v3764_v57  ;;  %v4315_v11 = vrot.slane %v4314_v15, 1  ;;  %v4321_v4 = vadd.f32 %v4320_v55, %v4319_v42 }
 0x64d   :  { %v10680_v31 = vpop.eup %7322  ;;  %v3768_v25 = vsel %vm821_vm5, %v3767_v32, %v3766_v46  ;;  %v3769_v58 = vrot.slane %v10677_v29, 7  ;;  %v4309_v26 = vadd.f32 %v4308_v17, %v4307_v61  ;;  %v4327_v39 = vrot.slane %v4326_v56, 2 }
 0x64e   :  { %v10684_v47 = vpop.eup %7324  ;;  %v3771_v40 = vrot.slane %v10680_v31, 6  ;;  %v4316_v41 = vadd.f32 %v4315_v11, %v4314_v15  ;;  %v4322_v38 = vrot.slane %v4321_v4, 1  ;;  %v3791_v0 = vsel %vm845_vm6, %v3768_v25, 0.0 }
 0x64f   :  { %v10688_v19 = vpop.eup %7326  ;;  %v3770_v49 = vsel %vm815_vm2, %v3769_v58, %v10672_v28  ;;  %v3773_v24 = vrot.slane %v10684_v47, 5  ;;  %v4328_v52 = vadd.f32 %v4327_v39, %v4326_v56  ;;  %7342 = vrcp.f32 %v4309_v26  ;;  %v3399_v26 = vpop.f32.mrf.mxu0 }
 0x650   :  { %12161 = vst [vmem:[#allocation23_spill] sm:$0xff] %v10688_v19  ;;  %v10693_v27 = vpop.eup %7328  ;;  %v3772_v51 = vsel %vm818_vm4, %v3771_v40, %v3770_v49  ;;  %v4323_v36 = vadd.f32 %v4322_v38, %v4321_v4  ;;  %7344 = vrcp.f32 %v4316_v41  ;;  %v3792_v44 = vrot.slane %v3791_v0, 4  ;;  %v7003_v41 = vpop.f32.mrf.mxu1 }
 0x651   :  { %12162 = vst [vmem:[#allocation20_spill] sm:$0xff] %v10693_v27  ;;  %v10696_v3 = vpop.eup %7330  ;;  %v3774_v6 = vsel %vm821_vm5, %v3773_v24, %v3772_v51  ;;  %v3775_v33 = vrot.slane %v10693_v27, 7  ;;  %v4329_v43 = vrot.slane %v4328_v52, 1 }
 0x652   :  { %12163 = vst [vmem:[#allocation24_spill] sm:$0xff] %v10696_v3  ;;  %v10700_v8 = vpop.eup %7332  ;;  %v3777_v14 = vrot.slane %v10696_v3, 6  ;;  %7346 = vrcp.f32 %v4323_v36  ;;  %v3793_v34 = vadd.f32 %v3792_v44, %v3791_v0  ;;  %v3798_v10 = vsel %vm845_vm6, %v3774_v6, 0.0  ;;  %v12167_v44 = vld [vmem:[#allocation57_spill] sm:$0xff]  ;;  %v12168_v6 = vld [vmem:[#allocation7_spill] sm:$0xff] }
 0x653   :  { %v10704_v42 = vpop.eup %7334  ;;  %v3776_v50 = vsel %vm815_vm2, %v3775_v33, %v10688_v19  ;;  %v3779_v61 = vrot.slane %v10700_v8, 5  ;;  %v4330_v35 = vadd.f32 %v4329_v43, %v4328_v52  ;;  %v3799_v37 = vrot.slane %v3798_v10, 4  ;;  %v12169_v43 = vld [vmem:[#allocation64_spill] sm:$0xff] }
 0x654   :  { %12164 = vst [vmem:[#allocation22_spill] sm:$0xff] %v10704_v42  ;;  %v10709_v15 = vpop.eup %7336  ;;  %v3778_v55 = vsel %vm818_vm4, %v3777_v14, %v3776_v50  ;;  %v3794_v57 = vrot.slane %v3793_v34, 2  ;;  %v10727_v33 = vadd.f32 %v12168_v6, %v12167_v44  ;;  %v12170_v14 = vld [vmem:[#allocation101_spill] sm:$0xff] }
 0x655   :  { %12165 = vst [vmem:[#allocation25_spill] sm:$0xff] %v10709_v15  ;;  %v10712_v32 = vpop.eup %7338  ;;  %v3780_v17 = vsel %vm821_vm5, %v3779_v61, %v3778_v55  ;;  %v3781_v56 = vrot.slane %v10709_v15, 7  ;;  %7348 = vrcp.f32 %v4330_v35  ;;  %v3800_v46 = vadd.f32 %v3799_v37, %v3798_v10  ;;  %v12171_v61 = vld [vmem:[#allocation56_spill] sm:$0xff]  ;;  %v12172_v35 = vld [vmem:[#allocation103_spill] sm:$0xff]  ;;  %v6988_v55 = vpop.f32.mrf.mxu0  ;;  %v12178_v15 = vld [vmem:[#allocation14_spill] sm:$0xff] }
 0x656   :  { %12166 = vst [vmem:[#allocation26_spill] sm:$0xff] %v10712_v32  ;;  %v10716_v11 = vpop.eup %7340  ;;  %v3783_v4 = vrot.slane %v10712_v32, 6  ;;  %v3795_v25 = vadd.f32 %v3794_v57, %v3793_v34  ;;  %v3805_v58 = vsel %vm845_vm6, %v3780_v17, 0.0  ;;  %v10731_v34 = vadd.f32 %v12170_v14, %v12169_v43  ;;  %v3480_v57 = vpop.f32.mrf.mxu1 }
 0x657   :  { %v3782_v39 = vsel %vm815_vm2, %v3781_v56, %v10704_v42  ;;  %v3785_v40 = vrot.slane %v10716_v11, 5  ;;  %v3801_v38 = vrot.slane %v3800_v46, 2  ;;  %v3806_v0 = vrot.slane %v3805_v58, 4  ;;  %v3402_v27 = vpop.f32.mrf.mxu0 }
 0x658   :  { %v3784_v49 = vsel %vm818_vm4, %v3783_v4, %v3782_v39  ;;  %v3796_v24 = vrot.slane %v3795_v25, 1  ;;  %v10736_v37 = vadd.f32 %v12172_v35, %v12171_v61  ;;  %v12174_v39 = vld [vmem:[#allocation107_spill] sm:$0xff]  ;;  %v10753_v42 = vadd.f32 %v12178_v15, %v12171_v61 }
 0x659   :  { %v3786_v52 = vsel %vm821_vm5, %v3785_v40, %v3784_v49  ;;  %v3802_v51 = vadd.f32 %v3801_v38, %v3800_v46  ;;  %v3807_v36 = vadd.f32 %v3806_v0, %v3805_v58  ;;  %v12173_v58 = vld [vmem:[#allocation63_spill] sm:$0xff]  ;;  %vm7394_vm2 = vmmov 0  }
 0x65a   :  { %v3797_v10 = vadd.f32 %v3796_v24, %v3795_v25  ;;  %v3812_v50 = vsel %vm845_vm6, %v3786_v52, 0.0  ;;  %v10740_v40 = vadd.f32 %v12174_v39, %v12173_v58  ;;  %v12175_v38 = vld [vmem:[#allocation15_spill] sm:$0xff]  ;;  %v12176_v25 = vld [vmem:[#allocation18_spill] sm:$0xff] }
 0x65b   :  { %v3803_v17 = vrot.slane %v3802_v51, 1  ;;  %v3808_v56 = vrot.slane %v3807_v36, 2  ;;  %v3813_v46 = vrot.slane %v3812_v50, 4  ;;  %v10744_v0 = vadd.f32 %v12175_v38, %v12167_v44  ;;  %v12177_v52 = vld [vmem:[#allocation83_spill] sm:$0xff] }
 0x65c   :  { %v7343_v4 = vpop.eup %7342  ;;  %v10748_v49 = vadd.f32 %v12176_v25, %v12169_v43  ;;  %7350 = vrcp.f32 %v3797_v10  ;;  %v12179_v39 = vld [vmem:[#allocation19_spill] sm:$0xff]  ;;  %v10760_v38 = vadd.f32 %v6987_v2, %v12167_v44 }
 0x65d   :  { %v7345_v24 = vpop.eup %7344  ;;  %v4338_v6 = vrot.slane %v7343_v4, %v12177_v52  ;;  %v3804_v14 = vadd.f32 %v3803_v17, %v3802_v51  ;;  %v3809_v35 = vadd.f32 %v3808_v56, %v3807_v36  ;;  %v3814_v32 = vadd.f32 %v3813_v46, %v3812_v50  ;;  %v7004_v17 = vpop.f32.mrf.mxu1 }
 0x65e   :  { %v10757_v3 = vadd.f32 %v12179_v39, %v12173_v58  ;;  %v10763_v25 = vrot.slane %v7345_v24, %v12177_v52  ;;  %v10774_v4 = vadd.f32 %v3399_v26, %v12169_v43 }
 0x65f   :  { %v7347_v10 = vpop.eup %7346  ;;  %v4354_v51 = vmul.f32 %v10603_v7, %v4338_v6  ;;  %v3810_v36 = vrot.slane %v3809_v35, 1  ;;  %v3815_v50 = vrot.slane %v3814_v32, 2  ;;  %7352 = vrcp.f32 %v3804_v14 }
 0x660   :  { %v10767_v15 = vrot.slane %v7347_v10, %v12177_v52  ;;  %v4358_v56 = vmul.f32 %v10620_v21, %v10763_v25  ;;  %v4351_v2 = vmul.f32 %v10585_v30, %v4338_v6  ;;  %v4352_v46 = vmul.f32 %v10590_v63, %v4338_v6 }
 0x661   :  { %v3811_v24 = vadd.f32 %v3810_v36, %v3809_v35  ;;  %v3816_v39 = vadd.f32 %v3815_v50, %v3814_v32  ;;  %v4353_v7 = vmul.f32 %v10596_v5, %v4338_v6  ;;  %v10778_v14 = vadd.f32 %v6988_v55, %v12171_v61  ;;  %v3483_v32 = vpop.f32.mrf.mxu1 }
 0x662   :  { %v7349_v19 = vpop.eup %7348  ;;  %v10781_v10 = vadd.f32 %v3402_v27, %v12173_v58  ;;  %v4370_v21 = vrot.slane %v4351_v2, %v12177_v52  ;;  %v4374_v30 = vrot.slane %v4352_v46, %v12177_v52  ;;  %v4382_v26 = vrot.slane %v4354_v51, %v12177_v52 }
 0x663   :  { %v10786_v63 = vrot.slane %v7349_v19, %v12177_v52  ;;  %v3817_v35 = vrot.slane %v3816_v39, 1  ;;  %7354 = vrcp.f32 %v3811_v24  ;;  %v3489_v5 = vadd.f32 %v7003_v41, %v12167_v44 }
 0x664   :  { %v4362_v55 = vmul.f32 %v10635_v59, %v10767_v15  ;;  %v4398_v27 = vrot.slane %v4358_v56, %v12177_v52  ;;  %v10794_v6 = vadd.f32 %v3480_v57, %v12169_v43  ;;  %v4378_v50 = vrot.slane %v4353_v7, %v12177_v52 }
 0x665   :  { %v4366_v36 = vmul.f32 %v10652_v53, %v10786_v63  ;;  %v3818_v19 = vadd.f32 %v3817_v35, %v3816_v39  ;;  %v4431_v51 = vmul.f32 %v4370_v21, %v10727_v33  ;;  %v3492_v2 = vadd.f32 %v7004_v17, %v12171_v61 }
 0x666   :  { %v10802_v41 = vadd.f32 %v3483_v32, %v12173_v58  ;;  %v4432_v59 = vmul.f32 %v4370_v21, %v10736_v37  ;;  %v4433_v44 = vmul.f32 %v4374_v30, %v10744_v0  ;;  %v4437_v56 = vmul.f32 %v4382_v26, %v3489_v5 }
 0x667   :  { %7356 = vrcp.f32 %v3818_v19  ;;  %v4434_v43 = vmul.f32 %v4374_v30, %v10753_v42  ;;  %v4435_v53 = vmul.f32 %v4378_v50, %v10760_v38  ;;  %v4414_v57 = vrot.slane %v4362_v55, %v12177_v52 }
 0x668   :  { %v4436_v46 = vmul.f32 %v4378_v50, %v10778_v14  ;;  %v4463_v24 = vsel %vm577_vm1, %v4431_v51, 0.0  ;;  %v4464_v61 = vsel %vm577_vm1, %v4433_v44, 0.0  ;;  %v4430_v17 = vrot.slane %v4366_v36, %v12177_v52 }
 0x669   :  { %v7351_v58 = vpop.eup %7350  ;;  %v4445_v39 = vmul.f32 %v4398_v27, %v3489_v5  ;;  %v4438_v7 = vmul.f32 %v4382_v26, %v3492_v2  ;;  %v4465_v21 = vadd.f32 %v4464_v61, %v4463_v24  ;;  %v4466_v30 = vsel %vm577_vm1, %v4435_v53, 0.0 }
 0x66a   :  { %v3826_v35 = vrot.slane %v7351_v58, %v12177_v52  ;;  %v4470_v32 = vsel %vm577_vm1, %v4432_v59, 0.0  ;;  %v4471_v55 = vsel %vm577_vm1, %v4434_v43, 0.0  ;;  %v4468_v50 = vsel %vm577_vm1, %v4437_v56, 0.0 }
 0x66b   :  { %v4467_v19 = vadd.f32 %v4466_v30, %v4465_v21  ;;  %v4472_v51 = vadd.f32 %v4471_v55, %v4470_v32  ;;  %v4355_v44 = vmul.f32 %v10608_v45, %v10763_v25  ;;  %v4473_v26 = vsel %vm577_vm1, %v4436_v46, 0.0 }
 0x66c   :  { %v7353_v60 = vpop.eup %7352  ;;  %v3842_v36 = vmul.f32 %v10669_v62, %v3826_v35  ;;  %v4356_v24 = vmul.f32 %v10613_v22, %v10763_v25  ;;  %v4357_v59 = vmul.f32 %v10616_v54, %v10763_v25  ;;  %v4446_v58 = vmul.f32 %v4398_v27, %v3492_v2 }
 0x66d   :  { %v10827_v43 = vrot.slane %v7353_v60, %v12177_v52  ;;  %v4469_v53 = vadd.f32 %v4468_v50, %v4467_v19  ;;  %v4474_v56 = vadd.f32 %v4473_v26, %v4472_v51  ;;  %v4386_v61 = vrot.slane %v4355_v44, %v12177_v52 }
 0x66e   :  { %v4475_v45 = vsel %vm577_vm1, %v4438_v7, 0.0  ;;  %v4390_v62 = vrot.slane %v4356_v24, %v12177_v52  ;;  %v4394_v46 = vrot.slane %v4357_v59, %v12177_v52  ;;  %v10833_v21 = vmul.f32 %v4414_v57, %v3489_v5 }
 0x66f   :  { %v4476_v22 = vadd.f32 %v4475_v45, %v4474_v56  ;;  %v4439_v30 = vmul.f32 %v4386_v61, %v10727_v33  ;;  %v4440_v54 = vmul.f32 %v4386_v61, %v10736_v37  ;;  %v10837_v25 = vmul.f32 %v4430_v17, %v3489_v5 }
 0x670   :  { %v7355_v60 = vpop.eup %7354  ;;  %v10839_v32 = vmul.f32 %v4414_v57, %v3492_v2  ;;  %v4441_v27 = vmul.f32 %v4390_v62, %v10744_v0  ;;  %v4442_v7 = vmul.f32 %v4390_v62, %v10753_v42  ;;  %v3846_v55 = vmul.f32 %v10684_v47, %v10827_v43 }
 0x671   :  { %v3870_v19 = vrot.slane %v3842_v36, %v12177_v52  ;;  %v4520_v50 = vpack.c.bf16 %v4476_v22, %v4469_v53  ;;  %v4443_v51 = vmul.f32 %v4394_v46, %v10760_v38  ;;  %v10847_v44 = vmul.f32 %v4430_v17, %v3492_v2 }
 0x672   :  { %v4477_v26 = vsel %vm577_vm1, %v4439_v30, 0.0  ;;  %v4478_v5 = vsel %vm577_vm1, %v4441_v27, 0.0  ;;  %v4484_v57 = vsel %vm577_vm1, %v4440_v54, 0.0  ;;  %v10853_v24 = vrot.slane %v7355_v60, %v12177_v52 }
 0x673   :  { %7005 = vmatprep.subr.bf16.mxu0 %v4520_v50  ;;  %v4444_v59 = vmul.f32 %v4394_v46, %v10778_v14  ;;  %v4479_v47 = vadd.f32 %v4478_v5, %v4477_v26  ;;  %v4482_v36 = vsel %vm577_vm1, %v4445_v39, 0.0  ;;  %v4480_v56 = vsel %vm577_vm1, %v4443_v51, 0.0 }
 0x674   :  { %v7357_v53 = vpop.eup %7356  ;;  %v4485_v2 = vsel %vm577_vm1, %v4442_v7, 0.0  ;;  %v4489_v17 = vsel %vm577_vm1, %v4446_v58, 0.0  ;;  %7006 = vmatpush3.bf16.msra.mxu0 %v4520_v50  ;;  %v3839_v61 = vmul.f32 %v10660_v23, %v3826_v35  ;;  %v3886_v45 = vrot.slane %v3846_v55, %v12177_v52 }
 0x675   :  { %v3925_v62 = vmul.f32 %v3870_v19, %v10794_v6  ;;  %v4481_v22 = vadd.f32 %v4480_v56, %v4479_v47  ;;  %v4486_v30 = vadd.f32 %v4485_v2, %v4484_v57  ;;  %v3926_v46 = vmul.f32 %v3870_v19, %v10802_v41 }
 0x676   :  { %v3840_v39 = vmul.f32 %v10663_v9, %v3826_v35  ;;  %v3841_v54 = vmul.f32 %v10666_v20, %v3826_v35  ;;  %v3858_v60 = vrot.slane %v3839_v61, %v12177_v52  ;;  %v10868_v27 = vrot.slane %v7357_v53, %v12177_v52 }
 0x677   :  { %v3850_v23 = vmul.f32 %v10700_v8, %v10853_v24  ;;  %v4483_v58 = vadd.f32 %v4482_v36, %v4481_v22  ;;  %v4487_v7 = vsel %vm577_vm1, %v4444_v59, 0.0  ;;  %v3933_v20 = vmul.f32 %v3886_v45, %v10794_v6 }
 0x678   :  { %v4488_v55 = vadd.f32 %v4487_v7, %v4486_v30  ;;  %v3862_v50 = vrot.slane %v3840_v39, %v12177_v52  ;;  %v3866_v19 = vrot.slane %v3841_v54, %v12177_v52  ;;  %v3919_v9 = vmul.f32 %v3858_v60, %v10731_v34 }
 0x679   :  { %v3934_v35 = vmul.f32 %v3886_v45, %v10802_v41  ;;  %v3920_v51 = vmul.f32 %v3858_v60, %v10740_v40  ;;  %v3843_v26 = vmul.f32 %v10672_v28, %v10827_v43  ;;  %v10885_v47 = vrot.slane %v3850_v23, %v12177_v52 }
 0x67a   :  { %v4490_v8 = vadd.f32 %v4489_v17, %v4488_v55  ;;  %v3921_v5 = vmul.f32 %v3862_v50, %v10748_v49  ;;  %v3922_v57 = vmul.f32 %v3862_v50, %v10757_v3  ;;  %v3923_v59 = vmul.f32 %v3866_v19, %v10774_v4 }
 0x67b   :  { %v3924_v36 = vmul.f32 %v3866_v19, %v10781_v10  ;;  %v3951_v53 = vsel %vm577_vm1, %v3919_v9, 0.0  ;;  %v3956_v56 = vsel %vm577_vm1, %v3925_v62, 0.0  ;;  %v10892_v2 = vmul.f32 %v10716_v11, %v10868_v27 }
 0x67c   :  { %v4522_v28 = vpack.c.bf16 %v4490_v8, %v4483_v58  ;;  %v3952_v17 = vsel %vm577_vm1, %v3921_v5, 0.0  ;;  %v3958_v61 = vsel %vm577_vm1, %v3920_v51, 0.0  ;;  %v3959_v22 = vsel %vm577_vm1, %v3922_v57, 0.0 }
 0x67d   :  { %v3953_v45 = vadd.f32 %v3952_v17, %v3951_v53  ;;  %v3963_v30 = vsel %vm577_vm1, %v3926_v46, 0.0  ;;  %v3844_v39 = vmul.f32 %v10677_v29, %v10827_v43  ;;  %v3954_v62 = vsel %vm577_vm1, %v3923_v59, 0.0 }
 0x67e   :  { %7013 = vmatprep.subr.bf16.mxu1 %v4522_v28  ;;  %v3960_v54 = vadd.f32 %v3959_v22, %v3958_v61  ;;  %v3845_v11 = vmul.f32 %v10680_v31, %v10827_v43  ;;  %v3874_v60 = vrot.slane %v3843_v26, %v12177_v52  ;;  %v3961_v58 = vsel %vm577_vm1, %v3924_v36, 0.0 }
 0x67f   :  { %7014 = vmatpush3.bf16.msra.mxu1 %v4522_v28  ;;  %v3955_v23 = vadd.f32 %v3954_v62, %v3953_v45  ;;  %v3878_v7 = vrot.slane %v3844_v39, %v12177_v52  ;;  %v4359_v46 = vmul.f32 %v10623_v1, %v10767_v15  ;;  %v4360_v51 = vmul.f32 %v10628_v16, %v10767_v15 }
 0x680   :  { %v3962_v55 = vadd.f32 %v3961_v58, %v3960_v54  ;;  %v3882_v29 = vrot.slane %v3845_v11, %v12177_v52  ;;  %v3927_v50 = vmul.f32 %v3874_v60, %v10731_v34  ;;  %v3928_v19 = vmul.f32 %v3874_v60, %v10740_v40 }
 0x681   :  { %v3957_v9 = vadd.f32 %v3956_v56, %v3955_v23  ;;  %v3929_v31 = vmul.f32 %v3878_v7, %v10748_v49  ;;  %v3930_v43 = vmul.f32 %v3878_v7, %v10757_v3  ;;  %v4361_v53 = vmul.f32 %v10631_v12, %v10767_v15  ;;  %v10933_v15 = vld [vmem:[%s11639_s4 + $0x18] sm:$0xff]  }
 0x682   :  { %v3964_v26 = vadd.f32 %v3963_v30, %v3962_v55  ;;  %v3931_v8 = vmul.f32 %v3882_v29, %v10774_v4  ;;  %v3932_v1 = vmul.f32 %v3882_v29, %v10781_v10  ;;  %v3965_v5 = vsel %vm577_vm1, %v3927_v50, 0.0 }
 0x683   :  { %v3966_v57 = vsel %vm577_vm1, %v3929_v31, 0.0  ;;  %v3972_v59 = vsel %vm577_vm1, %v3928_v19, 0.0  ;;  %v3973_v36 = vsel %vm577_vm1, %v3930_v43, 0.0  ;;  %v4402_v45 = vrot.slane %v4359_v46, %v12177_v52 }
 0x684   :  { %v4519_v56 = vpack.c.bf16 %v3964_v26, %v3957_v9  ;;  %v3967_v28 = vadd.f32 %v3966_v57, %v3965_v5  ;;  %v3968_v16 = vsel %vm577_vm1, %v3931_v8, 0.0  ;;  %v3974_v17 = vadd.f32 %v3973_v36, %v3972_v59  ;;  %v12180_v57 = vld [vmem:[#allocation21_spill] sm:$0xff] }
 0x685   :  { %v3975_v61 = vsel %vm577_vm1, %v3932_v1, 0.0  ;;  %v4406_v22 = vrot.slane %v4360_v51, %v12177_v52  ;;  %v4410_v30 = vrot.slane %v4361_v53, %v12177_v52  ;;  %v3970_v62 = vsel %vm577_vm1, %v3933_v20, 0.0 }
 0x686   :  { %7007 = vmatprep.subr.bf16.mxu0 %v4519_v56  ;;  %v3969_v39 = vadd.f32 %v3968_v16, %v3967_v28  ;;  %v3976_v54 = vadd.f32 %v3975_v61, %v3974_v17  ;;  %v3977_v12 = vsel %vm577_vm1, %v3934_v35, 0.0  ;;  %v4447_v11 = vmul.f32 %v4402_v45, %v10727_v33  ;;  %v12182_v61 = vld [vmem:[#allocation20_spill] sm:$0xff] }
 0x687   :  { %7008 = vmatpush3.bf16.msra.mxu0 %v4519_v56  ;;  %v4448_v60 = vmul.f32 %v4402_v45, %v10736_v37  ;;  %v4449_v23 = vmul.f32 %v4406_v22, %v10744_v0  ;;  %v4450_v58 = vmul.f32 %v4406_v22, %v10753_v42  ;;  %v4451_v20 = vmul.f32 %v4410_v30, %v10760_v38 }
 0x688   :  { %v3971_v7 = vadd.f32 %v3970_v62, %v3969_v39  ;;  %v3978_v46 = vadd.f32 %v3977_v12, %v3976_v54  ;;  %v4452_v35 = vmul.f32 %v4410_v30, %v10778_v14  ;;  %v4491_v55 = vsel %vm577_vm1, %v4447_v11, 0.0 }
 0x689   :  { %v4492_v29 = vsel %vm577_vm1, %v4449_v23, 0.0  ;;  %v4498_v50 = vsel %vm577_vm1, %v4448_v60, 0.0  ;;  %v4499_v19 = vsel %vm577_vm1, %v4450_v58, 0.0  ;;  %v4494_v43 = vsel %vm577_vm1, %v4451_v20, 0.0 }
 0x68a   :  { %v4521_v9 = vpack.c.bf16 %v3978_v46, %v3971_v7  ;;  %v4493_v31 = vadd.f32 %v4492_v29, %v4491_v55  ;;  %v4500_v51 = vadd.f32 %v4499_v19, %v4498_v50  ;;  %7010 = vmatmul.mubr.msk.bf16.vlgmr.msra.gmra.mxu0 %vm202_vm0, %v10933_v15  ;;  %v4501_v26 = vsel %vm577_vm1, %v4452_v35, 0.0 }
 0x68b   :  { %v4363_v8 = vmul.f32 %v10638_v18, %v10786_v63  ;;  %v4364_v1 = vmul.f32 %v10643_v48, %v10786_v63  ;;  %v4365_v5 = vmul.f32 %v10648_v13, %v10786_v63  ;;  %7025 = vmatprep.mubr.msk.bf16.mxu0 %vm202_vm0, %v12180_v57  ;;  %v4496_v36 = vsel %vm577_vm1, %v10833_v21, 0.0  ;;  %v12181_v13 = vld [vmem:[#allocation23_spill] sm:$0xff]  ;;  %v12183_v21 = vld [vmem:[#allocation24_spill] sm:$0xff] }
 0x68c   :  { %7015 = vmatprep.subr.bf16.mxu1 %v4521_v9  ;;  %v4495_v59 = vadd.f32 %v4494_v43, %v4493_v31  ;;  %v4502_v53 = vadd.f32 %v4501_v26, %v4500_v51  ;;  %v4503_v56 = vsel %vm577_vm1, %v10839_v32, 0.0  ;;  %v3847_v63 = vmul.f32 %v12181_v13, %v10853_v24 }
 0x68d   :  { %7016 = vmatpush3.bf16.msra.mxu1 %v4521_v9  ;;  %v4418_v18 = vrot.slane %v4363_v8, %v12177_v52  ;;  %v4422_v48 = vrot.slane %v4364_v1, %v12177_v52  ;;  %v4426_v28 = vrot.slane %v4365_v5, %v12177_v52  ;;  %v3848_v45 = vmul.f32 %v12182_v61, %v10853_v24 }
 0x68e   :  { %v4497_v16 = vadd.f32 %v4496_v36, %v4495_v59  ;;  %v4504_v17 = vadd.f32 %v4503_v56, %v4502_v53  ;;  %v3849_v22 = vmul.f32 %v12183_v21, %v10853_v24  ;;  %v3890_v60 = vrot.slane %v3847_v63, %v12177_v52  ;;  %v12185_v63 = vld [vmem:[#allocation25_spill] sm:$0xff] }
 0x68f   :  { %v4455_v32 = vmul.f32 %v4418_v18, %v10727_v33  ;;  %v4456_v30 = vmul.f32 %v4418_v18, %v10736_v37  ;;  %v4457_v39 = vmul.f32 %v4422_v48, %v10744_v0  ;;  %v4458_v62 = vmul.f32 %v4422_v48, %v10753_v42  ;;  %v7391_v42 = vld [vmem:[%s11639_s4 + $0x10] sm:$0xff]   ;;  %v12184_v18 = vld [vmem:[#allocation22_spill] sm:$0xff] }
 0x690   :  { %v4524_v54 = vpack.c.bf16 %v4504_v17, %v4497_v16  ;;  %v4459_v12 = vmul.f32 %v4426_v28, %v10760_v38  ;;  %v4460_v11 = vmul.f32 %v4426_v28, %v10778_v14  ;;  %7018 = vmatmul.mubr.msk.bf16.vlgmr.msra.gmra.mxu1 %vm202_vm0, %v10933_v15  ;;  %v3894_v7 = vrot.slane %v3848_v45, %v12177_v52  ;;  %v12186_v17 = vld [vmem:[#allocation26_spill] sm:$0xff] }
 0x691   :  { %v4505_v24 = vsel %vm577_vm1, %v4455_v32, 0.0  ;;  %v4506_v33 = vsel %vm577_vm1, %v4457_v39, 0.0  ;;  %v4512_v37 = vsel %vm577_vm1, %v4456_v30, 0.0  ;;  %v4513_v0 = vsel %vm577_vm1, %v4458_v62, 0.0  ;;  %7033 = vmatprep.mubr.msk.bf16.mxu1 %vm202_vm0, %v7391_v42 }
 0x692   :  { %7021 = vmatprep.subr.bf16.mxu0 %v4524_v54  ;;  %v4507_v38 = vadd.f32 %v4506_v33, %v4505_v24  ;;  %v4508_v14 = vsel %vm577_vm1, %v4459_v12, 0.0  ;;  %v4514_v23 = vadd.f32 %v4513_v0, %v4512_v37  ;;  %v4515_v58 = vsel %vm577_vm1, %v4460_v11, 0.0 }
 0x693   :  { %7022 = vmatpush3.bf16.msra.mxu0 %v4524_v54  ;;  %v3898_v46 = vrot.slane %v3849_v22, %v12177_v52  ;;  %v3935_v20 = vmul.f32 %v3890_v60, %v10731_v34  ;;  %v3936_v35 = vmul.f32 %v3890_v60, %v10740_v40  ;;  %v4510_v29 = vsel %vm577_vm1, %v10837_v25, 0.0 }
 0x694   :  { %v4509_v55 = vadd.f32 %v4508_v14, %v4507_v38  ;;  %v4516_v50 = vadd.f32 %v4515_v58, %v4514_v23  ;;  %v4517_v19 = vsel %vm577_vm1, %v10847_v44, 0.0  ;;  %v3937_v9 = vmul.f32 %v3894_v7, %v10748_v49 }
 0x695   :  { %v3938_v31 = vmul.f32 %v3894_v7, %v10757_v3  ;;  %v3939_v43 = vmul.f32 %v3898_v46, %v10774_v4  ;;  %v3940_v51 = vmul.f32 %v3898_v46, %v10781_v10  ;;  %v3979_v1 = vsel %vm577_vm1, %v3935_v20, 0.0  ;;  %v11047_v20 = vld [vmem:[%s11642_s8 + $0x20] sm:$0xff]  }
 0x696   :  { %v4511_v26 = vadd.f32 %v4510_v29, %v4509_v55  ;;  %v4518_v8 = vadd.f32 %v4517_v19, %v4516_v50  ;;  %v3986_v5 = vsel %vm577_vm1, %v3936_v35, 0.0  ;;  %v3941_v25 = vmul.f32 %v10885_v47, %v10794_v6  ;;  %v12187_v29 = vld [vmem:[#allocation73_spill] sm:$0xff] }
 0x697   :  { %v3942_v44 = vmul.f32 %v10885_v47, %v10802_v41  ;;  %v3980_v57 = vsel %vm577_vm1, %v3937_v9, 0.0  ;;  %v3987_v59 = vsel %vm577_vm1, %v3938_v31, 0.0  ;;  %v3851_v48 = vmul.f32 %v12184_v18, %v10868_v27  ;;  %v12188_v9 = vld [vmem:[#allocation75_spill] sm:$0xff] }
 0x698   :  { %v4526_v36 = vpack.c.bf16 %v4518_v8, %v4511_v26  ;;  %v3981_v53 = vadd.f32 %v3980_v57, %v3979_v1  ;;  %v3988_v56 = vadd.f32 %v3987_v59, %v3986_v5  ;;  %v3982_v28 = vsel %vm577_vm1, %v3939_v43, 0.0  ;;  %v12189_v26 = vld [vmem:[#allocation67_spill] sm:$0xff]  ;;  %v12191_v5 = vld [vmem:[#allocation72_spill] sm:$0xff]  ;;  %v12192_v57 = vld [vmem:[#allocation66_spill] sm:$0xff] }
 0x699   :  { %v3989_v13 = vsel %vm577_vm1, %v3940_v51, 0.0  ;;  %v3852_v16 = vmul.f32 %v12185_v63, %v10868_v27  ;;  %v3853_v47 = vmul.f32 %v12186_v17, %v10868_v27  ;;  %v3918_v61 = vrot.slane %v10892_v2, %v12177_v52 }
 0x69a   :  { %7029 = vmatprep.subr.bf16.mxu1 %v4526_v36  ;;  %v3983_v45 = vadd.f32 %v3982_v28, %v3981_v53  ;;  %v3990_v21 = vadd.f32 %v3989_v13, %v3988_v56  ;;  %v3906_v22 = vrot.slane %v3851_v48, %v12177_v52  ;;  %v3984_v32 = vsel %vm577_vm1, %v3941_v25, 0.0  ;;  %v12193_v53 = vld [vmem:[#allocation82_spill] sm:$0xff]  ;;  %v12194_v13 = vld [vmem:[#allocation81_spill] sm:$0xff] }
 0x69b   :  { %7030 = vmatpush3.bf16.msra.mxu1 %v4526_v36  ;;  %v3991_v30 = vsel %vm577_vm1, %v3942_v44, 0.0  ;;  %v3910_v39 = vrot.slane %v3852_v16, %v12177_v52  ;;  %v3914_v62 = vrot.slane %v3853_v47, %v12177_v52  ;;  %v3949_v52 = vmul.f32 %v3918_v61, %v10794_v6 }
 0x69c   :  { %v3985_v54 = vadd.f32 %v3984_v32, %v3983_v45  ;;  %v3992_v12 = vadd.f32 %v3991_v30, %v3990_v21  ;;  %v3943_v27 = vmul.f32 %v3906_v22, %v10731_v34  ;;  %v3944_v2 = vmul.f32 %v3906_v22, %v10740_v40  ;;  %v12195_v45 = vld [vmem:[#allocation87_spill] sm:$0xff] }
 0x69d   :  { %v3945_v11 = vmul.f32 %v3910_v39, %v10748_v49  ;;  %v3946_v60 = vmul.f32 %v3910_v39, %v10757_v3  ;;  %v3947_v24 = vmul.f32 %v3914_v62, %v10774_v4  ;;  %v3948_v33 = vmul.f32 %v3914_v62, %v10781_v10  ;;  %v12196_v39 = vld [vmem:[#allocation100_spill] sm:$0xff] }
 0x69e   :  { %v4523_v37 = vpack.c.bf16 %v3992_v12, %v3985_v54  ;;  %v3993_v0 = vsel %vm577_vm1, %v3943_v27, 0.0  ;;  %v4000_v42 = vsel %vm577_vm1, %v3944_v2, 0.0  ;;  %v3950_v38 = vmul.f32 %v3918_v61, %v10802_v41  ;;  %v12197_v12 = vld [vmem:[#allocation86_spill] sm:$0xff] }
 0x69f   :  { %v3994_v34 = vsel %vm577_vm1, %v3945_v11, 0.0  ;;  %v4001_v40 = vsel %vm577_vm1, %v3946_v60, 0.0  ;;  %v3996_v4 = vsel %vm577_vm1, %v3947_v24, 0.0  ;;  %v4003_v10 = vsel %vm577_vm1, %v3948_v33, 0.0  ;;  %v12198_v60 = vld [vmem:[#allocation2_spill] sm:$0xff] }
 0x6a0   :  { %7023 = vmatprep.subr.bf16.mxu0 %v4523_v37  ;;  %v3995_v49 = vadd.f32 %v3994_v34, %v3993_v0  ;;  %v4002_v3 = vadd.f32 %v4001_v40, %v4000_v42  ;;  %v3998_v58 = vsel %vm577_vm1, %v3949_v52, 0.0  ;;  %v4005_v6 = vsel %vm577_vm1, %v3950_v38, 0.0 }
 0x6a1   :  { %7024 = vmatpush3.bf16.msra.mxu0 %v4523_v37 }
 0x6a2   :  { %v3997_v14 = vadd.f32 %v3996_v4, %v3995_v49  ;;  %v4004_v23 = vadd.f32 %v4003_v10, %v4002_v3 }
 0x6a4   :  { %v3999_v7 = vadd.f32 %v3998_v58, %v3997_v14  ;;  %v4006_v41 = vadd.f32 %v4005_v6, %v4004_v23  ;;  %7026 = vmatmul.mubr.msk.bf16.vlgmr.msra.gmra.mxu0 %vm202_vm0, %v10933_v15 }
 0x6a5   :  { %7041 = vmatprep.mubr.msk.bf16.mxu0 %vm202_vm0, %v11047_v20 }
 0x6a6   :  { %v4525_v46 = vpack.c.bf16 %v4006_v41, %v3999_v7 }
 0x6a8   :  { %7031 = vmatprep.subr.bf16.mxu1 %v4525_v46 }
 0x6a9   :  { %7032 = vmatpush3.bf16.msra.mxu1 %v4525_v46 }
 0x6ac   :  { %7034 = vmatmul.mubr.msk.bf16.vlgmr.msra.gmra.mxu1 %vm202_vm0, %v10933_v15  ;;  %v12190_v15 = vld [vmem:[#allocation74_spill] sm:$0xff] }
 0x74a   :  { %v7011_v35 = vpop.f32.mrf.mxu0 }
 0x74b   :  { %v4766_v31 = vadd.f32 %v7011_v35, %v12188_v9 }
 0x74c   :  { %v4577_v55 = vpop.f32.mrf.mxu0 }
 0x74d   :  { %v4764_v50 = vadd.f32 %v12187_v29, %v4577_v55  ;;  %v4782_v59 = vadd.f32 %v4766_v31, %v12192_v57 }
 0x74e   :  { %v7012_v19 = vpop.f32.mrf.mxu0 }
 0x74f   :  { %v4780_v8 = vadd.f32 %v4764_v50, %v12189_v26  ;;  %v4767_v1 = vadd.f32 %v7012_v19, %v12190_v15  ;;  %v4809_v61 = vsel %vm577_vm1, %v4782_v59, 0.0 }
 0x750   :  { %v7019_v43 = vpop.f32.mrf.mxu1  ;;  %v4580_v51 = vpop.f32.mrf.mxu0 }
 0x751   :  { %v4765_v25 = vadd.f32 %v12191_v5, %v4580_v51  ;;  %v4770_v48 = vadd.f32 %v7019_v43, %v12188_v9  ;;  %v4806_v28 = vsel %vm577_vm1, %v4780_v8, 0.0  ;;  %v4783_v63 = vadd.f32 %v4767_v1, %v12194_v13 }
 0x752   :  { %v4626_v44 = vpop.f32.mrf.mxu1 }
 0x753   :  { %v4768_v36 = vadd.f32 %v12187_v29, %v4626_v44  ;;  %v4781_v56 = vadd.f32 %v4765_v25, %v12193_v53  ;;  %v4786_v62 = vadd.f32 %v4770_v48, %v12196_v39  ;;  %v4811_v54 = vsel %vm577_vm1, %v4783_v63, 0.0 }
 0x754   :  { %v7020_v18 = vpop.f32.mrf.mxu1 }
 0x755   :  { %v4807_v16 = vsel %vm577_vm1, %v4781_v56, 0.0  ;;  %v4784_v21 = vadd.f32 %v4768_v36, %v12195_v45  ;;  %v4771_v22 = vadd.f32 %v7020_v18, %v12190_v15  ;;  %v4822_v42 = vsel %vm577_vm1, %v4786_v62, 0.0  ;;  %v12200_v18 = vld [vmem:[#allocation85_spill] sm:$0xff] }
 0x756   :  { %v4808_v17 = vadd.f32 %v4807_v16, %v4806_v28  ;;  %v4629_v47 = vpop.f32.mrf.mxu1 }
 0x757   :  { %v4769_v32 = vadd.f32 %v12191_v5, %v4629_v47  ;;  %v4819_v11 = vsel %vm577_vm1, %v4784_v21, 0.0  ;;  %v4787_v24 = vadd.f32 %v4771_v22, %v12198_v60  ;;  %v12201_v22 = vld [vmem:[#allocation71_spill] sm:$0xff] }
 0x758   :  { %v4810_v30 = vadd.f32 %v4809_v61, %v4808_v17 }
 0x759   :  { %v4785_v27 = vadd.f32 %v4769_v32, %v12197_v12  ;;  %v4824_v34 = vsel %vm577_vm1, %v4787_v24, 0.0 }
 0x75a   :  { %v4812_v2 = vadd.f32 %v4811_v54, %v4810_v30 }
 0x75b   :  { %v4820_v33 = vsel %vm577_vm1, %v4785_v27, 0.0 }
 0x75c   :  { %v4813_v37 = vrot.slane %v4812_v2, 4  ;;  %v4821_v0 = vadd.f32 %v4820_v33, %v4819_v11 }
 0x75e   :  { %v4814_v52 = vadd.f32 %v4813_v37, %v4812_v2  ;;  %v4823_v38 = vadd.f32 %v4822_v42, %v4821_v0  ;;  %v12202_v42 = vld [vmem:[#allocation84_spill] sm:$0xff] }
 0x760   :  { %v4815_v40 = vrot.slane %v4814_v52, 2  ;;  %v4825_v49 = vadd.f32 %v4824_v34, %v4823_v38 }
 0x762   :  { %v4816_v3 = vadd.f32 %v4815_v40, %v4814_v52  ;;  %v4826_v4 = vrot.slane %v4825_v49, 4 }
 0x764   :  { %v4817_v10 = vrot.slane %v4816_v3, 1  ;;  %v4827_v14 = vadd.f32 %v4826_v4, %v4825_v49  ;;  %v7027_v23 = vpop.f32.mrf.mxu0 }
 0x765   :  { %v4774_v1 = vadd.f32 %v7027_v23, %v12188_v9  ;;  %v12203_v23 = vld [vmem:[#allocation65_spill] sm:$0xff] }
 0x766   :  { %v4818_v58 = vadd.f32 %v4817_v10, %v4816_v3  ;;  %v4828_v6 = vrot.slane %v4827_v14, 2  ;;  %v4675_v7 = vpop.f32.mrf.mxu0 }
 0x767   :  { %v4772_v35 = vadd.f32 %v12187_v29, %v4675_v7  ;;  %v11105_v32 = vadd.f32 %v4774_v1, %v12201_v22 }
 0x768   :  { %v4858_v41 = vmul.f32 0.03125, %v4818_v58  ;;  %v4829_v46 = vadd.f32 %v4828_v6, %v4827_v14  ;;  %v7028_v55 = vpop.f32.mrf.mxu0 }
 0x769   :  { %v4775_v17 = vadd.f32 %v7028_v55, %v12190_v15 }
 0x76a   :  { %v11076_v50 = vsub.f32 %v4780_v8, %v4858_v41  ;;  %v11078_v19 = vsub.f32 %v4781_v56, %v4858_v41  ;;  %v11080_v31 = vsub.f32 %v4782_v59, %v4858_v41  ;;  %v11082_v43 = vsub.f32 %v4783_v63, %v4858_v41  ;;  %v4678_v51 = vpop.f32.mrf.mxu0  ;;  %v12199_v59 = vld [vmem:[#allocation80_spill] sm:$0xff] }
 0x76b   :  { %v4830_v26 = vrot.slane %v4829_v46, 1  ;;  %v4773_v25 = vadd.f32 %v12191_v5, %v4678_v51  ;;  %v11093_v53 = vadd.f32 %v4772_v35, %v12199_v59  ;;  %v4791_v52 = vadd.f32 %v4775_v17, %v12202_v42 }
 0x76c   :  { %v4878_v44 = vmul.f32 %v11076_v50, %v11076_v50  ;;  %v4879_v57 = vmul.f32 %v11078_v19, %v11078_v19  ;;  %v4880_v8 = vmul.f32 %v11080_v31, %v11080_v31  ;;  %v7035_v36 = vpop.f32.mrf.mxu1  ;;  %v4881_v28 = vmul.f32 %v11082_v43, %v11082_v43 }
 0x76d   :  { %v4831_v56 = vadd.f32 %v4830_v26, %v4829_v46  ;;  %v11096_v48 = vadd.f32 %v4773_v25, %v12200_v18  ;;  %v4832_v30 = vsel %vm577_vm1, %v11093_v53, 0.0  ;;  %v4837_v6 = vsel %vm577_vm1, %v4791_v52, 0.0  ;;  %v12204_v25 = vld [vmem:[#allocation6_spill] sm:$0xff] }
 0x76e   :  { %v4894_v13 = vsel %vm577_vm1, %v4878_v44, 0.0  ;;  %v4895_v63 = vsel %vm577_vm1, %v4879_v57, 0.0  ;;  %v4724_v16 = vpop.f32.mrf.mxu1  ;;  %v4897_v45 = vsel %vm577_vm1, %v4880_v8, 0.0  ;;  %v4899_v33 = vsel %vm577_vm1, %v4881_v28, 0.0  ;;  %v12205_v57 = vld [vmem:[#allocation61_spill] sm:$0xff] }
 0x76f   :  { %v4896_v47 = vadd.f32 %v4895_v63, %v4894_v13  ;;  %v4859_v61 = vmul.f32 0.03125, %v4831_v56  ;;  %v4833_v54 = vsel %vm577_vm1, %v11096_v48, 0.0  ;;  %v4776_v0 = vadd.f32 %v12187_v29, %v4724_v16  ;;  %v12206_v28 = vld [vmem:[#allocation53_spill] sm:$0xff] }
 0x770   :  { %v7036_v39 = vpop.f32.mrf.mxu1  ;;  %v4834_v40 = vadd.f32 %v4833_v54, %v4832_v30 }
 0x771   :  { %v4898_v12 = vadd.f32 %v4897_v45, %v4896_v47  ;;  %v11111_v2 = vsub.f32 %v4784_v21, %v4859_v61  ;;  %v11113_v11 = vsub.f32 %v4785_v27, %v4859_v61  ;;  %v11115_v60 = vsub.f32 %v4786_v62, %v4859_v61 }
 0x772   :  { %v11118_v37 = vsub.f32 %v4787_v24, %v4859_v61  ;;  %v4835_v62 = vsel %vm577_vm1, %v11105_v32, 0.0  ;;  %v4778_v24 = vadd.f32 %v7035_v36, %v12188_v9  ;;  %v4727_v49 = vpop.f32.mrf.mxu1  ;;  %v11136_v58 = vadd.f32 %v4776_v0, %v12203_v23 }
 0x773   :  { %v4900_v38 = vadd.f32 %v4899_v33, %v4898_v12  ;;  %v4882_v34 = vmul.f32 %v11111_v2, %v11111_v2  ;;  %v4883_v21 = vmul.f32 %v11113_v11, %v11113_v11  ;;  %v4884_v27 = vmul.f32 %v11115_v60, %v11115_v60 }
 0x774   :  { %v4885_v3 = vmul.f32 %v11118_v37, %v11118_v37  ;;  %v4836_v7 = vadd.f32 %v4835_v62, %v4834_v40  ;;  %v4779_v46 = vadd.f32 %v7036_v39, %v12190_v15  ;;  %v4777_v35 = vadd.f32 %v12191_v5, %v4727_v49 }
 0x775   :  { %v4901_v29 = vrot.slane %v4900_v38, 4  ;;  %v4907_v4 = vsel %vm577_vm1, %v4882_v34, 0.0  ;;  %v4908_v10 = vsel %vm577_vm1, %v4883_v21, 0.0  ;;  %v4910_v9 = vsel %vm577_vm1, %v4884_v27, 0.0 }
 0x776   :  { %v4909_v14 = vadd.f32 %v4908_v10, %v4907_v4  ;;  %v4838_v51 = vadd.f32 %v4837_v6, %v4836_v7  ;;  %v4912_v1 = vsel %vm577_vm1, %v4885_v3, 0.0  ;;  %v4794_v44 = vadd.f32 %v4778_v24, %v12204_v25 }
 0x777   :  { %v4902_v41 = vadd.f32 %v4901_v29, %v4900_v38  ;;  %v4793_v8 = vadd.f32 %v4777_v35, %v12205_v57  ;;  %v4845_v18 = vsel %vm577_vm1, %v11136_v58, 0.0  ;;  %v4795_v13 = vadd.f32 %v4779_v46, %v12206_v28 }
 0x778   :  { %v4911_v55 = vadd.f32 %v4910_v9, %v4909_v14  ;;  %v4839_v59 = vrot.slane %v4838_v51, 4  ;;  %v4848_v47 = vsel %vm577_vm1, %v4794_v44, 0.0 }
 0x779   :  { %v4903_v26 = vrot.slane %v4902_v41, 2  ;;  %v4846_v15 = vsel %vm577_vm1, %v4793_v8, 0.0  ;;  %v4850_v39 = vsel %vm577_vm1, %v4795_v13, 0.0 }
 0x77a   :  { %v4913_v36 = vadd.f32 %v4912_v1, %v4911_v55  ;;  %v4840_v63 = vadd.f32 %v4839_v59, %v4838_v51  ;;  %v4847_v16 = vadd.f32 %v4846_v15, %v4845_v18 }
 0x77b   :  { %v4904_v56 = vadd.f32 %v4903_v26, %v4902_v41 }
 0x77c   :  { %v4914_v5 = vrot.slane %v4913_v36, 4  ;;  %v4841_v45 = vrot.slane %v4840_v63, 2  ;;  %v4849_v22 = vadd.f32 %v4848_v47, %v4847_v16 }
 0x77d   :  { %v4905_v17 = vrot.slane %v4904_v56, 1 }
 0x77e   :  { %v4915_v61 = vadd.f32 %v4914_v5, %v4913_v36  ;;  %v4842_v12 = vadd.f32 %v4841_v45, %v4840_v63  ;;  %v4851_v33 = vadd.f32 %v4850_v39, %v4849_v22 }
 0x77f   :  { %v4906_v30 = vadd.f32 %v4905_v17, %v4904_v56 }
 0x780   :  { %v4916_v54 = vrot.slane %v4915_v61, 2  ;;  %v4843_v38 = vrot.slane %v4842_v12, 1  ;;  %v4852_v34 = vrot.slane %v4851_v33, 4 }
 0x781   :  { %v4946_v0 = vmul.f32 0.03125, %v4906_v30  ;;  %v12207_v30 = vld [vmem:[#allocation77_spill] sm:$0xff] }
 0x782   :  { %v4917_v42 = vadd.f32 %v4916_v54, %v4915_v61  ;;  %v4844_v62 = vadd.f32 %v4843_v38, %v4842_v12  ;;  %v4853_v24 = vadd.f32 %v4852_v34, %v4851_v33  ;;  %v12208_v12 = vld [vmem:[#allocation76_spill] sm:$0xff] }
 0x783   :  { %v4950_v21 = vadd.f32 1e-05, %v4946_v0  ;;  %v12209_v0 = vld [vmem:[#allocation40_spill] sm:$0xff] }
 0x784   :  { %v4918_v27 = vrot.slane %v4917_v42, 1  ;;  %v4860_v49 = vmul.f32 0.03125, %v4844_v62  ;;  %v4854_v29 = vrot.slane %v4853_v24, 2 }
 0x785   :  { %7358 = vrsqrt.f32 %v4950_v21  ;;  %v12211_v21 = vld [vmem:[#allocation79_spill] sm:$0xff] }
 0x786   :  { %v4919_v40 = vadd.f32 %v4918_v27, %v4917_v42  ;;  %v11152_v4 = vsub.f32 %v11093_v53, %v4860_v49  ;;  %v11155_v10 = vsub.f32 %v11096_v48, %v4860_v49  ;;  %v11158_v14 = vsub.f32 %v11105_v32, %v4860_v49 }
 0x787   :  { %v11160_v23 = vsub.f32 %v4791_v52, %v4860_v49  ;;  %v4855_v6 = vadd.f32 %v4854_v29, %v4853_v24  ;;  %v12212_v24 = vld [vmem:[#allocation78_spill] sm:$0xff]  ;;  %v12213_v49 = vld [vmem:[#allocation44_spill] sm:$0xff] }
 0x788   :  { %v4947_v3 = vmul.f32 0.03125, %v4919_v40  ;;  %v4886_v41 = vmul.f32 %v11152_v4, %v11152_v4  ;;  %v4887_v9 = vmul.f32 %v11155_v10, %v11155_v10  ;;  %v4888_v53 = vmul.f32 %v11158_v14, %v11158_v14 }
 0x789   :  { %v4856_v46 = vrot.slane %v4855_v6, 1  ;;  %v4889_v48 = vmul.f32 %v11160_v23, %v11160_v23 }
 0x78a   :  { %v4951_v7 = vadd.f32 1e-05, %v4947_v3  ;;  %v4920_v32 = vsel %vm577_vm1, %v4886_v41, 0.0  ;;  %v4921_v52 = vsel %vm577_vm1, %v4887_v9, 0.0  ;;  %v4923_v51 = vsel %vm577_vm1, %v4888_v53, 0.0  ;;  %v12214_v3 = vld [vmem:[#allocation43_spill] sm:$0xff] }
 0x78b   :  { %v4922_v35 = vadd.f32 %v4921_v52, %v4920_v32  ;;  %v4857_v55 = vadd.f32 %v4856_v46, %v4855_v6  ;;  %v4925_v25 = vsel %vm577_vm1, %v4889_v48, 0.0 }
 0x78c   :  { %7360 = vrsqrt.f32 %v4951_v7 }
 0x78d   :  { %v4924_v26 = vadd.f32 %v4923_v51, %v4922_v35  ;;  %v4861_v1 = vmul.f32 0.03125, %v4857_v55 }
 0x78f   :  { %v4926_v57 = vadd.f32 %v4925_v25, %v4924_v26  ;;  %v11175_v36 = vsub.f32 %v11136_v58, %v4861_v1  ;;  %v11177_v59 = vsub.f32 %v4793_v8, %v4861_v1  ;;  %v11179_v56 = vsub.f32 %v4794_v44, %v4861_v1 }
 0x790   :  { %v11181_v28 = vsub.f32 %v4795_v13, %v4861_v1 }
 0x791   :  { %v4927_v5 = vrot.slane %v4926_v57, 4  ;;  %v4890_v63 = vmul.f32 %v11175_v36, %v11175_v36  ;;  %v4891_v16 = vmul.f32 %v11177_v59, %v11177_v59  ;;  %v4892_v58 = vmul.f32 %v11179_v56, %v11179_v56 }
 0x792   :  { %v7359_v18 = vpop.eup %7358  ;;  %v4893_v8 = vmul.f32 %v11181_v28, %v11181_v28 }
 0x793   :  { %v4959_v15 = vmul.f32 %v7359_v18, %v11078_v19  ;;  %v4960_v44 = vmul.f32 %v7359_v18, %v11080_v31  ;;  %v4961_v13 = vmul.f32 %v7359_v18, %v11082_v43  ;;  %v4928_v17 = vadd.f32 %v4927_v5, %v4926_v57  ;;  %v12210_v31 = vld [vmem:[#allocation88_spill] sm:$0xff]  ;;  %v11238_v5 = vld [vmem:[%s11642_s8 + $0x28] sm:$0xff]  }
 0x794   :  { %v4933_v19 = vsel %vm577_vm1, %v4890_v63, 0.0  ;;  %v4934_v47 = vsel %vm577_vm1, %v4891_v16, 0.0  ;;  %v4958_v61 = vmul.f32 %v7359_v18, %v11076_v50  ;;  %v4936_v22 = vsel %vm577_vm1, %v4892_v58, 0.0 }
 0x795   :  { %v4935_v45 = vadd.f32 %v4934_v47, %v4933_v19  ;;  %v4996_v39 = vmul.f32 %v12207_v30, %v4960_v44  ;;  %v4929_v54 = vrot.slane %v4928_v17, 2  ;;  %v4997_v33 = vmul.f32 %v12208_v12, %v4961_v13  ;;  %v7179_v47 = vld [vmem:[%s11642_s8 + $0x38] sm:$0xff]  }
 0x796   :  { %v4994_v42 = vmul.f32 %v12209_v0, %v4958_v61  ;;  %v4995_v38 = vmul.f32 %v12210_v31, %v4959_v15  ;;  %v4938_v34 = vsel %vm577_vm1, %v4893_v8, 0.0  ;;  %v11249_v8 = vld [vmem:[%s11642_s8 + $0x30] sm:$0xff]  }
 0x797   :  { %v4937_v43 = vadd.f32 %v4936_v22, %v4935_v45  ;;  %v11204_v27 = vadd.f32 %v12211_v21, %v4996_v39  ;;  %v4930_v50 = vadd.f32 %v4929_v54, %v4928_v17  ;;  %v11207_v40 = vadd.f32 %v12212_v24, %v4997_v33 }
 0x798   :  { %v11210_v29 = vadd.f32 %v12213_v49, %v4994_v42  ;;  %v11213_v6 = vadd.f32 %v12214_v3, %v4995_v38 }
 0x799   :  { %v7361_v62 = vpop.eup %7360  ;;  %v4939_v41 = vadd.f32 %v4938_v34, %v4937_v43  ;;  %v4931_v46 = vrot.slane %v4930_v50, 1  ;;  %v5047_v48 = vpack.c.bf16 %v11207_v40, %v11204_v27 }
 0x79a   :  { %v4963_v7 = vmul.f32 %v7361_v62, %v11113_v11  ;;  %v4964_v9 = vmul.f32 %v7361_v62, %v11115_v60  ;;  %v4965_v53 = vmul.f32 %v7361_v62, %v11118_v37  ;;  %v4962_v32 = vmul.f32 %v7361_v62, %v11111_v2 }
 0x79b   :  { %v4940_v52 = vrot.slane %v4939_v41, 4  ;;  %v4932_v51 = vadd.f32 %v4931_v46, %v4930_v50  ;;  %7037 = vmatprep.subr.bf16.mxu0 %v5047_v48  ;;  %v5046_v11 = vpack.c.bf16 %v11213_v6, %v11210_v29 }
 0x79c   :  { %v5000_v35 = vmul.f32 %v12207_v30, %v4964_v9  ;;  %v5001_v55 = vmul.f32 %v12208_v12, %v4965_v53  ;;  %v4998_v60 = vmul.f32 %v12209_v0, %v4962_v32  ;;  %v4999_v37 = vmul.f32 %v12210_v31, %v4963_v7  ;;  %7038 = vmatpush3.bf16.msra.mxu0 %v5047_v48 }
 0x79d   :  { %v4941_v26 = vadd.f32 %v4940_v52, %v4939_v41  ;;  %v4948_v25 = vmul.f32 0.03125, %v4932_v51  ;;  %7039 = vmatprep.subr.bf16.mxu0 %v5046_v11 }
 0x79e   :  { %v11228_v1 = vadd.f32 %v12211_v21, %v5000_v35  ;;  %v11231_v2 = vadd.f32 %v12212_v24, %v5001_v55  ;;  %v11241_v63 = vadd.f32 %v12213_v49, %v4998_v60  ;;  %v11244_v16 = vadd.f32 %v12214_v3, %v4999_v37  ;;  %v12215_v55 = vld [vmem:[#allocation45_spill] sm:$0xff]  ;;  %v12216_v60 = vld [vmem:[#allocation91_spill] sm:$0xff] }
 0x79f   :  { %v4942_v57 = vrot.slane %v4941_v26, 2  ;;  %v4952_v18 = vadd.f32 1e-05, %v4948_v25 }
 0x7a0   :  { %v5049_v15 = vpack.c.bf16 %v11231_v2, %v11228_v1  ;;  %7040 = vmatpush3.bf16.msra.mxu0 %v5046_v11  ;;  %v5048_v13 = vpack.c.bf16 %v11244_v16, %v11241_v63 }
 0x7a1   :  { %v4943_v58 = vadd.f32 %v4942_v57, %v4941_v26  ;;  %7362 = vrsqrt.f32 %v4952_v18  ;;  %v12217_v26 = vld [vmem:[#allocation3_spill] sm:$0xff]  ;;  %v12218_v18 = vld [vmem:[#allocation92_spill] sm:$0xff] }
 0x7a2   :  { %7061 = vmatprep.subr.bf16.mxu0 %v5049_v15 }
 0x7a3   :  { %v4944_v44 = vrot.slane %v4943_v58, 1  ;;  %7042 = vmatmul.mubr.msk.bf16.vlgmr.msra.gmra.mxu0 %vm202_vm0, %v11238_v5 }
 0x7a4   :  { %7062 = vmatpush3.bf16.msra.mxu0 %v5049_v15  ;;  %7045 = vmatprep.mubr.msk.bf16.mxu0 %vm202_vm0, %v11249_v8 }
 0x7a5   :  { %v4945_v17 = vadd.f32 %v4944_v44, %v4943_v58  ;;  %7063 = vmatprep.subr.bf16.mxu0 %v5048_v13 }
 0x7a7   :  { %v4949_v19 = vmul.f32 0.03125, %v4945_v17  ;;  %v12220_v17 = vld [vmem:[#allocation93_spill] sm:$0xff] }
 0x7a8   :  { %7064 = vmatpush3.bf16.msra.mxu0 %v5048_v13 }
 0x7a9   :  { %v4953_v61 = vadd.f32 1e-05, %v4949_v19 }
 0x7ab   :  { %7364 = vrsqrt.f32 %v4953_v61  ;;  %7046 = vmatmul.mubr.msk.bf16.gmra.mxu0 %vm202_vm0, %v7179_v47 }
 0x7ac   :  { %7065 = vmatprep.mubr.msk.bf16.mxu0 %vm202_vm0, %v11047_v20 }
 0x7ae   :  { %v7363_v45 = vpop.eup %7362 }
 0x7af   :  { %v4967_v22 = vmul.f32 %v7363_v45, %v11155_v10  ;;  %v4968_v39 = vmul.f32 %v7363_v45, %v11158_v14  ;;  %v4969_v54 = vmul.f32 %v7363_v45, %v11160_v23  ;;  %v4966_v33 = vmul.f32 %v7363_v45, %v11152_v4 }
 0x7b1   :  { %v5004_v42 = vmul.f32 %v12207_v30, %v4968_v39  ;;  %v5005_v38 = vmul.f32 %v12208_v12, %v4969_v54  ;;  %v5002_v43 = vmul.f32 %v12209_v0, %v4966_v33  ;;  %v5003_v34 = vmul.f32 %v12210_v31, %v4967_v22  ;;  %v12221_v54 = vld [vmem:[#allocation47_spill] sm:$0xff] }
 0x7b3   :  { %v11272_v62 = vadd.f32 %v12211_v21, %v5004_v42  ;;  %v11275_v50 = vadd.f32 %v12212_v24, %v5005_v38  ;;  %7066 = vmatmul.mubr.msk.bf16.vlgmr.msra.gmra.mxu0 %vm202_vm0, %v11238_v5  ;;  %v11280_v10 = vadd.f32 %v12213_v49, %v5002_v43  ;;  %v11283_v4 = vadd.f32 %v12214_v3, %v5003_v34  ;;  %v12222_v34 = vld [vmem:[#allocation48_spill] sm:$0xff] }
 0x7b4   :  { %7069 = vmatprep.mubr.msk.bf16.mxu0 %vm202_vm0, %v11249_v8 }
 0x7b5   :  { %v5051_v14 = vpack.c.bf16 %v11275_v50, %v11272_v62  ;;  %v5050_v7 = vpack.c.bf16 %v11283_v4, %v11280_v10 }
 0x7b7   :  { %7085 = vmatprep.subr.bf16.mxu0 %v5051_v14 }
 0x7b8   :  { %v7365_v23 = vpop.eup %7364  ;;  %7086 = vmatpush3.bf16.msra.mxu0 %v5051_v14 }
 0x7b9   :  { %v4971_v41 = vmul.f32 %v7365_v23, %v11177_v59  ;;  %v4972_v9 = vmul.f32 %v7365_v23, %v11179_v56  ;;  %v4973_v53 = vmul.f32 %v7365_v23, %v11181_v28  ;;  %v4970_v46 = vmul.f32 %v7365_v23, %v11175_v36  ;;  %7087 = vmatprep.subr.bf16.mxu0 %v5050_v7 }
 0x7bb   :  { %v5008_v48 = vmul.f32 %v12207_v30, %v4972_v9  ;;  %v5009_v32 = vmul.f32 %v12208_v12, %v4973_v53  ;;  %7070 = vmatmul.mubr.msk.bf16.gmra.mxu0 %vm202_vm0, %v7179_v47  ;;  %v5006_v52 = vmul.f32 %v12209_v0, %v4970_v46  ;;  %v5007_v35 = vmul.f32 %v12210_v31, %v4971_v41  ;;  %v11333_v0 = vld [vmem:[%s11643_s10 + $0x10] sm:$0xff]  }
 0x7bc   :  { %7088 = vmatpush3.bf16.msra.mxu0 %v5050_v7  ;;  %7089 = vmatprep.mubr.msk.bf16.mxu0 %vm202_vm0, %v11047_v20 }
 0x7bd   :  { %v11301_v59 = vadd.f32 %v12211_v21, %v5008_v48  ;;  %v11304_v56 = vadd.f32 %v12212_v24, %v5009_v32  ;;  %v11311_v28 = vadd.f32 %v12213_v49, %v5006_v52  ;;  %v11314_v30 = vadd.f32 %v12214_v3, %v5007_v35  ;;  %7057 = vmatprep.mubr.msk.bf16.mxu1 %vm2286_vm9, %v11333_v0 }
 0x7bf   :  { %v5053_v36 = vpack.c.bf16 %v11304_v56, %v11301_v59  ;;  %v5052_v12 = vpack.c.bf16 %v11314_v30, %v11311_v28 }
 0x7c1   :  { %7109 = vmatprep.subr.bf16.mxu0 %v5053_v36 }
 0x7c3   :  { %7090 = vmatmul.mubr.msk.bf16.vlgmr.msra.gmra.mxu0 %vm202_vm0, %v11238_v5 }
 0x7c4   :  { %7110 = vmatpush3.bf16.msra.mxu0 %v5053_v36  ;;  %7093 = vmatprep.mubr.msk.bf16.mxu0 %vm202_vm0, %v11249_v8 }
 0x7c5   :  { %7111 = vmatprep.subr.bf16.mxu0 %v5052_v12 }
 0x7c8   :  { %7112 = vmatpush3.bf16.msra.mxu0 %v5052_v12 }
 0x7cb   :  { %7094 = vmatmul.mubr.msk.bf16.gmra.mxu0 %vm202_vm0, %v7179_v47 }
 0x7cc   :  { %7113 = vmatprep.mubr.msk.bf16.mxu0 %vm202_vm0, %v11047_v20 }
 0x7d3   :  { %7114 = vmatmul.mubr.msk.bf16.vlgmr.msra.gmra.mxu0 %vm202_vm0, %v11238_v5 }
 0x7d4   :  { %7117 = vmatprep.mubr.msk.bf16.mxu0 %vm202_vm0, %v11249_v8  ;;  %v12219_v8 = vld [vmem:[#allocation46_spill] sm:$0xff] }
 0x7db   :  { %7118 = vmatmul.mubr.msk.bf16.gmra.mxu0 %vm202_vm0, %v7179_v47 }
 0x863   :  { %v7043_v31 = vpop.f32.mrf.mxu0 }
 0x864   :  { %v5192_v19 = vadd.f32 %v7043_v31, %v12220_v17 }
 0x865   :  { %v5183_v21 = vpop.f32.mrf.mxu0 }
 0x866   :  { %v5216_v43 = vmax.f32 %v5192_v19, 0.0  ;;  %v5184_v14 = vadd.f32 %v5183_v21, %v12222_v34 }
 0x867   :  { %v7044_v24 = vpop.f32.mrf.mxu0 }
 0x868   :  { %v5195_v15 = vadd.f32 %v7044_v24, %v12218_v18  ;;  %v5214_v53 = vmax.f32 %v5184_v14, 0.0 }
 0x869   :  { %v5186_v20 = vpop.f32.mrf.mxu0 }
 0x86a   :  { %v5217_v39 = vmax.f32 %v5195_v15, 0.0  ;;  %v5187_v33 = vadd.f32 %v5186_v20, %v12221_v54 }
 0x86b   :  { %v7047_v49 = vpop.f32.mrf.mxu0 }
 0x86c   :  { %v5208_v51 = vadd.f32 %v7047_v49, %v12215_v55  ;;  %v5223_v7 = vpack.c.bf16 %v5217_v39, %v5216_v43  ;;  %v5215_v41 = vmax.f32 %v5187_v33, 0.0  ;;  %v11353_v49 = vld [vmem:[%s11643_s10 + $0x18] sm:$0xff]  }
 0x86d   :  { %v5199_v3 = vpop.f32.mrf.mxu0 }
 0x86e   :  { %v5200_v37 = vadd.f32 %v5199_v3, %v12216_v60  ;;  %v5220_v5 = vmax.f32 %v5208_v51, 0.0  ;;  %v5222_v48 = vpack.c.bf16 %v5215_v41, %v5214_v53 }
 0x86f   :  { %v7048_v11 = vpop.f32.mrf.mxu0 }
 0x870   :  { %v5211_v25 = vadd.f32 %v7048_v11, %v12217_v26  ;;  %v5218_v47 = vmax.f32 %v5200_v37, 0.0 }
 0x871   :  { %v5202_v57 = vpop.f32.mrf.mxu0 }
 0x872   :  { %v5221_v58 = vmax.f32 %v5211_v25, 0.0  ;;  %v5203_v44 = vadd.f32 %v5202_v57, %v12219_v8 }
 0x873   :  { %v7067_v13 = vpop.f32.mrf.mxu0 }
 0x874   :  { %v5225_v61 = vpack.c.bf16 %v5221_v58, %v5220_v5  ;;  %v5219_v45 = vmax.f32 %v5203_v44, 0.0  ;;  %v5334_v51 = vadd.f32 %v7067_v13, %v12220_v17 }
 0x875   :  { %v5325_v22 = vpop.f32.mrf.mxu0 }
 0x876   :  { %v5224_v42 = vpack.c.bf16 %v5219_v45, %v5218_v47  ;;  %7049 = vmatprep.subr.bf16.mxu1 %v5225_v61  ;;  %v5358_v19 = vmax.f32 %v5334_v51, 0.0  ;;  %v5326_v13 = vadd.f32 %v5325_v22, %v12222_v34 }
 0x877   :  { %7050 = vmatpush3.bf16.msra.mxu1 %v5225_v61  ;;  %v7068_v38 = vpop.f32.mrf.mxu0 }
 0x878   :  { %7051 = vmatprep.subr.bf16.mxu1 %v5224_v42  ;;  %v5337_v31 = vadd.f32 %v7068_v38, %v12218_v18  ;;  %v5356_v33 = vmax.f32 %v5326_v13, 0.0 }
 0x879   :  { %v5328_v23 = vpop.f32.mrf.mxu0 }
 0x87a   :  { %v5359_v15 = vmax.f32 %v5337_v31, 0.0  ;;  %v5329_v5 = vadd.f32 %v5328_v23, %v12221_v54 }
 0x87b   :  { %7052 = vmatpush3.bf16.msra.mxu1 %v5224_v42  ;;  %v7071_v9 = vpop.f32.mrf.mxu0 }
 0x87c   :  { %7053 = vmatprep.subr.bf16.mxu1 %v5223_v7  ;;  %v5350_v32 = vadd.f32 %v7071_v9, %v12215_v55  ;;  %v5365_v61 = vpack.c.bf16 %v5359_v15, %v5358_v19  ;;  %v5357_v45 = vmax.f32 %v5329_v5, 0.0 }
 0x87d   :  { %v5341_v46 = vpop.f32.mrf.mxu0 }
 0x87e   :  { %v5342_v35 = vadd.f32 %v5341_v46, %v12216_v60  ;;  %v5362_v21 = vmax.f32 %v5350_v32, 0.0  ;;  %v5364_v38 = vpack.c.bf16 %v5357_v45, %v5356_v33 }
 0x87f   :  { %7054 = vmatpush3.bf16.msra.mxu1 %v5223_v7  ;;  %v7072_v52 = vpop.f32.mrf.mxu0 }
 0x880   :  { %v5353_v36 = vadd.f32 %v7072_v52, %v12217_v26  ;;  %7055 = vmatprep.subr.bf16.mxu1 %v5222_v48  ;;  %v5360_v11 = vmax.f32 %v5342_v35, 0.0 }
 0x881   :  { %v5344_v12 = vpop.f32.mrf.mxu0 }
 0x882   :  { %v5363_v24 = vmax.f32 %v5353_v36, 0.0  ;;  %v5345_v20 = vadd.f32 %v5344_v12, %v12219_v8 }
 0x883   :  { %7056 = vmatpush3.bf16.msra.mxu1 %v5222_v48  ;;  %v7091_v3 = vpop.f32.mrf.mxu0 }
 0x884   :  { %v5367_v37 = vpack.c.bf16 %v5363_v24, %v5362_v21  ;;  %v5361_v25 = vmax.f32 %v5345_v20, 0.0  ;;  %v5460_v32 = vadd.f32 %v7091_v3, %v12220_v17 }
 0x885   :  { %v5451_v57 = vpop.f32.mrf.mxu0 }
 0x886   :  { %v5366_v58 = vpack.c.bf16 %v5361_v25, %v5360_v11  ;;  %7058 = vmatmul.mubr.msk.bf16.vlgmr.msra.gmra.mxu1 %vm2286_vm9, %v11353_v49  ;;  %7073 = vmatprep.subr.bf16.mxu1 %v5367_v37  ;;  %v5484_v51 = vmax.f32 %v5460_v32, 0.0  ;;  %v5452_v3 = vadd.f32 %v5451_v57, %v12222_v34  ;;  %v12223_v32 = vld [vmem:[#allocation94_spill] sm:$0xff] }
 0x887   :  { %7074 = vmatpush3.bf16.msra.mxu1 %v5367_v37  ;;  %v7092_v44 = vpop.f32.mrf.mxu0  ;;  %7081 = vmatprep.mubr.msk.bf16.mxu1 %vm2286_vm9, %v11333_v0 }
 0x888   :  { %7075 = vmatprep.subr.bf16.mxu1 %v5366_v58  ;;  %v5463_v41 = vadd.f32 %v7092_v44, %v12218_v18  ;;  %v5482_v5 = vmax.f32 %v5452_v3, 0.0 }
 0x889   :  { %v5454_v47 = vpop.f32.mrf.mxu0 }
 0x88a   :  { %v5485_v31 = vmax.f32 %v5463_v41, 0.0  ;;  %v5455_v21 = vadd.f32 %v5454_v47, %v12221_v54 }
 0x88b   :  { %7076 = vmatpush3.bf16.msra.mxu1 %v5366_v58  ;;  %v7095_v39 = vpop.f32.mrf.mxu0 }
 0x88c   :  { %7077 = vmatprep.subr.bf16.mxu1 %v5365_v61  ;;  %v5476_v43 = vadd.f32 %v7095_v39, %v12215_v55  ;;  %v5491_v37 = vpack.c.bf16 %v5485_v31, %v5484_v51  ;;  %v5483_v25 = vmax.f32 %v5455_v21, 0.0  ;;  %v12225_v31 = vld [vmem:[#allocation58_spill] sm:$0xff] }
 0x88d   :  { %v5467_v42 = vpop.f32.mrf.mxu0 }
 0x88e   :  { %v5468_v23 = vadd.f32 %v5467_v42, %v12216_v60  ;;  %v5488_v9 = vmax.f32 %v5476_v43, 0.0  ;;  %v5490_v44 = vpack.c.bf16 %v5483_v25, %v5482_v5 }
 0x88f   :  { %7078 = vmatpush3.bf16.msra.mxu1 %v5365_v61  ;;  %v7096_v14 = vpop.f32.mrf.mxu0 }
 0x890   :  { %v5479_v7 = vadd.f32 %v7096_v14, %v12217_v26  ;;  %7079 = vmatprep.subr.bf16.mxu1 %v5364_v38  ;;  %v5486_v52 = vmax.f32 %v5468_v23, 0.0 }
 0x891   :  { %v5470_v22 = vpop.f32.mrf.mxu0 }
 0x892   :  { %v5489_v53 = vmax.f32 %v5479_v7, 0.0  ;;  %v5471_v46 = vadd.f32 %v5470_v22, %v12219_v8 }
 0x893   :  { %7080 = vmatpush3.bf16.msra.mxu1 %v5364_v38  ;;  %v7115_v48 = vpop.f32.mrf.mxu0 }
 0x894   :  { %v5493_v35 = vpack.c.bf16 %v5489_v53, %v5488_v9  ;;  %v5487_v36 = vmax.f32 %v5471_v46, 0.0  ;;  %v5586_v38 = vadd.f32 %v7115_v48, %v12220_v17  ;;  %v7393_v9 = vmov 0.0  }
 0x895   :  { %v5577_v12 = vpop.f32.mrf.mxu0  ;;  %7133 = vmatprep.subr.bf16.mxu0 %v7393_v9  ;;  %7137 = vmatprep.mubr.msk.bf16.mxu0 %vm7394_vm2, %v7393_v9 }
 0x896   :  { %v5492_v24 = vpack.c.bf16 %v5487_v36, %v5486_v52  ;;  %7082 = vmatmul.mubr.msk.bf16.vlgmr.msra.gmra.mxu1 %vm2286_vm9, %v11353_v49  ;;  %7097 = vmatprep.subr.bf16.mxu1 %v5493_v35 }
 0x897   :  { %7098 = vmatpush3.bf16.msra.mxu1 %v5493_v35  ;;  %v7116_v20 = vpop.f32.mrf.mxu0  ;;  %7105 = vmatprep.mubr.msk.bf16.mxu1 %vm2286_vm9, %v11333_v0 }
 0x898   :  { %7099 = vmatprep.subr.bf16.mxu1 %v5492_v24  ;;  %v5589_v45 = vadd.f32 %v7116_v20, %v12218_v18  ;;  %v5578_v18 = vadd.f32 %v5577_v12, %v12222_v34  ;;  %v12226_v20 = vld [vmem:[#allocation95_spill] sm:$0xff] }
 0x899   :  { %v5580_v11 = vpop.f32.mrf.mxu0 }
 0x89a   :  { %v5611_v23 = vmax.f32 %v5589_v45, 0.0  ;;  %v5581_v7 = vadd.f32 %v5580_v11, %v12221_v54  ;;  %v5608_v22 = vmax.f32 %v5578_v18, 0.0 }
 0x89b   :  { %7100 = vmatpush3.bf16.msra.mxu1 %v5492_v24  ;;  %v7119_v15 = vpop.f32.mrf.mxu0 }
 0x89c   :  { %7101 = vmatprep.subr.bf16.mxu1 %v5491_v37  ;;  %v5602_v19 = vadd.f32 %v7119_v15, %v12215_v55  ;;  %v5609_v17 = vmax.f32 %v5581_v7, 0.0 }
 0x89d   :  { %v5593_v58 = vpop.f32.mrf.mxu0 }
 0x89e   :  { %v5594_v47 = vadd.f32 %v5593_v58, %v12216_v60  ;;  %v5614_v39 = vmax.f32 %v5602_v19, 0.0  ;;  %v5616_v41 = vpack.c.bf16 %v5609_v17, %v5608_v22 }
 0x89f   :  { %7102 = vmatpush3.bf16.msra.mxu1 %v5491_v37  ;;  %v7120_v13 = vpop.f32.mrf.mxu0 }
 0x8a0   :  { %v5605_v61 = vadd.f32 %v7120_v13, %v12217_v26  ;;  %7103 = vmatprep.subr.bf16.mxu1 %v5490_v44  ;;  %v5612_v43 = vmax.f32 %v5594_v47, 0.0  ;;  %v5610_v26 = vmax.f32 %v5586_v38, 0.0 }
 0x8a1   :  { %v5596_v57 = vpop.f32.mrf.mxu0 }
 0x8a2   :  { %v5615_v33 = vmax.f32 %v5605_v61, 0.0  ;;  %v5597_v42 = vadd.f32 %v5596_v57, %v12219_v8  ;;  %v5617_v8 = vpack.c.bf16 %v5611_v23, %v5610_v26 }
 0x8a3   :  { %7104 = vmatpush3.bf16.msra.mxu1 %v5490_v44 }
 0x8a4   :  { %v5619_v14 = vpack.c.bf16 %v5615_v33, %v5614_v39  ;;  %v5613_v55 = vmax.f32 %v5597_v42, 0.0 }
 0x8a6   :  { %v5618_v60 = vpack.c.bf16 %v5613_v55, %v5612_v43  ;;  %7106 = vmatmul.mubr.msk.bf16.vlgmr.msra.gmra.mxu1 %vm2286_vm9, %v11353_v49  ;;  %7121 = vmatprep.subr.bf16.mxu1 %v5619_v14 }
 0x8a7   :  { %7122 = vmatpush3.bf16.msra.mxu1 %v5619_v14  ;;  %7129 = vmatprep.mubr.msk.bf16.mxu1 %vm2286_vm9, %v11333_v0 }
 0x8a8   :  { %7123 = vmatprep.subr.bf16.mxu1 %v5618_v60 }
 0x8ab   :  { %7124 = vmatpush3.bf16.msra.mxu1 %v5618_v60 }
 0x8ac   :  { %7125 = vmatprep.subr.bf16.mxu1 %v5617_v8 }
 0x8af   :  { %7126 = vmatpush3.bf16.msra.mxu1 %v5617_v8 }
 0x8b0   :  { %7127 = vmatprep.subr.bf16.mxu1 %v5616_v41 }
 0x8b3   :  { %7128 = vmatpush3.bf16.msra.mxu1 %v5616_v41 }
 0x8b4   :  { %7141 = vmatprep.subr.bf16.mxu1 %v7393_v9 }
 0x8b6   :  { %7130 = vmatmul.mubr.msk.bf16.vlgmr.msra.gmra.mxu1 %vm2286_vm9, %v11353_v49  ;;  %v12224_v49 = vld [vmem:[#allocation96_spill] sm:$0xff] }
 0x8b7   :  { %7145 = vmatprep.mubr.msk.bf16.mxu1 %vm7394_vm2, %v7393_v9 }
 0x946   :  { %v7059_v54 = vpop.f32.mrf.mxu1 }
 0x947   :  { %v5671_v46 = vadd.f32 %v7059_v54, %v11204_v27 }
 0x948   :  { %v5276_v0 = vpop.f32.mrf.mxu1 }
 0x949   :  { %v5669_v34 = vadd.f32 %v5276_v0, %v11210_v29  ;;  %v5712_v12 = vadd.f32 %v12224_v49, %v5671_v46 }
 0x94a   :  { %v7060_v53 = vpop.f32.mrf.mxu1 }
 0x94b   :  { %v5710_v52 = vadd.f32 %v12223_v32, %v5669_v34  ;;  %v5672_v35 = vadd.f32 %v7060_v53, %v11207_v40  ;;  %v5739_v27 = vsel %vm577_vm1, %v5712_v12, 0.0 }
 0x94c   :  { %v5279_v48 = vpop.f32.mrf.mxu1 }
 0x94d   :  { %v5670_v36 = vadd.f32 %v5279_v48, %v11213_v6  ;;  %v5736_v24 = vsel %vm577_vm1, %v5710_v52, 0.0  ;;  %v5713_v51 = vadd.f32 %v12226_v20, %v5672_v35 }
 0x94f   :  { %v5711_v21 = vadd.f32 %v12225_v31, %v5670_v36  ;;  %v5741_v6 = vsel %vm577_vm1, %v5713_v51, 0.0 }
 0x951   :  { %v5737_v29 = vsel %vm577_vm1, %v5711_v21, 0.0 }
 0x952   :  { %v5738_v3 = vadd.f32 %v5737_v29, %v5736_v24 }
 0x954   :  { %v5740_v40 = vadd.f32 %v5739_v27, %v5738_v3 }
 0x956   :  { %v5742_v11 = vadd.f32 %v5741_v6, %v5740_v40  ;;  %v7083_v37 = vpop.f32.mrf.mxu1 }
 0x957   :  { %v5675_v19 = vadd.f32 %v7083_v37, %v11228_v1 }
 0x958   :  { %v5743_v25 = vrot.slane %v5742_v11, 4  ;;  %v5402_v15 = vpop.f32.mrf.mxu1 }
 0x959   :  { %v5673_v5 = vadd.f32 %v5402_v15, %v11241_v63  ;;  %v5716_v33 = vadd.f32 %v12224_v49, %v5675_v19 }
 0x95a   :  { %v5744_v58 = vadd.f32 %v5743_v25, %v5742_v11  ;;  %v7084_v44 = vpop.f32.mrf.mxu1 }
 0x95b   :  { %v5714_v61 = vadd.f32 %v12223_v32, %v5673_v5  ;;  %v5676_v39 = vadd.f32 %v7084_v44, %v11231_v2  ;;  %v5752_v23 = vsel %vm577_vm1, %v5716_v33, 0.0 }
 0x95c   :  { %v5745_v13 = vrot.slane %v5744_v58, 2  ;;  %v5405_v47 = vpop.f32.mrf.mxu1 }
 0x95d   :  { %v5674_v57 = vadd.f32 %v5405_v47, %v11244_v16  ;;  %v5749_v63 = vsel %vm577_vm1, %v5714_v61, 0.0  ;;  %v5717_v1 = vadd.f32 %v12226_v20, %v5676_v39 }
 0x95e   :  { %v5746_v45 = vadd.f32 %v5745_v13, %v5744_v58 }
 0x95f   :  { %v5715_v42 = vadd.f32 %v12225_v31, %v5674_v57  ;;  %v5754_v26 = vsel %vm577_vm1, %v5717_v1, 0.0 }
 0x960   :  { %v5747_v38 = vrot.slane %v5746_v45, 1 }
 0x961   :  { %v5750_v43 = vsel %vm577_vm1, %v5715_v42, 0.0 }
 0x962   :  { %v5748_v14 = vadd.f32 %v5747_v38, %v5746_v45  ;;  %v5751_v55 = vadd.f32 %v5750_v43, %v5749_v63 }
 0x964   :  { %v5788_v7 = vmul.f32 0.03125, %v5748_v14  ;;  %v5753_v16 = vadd.f32 %v5752_v23, %v5751_v55 }
 0x966   :  { %v11415_v60 = vsub.f32 %v5710_v52, %v5788_v7  ;;  %v11417_v2 = vsub.f32 %v5711_v21, %v5788_v7  ;;  %v7107_v18 = vpop.f32.mrf.mxu1  ;;  %v5755_v8 = vadd.f32 %v5754_v26, %v5753_v16  ;;  %v11420_v17 = vsub.f32 %v5712_v12, %v5788_v7 }
 0x967   :  { %v5679_v35 = vadd.f32 %v7107_v18, %v11272_v62  ;;  %v11430_v36 = vsub.f32 %v5713_v51, %v5788_v7 }
 0x968   :  { %v5808_v22 = vmul.f32 %v11415_v60, %v11415_v60  ;;  %v5809_v41 = vmul.f32 %v11417_v2, %v11417_v2  ;;  %v5528_v54 = vpop.f32.mrf.mxu1  ;;  %v5756_v0 = vrot.slane %v5755_v8, 4  ;;  %v5810_v12 = vmul.f32 %v11420_v17, %v11420_v17 }
 0x969   :  { %v5677_v34 = vadd.f32 %v5528_v54, %v11280_v10  ;;  %v11440_v6 = vadd.f32 %v12224_v49, %v5679_v35  ;;  %v5811_v51 = vmul.f32 %v11430_v36, %v11430_v36 }
 0x96a   :  { %v7108_v53 = vpop.f32.mrf.mxu1  ;;  %v5824_v46 = vsel %vm577_vm1, %v5808_v22, 0.0  ;;  %v5825_v48 = vsel %vm577_vm1, %v5809_v41, 0.0  ;;  %v5757_v52 = vadd.f32 %v5756_v0, %v5755_v8  ;;  %v5827_v11 = vsel %vm577_vm1, %v5810_v12, 0.0 }
 0x96b   :  { %v11435_v29 = vadd.f32 %v12223_v32, %v5677_v34  ;;  %v5680_v10 = vadd.f32 %v7108_v53, %v11275_v50  ;;  %v5826_v27 = vadd.f32 %v5825_v48, %v5824_v46  ;;  %v5765_v44 = vsel %vm577_vm1, %v11440_v6, 0.0 }
 0x96c   :  { %v5531_v21 = vpop.f32.mrf.mxu1  ;;  %v5758_v24 = vrot.slane %v5757_v52, 2  ;;  %v5829_v13 = vsel %vm577_vm1, %v5811_v51, 0.0 }
 0x96d   :  { %v5678_v3 = vadd.f32 %v5531_v21, %v11283_v4  ;;  %v5762_v25 = vsel %vm577_vm1, %v11435_v29, 0.0  ;;  %v5721_v50 = vadd.f32 %v12226_v20, %v5680_v10  ;;  %v5828_v15 = vadd.f32 %v5827_v11, %v5826_v27 }
 0x96e   :  { %v5759_v40 = vadd.f32 %v5758_v24, %v5757_v52 }
 0x96f   :  { %v11443_v62 = vadd.f32 %v12225_v31, %v5678_v3  ;;  %v5767_v57 = vsel %vm577_vm1, %v5721_v50, 0.0  ;;  %v5830_v45 = vadd.f32 %v5829_v13, %v5828_v15 }
 0x970   :  { %v5760_v37 = vrot.slane %v5759_v40, 1 }
 0x971   :  { %v5763_v4 = vsel %vm577_vm1, %v11443_v62, 0.0  ;;  %v5831_v8 = vrot.slane %v5830_v45, 4 }
 0x972   :  { %v5764_v5 = vadd.f32 %v5763_v4, %v5762_v25  ;;  %v5761_v58 = vadd.f32 %v5760_v37, %v5759_v40 }
 0x973   :  { %v5832_v21 = vadd.f32 %v5831_v8, %v5830_v45 }
 0x974   :  { %v5766_v19 = vadd.f32 %v5765_v44, %v5764_v5  ;;  %v5789_v47 = vmul.f32 0.03125, %v5761_v58 }
 0x975   :  { %v5833_v37 = vrot.slane %v5832_v21, 2 }
 0x976   :  { %v5768_v39 = vadd.f32 %v5767_v57, %v5766_v19  ;;  %v7131_v38 = vpop.f32.mrf.mxu1  ;;  %v11457_v63 = vsub.f32 %v5714_v61, %v5789_v47  ;;  %v11459_v43 = vsub.f32 %v5715_v42, %v5789_v47  ;;  %v11461_v14 = vsub.f32 %v5716_v33, %v5789_v47 }
 0x977   :  { %v11463_v55 = vsub.f32 %v5717_v1, %v5789_v47  ;;  %v5683_v54 = vadd.f32 %v7131_v38, %v11301_v59  ;;  %v5834_v19 = vadd.f32 %v5833_v37, %v5832_v21 }
 0x978   :  { %v5769_v23 = vrot.slane %v5768_v39, 4  ;;  %v5654_v7 = vpop.f32.mrf.mxu1  ;;  %v5812_v16 = vmul.f32 %v11457_v63, %v11457_v63  ;;  %v5813_v26 = vmul.f32 %v11459_v43, %v11459_v43  ;;  %v5814_v18 = vmul.f32 %v11461_v14, %v11461_v14 }
 0x979   :  { %v5681_v42 = vadd.f32 %v5654_v7, %v11311_v28  ;;  %v5815_v33 = vmul.f32 %v11463_v55, %v11463_v55  ;;  %v5724_v10 = vadd.f32 %v12224_v49, %v5683_v54 }
 0x97a   :  { %v5770_v61 = vadd.f32 %v5769_v23, %v5768_v39  ;;  %v7132_v22 = vpop.f32.mrf.mxu1  ;;  %v5837_v1 = vsel %vm577_vm1, %v5812_v16, 0.0  ;;  %v5838_v41 = vsel %vm577_vm1, %v5813_v26, 0.0  ;;  %v5840_v46 = vsel %vm577_vm1, %v5814_v18, 0.0 }
 0x97b   :  { %v5839_v0 = vadd.f32 %v5838_v41, %v5837_v1  ;;  %v5722_v48 = vadd.f32 %v12223_v32, %v5681_v42  ;;  %v5684_v52 = vadd.f32 %v7132_v22, %v11304_v56  ;;  %v5842_v24 = vsel %vm577_vm1, %v5815_v33, 0.0 }
 0x97c   :  { %v5771_v34 = vrot.slane %v5770_v61, 2  ;;  %v5657_v53 = vpop.f32.mrf.mxu1  ;;  %v5778_v25 = vsel %vm577_vm1, %v5724_v10, 0.0  ;;  %v5835_v23 = vrot.slane %v5834_v19, 1 }
 0x97d   :  { %v5682_v28 = vadd.f32 %v5657_v53, %v11314_v30  ;;  %v5841_v35 = vadd.f32 %v5840_v46, %v5839_v0  ;;  %v5775_v40 = vsel %vm577_vm1, %v5722_v48, 0.0  ;;  %v5725_v51 = vadd.f32 %v12226_v20, %v5684_v52 }
 0x97e   :  { %v5772_v12 = vadd.f32 %v5771_v34, %v5770_v61  ;;  %v5836_v22 = vadd.f32 %v5835_v23, %v5834_v19 }
 0x97f   :  { %v5723_v59 = vadd.f32 %v12225_v31, %v5682_v28  ;;  %v5843_v3 = vadd.f32 %v5842_v24, %v5841_v35  ;;  %v5780_v49 = vsel %vm577_vm1, %v5725_v51, 0.0 }
 0x980   :  { %v5773_v27 = vrot.slane %v5772_v12, 1  ;;  %v5876_v34 = vmul.f32 0.03125, %v5836_v22 }
 0x981   :  { %v5776_v32 = vsel %vm577_vm1, %v5723_v59, 0.0  ;;  %v5844_v56 = vrot.slane %v5843_v3, 4 }
 0x982   :  { %v5774_v11 = vadd.f32 %v5773_v27, %v5772_v12  ;;  %v5777_v30 = vadd.f32 %v5776_v32, %v5775_v40  ;;  %v5880_v12 = vadd.f32 1e-05, %v5876_v34 }
 0x983   :  { %v5845_v4 = vadd.f32 %v5844_v56, %v5843_v3 }
 0x984   :  { %v5790_v15 = vmul.f32 0.03125, %v5774_v11  ;;  %v5779_v5 = vadd.f32 %v5778_v25, %v5777_v30  ;;  %7366 = vrsqrt.f32 %v5880_v12  ;;  %v12233_v12 = vld [vmem:[#allocation90_spill] sm:$0xff] }
 0x985   :  { %v5846_v31 = vrot.slane %v5845_v4, 2 }
 0x986   :  { %v11490_v58 = vsub.f32 %v11435_v29, %v5790_v15  ;;  %v11493_v44 = vsub.f32 %v11443_v62, %v5790_v15  ;;  %v11496_v20 = vsub.f32 %v11440_v6, %v5790_v15  ;;  %v11498_v13 = vsub.f32 %v5721_v50, %v5790_v15 }
 0x987   :  { %v5781_v47 = vadd.f32 %v5780_v49, %v5779_v5  ;;  %v5847_v38 = vadd.f32 %v5846_v31, %v5845_v4 }
 0x988   :  { %v5816_v57 = vmul.f32 %v11490_v58, %v11490_v58  ;;  %v5817_v45 = vmul.f32 %v11493_v44, %v11493_v44  ;;  %v5818_v29 = vmul.f32 %v11496_v20, %v11496_v20  ;;  %v5819_v62 = vmul.f32 %v11498_v13, %v11498_v13 }
 0x989   :  { %v5782_v39 = vrot.slane %v5781_v47, 4  ;;  %v5848_v61 = vrot.slane %v5847_v38, 1 }
 0x98a   :  { %v5850_v6 = vsel %vm577_vm1, %v5816_v57, 0.0  ;;  %v5851_v50 = vsel %vm577_vm1, %v5817_v45, 0.0  ;;  %v5853_v26 = vsel %vm577_vm1, %v5818_v29, 0.0  ;;  %v5855_v42 = vsel %vm577_vm1, %v5819_v62, 0.0 }
 0x98b   :  { %v5852_v7 = vadd.f32 %v5851_v50, %v5850_v6  ;;  %v5783_v16 = vadd.f32 %v5782_v39, %v5781_v47  ;;  %v5849_v54 = vadd.f32 %v5848_v61, %v5847_v38 }
 0x98d   :  { %v5854_v18 = vadd.f32 %v5853_v26, %v5852_v7  ;;  %v5784_v8 = vrot.slane %v5783_v16, 2  ;;  %v5877_v28 = vmul.f32 0.03125, %v5849_v54  ;;  %v12229_v54 = vld [vmem:[#allocation97_spill] sm:$0xff] }
 0x98f   :  { %v5856_v33 = vadd.f32 %v5855_v42, %v5854_v18  ;;  %v5785_v1 = vadd.f32 %v5784_v8, %v5783_v16  ;;  %v5881_v56 = vadd.f32 1e-05, %v5877_v28  ;;  %v12227_v8 = vld [vmem:[#allocation69_spill] sm:$0xff] }
 0x990   :  { %v12232_v28 = vld [vmem:[#allocation89_spill] sm:$0xff] }
 0x991   :  { %v5857_v41 = vrot.slane %v5856_v33, 4  ;;  %v5786_v0 = vrot.slane %v5785_v1, 1  ;;  %7368 = vrsqrt.f32 %v5881_v56  ;;  %v7367_v29 = vpop.eup %7366 }
 0x992   :  { %v5889_v62 = vmul.f32 %v7367_v29, %v11417_v2  ;;  %v5890_v50 = vmul.f32 %v7367_v29, %v11420_v17  ;;  %v5891_v7 = vmul.f32 %v7367_v29, %v11430_v36  ;;  %v5888_v18 = vmul.f32 %v7367_v29, %v11415_v60 }
 0x993   :  { %v5858_v53 = vadd.f32 %v5857_v41, %v5856_v33  ;;  %v5787_v46 = vadd.f32 %v5786_v0, %v5785_v1  ;;  %v12228_v41 = vld [vmem:[#allocation98_spill] sm:$0xff] }
 0x994   :  { %v5925_v61 = vmul.f32 %v12227_v8, %v5889_v62  ;;  %v5926_v17 = vmul.f32 %v12228_v41, %v5890_v50  ;;  %v5927_v0 = vmul.f32 %v12229_v54, %v5891_v7 }
 0x995   :  { %v5859_v52 = vrot.slane %v5858_v53, 2  ;;  %v5791_v35 = vmul.f32 0.03125, %v5787_v46 }
 0x997   :  { %v5860_v21 = vadd.f32 %v5859_v52, %v5858_v53  ;;  %v11512_v24 = vsub.f32 %v5722_v48, %v5791_v35  ;;  %v11514_v3 = vsub.f32 %v5723_v59, %v5791_v35  ;;  %v11516_v27 = vsub.f32 %v5724_v10, %v5791_v35  ;;  %v12231_v53 = vld [vmem:[#allocation68_spill] sm:$0xff] }
 0x998   :  { %v11518_v40 = vsub.f32 %v5725_v51, %v5791_v35  ;;  %v5924_v46 = vmul.f32 %v12231_v53, %v5888_v18  ;;  %v5962_v35 = vadd.f32 %v12232_v28, %v5926_v17 }
 0x999   :  { %v5861_v32 = vrot.slane %v5860_v21, 1  ;;  %v5820_v11 = vmul.f32 %v11512_v24, %v11512_v24  ;;  %v5821_v30 = vmul.f32 %v11514_v3, %v11514_v3  ;;  %v5822_v37 = vmul.f32 %v11516_v27, %v11516_v27 }
 0x99a   :  { %v5823_v59 = vmul.f32 %v11518_v40, %v11518_v40 }
 0x99b   :  { %v5862_v48 = vadd.f32 %v5861_v32, %v5860_v21  ;;  %v5863_v10 = vsel %vm577_vm1, %v5820_v11, 0.0  ;;  %v5864_v51 = vsel %vm577_vm1, %v5821_v30, 0.0  ;;  %v5866_v15 = vsel %vm577_vm1, %v5822_v37, 0.0 }
 0x99c   :  { %v5865_v4 = vadd.f32 %v5864_v51, %v5863_v10  ;;  %v5868_v31 = vsel %vm577_vm1, %v5823_v59, 0.0  ;;  %v5963_v21 = vadd.f32 %v12233_v12, %v5927_v0 }
 0x99d   :  { %v5878_v25 = vmul.f32 0.03125, %v5862_v48  ;;  %v12234_v48 = vld [vmem:[#allocation60_spill] sm:$0xff] }
 0x99e   :  { %v5867_v5 = vadd.f32 %v5866_v15, %v5865_v4  ;;  %v7369_v38 = vpop.eup %7368  ;;  %v5990_v4 = vsel %vm577_vm1, %v5962_v35, 0.0  ;;  %v5997_v15 = vsel %vm577_vm1, %v5963_v21, 0.0 }
 0x99f   :  { %v5882_v49 = vadd.f32 1e-05, %v5878_v25  ;;  %v5893_v16 = vmul.f32 %v7369_v38, %v11459_v43  ;;  %v5894_v26 = vmul.f32 %v7369_v38, %v11461_v14  ;;  %v5895_v22 = vmul.f32 %v7369_v38, %v11463_v55  ;;  %v12230_v14 = vld [vmem:[#allocation59_spill] sm:$0xff] }
 0x9a0   :  { %v5869_v19 = vadd.f32 %v5868_v31, %v5867_v5  ;;  %v5892_v33 = vmul.f32 %v7369_v38, %v11457_v63  ;;  %v5961_v34 = vadd.f32 %v12230_v14, %v5925_v61 }
 0x9a1   :  { %7370 = vrsqrt.f32 %v5882_v49  ;;  %v5929_v36 = vmul.f32 %v12227_v8, %v5893_v16  ;;  %v5930_v43 = vmul.f32 %v12228_v41, %v5894_v26  ;;  %v5931_v60 = vmul.f32 %v12229_v54, %v5895_v22 }
 0x9a2   :  { %v5870_v47 = vrot.slane %v5869_v19, 4  ;;  %v5928_v52 = vmul.f32 %v12231_v53, %v5892_v33  ;;  %v5983_v37 = vsel %vm577_vm1, %v5961_v34, 0.0  ;;  %v6018_v59 = vsel %vm577_vm1, %v5961_v34, -inf }
 0x9a3   :  { %v5965_v32 = vadd.f32 %v12230_v14, %v5929_v36  ;;  %v5966_v30 = vadd.f32 %v12232_v28, %v5930_v43 }
 0x9a4   :  { %v5871_v57 = vadd.f32 %v5870_v47, %v5869_v19  ;;  %v5964_v25 = vadd.f32 %v12234_v48, %v5928_v52 }
 0x9a5   :  { %v5984_v5 = vsel %vm577_vm1, %v5965_v32, 0.0  ;;  %v6026_v31 = vsel %vm577_vm1, %v5966_v30, -inf  ;;  %v6019_v47 = vsel %vm577_vm1, %v5965_v32, -inf }
 0x9a6   :  { %v5872_v45 = vrot.slane %v5871_v57, 2  ;;  %v6012_v62 = vsel %vm577_vm1, %v5964_v25, -inf  ;;  %v5985_v50 = vadd.f32 %v5984_v5, %v5983_v37 }
 0x9a8   :  { %v5873_v39 = vadd.f32 %v5872_v45, %v5871_v57  ;;  %v5991_v45 = vsel %vm577_vm1, %v5966_v30, 0.0 }
 0x9a9   :  { %v5992_v22 = vadd.f32 %v5991_v45, %v5990_v4 }
 0x9aa   :  { %v5874_v6 = vrot.slane %v5873_v39, 1 }
 0x9ac   :  { %v5875_v23 = vadd.f32 %v5874_v6, %v5873_v39  ;;  %v5977_v6 = vsel %vm577_vm1, %v5964_v25, 0.0 }
 0x9ae   :  { %v5879_v42 = vmul.f32 0.03125, %v5875_v23  ;;  %v7371_v2 = vpop.eup %7370 }
 0x9af   :  { %v5898_v55 = vmul.f32 %v7371_v2, %v11496_v20  ;;  %v5899_v63 = vmul.f32 %v7371_v2, %v11498_v13  ;;  %v5896_v56 = vmul.f32 %v7371_v2, %v11490_v58  ;;  %v5897_v11 = vmul.f32 %v7371_v2, %v11493_v44 }
 0x9b0   :  { %v5883_v1 = vadd.f32 1e-05, %v5879_v42  ;;  %v5967_v20 = vadd.f32 %v12233_v12, %v5931_v60  ;;  %v5960_v13 = vadd.f32 %v12234_v48, %v5924_v46  ;;  %v6025_v58 = vsel %vm577_vm1, %v5962_v35, -inf }
 0x9b1   :  { %v5934_v10 = vmul.f32 %v12228_v41, %v5898_v55  ;;  %v5935_v51 = vmul.f32 %v12229_v54, %v5899_v63  ;;  %v6032_v44 = vsel %vm577_vm1, %v5963_v21, -inf  ;;  %v5933_v49 = vmul.f32 %v12227_v8, %v5897_v11 }
 0x9b2   :  { %7372 = vrsqrt.f32 %v5883_v1  ;;  %v5932_v19 = vmul.f32 %v12231_v53, %v5896_v56  ;;  %v6033_v57 = vsel %vm577_vm1, %v5967_v20, -inf  ;;  %v5998_v29 = vsel %vm577_vm1, %v5967_v20, 0.0 }
 0x9b3   :  { %v5970_v39 = vadd.f32 %v12232_v28, %v5934_v10  ;;  %v5971_v38 = vadd.f32 %v12233_v12, %v5935_v51  ;;  %v6027_v23 = vmax.f32 %v6025_v58, %v6026_v31  ;;  %v6011_v7 = vsel %vm577_vm1, %v5960_v13, -inf }
 0x9b4   :  { %v5976_v16 = vsel %vm577_vm1, %v5960_v13, 0.0  ;;  %v5969_v26 = vadd.f32 %v12230_v14, %v5933_v49  ;;  %v6034_v18 = vmax.f32 %v6032_v44, %v6033_v57  ;;  %v5968_v61 = vadd.f32 %v12234_v48, %v5932_v19 }
 0x9b5   :  { %v6020_v42 = vmax.f32 %v6018_v59, %v6019_v47  ;;  %v5999_v33 = vadd.f32 %v5998_v29, %v5997_v15  ;;  %v6013_v2 = vmax.f32 %v6011_v7, %v6012_v62  ;;  %v5978_v1 = vadd.f32 %v5977_v6, %v5976_v16  ;;  %v6548_v7 = vld [vmem:[%s11644_s14 + $0x4] sm:$0xf]  ;;  %v6041_v16 = vld [vmem:[%s11644_s14] sm:$0xf] }
 0x9b6   :  { %v6028_v0 = vsel %vm577_vm1, %v5970_v39, -inf  ;;  %v6035_v36 = vsel %vm577_vm1, %v5971_v38, -inf  ;;  %v5993_v43 = vsel %vm577_vm1, %v5970_v39, 0.0  ;;  %v6000_v34 = vsel %vm577_vm1, %v5971_v38, 0.0 }
 0x9b7   :  { %v5986_v52 = vsel %vm577_vm1, %v5969_v26, 0.0  ;;  %v6014_v35 = vsel %vm577_vm1, %v5968_v61, -inf  ;;  %v6021_v21 = vsel %vm577_vm1, %v5969_v26, -inf  ;;  %v5979_v32 = vsel %vm577_vm1, %v5968_v61, 0.0 }
 0x9b8   :  { %v6029_v30 = vmax.f32 %v6027_v23, %v6028_v0  ;;  %v5994_v37 = vadd.f32 %v5993_v43, %v5992_v22  ;;  %v6015_v51 = vmax.f32 %v6013_v2, %v6014_v35  ;;  %v5980_v25 = vadd.f32 %v5979_v32, %v5978_v1 }
 0x9bf   :  { %v7373_v17 = vpop.eup %7372 }
 0x9c0   :  { %v5901_v60 = vmul.f32 %v7373_v17, %v11514_v3  ;;  %v5902_v46 = vmul.f32 %v7373_v17, %v11516_v27  ;;  %v5903_v55 = vmul.f32 %v7373_v17, %v11518_v40  ;;  %v5900_v63 = vmul.f32 %v7373_v17, %v11512_v24 }
 0x9c1   :  { %v6036_v40 = vmax.f32 %v6034_v18, %v6035_v36  ;;  %v6001_v24 = vadd.f32 %v6000_v34, %v5999_v33 }
 0x9c2   :  { %v5937_v56 = vmul.f32 %v12227_v8, %v5901_v60  ;;  %v5938_v11 = vmul.f32 %v12228_v41, %v5902_v46  ;;  %v5939_v3 = vmul.f32 %v12229_v54, %v5903_v55  ;;  %v5936_v27 = vmul.f32 %v12231_v53, %v5900_v63 }
 0x9c3   :  { %v6022_v8 = vmax.f32 %v6020_v42, %v6021_v21  ;;  %v5987_v41 = vadd.f32 %v5986_v52, %v5985_v50  ;;  %v6134_v42 = vpop.permute.xlu1 %6133 }
 0x9c4   :  { %v5973_v20 = vadd.f32 %v12230_v14, %v5937_v56  ;;  %v5974_v13 = vadd.f32 %v12232_v28, %v5938_v11  ;;  %v5975_v59 = vadd.f32 %v12233_v12, %v5939_v3  ;;  %v5972_v10 = vadd.f32 %v12234_v48, %v5936_v27 }
 0x9c6   :  { %v6030_v54 = vsel %vm577_vm1, %v5974_v13, -inf  ;;  %v6037_v53 = vsel %vm577_vm1, %v5975_v59, -inf  ;;  %v5995_v58 = vsel %vm577_vm1, %v5974_v13, 0.0  ;;  %v6002_v44 = vsel %vm577_vm1, %v5975_v59, 0.0 }
 0x9c7   :  { %v6031_v4 = vmax.f32 %v6029_v30, %v6030_v54  ;;  %v6038_v14 = vmax.f32 %v6036_v40, %v6037_v53  ;;  %v5996_v15 = vadd.f32 %v5995_v58, %v5994_v37  ;;  %v6003_v28 = vadd.f32 %v6002_v44, %v6001_v24 }
 0x9c8   :  { %v6016_v12 = vsel %vm577_vm1, %v5972_v10, -inf  ;;  %v6023_v48 = vsel %vm577_vm1, %v5973_v20, -inf  ;;  %v5981_v5 = vsel %vm577_vm1, %v5972_v10, 0.0  ;;  %v5988_v49 = vsel %vm577_vm1, %v5973_v20, 0.0 }
 0x9c9   :  { %v6040_v31 = vpack.c.bf16 %v6038_v14, %v6031_v4  ;;  %v6007_v19 = vmul.f32 0.25, %v5996_v15  ;;  %v6008_v47 = vmul.f32 0.25, %v6003_v28  ;;  %v6017_v57 = vmax.f32 %v6015_v51, %v6016_v12 }
 0x9ca   :  { %v6024_v45 = vmax.f32 %v6022_v8, %v6023_v48  ;;  %v5982_v29 = vadd.f32 %v5981_v5, %v5980_v25  ;;  %v5989_v39 = vadd.f32 %v5988_v49, %v5987_v41 }
 0x9cb   :  { %7134 = vmatpush3.bf16.msra.mxu0 %v6040_v31  ;;  %v6010_v38 = vpack.c.bf16 %v6008_v47, %v6007_v19 }
 0x9cc   :  { %7135 = vmatprep.subr.bf16.mxu0 %v7393_v9  ;;  %v6005_v62 = vmul.f32 0.25, %v5982_v29  ;;  %v6006_v6 = vmul.f32 0.25, %v5989_v39  ;;  %v6039_v50 = vpack.c.bf16 %v6024_v45, %v6017_v57 }
 0x9cd   :  { %7142 = vmatpush3.bf16.msra.mxu1 %v6010_v38 }
 0x9ce   :  { %7143 = vmatprep.subr.bf16.mxu1 %v7393_v9  ;;  %v6009_v23 = vpack.c.bf16 %v6006_v6, %v6005_v62 }
 0x9cf   :  { %7136 = vmatpush3.bf16.msra.mxu0 %v6039_v50 }
 0x9d1   :  { %7144 = vmatpush3.bf16.msra.mxu1 %v6009_v23 }
 0x9d2   :  { %7138 = vmatmul.mubr.msk.bf16.vlgmr.msra.gmra.mxu0 %vm202_vm0, %v6548_v7 }
 0x9d4   :  { %7146 = vmatmul.mubr.msk.bf16.vlgmr.msra.gmra.mxu1 %vm202_vm0, %v6041_v16 }
 0xa92   :  { %v6081_v26 = vpop.f32.mrf.mxu0 }
 0xa94   :  { %v6124_v18 = vpop.f32.mrf.mxu1  ;;  %v7139_v61 = vpop.f32.mrf.mxu0 }
 0xa95   :  { %v6125_v9 = vadd.f32 %v6124_v18, %v6081_v26 }
 0xa96   :  { %v7147_v22 = vpop.f32.mrf.mxu1  ;;  %v6084_v33 = vpop.f32.mrf.mxu0 }
 0xa97   :  { %v6136_v2 = vadd.f32 %v6134_v42, %v6125_v9 }
 0xa98   :  { %v6127_v1 = vpop.f32.mrf.mxu1  ;;  %v7140_v17 = vpop.f32.mrf.mxu0 }
 0xa99   :  { %6330 = vst.msk [vmem:[%s11641_s18] sm:$0xff] %vm577_vm1, %v6136_v2 }
 0xa9a   :  { %v7148_v0 = vpop.f32.mrf.mxu1 }

</bundles_post_ra>
